<compile_context>
chip_gen: v5e
topology: v5e:2x2
jax: 0.10.0
libtpu: 0.0.40
codegen_flags: <defaults>
</compile_context>

<pallas_src>
import functools

import jax
import jax.numpy as jnp
from jax import lax
from jax.experimental import pallas as pl
from jax.experimental.pallas import tpu as pltpu

EPS_BN = 1e-5
EPS_GN = 1e-5

# Explicit VMEM budget: keeps the fused-depth kernel viable on v7x (64 MiB
# physical) while leaving headroom for Mosaic's internal scratch.
_VMEM_LIMIT = 48 * 1024 * 1024


# --------------------------------------------------------------------------
# In-kernel helpers
# --------------------------------------------------------------------------

def _mm(a, w):
    """MXU matmul: f32 activation cast to bf16, bf16 weight, f32 accumulate."""
    return jnp.dot(a.astype(jnp.bfloat16), w, preferred_element_type=jnp.float32)


def _dw3x3(pad_ref, x, w_ref, b_ref, H, W, relu=False):
    """Depthwise 3x3 conv (padding=1) on an in-VMEM value.

    pad_ref : VMEM scratch (H+2, W+9, C).  Data lives at rows [1, H], columns
    [8, 8+W) so the interior store is sublane-aligned; the zero halo is rows
    {0, H+1} and columns {7, 8+W}.  Only the halo is zeroed (columns 0..6 are
    never read), and the accumulator is seeded with the center tap straight
    from the in-register value, so no full-scratch zero-fill is paid.
    w_ref : (1, 3, 3, C) ref,  b_ref : (1, 1, C) ref.
    """
    C = x.shape[-1]
    zero_row = jnp.zeros((1, W + 2, C), jnp.float32)
    zero_col = jnp.zeros((H, 1, C), jnp.float32)
    pad_ref[pl.ds(0, 1), pl.ds(7, W + 2), :] = zero_row          # top halo row
    pad_ref[pl.ds(H + 1, 1), pl.ds(7, W + 2), :] = zero_row      # bottom halo row
    pad_ref[pl.ds(1, H), pl.ds(7, 1), :] = zero_col              # left halo col
    pad_ref[pl.ds(1, H), pl.ds(8 + W, 1), :] = zero_col          # right halo col
    pad_ref[pl.ds(1, H), pl.ds(8, W), :] = x                     # interior

    acc = x * w_ref[0, 1, 1, :]                                  # center tap
    for kh in range(3):
        for kw in range(3):
            if kh == 1 and kw == 1:
                continue
            acc = acc + pad_ref[pl.ds(kh, H), pl.ds(7 + kw, W), :] * w_ref[0, kh, kw, :]
    y = acc + b_ref[0]
    if relu:
        y = jnp.maximum(y, 0.0)
    return y


# --------------------------------------------------------------------------
# Fused stage kernel: ALL BasicBlocks in one pallas_call, grid = (B, depth)
#   each block:  Residual(dw3x3) -> Residual(SHSA) -> Residual(FFN)
# --------------------------------------------------------------------------

def _blocks_kernel(*refs, H, W, C, qk_dim, pdim, has_attn):
    if has_attn:
        (x_ref, cw, cb, gnw, gnb, wqkv, bqkv, wp, bp,
         w1, b1, w2, b2, o_ref, act_ref, pad_ref) = refs
    else:
        (x_ref, cw, cb, w1, b1, w2, b2, o_ref, act_ref, pad_ref) = refs

    d = pl.program_id(1)

    @pl.when(d == 0)
    def _():                                   # seed resident f32 activation
        act_ref[...] = x_ref[0].astype(jnp.float32)

    x = act_ref[...]                                        # (H, W, C) f32
    x = x + _dw3x3(pad_ref, x, cw, cb, H, W)                # Residual(dw3x3 + BN)
    xf = x.reshape(H * W, C)                                # (N, C)

    if has_attn:                                            # Residual(SHSA)
        x1 = xf[:, :pdim]
        mu = jnp.mean(x1)                                   # GroupNorm(1, pdim)
        var = jnp.mean(jnp.square(x1 - mu))
        xn = (x1 - mu) * lax.rsqrt(var + EPS_GN) * gnw[0] + gnb[0]
        qkv = _mm(xn, wqkv[0]) + bqkv[0]                    # fused q|k|v matmul
        q = qkv[:, :qk_dim]                                 # scale folded into wqkv
        k = qkv[:, qk_dim:2 * qk_dim]
        v = qkv[:, 2 * qk_dim:]
        attn = lax.dot_general(q.astype(jnp.bfloat16), k.astype(jnp.bfloat16),
                               (((1,), (1,)), ((), ())),
                               preferred_element_type=jnp.float32)
        # TODO(synk): flash-style (query-tiled) softmax for stages with H*W >~ 1-2k
        # to respect v7x's 64 MiB VMEM; at SHViT stage resolutions N is small.
        attn = attn - jnp.max(attn, axis=-1, keepdims=True)
        p = jnp.exp(attn)
        p = p * pl.reciprocal(jnp.sum(p, axis=-1, keepdims=True), approx=True)
        a = jnp.dot(p.astype(jnp.bfloat16), v.astype(jnp.bfloat16),
                    preferred_element_type=jnp.float32)      # (N, pdim)
        # proj = ReLU -> 1x1 conv, split over [attn_out | passthrough] rows of wp
        # so no lane-concatenate is needed.
        proj = (_mm(jnp.maximum(a, 0.0), wp[0, pl.ds(0, pdim), :]) +
                _mm(jnp.maximum(xf[:, pdim:], 0.0), wp[0, pl.ds(pdim, C - pdim), :]) +
                bp[0])
        xf = xf + proj

    h = jnp.maximum(_mm(xf, w1[0]) + b1[0], 0.0)            # Residual(FFN)
    xf = xf + _mm(h, w2[0]) + b2[0]
    act_ref[...] = xf.reshape(H, W, C)

    @pl.when(d == pl.num_programs(1) - 1)
    def _():                                   # single bf16 writeback per sample
        o_ref[0] = act_ref[...].astype(jnp.bfloat16)


# --------------------------------------------------------------------------
# Fused downsample kernels (split only at the stride-2 / SE boundary)
# --------------------------------------------------------------------------

def _ds_a_kernel(x_ref, dw1w, dw1b, f1w1, f1b1, f1w2, f1b2,
                 pmw1, pmb1, pmdww, pmdwb,
                 y_ref, mean_ref, pad_in, pad_hid, *, H, W, Cin, hid):
    H2, W2 = H // 2, W // 2
    x = x_ref[0].astype(jnp.float32)                         # (H, W, Cin)
    x = x + _dw3x3(pad_in, x, dw1w, dw1b, H, W)              # Residual(dw3x3 + BN)
    xf = x.reshape(H * W, Cin)
    h = jnp.maximum(_mm(xf, f1w1[...]) + f1b1[...], 0.0)     # Residual(FFN)
    xf = xf + _mm(h, f1w2[...]) + f1b2[...]
    hh = jnp.maximum(_mm(xf, pmw1[...]) + pmb1[...], 0.0)    # PM conv1 + act1
    # PM conv2 (dw3x3 stride 2 pad 1) + act2 == stride-1 conv sampled at even
    # positions (valid for even H, W).  Even ROWS are selected in VMEM here.
    y_full = _dw3x3(pad_hid, hh.reshape(H, W, hid), pmdww, pmdwb, H, W, relu=True)
    y_er = y_full.reshape(H2, 2, W, hid)[:, 0]               # even rows (H2, W, hid)
    y_ref[0] = y_er.astype(jnp.bfloat16)
    # SqueezeExcite spatial mean over the stride-2 grid (even rows AND even cols),
    # emitted as a second tiny output so XLA never re-reads the activation.
    col_even = (lax.broadcasted_iota(jnp.int32, (1, W, 1), 1) % 2) == 0
    se_sum = jnp.sum(jnp.where(col_even, y_er, 0.0), axis=(0, 1))     # (hid,)
    mean_ref[0] = (se_sum * (1.0 / (H2 * W2))).reshape(1, hid)


def _ds_b_kernel(y_ref, gate_ref, pmw3, pmb3, dw2w, dw2b,
                 f2w1, f2b1, f2w2, f2b2, o_ref, pad_ref, *, H2, W2, hid, dim):
    hf = y_ref[0].astype(jnp.float32).reshape(H2 * W2, hid) * gate_ref[0]   # SE scale
    xf = _mm(hf, pmw3[...]) + pmb3[...]                      # PM conv3
    x = xf.reshape(H2, W2, dim)
    x = x + _dw3x3(pad_ref, x, dw2w, dw2b, H2, W2)           # Residual(dw3x3 + BN)
    xf = x.reshape(H2 * W2, dim)
    h = jnp.maximum(_mm(xf, f2w1[...]) + f2b1[...], 0.0)     # Residual(FFN)
    xf = xf + _mm(h, f2w2[...]) + f2b2[...]
    o_ref[0] = xf.reshape(H2, W2, dim).astype(jnp.bfloat16)


# --------------------------------------------------------------------------
# Wrappers (pallas_call plumbing)
# --------------------------------------------------------------------------

def _const_spec(a):
    """Full-array block whose index never changes over the grid."""
    return pl.BlockSpec(tuple(a.shape), lambda b, _n=a.ndim: (0,) * _n)


def _stacked_spec(a):
    """Per-block slice of a weight stacked along a leading depth axis."""
    return pl.BlockSpec((1,) + tuple(a.shape[1:]),
                        lambda b, d, _n=a.ndim - 1: (d,) + (0,) * _n)


def blocks_forward(x, bp, qk_dim, pdim, typ):
    B, H, W, C = x.shape
    depth = bp['conv_w'].shape[0]
    has_attn = (typ == 's')

    args = [bp['conv_w'], bp['conv_b']]
    if has_attn:
        args += [bp['gn_w'], bp['gn_b'], bp['wqkv'], bp['bqkv'], bp['wp'], bp['bp']]
    args += [bp['w1'], bp['b1'], bp['w2'], bp['b2']]

    kern = functools.partial(_blocks_kernel, H=H, W=W, C=C,
                             qk_dim=qk_dim, pdim=pdim, has_attn=has_attn)
    return pl.pallas_call(
        kern,
        out_shape=jax.ShapeDtypeStruct((B, H, W, C), jnp.bfloat16),
        grid=(B, depth),
        in_specs=[pl.BlockSpec((1, H, W, C), lambda b, d: (b, 0, 0, 0))]
                 + [_stacked_spec(a) for a in args],
        out_specs=pl.BlockSpec((1, H, W, C), lambda b, d: (b, 0, 0, 0)),
        scratch_shapes=[pltpu.VMEM((H, W, C), jnp.float32),          # resident act
                        pltpu.VMEM((H + 2, W + 9, C), jnp.float32)], # dw halo pad
        compiler_params=pltpu.CompilerParams(
            dimension_semantics=("parallel", "arbitrary"),
            vmem_limit_bytes=_VMEM_LIMIT),
    )(x, *args)


def downsample_forward(x, p):
    B, H, W, Cin = x.shape
    assert H % 2 == 0 and W % 2 == 0, "stride-2 PatchMerging needs even H, W"
    pm = p['pm']
    hid = pm['w2'].shape[-1]
    dim = pm['w3'].shape[-1]
    H2, W2 = H // 2, W // 2
    f1, f2 = p['ffn1'], p['ffn2']

    # -- fused A: Residual(dw) -> Residual(FFN) -> PM.conv1+act
    #             -> PM.conv2(+act, even rows) -> SE spatial mean
    a_args = [p['dw1_w'], p['dw1_b'], f1['w1'], f1['b1'], f1['w2'], f1['b2'],
              pm['w1'], pm['b1'], pm['w2'], pm['b2']]
    y_er, se_mean = pl.pallas_call(
        functools.partial(_ds_a_kernel, H=H, W=W, Cin=Cin, hid=hid),
        out_shape=(jax.ShapeDtypeStruct((B, H2, W, hid), jnp.bfloat16),
                   jax.ShapeDtypeStruct((B, 1, hid), jnp.float32)),
        grid=(B,),
        in_specs=[pl.BlockSpec((1, H, W, Cin), lambda b: (b, 0, 0, 0))]
                 + [_const_spec(a) for a in a_args],
        out_specs=(pl.BlockSpec((1, H2, W, hid), lambda b: (b, 0, 0, 0)),
                   pl.BlockSpec((1, 1, hid), lambda b: (b, 0, 0))),
        scratch_shapes=[pltpu.VMEM((H + 2, W + 9, Cin), jnp.float32),
                        pltpu.VMEM((H + 2, W + 9, hid), jnp.float32)],
        compiler_params=pltpu.CompilerParams(
            dimension_semantics=("parallel",), vmem_limit_bytes=_VMEM_LIMIT),
    )(x, *a_args)

    # Even-column half of the stride-2 subsample: tiny bf16 slice in XLA.
    # TODO(synk): fold this into ds_a with strided pl.ds loads once verified on
    # the target toolchain; even rows + the SE mean are already folded.
    y = y_er[:, :, ::2, :]

    # SqueezeExcite gate: two (B, hid) FCs + sigmoid on the kernel-provided mean
    # -- far smaller than a kernel launch, stays in XLA on purpose.
    s = jnp.maximum(jnp.dot(se_mean[:, 0, :], pm['se_w1']) + pm['se_b1'], 0.0)
    gate = jax.nn.sigmoid(jnp.dot(s, pm['se_w2']) + pm['se_b2'])
    gate = gate.reshape(B, 1, hid)

    # -- fused B: SE scale -> PM.conv3 -> Residual(dw) -> Residual(FFN)
    b_args = [pm['w3'], pm['b3'], p['dw2_w'], p['dw2_b'],
              f2['w1'], f2['b1'], f2['w2'], f2['b2']]
    out = pl.pallas_call(
        functools.partial(_ds_b_kernel, H2=H2, W2=W2, hid=hid, dim=dim),
        out_shape=jax.ShapeDtypeStruct((B, H2, W2, dim), jnp.bfloat16),
        grid=(B,),
        in_specs=[pl.BlockSpec((1, H2, W2, hid), lambda b: (b, 0, 0, 0)),
                  pl.BlockSpec((1, 1, hid), lambda b: (b, 0, 0))]
                 + [_const_spec(a) for a in b_args],
        out_specs=pl.BlockSpec((1, H2, W2, dim), lambda b: (b, 0, 0, 0)),
        scratch_shapes=[pltpu.VMEM((H2 + 2, W2 + 9, dim), jnp.float32)],
        compiler_params=pltpu.CompilerParams(
            dimension_semantics=("parallel",), vmem_limit_bytes=_VMEM_LIMIT),
    )(y, gate, *b_args)
    return out


def stage_block_forward(x_nchw, params, qk_dim, pdim, typ):
    # NCHW -> NHWC + bf16 kernel I/O.  (A full model would stay NHWC end-to-end.)
    x = jnp.transpose(x_nchw, (0, 2, 3, 1)).astype(jnp.bfloat16)
    if params['downsample'] is not None:
        x = downsample_forward(x, params['downsample'])
    if params['blocks'] is not None:
        x = blocks_forward(x, params['blocks'], qk_dim, pdim, typ)
    return jnp.transpose(x, (0, 3, 1, 2)).astype(jnp.float32)    # NHWC -> NCHW


# --------------------------------------------------------------------------
# Deterministic parameter initialization (Conv2d + eval-mode BN folded)
# --------------------------------------------------------------------------

def make_divisible(v, divisor=8, min_value=None, round_limit=0.9):
    min_value = min_value or divisor
    new_v = max(min_value, int(v + divisor / 2) // divisor * divisor)
    if new_v < round_limit * v:
        new_v += divisor
    return new_v


def _bn_fold(key, cout):
    k1, k2, k3, k4 = jax.random.split(key, 4)
    gamma = 1.0 + 0.1 * jax.random.normal(k1, (cout,))
    beta = 0.1 * jax.random.normal(k2, (cout,))
    rmean = 0.1 * jax.random.normal(k3, (cout,))
    rvar = 1.0 + 0.1 * jax.random.uniform(k4, (cout,))
    scale = gamma / jnp.sqrt(rvar + EPS_BN)
    return scale, beta - rmean * scale


def make_pw(key, cin, cout):
    kw, kb = jax.random.split(key)
    w = 0.05 * jax.random.normal(kw, (cout, cin))            # torch weight (cout,cin,1,1)
    scale, bias = _bn_fold(kb, cout)
    return (w * scale[:, None]).T, bias                      # (cin, cout), (cout,)


def make_dw(key, c):
    kw, kb = jax.random.split(key)
    w = 0.05 * jax.random.normal(kw, (c, 3, 3))              # torch dw weight (c,1,3,3)
    scale, bias = _bn_fold(kb, c)
    return jnp.transpose(w * scale[:, None, None], (1, 2, 0)), bias   # (3,3,c), (c,)


def make_se(key, c, rd):
    k1, k2, k3, k4 = jax.random.split(key, 4)
    w1 = 0.05 * jax.random.normal(k1, (rd, c))
    b1 = 0.05 * jax.random.normal(k2, (rd,))
    w2 = 0.05 * jax.random.normal(k3, (c, rd))
    b2 = 0.05 * jax.random.normal(k4, (c,))
    return w1.T, b1, w2.T, b2                                # f32, used in XLA


def init_ffn(key, dim):
    k1, k2 = jax.random.split(key)
    w1, b1 = make_pw(k1, dim, int(dim * 2))
    w2, b2 = make_pw(k2, int(dim * 2), dim)
    return dict(w1=w1.astype(jnp.bfloat16), b1=b1.reshape(1, -1),
                w2=w2.astype(jnp.bfloat16), b2=b2.reshape(1, -1))


def init_shsa(key, dim, qk_dim, pdim):
    k1, k1b, k2, k3 = jax.random.split(key, 4)
    gn_w = 1.0 + 0.1 * jax.random.normal(k1, (pdim,))
    gn_b = 0.1 * jax.random.normal(k1b, (pdim,))
    wqkv, bqkv = make_pw(k2, pdim, 2 * qk_dim + pdim)        # fused q|k|v weight
    # Fold the attention scale into the q-columns (math-equivalent, removes the
    # (N,N) f32 multiply inside the kernel's softmax phase).
    scale = float(qk_dim) ** -0.5
    col_scale = jnp.concatenate([jnp.full((qk_dim,), scale, jnp.float32),
                                 jnp.ones((qk_dim + pdim,), jnp.float32)])
    wqkv = wqkv * col_scale[None, :]
    bqkv = bqkv * col_scale
    wp, bp = make_pw(k3, dim, dim)
    return dict(gn_w=gn_w.reshape(1, pdim), gn_b=gn_b.reshape(1, pdim),
                wqkv=wqkv.astype(jnp.bfloat16), bqkv=bqkv.reshape(1, -1),
                wp=wp.astype(jnp.bfloat16), bp=bp.reshape(1, -1))


def init_basic_block(key, dim, qk_dim, pdim, typ):
    k1, k2, k3 = jax.random.split(key, 3)
    cw, cb = make_dw(k1, dim)
    p = dict(conv_w=cw, conv_b=cb.reshape(1, dim), ffn=init_ffn(k3, dim))
    if typ == 's':
        p['shsa'] = init_shsa(k2, dim, qk_dim, pdim)
    return p


def _stack_blocks(per, typ):
    """Stack per-block params along a leading depth axis for the fused kernel."""
    def stk(get):
        return jnp.stack([get(p) for p in per], axis=0)
    out = dict(
        conv_w=stk(lambda p: p['conv_w']),                   # (depth, 3, 3, C)
        conv_b=stk(lambda p: p['conv_b']),                   # (depth, 1, C)
        w1=stk(lambda p: p['ffn']['w1']), b1=stk(lambda p: p['ffn']['b1']),
        w2=stk(lambda p: p['ffn']['w2']), b2=stk(lambda p: p['ffn']['b2']),
    )
    if typ == 's':
        out.update(
            gn_w=stk(lambda p: p['shsa']['gn_w']), gn_b=stk(lambda p: p['shsa']['gn_b']),
            wqkv=stk(lambda p: p['shsa']['wqkv']), bqkv=stk(lambda p: p['shsa']['bqkv']),
            wp=stk(lambda p: p['shsa']['wp']), bp=stk(lambda p: p['shsa']['bp']))
    return out


def init_patch_merging(key, dim, out_dim):
    hid = int(dim * 4)
    rd = make_divisible(hid * 0.25, 8, round_limit=0.0)
    k1, k2, k3, k4 = jax.random.split(key, 4)
    w1, b1 = make_pw(k1, dim, hid)
    w2, b2 = make_dw(k2, hid)
    se_w1, se_b1, se_w2, se_b2 = make_se(k3, hid, rd)
    w3, b3 = make_pw(k4, hid, out_dim)
    return dict(w1=w1.astype(jnp.bfloat16), b1=b1.reshape(1, -1),
                w2=w2[None], b2=b2.reshape(1, 1, hid),
                se_w1=se_w1, se_b1=se_b1, se_w2=se_w2, se_b2=se_b2,
                w3=w3.astype(jnp.bfloat16), b3=b3.reshape(1, -1))


def init_downsample(key, prev_dim, dim):
    k1, k2, k3, k4, k5 = jax.random.split(key, 5)
    dw1_w, dw1_b = make_dw(k1, prev_dim)
    dw2_w, dw2_b = make_dw(k4, dim)
    return dict(dw1_w=dw1_w[None], dw1_b=dw1_b.reshape(1, 1, prev_dim),
                ffn1=init_ffn(k2, prev_dim),
                pm=init_patch_merging(k3, prev_dim, dim),
                dw2_w=dw2_w[None], dw2_b=dw2_b.reshape(1, 1, dim),
                ffn2=init_ffn(k5, dim))


def init_stage_block(key, prev_dim, dim, qk_dim, pdim, typ, depth):
    keys = jax.random.split(key, depth + 1)
    ds = init_downsample(keys[0], prev_dim, dim) if prev_dim != dim else None
    per = [init_basic_block(keys[i + 1], dim, qk_dim, pdim, typ) for i in range(depth)]
    blocks = _stack_blocks(per, typ) if depth > 0 else None
    return dict(downsample=ds, blocks=blocks)


# --------------------------------------------------------------------------

if __name__ == "__main__":
    B, prev_dim, dim, qk_dim, pdim, depth = 2, 32, 64, 16, 32, 2
    H = W = 16
    key = jax.random.PRNGKey(0)
    kx, kp = jax.random.split(key)

    x = jax.random.normal(kx, (B, prev_dim, H, W), jnp.float32)   # NCHW, like PyTorch
    params = init_stage_block(kp, prev_dim, dim, qk_dim, pdim, 's', depth)

    fwd = jax.jit(functools.partial(stage_block_forward,
                                    qk_dim=qk_dim, pdim=pdim, typ='s'))
    y = fwd(x, params)
    y = jax.block_until_ready(y)

    assert y.shape == (B, dim, H // 2, W // 2), y.shape
    assert bool(jnp.all(jnp.isfinite(y)))
    print("KERNEL_OK")
</pallas_src>

<mosaic_0001>
module attributes {stable_mosaic.version = 11 : i64} {
  func.func @_ds_a_kernel(%arg0: i32, %arg1: memref<1x16x16x32xbf16, #tpu.memory_space<vmem>>, %arg2: memref<1x3x3x32xf32, #tpu.memory_space<vmem>>, %arg3: memref<1x1x32xf32, #tpu.memory_space<vmem>>, %arg4: memref<32x64xbf16, #tpu.memory_space<vmem>>, %arg5: memref<1x64xf32, #tpu.memory_space<vmem>>, %arg6: memref<64x32xbf16, #tpu.memory_space<vmem>>, %arg7: memref<1x32xf32, #tpu.memory_space<vmem>>, %arg8: memref<32x128xbf16, #tpu.memory_space<vmem>>, %arg9: memref<1x128xf32, #tpu.memory_space<vmem>>, %arg10: memref<1x3x3x128xf32, #tpu.memory_space<vmem>>, %arg11: memref<1x1x128xf32, #tpu.memory_space<vmem>>, %arg12: memref<1x8x16x128xbf16, #tpu.memory_space<vmem>>, %arg13: memref<1x1x128xf32, #tpu.memory_space<vmem>>, %arg14: memref<18x25x32xf32, #tpu.memory_space<vmem>>, %arg15: memref<18x25x128xf32, #tpu.memory_space<vmem>>) attributes {dimension_semantics = [#tpu.dimension_semantics<parallel>], iteration_bounds = array<i64: 2>, scalar_prefetch = 0 : i64, scratch_operands = 2 : i64, tpu.core_type = #tpu.core_type<tc>, window_params = [{transform_indices = @transform_0, window_bounds = array<i64: 1, 16, 16, 32>}, {pipeline_mode = #tpu.pipeline_mode<synchronous>, transform_indices = @transform_1, window_bounds = array<i64: 1, 3, 3, 32>}, {pipeline_mode = #tpu.pipeline_mode<synchronous>, transform_indices = @transform_2, window_bounds = array<i64: 1, 1, 32>}, {pipeline_mode = #tpu.pipeline_mode<synchronous>, transform_indices = @transform_3, window_bounds = array<i64: 32, 64>}, {pipeline_mode = #tpu.pipeline_mode<synchronous>, transform_indices = @transform_4, window_bounds = array<i64: 1, 64>}, {pipeline_mode = #tpu.pipeline_mode<synchronous>, transform_indices = @transform_5, window_bounds = array<i64: 64, 32>}, {pipeline_mode = #tpu.pipeline_mode<synchronous>, transform_indices = @transform_6, window_bounds = array<i64: 1, 32>}, {pipeline_mode = #tpu.pipeline_mode<synchronous>, transform_indices = @transform_7, window_bounds = array<i64: 32, 128>}, {pipeline_mode = #tpu.pipeline_mode<synchronous>, transform_indices = @transform_8, window_bounds = array<i64: 1, 128>}, {pipeline_mode = #tpu.pipeline_mode<synchronous>, transform_indices = @transform_9, window_bounds = array<i64: 1, 3, 3, 128>}, {pipeline_mode = #tpu.pipeline_mode<synchronous>, transform_indices = @transform_10, window_bounds = array<i64: 1, 1, 128>}, {transform_indices = @transform_11, window_bounds = array<i64: 1, 8, 16, 128>}, {transform_indices = @transform_12, window_bounds = array<i64: 1, 1, 128>}]} {
    %c0 = arith.constant 0 : index
    %c0_0 = arith.constant 0 : index
    %c0_1 = arith.constant 0 : index
    %c0_2 = arith.constant 0 : index
    %0 = vector.load %arg1[%c0, %c0_0, %c0_1, %c0_2] : memref<1x16x16x32xbf16, #tpu.memory_space<vmem>>, vector<1x16x16x32xbf16>
    %1 = vector.shape_cast %0 : vector<1x16x16x32xbf16> to vector<16x16x32xbf16>
    %2 = arith.extf %1 : vector<16x16x32xbf16> to vector<16x16x32xf32>
    %cst = arith.constant 0.000000e+00 : f32
    %3 = vector.broadcast %cst : f32 to vector<1x18x32xf32>
    %cst_3 = arith.constant 0.000000e+00 : f32
    %4 = vector.broadcast %cst_3 : f32 to vector<16x1x32xf32>
    %c0_4 = arith.constant 0 : index
    %c7 = arith.constant 7 : index
    %c0_5 = arith.constant 0 : index
    %5 = vector.load %arg14[%c0_4, %c7, %c0_5] : memref<18x25x32xf32, #tpu.memory_space<vmem>>, vector<1x18x32xf32>
    tpu.vector_store %arg14[%c0_4, %c7, %c0_5], %3 {strides = array<i32>} : memref<18x25x32xf32, #tpu.memory_space<vmem>>, vector<1x18x32xf32>,
    %c17 = arith.constant 17 : index
    %c7_6 = arith.constant 7 : index
    %c0_7 = arith.constant 0 : index
    %6 = vector.load %arg14[%c17, %c7_6, %c0_7] : memref<18x25x32xf32, #tpu.memory_space<vmem>>, vector<1x18x32xf32>
    tpu.vector_store %arg14[%c17, %c7_6, %c0_7], %3 {strides = array<i32>} : memref<18x25x32xf32, #tpu.memory_space<vmem>>, vector<1x18x32xf32>,
    %c1 = arith.constant 1 : index
    %c7_8 = arith.constant 7 : index
    %c0_9 = arith.constant 0 : index
    %7 = vector.load %arg14[%c1, %c7_8, %c0_9] : memref<18x25x32xf32, #tpu.memory_space<vmem>>, vector<16x1x32xf32>
    tpu.vector_store %arg14[%c1, %c7_8, %c0_9], %4 {strides = array<i32>} : memref<18x25x32xf32, #tpu.memory_space<vmem>>, vector<16x1x32xf32>,
    %c1_10 = arith.constant 1 : index
    %c24 = arith.constant 24 : index
    %c0_11 = arith.constant 0 : index
    %8 = vector.load %arg14[%c1_10, %c24, %c0_11] : memref<18x25x32xf32, #tpu.memory_space<vmem>>, vector<16x1x32xf32>
    tpu.vector_store %arg14[%c1_10, %c24, %c0_11], %4 {strides = array<i32>} : memref<18x25x32xf32, #tpu.memory_space<vmem>>, vector<16x1x32xf32>,
    %c1_12 = arith.constant 1 : index
    %c8 = arith.constant 8 : index
    %c0_13 = arith.constant 0 : index
    %9 = vector.load %arg14[%c1_12, %c8, %c0_13] : memref<18x25x32xf32, #tpu.memory_space<vmem>>, vector<16x16x32xf32>
    tpu.vector_store %arg14[%c1_12, %c8, %c0_13], %2 {strides = array<i32>} : memref<18x25x32xf32, #tpu.memory_space<vmem>>, vector<16x16x32xf32>,
    %c0_14 = arith.constant 0 : index
    %c1_15 = arith.constant 1 : index
    %c1_16 = arith.constant 1 : index
    %c0_17 = arith.constant 0 : index
    %10 = vector.load %arg2[%c0_14, %c1_15, %c1_16, %c0_17] : memref<1x3x3x32xf32, #tpu.memory_space<vmem>>, vector<1x1x1x32xf32>
    %11 = vector.shape_cast %10 : vector<1x1x1x32xf32> to vector<32xf32>
    %12 = vector.shape_cast %11 : vector<32xf32> to vector<1x1x32xf32>
    %13 = vector.broadcast %12 : vector<1x1x32xf32> to vector<16x16x32xf32>
    %14 = arith.mulf %2, %13 : vector<16x16x32xf32>
    %c0_18 = arith.constant 0 : index
    %c7_19 = arith.constant 7 : index
    %c0_20 = arith.constant 0 : index
    %15 = vector.load %arg14[%c0_18, %c7_19, %c0_20] : memref<18x25x32xf32, #tpu.memory_space<vmem>>, vector<16x16x32xf32>
    %c0_21 = arith.constant 0 : index
    %c0_22 = arith.constant 0 : index
    %c0_23 = arith.constant 0 : index
    %c0_24 = arith.constant 0 : index
    %16 = vector.load %arg2[%c0_21, %c0_22, %c0_23, %c0_24] : memref<1x3x3x32xf32, #tpu.memory_space<vmem>>, vector<1x1x1x32xf32>
    %17 = vector.shape_cast %16 : vector<1x1x1x32xf32> to vector<32xf32>
    %18 = vector.shape_cast %17 : vector<32xf32> to vector<1x1x32xf32>
    %19 = vector.broadcast %18 : vector<1x1x32xf32> to vector<16x16x32xf32>
    %20 = arith.mulf %15, %19 : vector<16x16x32xf32>
    %21 = arith.addf %14, %20 : vector<16x16x32xf32>
    %c0_25 = arith.constant 0 : index
    %c8_26 = arith.constant 8 : index
    %c0_27 = arith.constant 0 : index
    %22 = vector.load %arg14[%c0_25, %c8_26, %c0_27] : memref<18x25x32xf32, #tpu.memory_space<vmem>>, vector<16x16x32xf32>
    %c0_28 = arith.constant 0 : index
    %c0_29 = arith.constant 0 : index
    %c1_30 = arith.constant 1 : index
    %c0_31 = arith.constant 0 : index
    %23 = vector.load %arg2[%c0_28, %c0_29, %c1_30, %c0_31] : memref<1x3x3x32xf32, #tpu.memory_space<vmem>>, vector<1x1x1x32xf32>
    %24 = vector.shape_cast %23 : vector<1x1x1x32xf32> to vector<32xf32>
    %25 = vector.shape_cast %24 : vector<32xf32> to vector<1x1x32xf32>
    %26 = vector.broadcast %25 : vector<1x1x32xf32> to vector<16x16x32xf32>
    %27 = arith.mulf %22, %26 : vector<16x16x32xf32>
    %28 = arith.addf %21, %27 : vector<16x16x32xf32>
    %c0_32 = arith.constant 0 : index
    %c9 = arith.constant 9 : index
    %c0_33 = arith.constant 0 : index
    %29 = vector.load %arg14[%c0_32, %c9, %c0_33] : memref<18x25x32xf32, #tpu.memory_space<vmem>>, vector<16x16x32xf32>
    %c0_34 = arith.constant 0 : index
    %c0_35 = arith.constant 0 : index
    %c2 = arith.constant 2 : index
    %c0_36 = arith.constant 0 : index
    %30 = vector.load %arg2[%c0_34, %c0_35, %c2, %c0_36] : memref<1x3x3x32xf32, #tpu.memory_space<vmem>>, vector<1x1x1x32xf32>
    %31 = vector.shape_cast %30 : vector<1x1x1x32xf32> to vector<32xf32>
    %32 = vector.shape_cast %31 : vector<32xf32> to vector<1x1x32xf32>
    %33 = vector.broadcast %32 : vector<1x1x32xf32> to vector<16x16x32xf32>
    %34 = arith.mulf %29, %33 : vector<16x16x32xf32>
    %35 = arith.addf %28, %34 : vector<16x16x32xf32>
    %c1_37 = arith.constant 1 : index
    %c7_38 = arith.constant 7 : index
    %c0_39 = arith.constant 0 : index
    %36 = vector.load %arg14[%c1_37, %c7_38, %c0_39] : memref<18x25x32xf32, #tpu.memory_space<vmem>>, vector<16x16x32xf32>
    %c0_40 = arith.constant 0 : index
    %c1_41 = arith.constant 1 : index
    %c0_42 = arith.constant 0 : index
    %c0_43 = arith.constant 0 : index
    %37 = vector.load %arg2[%c0_40, %c1_41, %c0_42, %c0_43] : memref<1x3x3x32xf32, #tpu.memory_space<vmem>>, vector<1x1x1x32xf32>
    %38 = vector.shape_cast %37 : vector<1x1x1x32xf32> to vector<32xf32>
    %39 = vector.shape_cast %38 : vector<32xf32> to vector<1x1x32xf32>
    %40 = vector.broadcast %39 : vector<1x1x32xf32> to vector<16x16x32xf32>
    %41 = arith.mulf %36, %40 : vector<16x16x32xf32>
    %42 = arith.addf %35, %41 : vector<16x16x32xf32>
    %c1_44 = arith.constant 1 : index
    %c9_45 = arith.constant 9 : index
    %c0_46 = arith.constant 0 : index
    %43 = vector.load %arg14[%c1_44, %c9_45, %c0_46] : memref<18x25x32xf32, #tpu.memory_space<vmem>>, vector<16x16x32xf32>
    %c0_47 = arith.constant 0 : index
    %c1_48 = arith.constant 1 : index
    %c2_49 = arith.constant 2 : index
    %c0_50 = arith.constant 0 : index
    %44 = vector.load %arg2[%c0_47, %c1_48, %c2_49, %c0_50] : memref<1x3x3x32xf32, #tpu.memory_space<vmem>>, vector<1x1x1x32xf32>
    %45 = vector.shape_cast %44 : vector<1x1x1x32xf32> to vector<32xf32>
    %46 = vector.shape_cast %45 : vector<32xf32> to vector<1x1x32xf32>
    %47 = vector.broadcast %46 : vector<1x1x32xf32> to vector<16x16x32xf32>
    %48 = arith.mulf %43, %47 : vector<16x16x32xf32>
    %49 = arith.addf %42, %48 : vector<16x16x32xf32>
    %c2_51 = arith.constant 2 : index
    %c7_52 = arith.constant 7 : index
    %c0_53 = arith.constant 0 : index
    %50 = vector.load %arg14[%c2_51, %c7_52, %c0_53] : memref<18x25x32xf32, #tpu.memory_space<vmem>>, vector<16x16x32xf32>
    %c0_54 = arith.constant 0 : index
    %c2_55 = arith.constant 2 : index
    %c0_56 = arith.constant 0 : index
    %c0_57 = arith.constant 0 : index
    %51 = vector.load %arg2[%c0_54, %c2_55, %c0_56, %c0_57] : memref<1x3x3x32xf32, #tpu.memory_space<vmem>>, vector<1x1x1x32xf32>
    %52 = vector.shape_cast %51 : vector<1x1x1x32xf32> to vector<32xf32>
    %53 = vector.shape_cast %52 : vector<32xf32> to vector<1x1x32xf32>
    %54 = vector.broadcast %53 : vector<1x1x32xf32> to vector<16x16x32xf32>
    %55 = arith.mulf %50, %54 : vector<16x16x32xf32>
    %56 = arith.addf %49, %55 : vector<16x16x32xf32>
    %c2_58 = arith.constant 2 : index
    %c8_59 = arith.constant 8 : index
    %c0_60 = arith.constant 0 : index
    %57 = vector.load %arg14[%c2_58, %c8_59, %c0_60] : memref<18x25x32xf32, #tpu.memory_space<vmem>>, vector<16x16x32xf32>
    %c0_61 = arith.constant 0 : index
    %c2_62 = arith.constant 2 : index
    %c1_63 = arith.constant 1 : index
    %c0_64 = arith.constant 0 : index
    %58 = vector.load %arg2[%c0_61, %c2_62, %c1_63, %c0_64] : memref<1x3x3x32xf32, #tpu.memory_space<vmem>>, vector<1x1x1x32xf32>
    %59 = vector.shape_cast %58 : vector<1x1x1x32xf32> to vector<32xf32>
    %60 = vector.shape_cast %59 : vector<32xf32> to vector<1x1x32xf32>
    %61 = vector.broadcast %60 : vector<1x1x32xf32> to vector<16x16x32xf32>
    %62 = arith.mulf %57, %61 : vector<16x16x32xf32>
    %63 = arith.addf %56, %62 : vector<16x16x32xf32>
    %c2_65 = arith.constant 2 : index
    %c9_66 = arith.constant 9 : index
    %c0_67 = arith.constant 0 : index
    %64 = vector.load %arg14[%c2_65, %c9_66, %c0_67] : memref<18x25x32xf32, #tpu.memory_space<vmem>>, vector<16x16x32xf32>
    %c0_68 = arith.constant 0 : index
    %c2_69 = arith.constant 2 : index
    %c2_70 = arith.constant 2 : index
    %c0_71 = arith.constant 0 : index
    %65 = vector.load %arg2[%c0_68, %c2_69, %c2_70, %c0_71] : memref<1x3x3x32xf32, #tpu.memory_space<vmem>>, vector<1x1x1x32xf32>
    %66 = vector.shape_cast %65 : vector<1x1x1x32xf32> to vector<32xf32>
    %67 = vector.shape_cast %66 : vector<32xf32> to vector<1x1x32xf32>
    %68 = vector.broadcast %67 : vector<1x1x32xf32> to vector<16x16x32xf32>
    %69 = arith.mulf %64, %68 : vector<16x16x32xf32>
    %70 = arith.addf %63, %69 : vector<16x16x32xf32>
    %c0_72 = arith.constant 0 : index
    %c0_73 = arith.constant 0 : index
    %c0_74 = arith.constant 0 : index
    %71 = vector.load %arg3[%c0_72, %c0_73, %c0_74] : memref<1x1x32xf32, #tpu.memory_space<vmem>>, vector<1x1x32xf32>
    %72 = vector.shape_cast %71 : vector<1x1x32xf32> to vector<1x32xf32>
    %73 = vector.shape_cast %72 : vector<1x32xf32> to vector<1x1x32xf32>
    %74 = vector.broadcast %73 : vector<1x1x32xf32> to vector<16x16x32xf32>
    %75 = arith.addf %70, %74 : vector<16x16x32xf32>
    %76 = arith.addf %2, %75 : vector<16x16x32xf32>
    %77 = vector.shape_cast %76 : vector<16x16x32xf32> to vector<256x32xf32>
    %c0_75 = arith.constant 0 : index
    %c0_76 = arith.constant 0 : index
    %78 = vector.load %arg4[%c0_75, %c0_76] : memref<32x64xbf16, #tpu.memory_space<vmem>>, vector<32x64xbf16>
    %79 = arith.truncf %77 : vector<256x32xf32> to vector<256x32xbf16>
    %cst_77 = arith.constant dense<0.000000e+00> : vector<256x64xf32>
    %80 = tpu.matmul %79, %78, %cst_77 {dimension_numbers = #tpu.dot_dimension_numbers<[1], [0], [0], [1], [0, 0, 1, 1], [], []>} : vector<256x32xbf16>, vector<32x64xbf16>, vector<256x64xf32> -> vector<256x64xf32>
    %c0_78 = arith.constant 0 : index
    %c0_79 = arith.constant 0 : index
    %81 = vector.load %arg5[%c0_78, %c0_79] : memref<1x64xf32, #tpu.memory_space<vmem>>, vector<1x64xf32>
    %82 = vector.broadcast %81 : vector<1x64xf32> to vector<256x64xf32>
    %83 = arith.addf %80, %82 : vector<256x64xf32>
    %cst_80 = arith.constant 0.000000e+00 : f32
    %84 = vector.broadcast %cst_80 : f32 to vector<256x64xf32>
    %85 = arith.maximumf %83, %84 : vector<256x64xf32>
    %c0_81 = arith.constant 0 : index
    %c0_82 = arith.constant 0 : index
    %86 = vector.load %arg6[%c0_81, %c0_82] : memref<64x32xbf16, #tpu.memory_space<vmem>>, vector<64x32xbf16>
    %87 = arith.truncf %85 : vector<256x64xf32> to vector<256x64xbf16>
    %cst_83 = arith.constant dense<0.000000e+00> : vector<256x32xf32>
    %88 = tpu.matmul %87, %86, %cst_83 {dimension_numbers = #tpu.dot_dimension_numbers<[1], [0], [0], [1], [0, 0, 1, 1], [], []>} : vector<256x64xbf16>, vector<64x32xbf16>, vector<256x32xf32> -> vector<256x32xf32>
    %89 = arith.addf %77, %88 : vector<256x32xf32>
    %c0_84 = arith.constant 0 : index
    %c0_85 = arith.constant 0 : index
    %90 = vector.load %arg7[%c0_84, %c0_85] : memref<1x32xf32, #tpu.memory_space<vmem>>, vector<1x32xf32>
    %91 = vector.broadcast %90 : vector<1x32xf32> to vector<256x32xf32>
    %92 = arith.addf %89, %91 : vector<256x32xf32>
    %c0_86 = arith.constant 0 : index
    %c0_87 = arith.constant 0 : index
    %93 = vector.load %arg8[%c0_86, %c0_87] : memref<32x128xbf16, #tpu.memory_space<vmem>>, vector<32x128xbf16>
    %94 = arith.truncf %92 : vector<256x32xf32> to vector<256x32xbf16>
    %cst_88 = arith.constant dense<0.000000e+00> : vector<256x128xf32>
    %95 = tpu.matmul %94, %93, %cst_88 {dimension_numbers = #tpu.dot_dimension_numbers<[1], [0], [0], [1], [0, 0, 1, 1], [], []>} : vector<256x32xbf16>, vector<32x128xbf16>, vector<256x128xf32> -> vector<256x128xf32>
    %c0_89 = arith.constant 0 : index
    %c0_90 = arith.constant 0 : index
    %96 = vector.load %arg9[%c0_89, %c0_90] : memref<1x128xf32, #tpu.memory_space<vmem>>, vector<1x128xf32>
    %97 = vector.broadcast %96 : vector<1x128xf32> to vector<256x128xf32>
    %98 = arith.addf %95, %97 : vector<256x128xf32>
    %cst_91 = arith.constant 0.000000e+00 : f32
    %99 = vector.broadcast %cst_91 : f32 to vector<256x128xf32>
    %100 = arith.maximumf %98, %99 : vector<256x128xf32>
    %101 = vector.shape_cast %100 : vector<256x128xf32> to vector<16x16x128xf32>
    %cst_92 = arith.constant 0.000000e+00 : f32
    %102 = vector.broadcast %cst_92 : f32 to vector<1x18x128xf32>
    %cst_93 = arith.constant 0.000000e+00 : f32
    %103 = vector.broadcast %cst_93 : f32 to vector<16x1x128xf32>
    %c0_94 = arith.constant 0 : index
    %c7_95 = arith.constant 7 : index
    %c0_96 = arith.constant 0 : index
    %104 = vector.load %arg15[%c0_94, %c7_95, %c0_96] : memref<18x25x128xf32, #tpu.memory_space<vmem>>, vector<1x18x128xf32>
    tpu.vector_store %arg15[%c0_94, %c7_95, %c0_96], %102 {strides = array<i32>} : memref<18x25x128xf32, #tpu.memory_space<vmem>>, vector<1x18x128xf32>,
    %c17_97 = arith.constant 17 : index
    %c7_98 = arith.constant 7 : index
    %c0_99 = arith.constant 0 : index
    %105 = vector.load %arg15[%c17_97, %c7_98, %c0_99] : memref<18x25x128xf32, #tpu.memory_space<vmem>>, vector<1x18x128xf32>
    tpu.vector_store %arg15[%c17_97, %c7_98, %c0_99], %102 {strides = array<i32>} : memref<18x25x128xf32, #tpu.memory_space<vmem>>, vector<1x18x128xf32>,
    %c1_100 = arith.constant 1 : index
    %c7_101 = arith.constant 7 : index
    %c0_102 = arith.constant 0 : index
    %106 = vector.load %arg15[%c1_100, %c7_101, %c0_102] : memref<18x25x128xf32, #tpu.memory_space<vmem>>, vector<16x1x128xf32>
    tpu.vector_store %arg15[%c1_100, %c7_101, %c0_102], %103 {strides = array<i32>} : memref<18x25x128xf32, #tpu.memory_space<vmem>>, vector<16x1x128xf32>,
    %c1_103 = arith.constant 1 : index
    %c24_104 = arith.constant 24 : index
    %c0_105 = arith.constant 0 : index
    %107 = vector.load %arg15[%c1_103, %c24_104, %c0_105] : memref<18x25x128xf32, #tpu.memory_space<vmem>>, vector<16x1x128xf32>
    tpu.vector_store %arg15[%c1_103, %c24_104, %c0_105], %103 {strides = array<i32>} : memref<18x25x128xf32, #tpu.memory_space<vmem>>, vector<16x1x128xf32>,
    %c1_106 = arith.constant 1 : index
    %c8_107 = arith.constant 8 : index
    %c0_108 = arith.constant 0 : index
    %108 = vector.load %arg15[%c1_106, %c8_107, %c0_108] : memref<18x25x128xf32, #tpu.memory_space<vmem>>, vector<16x16x128xf32>
    tpu.vector_store %arg15[%c1_106, %c8_107, %c0_108], %101 {strides = array<i32>} : memref<18x25x128xf32, #tpu.memory_space<vmem>>, vector<16x16x128xf32>,
    %c0_109 = arith.constant 0 : index
    %c1_110 = arith.constant 1 : index
    %c1_111 = arith.constant 1 : index
    %c0_112 = arith.constant 0 : index
    %109 = vector.load %arg10[%c0_109, %c1_110, %c1_111, %c0_112] : memref<1x3x3x128xf32, #tpu.memory_space<vmem>>, vector<1x1x1x128xf32>
    %110 = vector.shape_cast %109 : vector<1x1x1x128xf32> to vector<128xf32>
    %111 = vector.shape_cast %110 : vector<128xf32> to vector<1x1x128xf32>
    %112 = vector.broadcast %111 : vector<1x1x128xf32> to vector<16x16x128xf32>
    %113 = arith.mulf %101, %112 : vector<16x16x128xf32>
    %c0_113 = arith.constant 0 : index
    %c7_114 = arith.constant 7 : index
    %c0_115 = arith.constant 0 : index
    %114 = vector.load %arg15[%c0_113, %c7_114, %c0_115] : memref<18x25x128xf32, #tpu.memory_space<vmem>>, vector<16x16x128xf32>
    %c0_116 = arith.constant 0 : index
    %c0_117 = arith.constant 0 : index
    %c0_118 = arith.constant 0 : index
    %c0_119 = arith.constant 0 : index
    %115 = vector.load %arg10[%c0_116, %c0_117, %c0_118, %c0_119] : memref<1x3x3x128xf32, #tpu.memory_space<vmem>>, vector<1x1x1x128xf32>
    %116 = vector.shape_cast %115 : vector<1x1x1x128xf32> to vector<128xf32>
    %117 = vector.shape_cast %116 : vector<128xf32> to vector<1x1x128xf32>
    %118 = vector.broadcast %117 : vector<1x1x128xf32> to vector<16x16x128xf32>
    %119 = arith.mulf %114, %118 : vector<16x16x128xf32>
    %120 = arith.addf %113, %119 : vector<16x16x128xf32>
    %c0_120 = arith.constant 0 : index
    %c8_121 = arith.constant 8 : index
    %c0_122 = arith.constant 0 : index
    %121 = vector.load %arg15[%c0_120, %c8_121, %c0_122] : memref<18x25x128xf32, #tpu.memory_space<vmem>>, vector<16x16x128xf32>
    %c0_123 = arith.constant 0 : index
    %c0_124 = arith.constant 0 : index
    %c1_125 = arith.constant 1 : index
    %c0_126 = arith.constant 0 : index
    %122 = vector.load %arg10[%c0_123, %c0_124, %c1_125, %c0_126] : memref<1x3x3x128xf32, #tpu.memory_space<vmem>>, vector<1x1x1x128xf32>
    %123 = vector.shape_cast %122 : vector<1x1x1x128xf32> to vector<128xf32>
    %124 = vector.shape_cast %123 : vector<128xf32> to vector<1x1x128xf32>
    %125 = vector.broadcast %124 : vector<1x1x128xf32> to vector<16x16x128xf32>
    %126 = arith.mulf %121, %125 : vector<16x16x128xf32>
    %127 = arith.addf %120, %126 : vector<16x16x128xf32>
    %c0_127 = arith.constant 0 : index
    %c9_128 = arith.constant 9 : index
    %c0_129 = arith.constant 0 : index
    %128 = vector.load %arg15[%c0_127, %c9_128, %c0_129] : memref<18x25x128xf32, #tpu.memory_space<vmem>>, vector<16x16x128xf32>
    %c0_130 = arith.constant 0 : index
    %c0_131 = arith.constant 0 : index
    %c2_132 = arith.constant 2 : index
    %c0_133 = arith.constant 0 : index
    %129 = vector.load %arg10[%c0_130, %c0_131, %c2_132, %c0_133] : memref<1x3x3x128xf32, #tpu.memory_space<vmem>>, vector<1x1x1x128xf32>
    %130 = vector.shape_cast %129 : vector<1x1x1x128xf32> to vector<128xf32>
    %131 = vector.shape_cast %130 : vector<128xf32> to vector<1x1x128xf32>
    %132 = vector.broadcast %131 : vector<1x1x128xf32> to vector<16x16x128xf32>
    %133 = arith.mulf %128, %132 : vector<16x16x128xf32>
    %134 = arith.addf %127, %133 : vector<16x16x128xf32>
    %c1_134 = arith.constant 1 : index
    %c7_135 = arith.constant 7 : index
    %c0_136 = arith.constant 0 : index
    %135 = vector.load %arg15[%c1_134, %c7_135, %c0_136] : memref<18x25x128xf32, #tpu.memory_space<vmem>>, vector<16x16x128xf32>
    %c0_137 = arith.constant 0 : index
    %c1_138 = arith.constant 1 : index
    %c0_139 = arith.constant 0 : index
    %c0_140 = arith.constant 0 : index
    %136 = vector.load %arg10[%c0_137, %c1_138, %c0_139, %c0_140] : memref<1x3x3x128xf32, #tpu.memory_space<vmem>>, vector<1x1x1x128xf32>
    %137 = vector.shape_cast %136 : vector<1x1x1x128xf32> to vector<128xf32>
    %138 = vector.shape_cast %137 : vector<128xf32> to vector<1x1x128xf32>
    %139 = vector.broadcast %138 : vector<1x1x128xf32> to vector<16x16x128xf32>
    %140 = arith.mulf %135, %139 : vector<16x16x128xf32>
    %141 = arith.addf %134, %140 : vector<16x16x128xf32>
    %c1_141 = arith.constant 1 : index
    %c9_142 = arith.constant 9 : index
    %c0_143 = arith.constant 0 : index
    %142 = vector.load %arg15[%c1_141, %c9_142, %c0_143] : memref<18x25x128xf32, #tpu.memory_space<vmem>>, vector<16x16x128xf32>
    %c0_144 = arith.constant 0 : index
    %c1_145 = arith.constant 1 : index
    %c2_146 = arith.constant 2 : index
    %c0_147 = arith.constant 0 : index
    %143 = vector.load %arg10[%c0_144, %c1_145, %c2_146, %c0_147] : memref<1x3x3x128xf32, #tpu.memory_space<vmem>>, vector<1x1x1x128xf32>
    %144 = vector.shape_cast %143 : vector<1x1x1x128xf32> to vector<128xf32>
    %145 = vector.shape_cast %144 : vector<128xf32> to vector<1x1x128xf32>
    %146 = vector.broadcast %145 : vector<1x1x128xf32> to vector<16x16x128xf32>
    %147 = arith.mulf %142, %146 : vector<16x16x128xf32>
    %148 = arith.addf %141, %147 : vector<16x16x128xf32>
    %c2_148 = arith.constant 2 : index
    %c7_149 = arith.constant 7 : index
    %c0_150 = arith.constant 0 : index
    %149 = vector.load %arg15[%c2_148, %c7_149, %c0_150] : memref<18x25x128xf32, #tpu.memory_space<vmem>>, vector<16x16x128xf32>
    %c0_151 = arith.constant 0 : index
    %c2_152 = arith.constant 2 : index
    %c0_153 = arith.constant 0 : index
    %c0_154 = arith.constant 0 : index
    %150 = vector.load %arg10[%c0_151, %c2_152, %c0_153, %c0_154] : memref<1x3x3x128xf32, #tpu.memory_space<vmem>>, vector<1x1x1x128xf32>
    %151 = vector.shape_cast %150 : vector<1x1x1x128xf32> to vector<128xf32>
    %152 = vector.shape_cast %151 : vector<128xf32> to vector<1x1x128xf32>
    %153 = vector.broadcast %152 : vector<1x1x128xf32> to vector<16x16x128xf32>
    %154 = arith.mulf %149, %153 : vector<16x16x128xf32>
    %155 = arith.addf %148, %154 : vector<16x16x128xf32>
    %c2_155 = arith.constant 2 : index
    %c8_156 = arith.constant 8 : index
    %c0_157 = arith.constant 0 : index
    %156 = vector.load %arg15[%c2_155, %c8_156, %c0_157] : memref<18x25x128xf32, #tpu.memory_space<vmem>>, vector<16x16x128xf32>
    %c0_158 = arith.constant 0 : index
    %c2_159 = arith.constant 2 : index
    %c1_160 = arith.constant 1 : index
    %c0_161 = arith.constant 0 : index
    %157 = vector.load %arg10[%c0_158, %c2_159, %c1_160, %c0_161] : memref<1x3x3x128xf32, #tpu.memory_space<vmem>>, vector<1x1x1x128xf32>
    %158 = vector.shape_cast %157 : vector<1x1x1x128xf32> to vector<128xf32>
    %159 = vector.shape_cast %158 : vector<128xf32> to vector<1x1x128xf32>
    %160 = vector.broadcast %159 : vector<1x1x128xf32> to vector<16x16x128xf32>
    %161 = arith.mulf %156, %160 : vector<16x16x128xf32>
    %162 = arith.addf %155, %161 : vector<16x16x128xf32>
    %c2_162 = arith.constant 2 : index
    %c9_163 = arith.constant 9 : index
    %c0_164 = arith.constant 0 : index
    %163 = vector.load %arg15[%c2_162, %c9_163, %c0_164] : memref<18x25x128xf32, #tpu.memory_space<vmem>>, vector<16x16x128xf32>
    %c0_165 = arith.constant 0 : index
    %c2_166 = arith.constant 2 : index
    %c2_167 = arith.constant 2 : index
    %c0_168 = arith.constant 0 : index
    %164 = vector.load %arg10[%c0_165, %c2_166, %c2_167, %c0_168] : memref<1x3x3x128xf32, #tpu.memory_space<vmem>>, vector<1x1x1x128xf32>
    %165 = vector.shape_cast %164 : vector<1x1x1x128xf32> to vector<128xf32>
    %166 = vector.shape_cast %165 : vector<128xf32> to vector<1x1x128xf32>
    %167 = vector.broadcast %166 : vector<1x1x128xf32> to vector<16x16x128xf32>
    %168 = arith.mulf %163, %167 : vector<16x16x128xf32>
    %169 = arith.addf %162, %168 : vector<16x16x128xf32>
    %c0_169 = arith.constant 0 : index
    %c0_170 = arith.constant 0 : index
    %c0_171 = arith.constant 0 : index
    %170 = vector.load %arg11[%c0_169, %c0_170, %c0_171] : memref<1x1x128xf32, #tpu.memory_space<vmem>>, vector<1x1x128xf32>
    %171 = vector.shape_cast %170 : vector<1x1x128xf32> to vector<1x128xf32>
    %172 = vector.shape_cast %171 : vector<1x128xf32> to vector<1x1x128xf32>
    %173 = vector.broadcast %172 : vector<1x1x128xf32> to vector<16x16x128xf32>
    %174 = arith.addf %169, %173 : vector<16x16x128xf32>
    %cst_172 = arith.constant 0.000000e+00 : f32
    %175 = vector.broadcast %cst_172 : f32 to vector<16x16x128xf32>
    %176 = arith.maximumf %174, %175 : vector<16x16x128xf32>
    %177 = vector.shape_cast %176 : vector<16x16x128xf32> to vector<8x2x16x128xf32>
    %178 = vector.extract_strided_slice %177 {offsets = [0, 0, 0, 0], sizes = [8, 1, 16, 128], strides = [1, 1, 1, 1]} : vector<8x2x16x128xf32> to vector<8x1x16x128xf32>
    %179 = vector.shape_cast %178 : vector<8x1x16x128xf32> to vector<8x16x128xf32>
    %180 = arith.truncf %179 : vector<8x16x128xf32> to vector<8x16x128xbf16>
    %c0_173 = arith.constant 0 : index
    %c0_174 = arith.constant 0 : index
    %c0_175 = arith.constant 0 : index
    %c0_176 = arith.constant 0 : index
    %181 = vector.load %arg12[%c0_173, %c0_174, %c0_175, %c0_176] : memref<1x8x16x128xbf16, #tpu.memory_space<vmem>>, vector<1x8x16x128xbf16>
    %182 = vector.shape_cast %181 : vector<1x8x16x128xbf16> to vector<8x16x128xbf16>
    %183 = vector.shape_cast %180 : vector<8x16x128xbf16> to vector<1x8x16x128xbf16>
    tpu.vector_store %arg12[%c0_173, %c0_174, %c0_175, %c0_176], %183 {strides = array<i32>} : memref<1x8x16x128xbf16, #tpu.memory_space<vmem>>, vector<1x8x16x128xbf16>,
    %184 = tpu.iota {dimensions = array<i32: 1>} : vector<1x16x1xi32>
    %c2_i32 = arith.constant 2 : i32
    %c0_i32 = arith.constant 0 : i32
    %185 = arith.cmpi eq, %c2_i32, %c0_i32 : i32
    %c1_i32 = arith.constant 1 : i32
    %186 = arith.select %185, %c1_i32, %c2_i32 : i32
    %187 = vector.broadcast %186 : i32 to vector<1x16x1xi32>
    %188 = arith.remsi %184, %187 : vector<1x16x1xi32>
    %c0_i32_177 = arith.constant 0 : i32
    %189 = vector.broadcast %c0_i32_177 : i32 to vector<1x16x1xi32>
    %190 = arith.cmpi ne, %188, %189 : vector<1x16x1xi32>
    %c0_i32_178 = arith.constant 0 : i32
    %191 = vector.broadcast %c0_i32_178 : i32 to vector<1x16x1xi32>
    %192 = arith.cmpi slt, %188, %191 : vector<1x16x1xi32>
    %c0_i32_179 = arith.constant 0 : i32
    %193 = arith.cmpi slt, %186, %c0_i32_179 : i32
    %194 = vector.broadcast %193 : i1 to vector<1x16x1xi1>
    %195 = vector.broadcast %194 : vector<1x16x1xi1> to vector<1x16x1xi1>
    %196 = arith.xori %192, %195 : vector<1x16x1xi1>
    %197 = arith.andi %196, %190 : vector<1x16x1xi1>
    %198 = vector.broadcast %186 : i32 to vector<1x16x1xi32>
    %199 = arith.addi %188, %198 : vector<1x16x1xi32>
    %200 = arith.select %197, %199, %188 : vector<1x16x1xi1>, vector<1x16x1xi32>
    %c0_i32_180 = arith.constant 0 : i32
    %201 = vector.broadcast %c0_i32_180 : i32 to vector<1x16x1xi32>
    %202 = arith.cmpi eq, %200, %201 : vector<1x16x1xi32>
    %cst_181 = arith.constant 0.000000e+00 : f32
    %203 = vector.shape_cast %202 : vector<1x16x1xi1> to vector<1x16x1xi1>
    %204 = vector.broadcast %203 : vector<1x16x1xi1> to vector<8x16x128xi1>
    %205 = vector.broadcast %cst_181 : f32 to vector<8x16x128xf32>
    %206 = arith.select %204, %179, %205 : vector<8x16x128xi1>, vector<8x16x128xf32>
    %cst_182 = arith.constant dense<0.000000e+00> : vector<128xf32>
    %207 = vector.multi_reduction <add>, %206, %cst_182 [0, 1] : vector<8x16x128xf32> to vector<128xf32>
    %cst_183 = arith.constant 1.562500e-02 : f32
    %208 = vector.broadcast %cst_183 : f32 to vector<128xf32>
    %209 = arith.mulf %207, %208 : vector<128xf32>
    %210 = vector.shape_cast %209 : vector<128xf32> to vector<1x128xf32>
    %c0_184 = arith.constant 0 : index
    %c0_185 = arith.constant 0 : index
    %c0_186 = arith.constant 0 : index
    %211 = vector.load %arg13[%c0_184, %c0_185, %c0_186] : memref<1x1x128xf32, #tpu.memory_space<vmem>>, vector<1x1x128xf32>
    %212 = vector.shape_cast %211 : vector<1x1x128xf32> to vector<1x128xf32>
    %213 = vector.shape_cast %210 : vector<1x128xf32> to vector<1x1x128xf32>
    tpu.vector_store %arg13[%c0_184, %c0_185, %c0_186], %213 {strides = array<i32>} : memref<1x1x128xf32, #tpu.memory_space<vmem>>, vector<1x1x128xf32>,
    return
  }
  func.func @transform_0(%arg0: i32) -> (i32, i32, i32, i32) {
    %c0_i32 = arith.constant 0 : i32
    %c0_i32_0 = arith.constant 0 : i32
    %c0_i32_1 = arith.constant 0 : i32
    %c0_i32_2 = arith.constant 0 : i32
    return %arg0, %c0_i32, %c0_i32_0, %c0_i32_1 : i32, i32, i32, i32
  }
  func.func @transform_1(%arg0: i32) -> (i32, i32, i32, i32) {
    %c0_i32 = arith.constant 0 : i32
    %c0_i32_0 = arith.constant 0 : i32
    %c0_i32_1 = arith.constant 0 : i32
    %c0_i32_2 = arith.constant 0 : i32
    %c0_i32_3 = arith.constant 0 : i32
    return %c0_i32, %c0_i32_0, %c0_i32_1, %c0_i32_2 : i32, i32, i32, i32
  }
  func.func @transform_2(%arg0: i32) -> (i32, i32, i32) {
    %c0_i32 = arith.constant 0 : i32
    %c0_i32_0 = arith.constant 0 : i32
    %c0_i32_1 = arith.constant 0 : i32
    %c0_i32_2 = arith.constant 0 : i32
    return %c0_i32, %c0_i32_0, %c0_i32_1 : i32, i32, i32
  }
  func.func @transform_3(%arg0: i32) -> (i32, i32) {
    %c0_i32 = arith.constant 0 : i32
    %c0_i32_0 = arith.constant 0 : i32
    %c0_i32_1 = arith.constant 0 : i32
    return %c0_i32, %c0_i32_0 : i32, i32
  }
  func.func @transform_4(%arg0: i32) -> (i32, i32) {
    %c0_i32 = arith.constant 0 : i32
    %c0_i32_0 = arith.constant 0 : i32
    %c0_i32_1 = arith.constant 0 : i32
    return %c0_i32, %c0_i32_0 : i32, i32
  }
  func.func @transform_5(%arg0: i32) -> (i32, i32) {
    %c0_i32 = arith.constant 0 : i32
    %c0_i32_0 = arith.constant 0 : i32
    %c0_i32_1 = arith.constant 0 : i32
    return %c0_i32, %c0_i32_0 : i32, i32
  }
  func.func @transform_6(%arg0: i32) -> (i32, i32) {
    %c0_i32 = arith.constant 0 : i32
    %c0_i32_0 = arith.constant 0 : i32
    %c0_i32_1 = arith.constant 0 : i32
    return %c0_i32, %c0_i32_0 : i32, i32
  }
  func.func @transform_7(%arg0: i32) -> (i32, i32) {
    %c0_i32 = arith.constant 0 : i32
    %c0_i32_0 = arith.constant 0 : i32
    %c0_i32_1 = arith.constant 0 : i32
    return %c0_i32, %c0_i32_0 : i32, i32
  }
  func.func @transform_8(%arg0: i32) -> (i32, i32) {
    %c0_i32 = arith.constant 0 : i32
    %c0_i32_0 = arith.constant 0 : i32
    %c0_i32_1 = arith.constant 0 : i32
    return %c0_i32, %c0_i32_0 : i32, i32
  }
  func.func @transform_9(%arg0: i32) -> (i32, i32, i32, i32) {
    %c0_i32 = arith.constant 0 : i32
    %c0_i32_0 = arith.constant 0 : i32
    %c0_i32_1 = arith.constant 0 : i32
    %c0_i32_2 = arith.constant 0 : i32
    %c0_i32_3 = arith.constant 0 : i32
    return %c0_i32, %c0_i32_0, %c0_i32_1, %c0_i32_2 : i32, i32, i32, i32
  }
  func.func @transform_10(%arg0: i32) -> (i32, i32, i32) {
    %c0_i32 = arith.constant 0 : i32
    %c0_i32_0 = arith.constant 0 : i32
    %c0_i32_1 = arith.constant 0 : i32
    %c0_i32_2 = arith.constant 0 : i32
    return %c0_i32, %c0_i32_0, %c0_i32_1 : i32, i32, i32
  }
  func.func @transform_11(%arg0: i32) -> (i32, i32, i32, i32) {
    %c0_i32 = arith.constant 0 : i32
    %c0_i32_0 = arith.constant 0 : i32
    %c0_i32_1 = arith.constant 0 : i32
    %c0_i32_2 = arith.constant 0 : i32
    return %arg0, %c0_i32, %c0_i32_0, %c0_i32_1 : i32, i32, i32, i32
  }
  func.func @transform_12(%arg0: i32) -> (i32, i32, i32) {
    %c0_i32 = arith.constant 0 : i32
    %c0_i32_0 = arith.constant 0 : i32
    %c0_i32_1 = arith.constant 0 : i32
    return %arg0, %c0_i32, %c0_i32_0 : i32, i32, i32
  }
}

module attributes {stable_mosaic.version = 11 : i64} {
  func.func @_ds_b_kernel(%arg0: i32, %arg1: memref<1x8x8x128xbf16, #tpu.memory_space<vmem>>, %arg2: memref<1x1x128xf32, #tpu.memory_space<vmem>>, %arg3: memref<128x64xbf16, #tpu.memory_space<vmem>>, %arg4: memref<1x64xf32, #tpu.memory_space<vmem>>, %arg5: memref<1x3x3x64xf32, #tpu.memory_space<vmem>>, %arg6: memref<1x1x64xf32, #tpu.memory_space<vmem>>, %arg7: memref<64x128xbf16, #tpu.memory_space<vmem>>, %arg8: memref<1x128xf32, #tpu.memory_space<vmem>>, %arg9: memref<128x64xbf16, #tpu.memory_space<vmem>>, %arg10: memref<1x64xf32, #tpu.memory_space<vmem>>, %arg11: memref<1x8x8x64xbf16, #tpu.memory_space<vmem>>, %arg12: memref<10x17x64xf32, #tpu.memory_space<vmem>>) attributes {dimension_semantics = [#tpu.dimension_semantics<parallel>], iteration_bounds = array<i64: 2>, scalar_prefetch = 0 : i64, scratch_operands = 1 : i64, tpu.core_type = #tpu.core_type<tc>, window_params = [{transform_indices = @transform_0, window_bounds = array<i64: 1, 8, 8, 128>}, {transform_indices = @transform_1, window_bounds = array<i64: 1, 1, 128>}, {pipeline_mode = #tpu.pipeline_mode<synchronous>, transform_indices = @transform_2, window_bounds = array<i64: 128, 64>}, {pipeline_mode = #tpu.pipeline_mode<synchronous>, transform_indices = @transform_3, window_bounds = array<i64: 1, 64>}, {pipeline_mode = #tpu.pipeline_mode<synchronous>, transform_indices = @transform_4, window_bounds = array<i64: 1, 3, 3, 64>}, {pipeline_mode = #tpu.pipeline_mode<synchronous>, transform_indices = @transform_5, window_bounds = array<i64: 1, 1, 64>}, {pipeline_mode = #tpu.pipeline_mode<synchronous>, transform_indices = @transform_6, window_bounds = array<i64: 64, 128>}, {pipeline_mode = #tpu.pipeline_mode<synchronous>, transform_indices = @transform_7, window_bounds = array<i64: 1, 128>}, {pipeline_mode = #tpu.pipeline_mode<synchronous>, transform_indices = @transform_8, window_bounds = array<i64: 128, 64>}, {pipeline_mode = #tpu.pipeline_mode<synchronous>, transform_indices = @transform_9, window_bounds = array<i64: 1, 64>}, {transform_indices = @transform_10, window_bounds = array<i64: 1, 8, 8, 64>}]} {
    %c0 = arith.constant 0 : index
    %c0_0 = arith.constant 0 : index
    %c0_1 = arith.constant 0 : index
    %c0_2 = arith.constant 0 : index
    %0 = vector.load %arg1[%c0, %c0_0, %c0_1, %c0_2] : memref<1x8x8x128xbf16, #tpu.memory_space<vmem>>, vector<1x8x8x128xbf16>
    %1 = vector.shape_cast %0 : vector<1x8x8x128xbf16> to vector<8x8x128xbf16>
    %2 = arith.extf %1 : vector<8x8x128xbf16> to vector<8x8x128xf32>
    %3 = vector.shape_cast %2 : vector<8x8x128xf32> to vector<64x128xf32>
    %c0_3 = arith.constant 0 : index
    %c0_4 = arith.constant 0 : index
    %c0_5 = arith.constant 0 : index
    %4 = vector.load %arg2[%c0_3, %c0_4, %c0_5] : memref<1x1x128xf32, #tpu.memory_space<vmem>>, vector<1x1x128xf32>
    %5 = vector.shape_cast %4 : vector<1x1x128xf32> to vector<1x128xf32>
    %6 = vector.broadcast %5 : vector<1x128xf32> to vector<64x128xf32>
    %7 = arith.mulf %3, %6 : vector<64x128xf32>
    %c0_6 = arith.constant 0 : index
    %c0_7 = arith.constant 0 : index
    %8 = vector.load %arg3[%c0_6, %c0_7] : memref<128x64xbf16, #tpu.memory_space<vmem>>, vector<128x64xbf16>
    %9 = arith.truncf %7 : vector<64x128xf32> to vector<64x128xbf16>
    %cst = arith.constant dense<0.000000e+00> : vector<64x64xf32>
    %10 = tpu.matmul %9, %8, %cst {dimension_numbers = #tpu.dot_dimension_numbers<[1], [0], [0], [1], [0, 0, 1, 1], [], []>} : vector<64x128xbf16>, vector<128x64xbf16>, vector<64x64xf32> -> vector<64x64xf32>
    %c0_8 = arith.constant 0 : index
    %c0_9 = arith.constant 0 : index
    %11 = vector.load %arg4[%c0_8, %c0_9] : memref<1x64xf32, #tpu.memory_space<vmem>>, vector<1x64xf32>
    %12 = vector.broadcast %11 : vector<1x64xf32> to vector<64x64xf32>
    %13 = arith.addf %10, %12 : vector<64x64xf32>
    %14 = vector.shape_cast %13 : vector<64x64xf32> to vector<8x8x64xf32>
    %cst_10 = arith.constant 0.000000e+00 : f32
    %15 = vector.broadcast %cst_10 : f32 to vector<1x10x64xf32>
    %cst_11 = arith.constant 0.000000e+00 : f32
    %16 = vector.broadcast %cst_11 : f32 to vector<8x1x64xf32>
    %c0_12 = arith.constant 0 : index
    %c7 = arith.constant 7 : index
    %c0_13 = arith.constant 0 : index
    %17 = vector.load %arg12[%c0_12, %c7, %c0_13] : memref<10x17x64xf32, #tpu.memory_space<vmem>>, vector<1x10x64xf32>
    tpu.vector_store %arg12[%c0_12, %c7, %c0_13], %15 {strides = array<i32>} : memref<10x17x64xf32, #tpu.memory_space<vmem>>, vector<1x10x64xf32>,
    %c9 = arith.constant 9 : index
    %c7_14 = arith.constant 7 : index
    %c0_15 = arith.constant 0 : index
    %18 = vector.load %arg12[%c9, %c7_14, %c0_15] : memref<10x17x64xf32, #tpu.memory_space<vmem>>, vector<1x10x64xf32>
    tpu.vector_store %arg12[%c9, %c7_14, %c0_15], %15 {strides = array<i32>} : memref<10x17x64xf32, #tpu.memory_space<vmem>>, vector<1x10x64xf32>,
    %c1 = arith.constant 1 : index
    %c7_16 = arith.constant 7 : index
    %c0_17 = arith.constant 0 : index
    %19 = vector.load %arg12[%c1, %c7_16, %c0_17] : memref<10x17x64xf32, #tpu.memory_space<vmem>>, vector<8x1x64xf32>
    tpu.vector_store %arg12[%c1, %c7_16, %c0_17], %16 {strides = array<i32>} : memref<10x17x64xf32, #tpu.memory_space<vmem>>, vector<8x1x64xf32>,
    %c1_18 = arith.constant 1 : index
    %c16 = arith.constant 16 : index
    %c0_19 = arith.constant 0 : index
    %20 = vector.load %arg12[%c1_18, %c16, %c0_19] : memref<10x17x64xf32, #tpu.memory_space<vmem>>, vector<8x1x64xf32>
    tpu.vector_store %arg12[%c1_18, %c16, %c0_19], %16 {strides = array<i32>} : memref<10x17x64xf32, #tpu.memory_space<vmem>>, vector<8x1x64xf32>,
    %c1_20 = arith.constant 1 : index
    %c8 = arith.constant 8 : index
    %c0_21 = arith.constant 0 : index
    %21 = vector.load %arg12[%c1_20, %c8, %c0_21] : memref<10x17x64xf32, #tpu.memory_space<vmem>>, vector<8x8x64xf32>
    tpu.vector_store %arg12[%c1_20, %c8, %c0_21], %14 {strides = array<i32>} : memref<10x17x64xf32, #tpu.memory_space<vmem>>, vector<8x8x64xf32>,
    %c0_22 = arith.constant 0 : index
    %c1_23 = arith.constant 1 : index
    %c1_24 = arith.constant 1 : index
    %c0_25 = arith.constant 0 : index
    %22 = vector.load %arg5[%c0_22, %c1_23, %c1_24, %c0_25] : memref<1x3x3x64xf32, #tpu.memory_space<vmem>>, vector<1x1x1x64xf32>
    %23 = vector.shape_cast %22 : vector<1x1x1x64xf32> to vector<64xf32>
    %24 = vector.shape_cast %23 : vector<64xf32> to vector<1x1x64xf32>
    %25 = vector.broadcast %24 : vector<1x1x64xf32> to vector<8x8x64xf32>
    %26 = arith.mulf %14, %25 : vector<8x8x64xf32>
    %c0_26 = arith.constant 0 : index
    %c7_27 = arith.constant 7 : index
    %c0_28 = arith.constant 0 : index
    %27 = vector.load %arg12[%c0_26, %c7_27, %c0_28] : memref<10x17x64xf32, #tpu.memory_space<vmem>>, vector<8x8x64xf32>
    %c0_29 = arith.constant 0 : index
    %c0_30 = arith.constant 0 : index
    %c0_31 = arith.constant 0 : index
    %c0_32 = arith.constant 0 : index
    %28 = vector.load %arg5[%c0_29, %c0_30, %c0_31, %c0_32] : memref<1x3x3x64xf32, #tpu.memory_space<vmem>>, vector<1x1x1x64xf32>
    %29 = vector.shape_cast %28 : vector<1x1x1x64xf32> to vector<64xf32>
    %30 = vector.shape_cast %29 : vector<64xf32> to vector<1x1x64xf32>
    %31 = vector.broadcast %30 : vector<1x1x64xf32> to vector<8x8x64xf32>
    %32 = arith.mulf %27, %31 : vector<8x8x64xf32>
    %33 = arith.addf %26, %32 : vector<8x8x64xf32>
    %c0_33 = arith.constant 0 : index
    %c8_34 = arith.constant 8 : index
    %c0_35 = arith.constant 0 : index
    %34 = vector.load %arg12[%c0_33, %c8_34, %c0_35] : memref<10x17x64xf32, #tpu.memory_space<vmem>>, vector<8x8x64xf32>
    %c0_36 = arith.constant 0 : index
    %c0_37 = arith.constant 0 : index
    %c1_38 = arith.constant 1 : index
    %c0_39 = arith.constant 0 : index
    %35 = vector.load %arg5[%c0_36, %c0_37, %c1_38, %c0_39] : memref<1x3x3x64xf32, #tpu.memory_space<vmem>>, vector<1x1x1x64xf32>
    %36 = vector.shape_cast %35 : vector<1x1x1x64xf32> to vector<64xf32>
    %37 = vector.shape_cast %36 : vector<64xf32> to vector<1x1x64xf32>
    %38 = vector.broadcast %37 : vector<1x1x64xf32> to vector<8x8x64xf32>
    %39 = arith.mulf %34, %38 : vector<8x8x64xf32>
    %40 = arith.addf %33, %39 : vector<8x8x64xf32>
    %c0_40 = arith.constant 0 : index
    %c9_41 = arith.constant 9 : index
    %c0_42 = arith.constant 0 : index
    %41 = vector.load %arg12[%c0_40, %c9_41, %c0_42] : memref<10x17x64xf32, #tpu.memory_space<vmem>>, vector<8x8x64xf32>
    %c0_43 = arith.constant 0 : index
    %c0_44 = arith.constant 0 : index
    %c2 = arith.constant 2 : index
    %c0_45 = arith.constant 0 : index
    %42 = vector.load %arg5[%c0_43, %c0_44, %c2, %c0_45] : memref<1x3x3x64xf32, #tpu.memory_space<vmem>>, vector<1x1x1x64xf32>
    %43 = vector.shape_cast %42 : vector<1x1x1x64xf32> to vector<64xf32>
    %44 = vector.shape_cast %43 : vector<64xf32> to vector<1x1x64xf32>
    %45 = vector.broadcast %44 : vector<1x1x64xf32> to vector<8x8x64xf32>
    %46 = arith.mulf %41, %45 : vector<8x8x64xf32>
    %47 = arith.addf %40, %46 : vector<8x8x64xf32>
    %c1_46 = arith.constant 1 : index
    %c7_47 = arith.constant 7 : index
    %c0_48 = arith.constant 0 : index
    %48 = vector.load %arg12[%c1_46, %c7_47, %c0_48] : memref<10x17x64xf32, #tpu.memory_space<vmem>>, vector<8x8x64xf32>
    %c0_49 = arith.constant 0 : index
    %c1_50 = arith.constant 1 : index
    %c0_51 = arith.constant 0 : index
    %c0_52 = arith.constant 0 : index
    %49 = vector.load %arg5[%c0_49, %c1_50, %c0_51, %c0_52] : memref<1x3x3x64xf32, #tpu.memory_space<vmem>>, vector<1x1x1x64xf32>
    %50 = vector.shape_cast %49 : vector<1x1x1x64xf32> to vector<64xf32>
    %51 = vector.shape_cast %50 : vector<64xf32> to vector<1x1x64xf32>
    %52 = vector.broadcast %51 : vector<1x1x64xf32> to vector<8x8x64xf32>
    %53 = arith.mulf %48, %52 : vector<8x8x64xf32>
    %54 = arith.addf %47, %53 : vector<8x8x64xf32>
    %c1_53 = arith.constant 1 : index
    %c9_54 = arith.constant 9 : index
    %c0_55 = arith.constant 0 : index
    %55 = vector.load %arg12[%c1_53, %c9_54, %c0_55] : memref<10x17x64xf32, #tpu.memory_space<vmem>>, vector<8x8x64xf32>
    %c0_56 = arith.constant 0 : index
    %c1_57 = arith.constant 1 : index
    %c2_58 = arith.constant 2 : index
    %c0_59 = arith.constant 0 : index
    %56 = vector.load %arg5[%c0_56, %c1_57, %c2_58, %c0_59] : memref<1x3x3x64xf32, #tpu.memory_space<vmem>>, vector<1x1x1x64xf32>
    %57 = vector.shape_cast %56 : vector<1x1x1x64xf32> to vector<64xf32>
    %58 = vector.shape_cast %57 : vector<64xf32> to vector<1x1x64xf32>
    %59 = vector.broadcast %58 : vector<1x1x64xf32> to vector<8x8x64xf32>
    %60 = arith.mulf %55, %59 : vector<8x8x64xf32>
    %61 = arith.addf %54, %60 : vector<8x8x64xf32>
    %c2_60 = arith.constant 2 : index
    %c7_61 = arith.constant 7 : index
    %c0_62 = arith.constant 0 : index
    %62 = vector.load %arg12[%c2_60, %c7_61, %c0_62] : memref<10x17x64xf32, #tpu.memory_space<vmem>>, vector<8x8x64xf32>
    %c0_63 = arith.constant 0 : index
    %c2_64 = arith.constant 2 : index
    %c0_65 = arith.constant 0 : index
    %c0_66 = arith.constant 0 : index
    %63 = vector.load %arg5[%c0_63, %c2_64, %c0_65, %c0_66] : memref<1x3x3x64xf32, #tpu.memory_space<vmem>>, vector<1x1x1x64xf32>
    %64 = vector.shape_cast %63 : vector<1x1x1x64xf32> to vector<64xf32>
    %65 = vector.shape_cast %64 : vector<64xf32> to vector<1x1x64xf32>
    %66 = vector.broadcast %65 : vector<1x1x64xf32> to vector<8x8x64xf32>
    %67 = arith.mulf %62, %66 : vector<8x8x64xf32>
    %68 = arith.addf %61, %67 : vector<8x8x64xf32>
    %c2_67 = arith.constant 2 : index
    %c8_68 = arith.constant 8 : index
    %c0_69 = arith.constant 0 : index
    %69 = vector.load %arg12[%c2_67, %c8_68, %c0_69] : memref<10x17x64xf32, #tpu.memory_space<vmem>>, vector<8x8x64xf32>
    %c0_70 = arith.constant 0 : index
    %c2_71 = arith.constant 2 : index
    %c1_72 = arith.constant 1 : index
    %c0_73 = arith.constant 0 : index
    %70 = vector.load %arg5[%c0_70, %c2_71, %c1_72, %c0_73] : memref<1x3x3x64xf32, #tpu.memory_space<vmem>>, vector<1x1x1x64xf32>
    %71 = vector.shape_cast %70 : vector<1x1x1x64xf32> to vector<64xf32>
    %72 = vector.shape_cast %71 : vector<64xf32> to vector<1x1x64xf32>
    %73 = vector.broadcast %72 : vector<1x1x64xf32> to vector<8x8x64xf32>
    %74 = arith.mulf %69, %73 : vector<8x8x64xf32>
    %75 = arith.addf %68, %74 : vector<8x8x64xf32>
    %c2_74 = arith.constant 2 : index
    %c9_75 = arith.constant 9 : index
    %c0_76 = arith.constant 0 : index
    %76 = vector.load %arg12[%c2_74, %c9_75, %c0_76] : memref<10x17x64xf32, #tpu.memory_space<vmem>>, vector<8x8x64xf32>
    %c0_77 = arith.constant 0 : index
    %c2_78 = arith.constant 2 : index
    %c2_79 = arith.constant 2 : index
    %c0_80 = arith.constant 0 : index
    %77 = vector.load %arg5[%c0_77, %c2_78, %c2_79, %c0_80] : memref<1x3x3x64xf32, #tpu.memory_space<vmem>>, vector<1x1x1x64xf32>
    %78 = vector.shape_cast %77 : vector<1x1x1x64xf32> to vector<64xf32>
    %79 = vector.shape_cast %78 : vector<64xf32> to vector<1x1x64xf32>
    %80 = vector.broadcast %79 : vector<1x1x64xf32> to vector<8x8x64xf32>
    %81 = arith.mulf %76, %80 : vector<8x8x64xf32>
    %82 = arith.addf %75, %81 : vector<8x8x64xf32>
    %c0_81 = arith.constant 0 : index
    %c0_82 = arith.constant 0 : index
    %c0_83 = arith.constant 0 : index
    %83 = vector.load %arg6[%c0_81, %c0_82, %c0_83] : memref<1x1x64xf32, #tpu.memory_space<vmem>>, vector<1x1x64xf32>
    %84 = vector.shape_cast %83 : vector<1x1x64xf32> to vector<1x64xf32>
    %85 = vector.shape_cast %84 : vector<1x64xf32> to vector<1x1x64xf32>
    %86 = vector.broadcast %85 : vector<1x1x64xf32> to vector<8x8x64xf32>
    %87 = arith.addf %82, %86 : vector<8x8x64xf32>
    %88 = arith.addf %14, %87 : vector<8x8x64xf32>
    %89 = vector.shape_cast %88 : vector<8x8x64xf32> to vector<64x64xf32>
    %c0_84 = arith.constant 0 : index
    %c0_85 = arith.constant 0 : index
    %90 = vector.load %arg7[%c0_84, %c0_85] : memref<64x128xbf16, #tpu.memory_space<vmem>>, vector<64x128xbf16>
    %91 = arith.truncf %89 : vector<64x64xf32> to vector<64x64xbf16>
    %cst_86 = arith.constant dense<0.000000e+00> : vector<64x128xf32>
    %92 = tpu.matmul %91, %90, %cst_86 {dimension_numbers = #tpu.dot_dimension_numbers<[1], [0], [0], [1], [0, 0, 1, 1], [], []>} : vector<64x64xbf16>, vector<64x128xbf16>, vector<64x128xf32> -> vector<64x128xf32>
    %c0_87 = arith.constant 0 : index
    %c0_88 = arith.constant 0 : index
    %93 = vector.load %arg8[%c0_87, %c0_88] : memref<1x128xf32, #tpu.memory_space<vmem>>, vector<1x128xf32>
    %94 = vector.broadcast %93 : vector<1x128xf32> to vector<64x128xf32>
    %95 = arith.addf %92, %94 : vector<64x128xf32>
    %cst_89 = arith.constant 0.000000e+00 : f32
    %96 = vector.broadcast %cst_89 : f32 to vector<64x128xf32>
    %97 = arith.maximumf %95, %96 : vector<64x128xf32>
    %c0_90 = arith.constant 0 : index
    %c0_91 = arith.constant 0 : index
    %98 = vector.load %arg9[%c0_90, %c0_91] : memref<128x64xbf16, #tpu.memory_space<vmem>>, vector<128x64xbf16>
    %99 = arith.truncf %97 : vector<64x128xf32> to vector<64x128xbf16>
    %cst_92 = arith.constant dense<0.000000e+00> : vector<64x64xf32>
    %100 = tpu.matmul %99, %98, %cst_92 {dimension_numbers = #tpu.dot_dimension_numbers<[1], [0], [0], [1], [0, 0, 1, 1], [], []>} : vector<64x128xbf16>, vector<128x64xbf16>, vector<64x64xf32> -> vector<64x64xf32>
    %101 = arith.addf %89, %100 : vector<64x64xf32>
    %c0_93 = arith.constant 0 : index
    %c0_94 = arith.constant 0 : index
    %102 = vector.load %arg10[%c0_93, %c0_94] : memref<1x64xf32, #tpu.memory_space<vmem>>, vector<1x64xf32>
    %103 = vector.broadcast %102 : vector<1x64xf32> to vector<64x64xf32>
    %104 = arith.addf %101, %103 : vector<64x64xf32>
    %105 = vector.shape_cast %104 : vector<64x64xf32> to vector<8x8x64xf32>
    %106 = arith.truncf %105 : vector<8x8x64xf32> to vector<8x8x64xbf16>
    %c0_95 = arith.constant 0 : index
    %c0_96 = arith.constant 0 : index
    %c0_97 = arith.constant 0 : index
    %c0_98 = arith.constant 0 : index
    %107 = vector.load %arg11[%c0_95, %c0_96, %c0_97, %c0_98] : memref<1x8x8x64xbf16, #tpu.memory_space<vmem>>, vector<1x8x8x64xbf16>
    %108 = vector.shape_cast %107 : vector<1x8x8x64xbf16> to vector<8x8x64xbf16>
    %109 = vector.shape_cast %106 : vector<8x8x64xbf16> to vector<1x8x8x64xbf16>
    tpu.vector_store %arg11[%c0_95, %c0_96, %c0_97, %c0_98], %109 {strides = array<i32>} : memref<1x8x8x64xbf16, #tpu.memory_space<vmem>>, vector<1x8x8x64xbf16>,
    return
  }
  func.func @transform_0(%arg0: i32) -> (i32, i32, i32, i32) {
    %c0_i32 = arith.constant 0 : i32
    %c0_i32_0 = arith.constant 0 : i32
    %c0_i32_1 = arith.constant 0 : i32
    %c0_i32_2 = arith.constant 0 : i32
    return %arg0, %c0_i32, %c0_i32_0, %c0_i32_1 : i32, i32, i32, i32
  }
  func.func @transform_1(%arg0: i32) -> (i32, i32, i32) {
    %c0_i32 = arith.constant 0 : i32
    %c0_i32_0 = arith.constant 0 : i32
    %c0_i32_1 = arith.constant 0 : i32
    return %arg0, %c0_i32, %c0_i32_0 : i32, i32, i32
  }
  func.func @transform_2(%arg0: i32) -> (i32, i32) {
    %c0_i32 = arith.constant 0 : i32
    %c0_i32_0 = arith.constant 0 : i32
    %c0_i32_1 = arith.constant 0 : i32
    return %c0_i32, %c0_i32_0 : i32, i32
  }
  func.func @transform_3(%arg0: i32) -> (i32, i32) {
    %c0_i32 = arith.constant 0 : i32
    %c0_i32_0 = arith.constant 0 : i32
    %c0_i32_1 = arith.constant 0 : i32
    return %c0_i32, %c0_i32_0 : i32, i32
  }
  func.func @transform_4(%arg0: i32) -> (i32, i32, i32, i32) {
    %c0_i32 = arith.constant 0 : i32
    %c0_i32_0 = arith.constant 0 : i32
    %c0_i32_1 = arith.constant 0 : i32
    %c0_i32_2 = arith.constant 0 : i32
    %c0_i32_3 = arith.constant 0 : i32
    return %c0_i32, %c0_i32_0, %c0_i32_1, %c0_i32_2 : i32, i32, i32, i32
  }
  func.func @transform_5(%arg0: i32) -> (i32, i32, i32) {
    %c0_i32 = arith.constant 0 : i32
    %c0_i32_0 = arith.constant 0 : i32
    %c0_i32_1 = arith.constant 0 : i32
    %c0_i32_2 = arith.constant 0 : i32
    return %c0_i32, %c0_i32_0, %c0_i32_1 : i32, i32, i32
  }
  func.func @transform_6(%arg0: i32) -> (i32, i32) {
    %c0_i32 = arith.constant 0 : i32
    %c0_i32_0 = arith.constant 0 : i32
    %c0_i32_1 = arith.constant 0 : i32
    return %c0_i32, %c0_i32_0 : i32, i32
  }
  func.func @transform_7(%arg0: i32) -> (i32, i32) {
    %c0_i32 = arith.constant 0 : i32
    %c0_i32_0 = arith.constant 0 : i32
    %c0_i32_1 = arith.constant 0 : i32
    return %c0_i32, %c0_i32_0 : i32, i32
  }
  func.func @transform_8(%arg0: i32) -> (i32, i32) {
    %c0_i32 = arith.constant 0 : i32
    %c0_i32_0 = arith.constant 0 : i32
    %c0_i32_1 = arith.constant 0 : i32
    return %c0_i32, %c0_i32_0 : i32, i32
  }
  func.func @transform_9(%arg0: i32) -> (i32, i32) {
    %c0_i32 = arith.constant 0 : i32
    %c0_i32_0 = arith.constant 0 : i32
    %c0_i32_1 = arith.constant 0 : i32
    return %c0_i32, %c0_i32_0 : i32, i32
  }
  func.func @transform_10(%arg0: i32) -> (i32, i32, i32, i32) {
    %c0_i32 = arith.constant 0 : i32
    %c0_i32_0 = arith.constant 0 : i32
    %c0_i32_1 = arith.constant 0 : i32
    %c0_i32_2 = arith.constant 0 : i32
    return %arg0, %c0_i32, %c0_i32_0, %c0_i32_1 : i32, i32, i32, i32
  }
}

module attributes {stable_mosaic.version = 11 : i64} {
  func.func @_blocks_kernel(%arg0: i32, %arg1: i32, %arg2: memref<1x8x8x64xbf16, #tpu.memory_space<vmem>>, %arg3: memref<1x3x3x64xf32, #tpu.memory_space<vmem>>, %arg4: memref<1x1x64xf32, #tpu.memory_space<vmem>>, %arg5: memref<1x1x32xf32, #tpu.memory_space<vmem>>, %arg6: memref<1x1x32xf32, #tpu.memory_space<vmem>>, %arg7: memref<1x32x64xbf16, #tpu.memory_space<vmem>>, %arg8: memref<1x1x64xf32, #tpu.memory_space<vmem>>, %arg9: memref<1x64x64xbf16, #tpu.memory_space<vmem>>, %arg10: memref<1x1x64xf32, #tpu.memory_space<vmem>>, %arg11: memref<1x64x128xbf16, #tpu.memory_space<vmem>>, %arg12: memref<1x1x128xf32, #tpu.memory_space<vmem>>, %arg13: memref<1x128x64xbf16, #tpu.memory_space<vmem>>, %arg14: memref<1x1x64xf32, #tpu.memory_space<vmem>>, %arg15: memref<1x8x8x64xbf16, #tpu.memory_space<vmem>>, %arg16: memref<8x8x64xf32, #tpu.memory_space<vmem>>, %arg17: memref<10x17x64xf32, #tpu.memory_space<vmem>>) attributes {dimension_semantics = [#tpu.dimension_semantics<parallel>, #tpu.dimension_semantics<arbitrary>], iteration_bounds = array<i64: 2, 2>, scalar_prefetch = 0 : i64, scratch_operands = 2 : i64, tpu.core_type = #tpu.core_type<tc>, window_params = [{transform_indices = @transform_0, window_bounds = array<i64: 1, 8, 8, 64>}, {transform_indices = @transform_1, window_bounds = array<i64: 1, 3, 3, 64>}, {transform_indices = @transform_2, window_bounds = array<i64: 1, 1, 64>}, {transform_indices = @transform_3, window_bounds = array<i64: 1, 1, 32>}, {transform_indices = @transform_4, window_bounds = array<i64: 1, 1, 32>}, {transform_indices = @transform_5, window_bounds = array<i64: 1, 32, 64>}, {transform_indices = @transform_6, window_bounds = array<i64: 1, 1, 64>}, {transform_indices = @transform_7, window_bounds = array<i64: 1, 64, 64>}, {transform_indices = @transform_8, window_bounds = array<i64: 1, 1, 64>}, {transform_indices = @transform_9, window_bounds = array<i64: 1, 64, 128>}, {transform_indices = @transform_10, window_bounds = array<i64: 1, 1, 128>}, {transform_indices = @transform_11, window_bounds = array<i64: 1, 128, 64>}, {transform_indices = @transform_12, window_bounds = array<i64: 1, 1, 64>}, {transform_indices = @transform_13, window_bounds = array<i64: 1, 8, 8, 64>}]} {
    %c0_i32 = arith.constant 0 : i32
    %0 = arith.cmpi eq, %arg1, %c0_i32 : i32
    %1 = arith.extui %0 : i1 to i32
    %c0_i32_0 = arith.constant 0 : i32
    %2 = arith.cmpi ne, %1, %c0_i32_0 : i32
    scf.if %2 {
      %c0_129 = arith.constant 0 : index
      %c0_130 = arith.constant 0 : index
      %c0_131 = arith.constant 0 : index
      %c0_132 = arith.constant 0 : index
      %177 = vector.load %arg2[%c0_129, %c0_130, %c0_131, %c0_132] : memref<1x8x8x64xbf16, #tpu.memory_space<vmem>>, vector<1x8x8x64xbf16>
      %178 = vector.shape_cast %177 : vector<1x8x8x64xbf16> to vector<8x8x64xbf16>
      %179 = arith.extf %178 : vector<8x8x64xbf16> to vector<8x8x64xf32>
      %c0_133 = arith.constant 0 : index
      %c0_134 = arith.constant 0 : index
      %c0_135 = arith.constant 0 : index
      %180 = vector.load %arg16[%c0_133, %c0_134, %c0_135] : memref<8x8x64xf32, #tpu.memory_space<vmem>>, vector<8x8x64xf32>
      tpu.vector_store %arg16[%c0_133, %c0_134, %c0_135], %179 {strides = array<i32>} : memref<8x8x64xf32, #tpu.memory_space<vmem>>, vector<8x8x64xf32>,
    } else {
    }
    %c0 = arith.constant 0 : index
    %c0_1 = arith.constant 0 : index
    %c0_2 = arith.constant 0 : index
    %3 = vector.load %arg16[%c0, %c0_1, %c0_2] : memref<8x8x64xf32, #tpu.memory_space<vmem>>, vector<8x8x64xf32>
    %cst = arith.constant 0.000000e+00 : f32
    %4 = vector.broadcast %cst : f32 to vector<1x10x64xf32>
    %cst_3 = arith.constant 0.000000e+00 : f32
    %5 = vector.broadcast %cst_3 : f32 to vector<8x1x64xf32>
    %c0_4 = arith.constant 0 : index
    %c7 = arith.constant 7 : index
    %c0_5 = arith.constant 0 : index
    %6 = vector.load %arg17[%c0_4, %c7, %c0_5] : memref<10x17x64xf32, #tpu.memory_space<vmem>>, vector<1x10x64xf32>
    tpu.vector_store %arg17[%c0_4, %c7, %c0_5], %4 {strides = array<i32>} : memref<10x17x64xf32, #tpu.memory_space<vmem>>, vector<1x10x64xf32>,
    %c9 = arith.constant 9 : index
    %c7_6 = arith.constant 7 : index
    %c0_7 = arith.constant 0 : index
    %7 = vector.load %arg17[%c9, %c7_6, %c0_7] : memref<10x17x64xf32, #tpu.memory_space<vmem>>, vector<1x10x64xf32>
    tpu.vector_store %arg17[%c9, %c7_6, %c0_7], %4 {strides = array<i32>} : memref<10x17x64xf32, #tpu.memory_space<vmem>>, vector<1x10x64xf32>,
    %c1 = arith.constant 1 : index
    %c7_8 = arith.constant 7 : index
    %c0_9 = arith.constant 0 : index
    %8 = vector.load %arg17[%c1, %c7_8, %c0_9] : memref<10x17x64xf32, #tpu.memory_space<vmem>>, vector<8x1x64xf32>
    tpu.vector_store %arg17[%c1, %c7_8, %c0_9], %5 {strides = array<i32>} : memref<10x17x64xf32, #tpu.memory_space<vmem>>, vector<8x1x64xf32>,
    %c1_10 = arith.constant 1 : index
    %c16 = arith.constant 16 : index
    %c0_11 = arith.constant 0 : index
    %9 = vector.load %arg17[%c1_10, %c16, %c0_11] : memref<10x17x64xf32, #tpu.memory_space<vmem>>, vector<8x1x64xf32>
    tpu.vector_store %arg17[%c1_10, %c16, %c0_11], %5 {strides = array<i32>} : memref<10x17x64xf32, #tpu.memory_space<vmem>>, vector<8x1x64xf32>,
    %c1_12 = arith.constant 1 : index
    %c8 = arith.constant 8 : index
    %c0_13 = arith.constant 0 : index
    %10 = vector.load %arg17[%c1_12, %c8, %c0_13] : memref<10x17x64xf32, #tpu.memory_space<vmem>>, vector<8x8x64xf32>
    tpu.vector_store %arg17[%c1_12, %c8, %c0_13], %3 {strides = array<i32>} : memref<10x17x64xf32, #tpu.memory_space<vmem>>, vector<8x8x64xf32>,
    %c0_14 = arith.constant 0 : index
    %c1_15 = arith.constant 1 : index
    %c1_16 = arith.constant 1 : index
    %c0_17 = arith.constant 0 : index
    %11 = vector.load %arg3[%c0_14, %c1_15, %c1_16, %c0_17] : memref<1x3x3x64xf32, #tpu.memory_space<vmem>>, vector<1x1x1x64xf32>
    %12 = vector.shape_cast %11 : vector<1x1x1x64xf32> to vector<64xf32>
    %13 = vector.shape_cast %12 : vector<64xf32> to vector<1x1x64xf32>
    %14 = vector.broadcast %13 : vector<1x1x64xf32> to vector<8x8x64xf32>
    %15 = arith.mulf %3, %14 : vector<8x8x64xf32>
    %c0_18 = arith.constant 0 : index
    %c7_19 = arith.constant 7 : index
    %c0_20 = arith.constant 0 : index
    %16 = vector.load %arg17[%c0_18, %c7_19, %c0_20] : memref<10x17x64xf32, #tpu.memory_space<vmem>>, vector<8x8x64xf32>
    %c0_21 = arith.constant 0 : index
    %c0_22 = arith.constant 0 : index
    %c0_23 = arith.constant 0 : index
    %c0_24 = arith.constant 0 : index
    %17 = vector.load %arg3[%c0_21, %c0_22, %c0_23, %c0_24] : memref<1x3x3x64xf32, #tpu.memory_space<vmem>>, vector<1x1x1x64xf32>
    %18 = vector.shape_cast %17 : vector<1x1x1x64xf32> to vector<64xf32>
    %19 = vector.shape_cast %18 : vector<64xf32> to vector<1x1x64xf32>
    %20 = vector.broadcast %19 : vector<1x1x64xf32> to vector<8x8x64xf32>
    %21 = arith.mulf %16, %20 : vector<8x8x64xf32>
    %22 = arith.addf %15, %21 : vector<8x8x64xf32>
    %c0_25 = arith.constant 0 : index
    %c8_26 = arith.constant 8 : index
    %c0_27 = arith.constant 0 : index
    %23 = vector.load %arg17[%c0_25, %c8_26, %c0_27] : memref<10x17x64xf32, #tpu.memory_space<vmem>>, vector<8x8x64xf32>
    %c0_28 = arith.constant 0 : index
    %c0_29 = arith.constant 0 : index
    %c1_30 = arith.constant 1 : index
    %c0_31 = arith.constant 0 : index
    %24 = vector.load %arg3[%c0_28, %c0_29, %c1_30, %c0_31] : memref<1x3x3x64xf32, #tpu.memory_space<vmem>>, vector<1x1x1x64xf32>
    %25 = vector.shape_cast %24 : vector<1x1x1x64xf32> to vector<64xf32>
    %26 = vector.shape_cast %25 : vector<64xf32> to vector<1x1x64xf32>
    %27 = vector.broadcast %26 : vector<1x1x64xf32> to vector<8x8x64xf32>
    %28 = arith.mulf %23, %27 : vector<8x8x64xf32>
    %29 = arith.addf %22, %28 : vector<8x8x64xf32>
    %c0_32 = arith.constant 0 : index
    %c9_33 = arith.constant 9 : index
    %c0_34 = arith.constant 0 : index
    %30 = vector.load %arg17[%c0_32, %c9_33, %c0_34] : memref<10x17x64xf32, #tpu.memory_space<vmem>>, vector<8x8x64xf32>
    %c0_35 = arith.constant 0 : index
    %c0_36 = arith.constant 0 : index
    %c2 = arith.constant 2 : index
    %c0_37 = arith.constant 0 : index
    %31 = vector.load %arg3[%c0_35, %c0_36, %c2, %c0_37] : memref<1x3x3x64xf32, #tpu.memory_space<vmem>>, vector<1x1x1x64xf32>
    %32 = vector.shape_cast %31 : vector<1x1x1x64xf32> to vector<64xf32>
    %33 = vector.shape_cast %32 : vector<64xf32> to vector<1x1x64xf32>
    %34 = vector.broadcast %33 : vector<1x1x64xf32> to vector<8x8x64xf32>
    %35 = arith.mulf %30, %34 : vector<8x8x64xf32>
    %36 = arith.addf %29, %35 : vector<8x8x64xf32>
    %c1_38 = arith.constant 1 : index
    %c7_39 = arith.constant 7 : index
    %c0_40 = arith.constant 0 : index
    %37 = vector.load %arg17[%c1_38, %c7_39, %c0_40] : memref<10x17x64xf32, #tpu.memory_space<vmem>>, vector<8x8x64xf32>
    %c0_41 = arith.constant 0 : index
    %c1_42 = arith.constant 1 : index
    %c0_43 = arith.constant 0 : index
    %c0_44 = arith.constant 0 : index
    %38 = vector.load %arg3[%c0_41, %c1_42, %c0_43, %c0_44] : memref<1x3x3x64xf32, #tpu.memory_space<vmem>>, vector<1x1x1x64xf32>
    %39 = vector.shape_cast %38 : vector<1x1x1x64xf32> to vector<64xf32>
    %40 = vector.shape_cast %39 : vector<64xf32> to vector<1x1x64xf32>
    %41 = vector.broadcast %40 : vector<1x1x64xf32> to vector<8x8x64xf32>
    %42 = arith.mulf %37, %41 : vector<8x8x64xf32>
    %43 = arith.addf %36, %42 : vector<8x8x64xf32>
    %c1_45 = arith.constant 1 : index
    %c9_46 = arith.constant 9 : index
    %c0_47 = arith.constant 0 : index
    %44 = vector.load %arg17[%c1_45, %c9_46, %c0_47] : memref<10x17x64xf32, #tpu.memory_space<vmem>>, vector<8x8x64xf32>
    %c0_48 = arith.constant 0 : index
    %c1_49 = arith.constant 1 : index
    %c2_50 = arith.constant 2 : index
    %c0_51 = arith.constant 0 : index
    %45 = vector.load %arg3[%c0_48, %c1_49, %c2_50, %c0_51] : memref<1x3x3x64xf32, #tpu.memory_space<vmem>>, vector<1x1x1x64xf32>
    %46 = vector.shape_cast %45 : vector<1x1x1x64xf32> to vector<64xf32>
    %47 = vector.shape_cast %46 : vector<64xf32> to vector<1x1x64xf32>
    %48 = vector.broadcast %47 : vector<1x1x64xf32> to vector<8x8x64xf32>
    %49 = arith.mulf %44, %48 : vector<8x8x64xf32>
    %50 = arith.addf %43, %49 : vector<8x8x64xf32>
    %c2_52 = arith.constant 2 : index
    %c7_53 = arith.constant 7 : index
    %c0_54 = arith.constant 0 : index
    %51 = vector.load %arg17[%c2_52, %c7_53, %c0_54] : memref<10x17x64xf32, #tpu.memory_space<vmem>>, vector<8x8x64xf32>
    %c0_55 = arith.constant 0 : index
    %c2_56 = arith.constant 2 : index
    %c0_57 = arith.constant 0 : index
    %c0_58 = arith.constant 0 : index
    %52 = vector.load %arg3[%c0_55, %c2_56, %c0_57, %c0_58] : memref<1x3x3x64xf32, #tpu.memory_space<vmem>>, vector<1x1x1x64xf32>
    %53 = vector.shape_cast %52 : vector<1x1x1x64xf32> to vector<64xf32>
    %54 = vector.shape_cast %53 : vector<64xf32> to vector<1x1x64xf32>
    %55 = vector.broadcast %54 : vector<1x1x64xf32> to vector<8x8x64xf32>
    %56 = arith.mulf %51, %55 : vector<8x8x64xf32>
    %57 = arith.addf %50, %56 : vector<8x8x64xf32>
    %c2_59 = arith.constant 2 : index
    %c8_60 = arith.constant 8 : index
    %c0_61 = arith.constant 0 : index
    %58 = vector.load %arg17[%c2_59, %c8_60, %c0_61] : memref<10x17x64xf32, #tpu.memory_space<vmem>>, vector<8x8x64xf32>
    %c0_62 = arith.constant 0 : index
    %c2_63 = arith.constant 2 : index
    %c1_64 = arith.constant 1 : index
    %c0_65 = arith.constant 0 : index
    %59 = vector.load %arg3[%c0_62, %c2_63, %c1_64, %c0_65] : memref<1x3x3x64xf32, #tpu.memory_space<vmem>>, vector<1x1x1x64xf32>
    %60 = vector.shape_cast %59 : vector<1x1x1x64xf32> to vector<64xf32>
    %61 = vector.shape_cast %60 : vector<64xf32> to vector<1x1x64xf32>
    %62 = vector.broadcast %61 : vector<1x1x64xf32> to vector<8x8x64xf32>
    %63 = arith.mulf %58, %62 : vector<8x8x64xf32>
    %64 = arith.addf %57, %63 : vector<8x8x64xf32>
    %c2_66 = arith.constant 2 : index
    %c9_67 = arith.constant 9 : index
    %c0_68 = arith.constant 0 : index
    %65 = vector.load %arg17[%c2_66, %c9_67, %c0_68] : memref<10x17x64xf32, #tpu.memory_space<vmem>>, vector<8x8x64xf32>
    %c0_69 = arith.constant 0 : index
    %c2_70 = arith.constant 2 : index
    %c2_71 = arith.constant 2 : index
    %c0_72 = arith.constant 0 : index
    %66 = vector.load %arg3[%c0_69, %c2_70, %c2_71, %c0_72] : memref<1x3x3x64xf32, #tpu.memory_space<vmem>>, vector<1x1x1x64xf32>
    %67 = vector.shape_cast %66 : vector<1x1x1x64xf32> to vector<64xf32>
    %68 = vector.shape_cast %67 : vector<64xf32> to vector<1x1x64xf32>
    %69 = vector.broadcast %68 : vector<1x1x64xf32> to vector<8x8x64xf32>
    %70 = arith.mulf %65, %69 : vector<8x8x64xf32>
    %71 = arith.addf %64, %70 : vector<8x8x64xf32>
    %c0_73 = arith.constant 0 : index
    %c0_74 = arith.constant 0 : index
    %c0_75 = arith.constant 0 : index
    %72 = vector.load %arg4[%c0_73, %c0_74, %c0_75] : memref<1x1x64xf32, #tpu.memory_space<vmem>>, vector<1x1x64xf32>
    %73 = vector.shape_cast %72 : vector<1x1x64xf32> to vector<1x64xf32>
    %74 = vector.shape_cast %73 : vector<1x64xf32> to vector<1x1x64xf32>
    %75 = vector.broadcast %74 : vector<1x1x64xf32> to vector<8x8x64xf32>
    %76 = arith.addf %71, %75 : vector<8x8x64xf32>
    %77 = arith.addf %3, %76 : vector<8x8x64xf32>
    %78 = vector.shape_cast %77 : vector<8x8x64xf32> to vector<64x64xf32>
    %79 = vector.extract_strided_slice %78 {offsets = [0, 0], sizes = [64, 32], strides = [1, 1]} : vector<64x64xf32> to vector<64x32xf32>
    %80 = vector.shape_cast %79 : vector<64x32xf32> to vector<1x64x32xf32>
    %cst_76 = arith.constant dense<0.000000e+00> : vector<1xf32>
    %81 = vector.multi_reduction <add>, %80, %cst_76 [1, 2] : vector<1x64x32xf32> to vector<1xf32>
    %82 = vector.shape_cast %81 : vector<1xf32> to vector<1x1x1xf32>
    %83 = vector.extract %82[0, 0, 0] : f32 from vector<1x1x1xf32>
    %cst_77 = arith.constant 2.048000e+03 : f32
    %84 = arith.divf %83, %cst_77 : f32
    %85 = vector.broadcast %84 : f32 to vector<64x32xf32>
    %86 = arith.subf %79, %85 : vector<64x32xf32>
    %87 = arith.mulf %86, %86 : vector<64x32xf32>
    %88 = vector.shape_cast %87 : vector<64x32xf32> to vector<1x64x32xf32>
    %cst_78 = arith.constant dense<0.000000e+00> : vector<1xf32>
    %89 = vector.multi_reduction <add>, %88, %cst_78 [1, 2] : vector<1x64x32xf32> to vector<1xf32>
    %90 = vector.shape_cast %89 : vector<1xf32> to vector<1x1x1xf32>
    %91 = vector.extract %90[0, 0, 0] : f32 from vector<1x1x1xf32>
    %cst_79 = arith.constant 2.048000e+03 : f32
    %92 = arith.divf %91, %cst_79 : f32
    %93 = vector.broadcast %84 : f32 to vector<64x32xf32>
    %94 = arith.subf %79, %93 : vector<64x32xf32>
    %cst_80 = arith.constant 9.99999974E-6 : f32
    %95 = arith.addf %92, %cst_80 : f32
    %96 = math.rsqrt %95 : f32
    %97 = vector.broadcast %96 : f32 to vector<64x32xf32>
    %98 = arith.mulf %94, %97 : vector<64x32xf32>
    %c0_81 = arith.constant 0 : index
    %c0_82 = arith.constant 0 : index
    %c0_83 = arith.constant 0 : index
    %99 = vector.load %arg5[%c0_81, %c0_82, %c0_83] : memref<1x1x32xf32, #tpu.memory_space<vmem>>, vector<1x1x32xf32>
    %100 = vector.shape_cast %99 : vector<1x1x32xf32> to vector<1x32xf32>
    %101 = vector.broadcast %100 : vector<1x32xf32> to vector<64x32xf32>
    %102 = arith.mulf %98, %101 : vector<64x32xf32>
    %c0_84 = arith.constant 0 : index
    %c0_85 = arith.constant 0 : index
    %c0_86 = arith.constant 0 : index
    %103 = vector.load %arg6[%c0_84, %c0_85, %c0_86] : memref<1x1x32xf32, #tpu.memory_space<vmem>>, vector<1x1x32xf32>
    %104 = vector.shape_cast %103 : vector<1x1x32xf32> to vector<1x32xf32>
    %105 = vector.broadcast %104 : vector<1x32xf32> to vector<64x32xf32>
    %106 = arith.addf %102, %105 : vector<64x32xf32>
    %c0_87 = arith.constant 0 : index
    %c0_88 = arith.constant 0 : index
    %c0_89 = arith.constant 0 : index
    %107 = vector.load %arg7[%c0_87, %c0_88, %c0_89] : memref<1x32x64xbf16, #tpu.memory_space<vmem>>, vector<1x32x64xbf16>
    %108 = vector.shape_cast %107 : vector<1x32x64xbf16> to vector<32x64xbf16>
    %109 = arith.truncf %106 : vector<64x32xf32> to vector<64x32xbf16>
    %cst_90 = arith.constant dense<0.000000e+00> : vector<64x64xf32>
    %110 = tpu.matmul %109, %108, %cst_90 {dimension_numbers = #tpu.dot_dimension_numbers<[1], [0], [0], [1], [0, 0, 1, 1], [], []>} : vector<64x32xbf16>, vector<32x64xbf16>, vector<64x64xf32> -> vector<64x64xf32>
    %c0_91 = arith.constant 0 : index
    %c0_92 = arith.constant 0 : index
    %c0_93 = arith.constant 0 : index
    %111 = vector.load %arg8[%c0_91, %c0_92, %c0_93] : memref<1x1x64xf32, #tpu.memory_space<vmem>>, vector<1x1x64xf32>
    %112 = vector.shape_cast %111 : vector<1x1x64xf32> to vector<1x64xf32>
    %113 = vector.broadcast %112 : vector<1x64xf32> to vector<64x64xf32>
    %114 = arith.addf %110, %113 : vector<64x64xf32>
    %115 = vector.extract_strided_slice %114 {offsets = [0, 0], sizes = [64, 16], strides = [1, 1]} : vector<64x64xf32> to vector<64x16xf32>
    %116 = vector.extract_strided_slice %114 {offsets = [0, 16], sizes = [64, 16], strides = [1, 1]} : vector<64x64xf32> to vector<64x16xf32>
    %117 = vector.extract_strided_slice %114 {offsets = [0, 32], sizes = [64, 32], strides = [1, 1]} : vector<64x64xf32> to vector<64x32xf32>
    %118 = arith.truncf %115 : vector<64x16xf32> to vector<64x16xbf16>
    %119 = arith.truncf %116 : vector<64x16xf32> to vector<64x16xbf16>
    %cst_94 = arith.constant dense<0.000000e+00> : vector<64x64xf32>
    %120 = tpu.matmul %118, %119, %cst_94 {dimension_numbers = #tpu.dot_dimension_numbers<[1], [1], [0], [0], [0, 0, 1, 0], [], []>} : vector<64x16xbf16>, vector<64x16xbf16>, vector<64x64xf32> -> vector<64x64xf32>
    %cst_95 = arith.constant dense<0xFF800000> : vector<64xf32>
    %121 = vector.multi_reduction <maximumf>, %120, %cst_95 [1] : vector<64x64xf32> to vector<64xf32>
    %122 = vector.shape_cast %121 : vector<64xf32> to vector<64x1xf32>
    %123 = vector.broadcast %122 : vector<64x1xf32> to vector<64x64xf32>
    %124 = arith.subf %120, %123 : vector<64x64xf32>
    %125 = math.exp %124 : vector<64x64xf32>
    %cst_96 = arith.constant dense<0.000000e+00> : vector<64xf32>
    %126 = vector.multi_reduction <add>, %125, %cst_96 [1] : vector<64x64xf32> to vector<64xf32>
    %127 = vector.shape_cast %126 : vector<64xf32> to vector<64x1xf32>
    %128 = tpu.reciprocal %127 {approx = true} : vector<64x1xf32> -> vector<64x1xf32>
    %129 = vector.broadcast %128 : vector<64x1xf32> to vector<64x64xf32>
    %130 = arith.mulf %125, %129 : vector<64x64xf32>
    %131 = arith.truncf %130 : vector<64x64xf32> to vector<64x64xbf16>
    %132 = arith.truncf %117 : vector<64x32xf32> to vector<64x32xbf16>
    %cst_97 = arith.constant dense<0.000000e+00> : vector<64x32xf32>
    %133 = tpu.matmul %131, %132, %cst_97 {dimension_numbers = #tpu.dot_dimension_numbers<[1], [0], [0], [1], [0, 0, 1, 1], [], []>} : vector<64x64xbf16>, vector<64x32xbf16>, vector<64x32xf32> -> vector<64x32xf32>
    %cst_98 = arith.constant 0.000000e+00 : f32
    %134 = vector.broadcast %cst_98 : f32 to vector<64x32xf32>
    %135 = arith.maximumf %133, %134 : vector<64x32xf32>
    %c0_99 = arith.constant 0 : index
    %c0_100 = arith.constant 0 : index
    %c0_101 = arith.constant 0 : index
    %136 = vector.load %arg9[%c0_99, %c0_100, %c0_101] : memref<1x64x64xbf16, #tpu.memory_space<vmem>>, vector<1x32x64xbf16>
    %137 = vector.shape_cast %136 : vector<1x32x64xbf16> to vector<32x64xbf16>
    %138 = arith.truncf %135 : vector<64x32xf32> to vector<64x32xbf16>
    %cst_102 = arith.constant dense<0.000000e+00> : vector<64x64xf32>
    %139 = tpu.matmul %138, %137, %cst_102 {dimension_numbers = #tpu.dot_dimension_numbers<[1], [0], [0], [1], [0, 0, 1, 1], [], []>} : vector<64x32xbf16>, vector<32x64xbf16>, vector<64x64xf32> -> vector<64x64xf32>
    %140 = vector.extract_strided_slice %78 {offsets = [0, 32], sizes = [64, 32], strides = [1, 1]} : vector<64x64xf32> to vector<64x32xf32>
    %cst_103 = arith.constant 0.000000e+00 : f32
    %141 = vector.broadcast %cst_103 : f32 to vector<64x32xf32>
    %142 = arith.maximumf %140, %141 : vector<64x32xf32>
    %c0_104 = arith.constant 0 : index
    %c32 = arith.constant 32 : index
    %c0_105 = arith.constant 0 : index
    %143 = vector.load %arg9[%c0_104, %c32, %c0_105] : memref<1x64x64xbf16, #tpu.memory_space<vmem>>, vector<1x32x64xbf16>
    %144 = vector.shape_cast %143 : vector<1x32x64xbf16> to vector<32x64xbf16>
    %145 = arith.truncf %142 : vector<64x32xf32> to vector<64x32xbf16>
    %cst_106 = arith.constant dense<0.000000e+00> : vector<64x64xf32>
    %146 = tpu.matmul %145, %144, %cst_106 {dimension_numbers = #tpu.dot_dimension_numbers<[1], [0], [0], [1], [0, 0, 1, 1], [], []>} : vector<64x32xbf16>, vector<32x64xbf16>, vector<64x64xf32> -> vector<64x64xf32>
    %147 = arith.addf %139, %146 : vector<64x64xf32>
    %c0_107 = arith.constant 0 : index
    %c0_108 = arith.constant 0 : index
    %c0_109 = arith.constant 0 : index
    %148 = vector.load %arg10[%c0_107, %c0_108, %c0_109] : memref<1x1x64xf32, #tpu.memory_space<vmem>>, vector<1x1x64xf32>
    %149 = vector.shape_cast %148 : vector<1x1x64xf32> to vector<1x64xf32>
    %150 = vector.broadcast %149 : vector<1x64xf32> to vector<64x64xf32>
    %151 = arith.addf %147, %150 : vector<64x64xf32>
    %152 = arith.addf %78, %151 : vector<64x64xf32>
    %c0_110 = arith.constant 0 : index
    %c0_111 = arith.constant 0 : index
    %c0_112 = arith.constant 0 : index
    %153 = vector.load %arg11[%c0_110, %c0_111, %c0_112] : memref<1x64x128xbf16, #tpu.memory_space<vmem>>, vector<1x64x128xbf16>
    %154 = vector.shape_cast %153 : vector<1x64x128xbf16> to vector<64x128xbf16>
    %155 = arith.truncf %152 : vector<64x64xf32> to vector<64x64xbf16>
    %cst_113 = arith.constant dense<0.000000e+00> : vector<64x128xf32>
    %156 = tpu.matmul %155, %154, %cst_113 {dimension_numbers = #tpu.dot_dimension_numbers<[1], [0], [0], [1], [0, 0, 1, 1], [], []>} : vector<64x64xbf16>, vector<64x128xbf16>, vector<64x128xf32> -> vector<64x128xf32>
    %c0_114 = arith.constant 0 : index
    %c0_115 = arith.constant 0 : index
    %c0_116 = arith.constant 0 : index
    %157 = vector.load %arg12[%c0_114, %c0_115, %c0_116] : memref<1x1x128xf32, #tpu.memory_space<vmem>>, vector<1x1x128xf32>
    %158 = vector.shape_cast %157 : vector<1x1x128xf32> to vector<1x128xf32>
    %159 = vector.broadcast %158 : vector<1x128xf32> to vector<64x128xf32>
    %160 = arith.addf %156, %159 : vector<64x128xf32>
    %cst_117 = arith.constant 0.000000e+00 : f32
    %161 = vector.broadcast %cst_117 : f32 to vector<64x128xf32>
    %162 = arith.maximumf %160, %161 : vector<64x128xf32>
    %c0_118 = arith.constant 0 : index
    %c0_119 = arith.constant 0 : index
    %c0_120 = arith.constant 0 : index
    %163 = vector.load %arg13[%c0_118, %c0_119, %c0_120] : memref<1x128x64xbf16, #tpu.memory_space<vmem>>, vector<1x128x64xbf16>
    %164 = vector.shape_cast %163 : vector<1x128x64xbf16> to vector<128x64xbf16>
    %165 = arith.truncf %162 : vector<64x128xf32> to vector<64x128xbf16>
    %cst_121 = arith.constant dense<0.000000e+00> : vector<64x64xf32>
    %166 = tpu.matmul %165, %164, %cst_121 {dimension_numbers = #tpu.dot_dimension_numbers<[1], [0], [0], [1], [0, 0, 1, 1], [], []>} : vector<64x128xbf16>, vector<128x64xbf16>, vector<64x64xf32> -> vector<64x64xf32>
    %167 = arith.addf %152, %166 : vector<64x64xf32>
    %c0_122 = arith.constant 0 : index
    %c0_123 = arith.constant 0 : index
    %c0_124 = arith.constant 0 : index
    %168 = vector.load %arg14[%c0_122, %c0_123, %c0_124] : memref<1x1x64xf32, #tpu.memory_space<vmem>>, vector<1x1x64xf32>
    %169 = vector.shape_cast %168 : vector<1x1x64xf32> to vector<1x64xf32>
    %170 = vector.broadcast %169 : vector<1x64xf32> to vector<64x64xf32>
    %171 = arith.addf %167, %170 : vector<64x64xf32>
    %172 = vector.shape_cast %171 : vector<64x64xf32> to vector<8x8x64xf32>
    %c0_125 = arith.constant 0 : index
    %c0_126 = arith.constant 0 : index
    %c0_127 = arith.constant 0 : index
    %173 = vector.load %arg16[%c0_125, %c0_126, %c0_127] : memref<8x8x64xf32, #tpu.memory_space<vmem>>, vector<8x8x64xf32>
    tpu.vector_store %arg16[%c0_125, %c0_126, %c0_127], %172 {strides = array<i32>} : memref<8x8x64xf32, #tpu.memory_space<vmem>>, vector<8x8x64xf32>,
    %c1_i32 = arith.constant 1 : i32
    %174 = arith.cmpi eq, %arg1, %c1_i32 : i32
    %175 = arith.extui %174 : i1 to i32
    %c0_i32_128 = arith.constant 0 : i32
    %176 = arith.cmpi ne, %175, %c0_i32_128 : i32
    scf.if %176 {
      %c0_129 = arith.constant 0 : index
      %c0_130 = arith.constant 0 : index
      %c0_131 = arith.constant 0 : index
      %177 = vector.load %arg16[%c0_129, %c0_130, %c0_131] : memref<8x8x64xf32, #tpu.memory_space<vmem>>, vector<8x8x64xf32>
      %178 = arith.truncf %177 : vector<8x8x64xf32> to vector<8x8x64xbf16>
      %c0_132 = arith.constant 0 : index
      %c0_133 = arith.constant 0 : index
      %c0_134 = arith.constant 0 : index
      %c0_135 = arith.constant 0 : index
      %179 = vector.load %arg15[%c0_132, %c0_133, %c0_134, %c0_135] : memref<1x8x8x64xbf16, #tpu.memory_space<vmem>>, vector<1x8x8x64xbf16>
      %180 = vector.shape_cast %179 : vector<1x8x8x64xbf16> to vector<8x8x64xbf16>
      %181 = vector.shape_cast %178 : vector<8x8x64xbf16> to vector<1x8x8x64xbf16>
      tpu.vector_store %arg15[%c0_132, %c0_133, %c0_134, %c0_135], %181 {strides = array<i32>} : memref<1x8x8x64xbf16, #tpu.memory_space<vmem>>, vector<1x8x8x64xbf16>,
    } else {
    }
    return
  }
  func.func @transform_0(%arg0: i32, %arg1: i32) -> (i32, i32, i32, i32) {
    %c0_i32 = arith.constant 0 : i32
    %c0_i32_0 = arith.constant 0 : i32
    %c0_i32_1 = arith.constant 0 : i32
    %c0_i32_2 = arith.constant 0 : i32
    return %arg0, %c0_i32, %c0_i32_0, %c0_i32_1 : i32, i32, i32, i32
  }
  func.func @transform_1(%arg0: i32, %arg1: i32) -> (i32, i32, i32, i32) {
    %c0_i32 = arith.constant 0 : i32
    %c0_i32_0 = arith.constant 0 : i32
    %c0_i32_1 = arith.constant 0 : i32
    %c0_i32_2 = arith.constant 0 : i32
    return %arg1, %c0_i32, %c0_i32_0, %c0_i32_1 : i32, i32, i32, i32
  }
  func.func @transform_2(%arg0: i32, %arg1: i32) -> (i32, i32, i32) {
    %c0_i32 = arith.constant 0 : i32
    %c0_i32_0 = arith.constant 0 : i32
    %c0_i32_1 = arith.constant 0 : i32
    return %arg1, %c0_i32, %c0_i32_0 : i32, i32, i32
  }
  func.func @transform_3(%arg0: i32, %arg1: i32) -> (i32, i32, i32) {
    %c0_i32 = arith.constant 0 : i32
    %c0_i32_0 = arith.constant 0 : i32
    %c0_i32_1 = arith.constant 0 : i32
    return %arg1, %c0_i32, %c0_i32_0 : i32, i32, i32
  }
  func.func @transform_4(%arg0: i32, %arg1: i32) -> (i32, i32, i32) {
    %c0_i32 = arith.constant 0 : i32
    %c0_i32_0 = arith.constant 0 : i32
    %c0_i32_1 = arith.constant 0 : i32
    return %arg1, %c0_i32, %c0_i32_0 : i32, i32, i32
  }
  func.func @transform_5(%arg0: i32, %arg1: i32) -> (i32, i32, i32) {
    %c0_i32 = arith.constant 0 : i32
    %c0_i32_0 = arith.constant 0 : i32
    %c0_i32_1 = arith.constant 0 : i32
    return %arg1, %c0_i32, %c0_i32_0 : i32, i32, i32
  }
  func.func @transform_6(%arg0: i32, %arg1: i32) -> (i32, i32, i32) {
    %c0_i32 = arith.constant 0 : i32
    %c0_i32_0 = arith.constant 0 : i32
    %c0_i32_1 = arith.constant 0 : i32
    return %arg1, %c0_i32, %c0_i32_0 : i32, i32, i32
  }
  func.func @transform_7(%arg0: i32, %arg1: i32) -> (i32, i32, i32) {
    %c0_i32 = arith.constant 0 : i32
    %c0_i32_0 = arith.constant 0 : i32
    %c0_i32_1 = arith.constant 0 : i32
    return %arg1, %c0_i32, %c0_i32_0 : i32, i32, i32
  }
  func.func @transform_8(%arg0: i32, %arg1: i32) -> (i32, i32, i32) {
    %c0_i32 = arith.constant 0 : i32
    %c0_i32_0 = arith.constant 0 : i32
    %c0_i32_1 = arith.constant 0 : i32
    return %arg1, %c0_i32, %c0_i32_0 : i32, i32, i32
  }
  func.func @transform_9(%arg0: i32, %arg1: i32) -> (i32, i32, i32) {
    %c0_i32 = arith.constant 0 : i32
    %c0_i32_0 = arith.constant 0 : i32
    %c0_i32_1 = arith.constant 0 : i32
    return %arg1, %c0_i32, %c0_i32_0 : i32, i32, i32
  }
  func.func @transform_10(%arg0: i32, %arg1: i32) -> (i32, i32, i32) {
    %c0_i32 = arith.constant 0 : i32
    %c0_i32_0 = arith.constant 0 : i32
    %c0_i32_1 = arith.constant 0 : i32
    return %arg1, %c0_i32, %c0_i32_0 : i32, i32, i32
  }
  func.func @transform_11(%arg0: i32, %arg1: i32) -> (i32, i32, i32) {
    %c0_i32 = arith.constant 0 : i32
    %c0_i32_0 = arith.constant 0 : i32
    %c0_i32_1 = arith.constant 0 : i32
    return %arg1, %c0_i32, %c0_i32_0 : i32, i32, i32
  }
  func.func @transform_12(%arg0: i32, %arg1: i32) -> (i32, i32, i32) {
    %c0_i32 = arith.constant 0 : i32
    %c0_i32_0 = arith.constant 0 : i32
    %c0_i32_1 = arith.constant 0 : i32
    return %arg1, %c0_i32, %c0_i32_0 : i32, i32, i32
  }
  func.func @transform_13(%arg0: i32, %arg1: i32) -> (i32, i32, i32, i32) {
    %c0_i32 = arith.constant 0 : i32
    %c0_i32_0 = arith.constant 0 : i32
    %c0_i32_1 = arith.constant 0 : i32
    %c0_i32_2 = arith.constant 0 : i32
    return %arg0, %c0_i32, %c0_i32_0, %c0_i32_1 : i32, i32, i32, i32
  }
}

</mosaic_0001>

<bundles_post_ra>
// kernel: stage_block_forward.5
= control target key start
LH: loop header
LB: loop body
LE: loop exit
PB: predicated region body
PF: predicated region fallthrough
CT: control target
= control target key end

     0   :  { %s2365_s25 = smov 0   ;;  %s2367_s26 = smov 0   ;;  %s3025_s0 = inlined_call_operand.vmem [shape: bf16[2,8,8,64], index: 0, kind: input, shape index: {}]   ;;  %s3026_s1 = inlined_call_operand.vmem [shape: f32[2,3,3,64], index: 1, kind: input, shape index: {}]   ;;  %s3027_s2 = inlined_call_operand.vmem [shape: f32[2,1,64], index: 2, kind: input, shape index: {}]   ;;  %s3028_s3 = inlined_call_operand.vmem [shape: f32[2,1,32], index: 3, kind: input, shape index: {}]   ;;  %s3029_s4 = inlined_call_operand.vmem [shape: f32[2,1,32], index: 4, kind: input, shape index: {}]   ;;  %s3030_s5 = inlined_call_operand.vmem [shape: bf16[2,32,64], index: 5, kind: input, shape index: {}]   ;;  %s3031_s6 = inlined_call_operand.vmem [shape: f32[2,1,64], index: 6, kind: input, shape index: {}]   ;;  %s3032_s7 = inlined_call_operand.vmem [shape: bf16[2,64,64], index: 7, kind: input, shape index: {}]   ;;  %s3033_s8 = inlined_call_operand.vmem [shape: f32[2,1,64], index: 8, kind: input, shape index: {}]   ;;  %s3034_s9 = inlined_call_operand.vmem [shape: bf16[2,64,128], index: 9, kind: input, shape index: {}]   ;;  %s3035_s10 = inlined_call_operand.vmem [shape: f32[2,1,128], index: 10, kind: input, shape index: {}]   ;;  %s3036_s11 = inlined_call_operand.vmem [shape: bf16[2,128,64], index: 11, kind: input, shape index: {}]   ;;  %s3037_s12 = inlined_call_operand.vmem [shape: f32[2,1,64], index: 12, kind: input, shape index: {}]   ;;  %s3038_s13 = inlined_call_operand.vmem [shape: bf16[2,8,8,64], index: 13, kind: output, shape index: {}]  }
   0x1   :  { %3047 = sst [smem:[#allocation14_spill]] %s3025_s0  ;;  %s2369_s27 = smov 0  }
   0x2   :  { %3048 = sst [smem:[#allocation15_spill]] %s3026_s1  ;;  %s2371_s28 = smov 0  }
   0x3   :  { %3049 = sst [smem:[#allocation16_spill]] %s3030_s5  ;;  %s2373_s29 = smov 0  }
   0x4   :  { %3050 = sst [smem:[#allocation17_spill]] %s3032_s7 }
   0x5   :  { %3051 = sst [smem:[#allocation18_spill]] %s3036_s11 }
   0x6   :  { %3052 = sst [smem:[#allocation19_spill]] %s3038_s13 }
   0x7 LB: > { %3053 = sst [smem:[#allocation4_spill]] %s2273_s25  ;;  %s32_s30 = sadd.s32 1, %s2281_s27  ;;  %s2289_s29 = sphi %s2373_s29, %s23_s29   ;;  %s2285_s28 = sphi %s2371_s28, %s3084_s28   ;;  %s2281_s27 = sphi %s2369_s27, %s3083_s27   ;;  %s2277_s26 = sphi %s2367_s26, %s3082_s26   ;;  %s2273_s25 = sphi %s2365_s25, %s3081_s25  }
   0x8   : > { %3054 = sst [smem:[#allocation5_spill]] %s2281_s27  ;;  %s35_s14 = sadd.s32 1, %s2285_s28 }
   0x9   : > { %3055 = sst [smem:[#allocation6_spill]] %s2285_s28  ;;  %p33_p0 = scmp.ge.s32.totalorder %s32_s30, 2 }
   0xa   : > { %3056 = sst [smem:[#allocation7_spill]] %s2289_s29  ;;  %p1979_p1 = scmp.ge.s32.totalorder %s2289_s29, 1 }
   0xb   : > { %p505_p2 = scmp.lt.s32.totalorder %s2289_s29, 5  ;;  %s3086_s30 = smov (%p33_p0, %s32_s30), 0 }
   0xc   : > { %3057 = sst [smem:[#allocation8_spill]] %s3086_s30  ;;  %s3088_s14 = smov (!%p33_p0, %s35_s14), %s2285_s28 }
   0xd   : > { %p506_p3 = pnand %p1979_p1, %p505_p2  ;;  %p37_p4 = scmp.ge.s32.totalorder %s3088_s14, 2 }
   0xf   : > { %s3090_s14 = smov (%p37_p4, %s3088_s14), 0  ;;  %509 = sbr.rel (%p506_p3) target bundleno = 1996 (0x7cc), region = 72 }
  0x10   : > { %3058 = sst [smem:[#allocation9_spill]] %s3090_s14 }
  0x14   : > { %p595_p5 = scmp.lt.s32.totalorder %s2277_s26, 1  ;;  %p600_p6 = scmp.lt.s32.totalorder %s2273_s25, 1 }
  0x15   : > { %s3059_s0 = sld [smem:[#allocation14_spill]] }
  0x16   : > { %s3092_s26 = smov (!%p595_p5, %s2277_s26), 1  ;;  %s3060_s1 = sld [smem:[#allocation15_spill]] }
  0x17   : > { %s2399_s15 = scalar_select %p600_p6, %s2273_s25, 1 }
  0x18   : > { %s2099_s16 = sshll.u32 %s3092_s26, 5  ;;  %s3061_s5 = sld [smem:[#allocation16_spill]] }
  0x19   : > { %s2146_s20 = smul.u32 12, %s2399_s15  ;;  %s2100_s18 = sshll.u32 %s2399_s15, 4 }
  0x1a   : > { %s2101_s14 = sshll.u32 %s2399_s15, 5  ;;  %s3062_s7 = sld [smem:[#allocation17_spill]] }
  0x1b   : > { %s599_s19 = scalar_lea.vmem %s3059_s0, %s2099_s16  ;;  %s2445_s0 = scalar_lea.vmem %s3034_s9, %s2101_s14 }
  0x1c   : > { %s2416_s29 = scalar_lea.vmem %s3060_s1, %s2146_s20  ;;  %s2103_s21 = sshll.u32 %s2399_s15, 6 }
  0x1d   : > { %s645_s30 = scalar_lea.vmem %s3037_s12, %s2399_s15  ;;  %s3065_s25 = sld [smem:[#allocation19_spill]] }
  0x1e   : > { %s2430_s23 = scalar_lea.vmem %s3061_s5, %s2100_s18  ;;  %s637_s18 = scalar_lea.vmem %s3035_s10, %s2399_s15 }
  0x20   : > { %s2436_s27 = scalar_lea.vmem %s3062_s7, %s2101_s14  ;;  %s3064_s7 = sld [smem:[#allocation18_spill]] }
  0x21   : > { %3063 = sst [smem:[#allocation10_spill]] %s2436_s27 }
  0x22   : > { %s3066_s14 = sld [smem:[#allocation4_spill]] }
  0x23   : > { %s2464_s17 = scalar_lea.vmem %s3065_s25, %s2099_s16 }
  0x26   : > { %s2459_s27 = scalar_lea.vmem %s3064_s7, %s2103_s21 }
  0x28   : > { %p1993_p7 = scmp.ne.s32.totalorder %s3066_s14, 0 }
  0x2a   : > { %655 = sbr.rel (%p1993_p7) target bundleno = 58 (0x3a), region = 76 }
  0x2f   : > { %v2124_v0 = vld [vmem:[%s599_s19] sm:$0xff]   ;;  %vm672_vm0 = vcmask 523264   ;;  %v2139_v1 = vld [vmem:[%s599_s19 + $0x8] sm:$0xff]   ;;  %v2140_v2 = vld [vmem:[%s599_s19 + $0x10] sm:$0xff]  }
  0x30   : > { %v2125_v3 = vunpack.c.l.bf16 %v2124_v0  ;;  %v2126_v4 = vunpack.c.h.bf16 %v2124_v0  ;;  %v2129_v5 = vunpack.c.l.bf16 %v2139_v1  ;;  %v2130_v6 = vunpack.c.h.bf16 %v2139_v1  ;;  %v2141_v7 = vld [vmem:[%s599_s19 + $0x18] sm:$0xff]  }
  0x31   : > { %v2133_v8 = vunpack.c.l.bf16 %v2140_v2  ;;  %v2134_v9 = vunpack.c.h.bf16 %v2140_v2  ;;  %v2137_v10 = vunpack.c.l.bf16 %v2141_v7  ;;  %v2138_v11 = vunpack.c.h.bf16 %v2141_v7 }
  0x32   : > { %673 = vst.msk [vmem:[#allocation2] sm:$0xff] %vm672_vm0, %v2125_v3 }
  0x33   : > { %674 = vst.msk [vmem:[#allocation2 + $0x8] sm:$0xff] %vm672_vm0, %v2126_v4 }
  0x34   : > { %675 = vst.msk [vmem:[#allocation2 + $0x10] sm:$0xff] %vm672_vm0, %v2129_v5 }
  0x35   : > { %676 = vst.msk [vmem:[#allocation2 + $0x18] sm:$0xff] %vm672_vm0, %v2130_v6 }
  0x36   : > { %677 = vst.msk [vmem:[#allocation2 + $0x20] sm:$0xff] %vm672_vm0, %v2133_v8 }
  0x37   : > { %678 = vst.msk [vmem:[#allocation2 + $0x28] sm:$0xff] %vm672_vm0, %v2134_v9 }
  0x38   : > { %679 = vst.msk [vmem:[#allocation2 + $0x30] sm:$0xff] %vm672_vm0, %v2137_v10 }
  0x39   : > { %680 = vst.msk [vmem:[#allocation2 + $0x38] sm:$0xff] %vm672_vm0, %v2138_v11 }
  0x3a PF: > { %vm689_vm1 = vcmask 523264   ;;  %vm691_vm2 = vcmask 517120   ;;  %v2291_v12 = vmov 0.0   ;;  %vm697_vm3 = vcmask 516096   ;;  %v2199_v13 = vld [vmem:[%s2416_s29 + $0x5] ss:$0 sm:$0xff]  ;;  %s3070_s7 = scalar_lea.vmem %s3027_s2, %s2399_s15  ;;  %s3074_s24 = scalar_lea.vmem %s3028_s3, %s2399_s15 }
  0x3b   : > { %690 = vst.msk [vmem:[#allocation3 + $0x7] sm:$0xff] %vm689_vm1, %v2291_v12  ;;  %v2485_v14 = vld [vmem:[%s2416_s29] ss:$0 sm:$0xff]  ;;  %v2498_v19 = vld [vmem:[%s2416_s29 + $0x1] ss:$0 sm:$0xff]  ;;  %v2502_v21 = vld [vmem:[#allocation2 + $0x8] sm:$0xff]  ;;  %s3075_s14 = scalar_lea.vmem %s3029_s4, %s2399_s15  ;;  %s3076_s5 = scalar_lea.vmem %s3031_s6, %s2399_s15 }
  0x3c   : > { %692 = vst.msk [vmem:[#allocation3 + $0xf] sm:$0x3] %vm691_vm2, %v2291_v12  ;;  %v2491_v16 = vld [vmem:[#allocation2] sm:$0xff]  ;;  %v2505_v22 = vld [vmem:[#allocation2 + $0x10] sm:$0xff]  ;;  %v2512_v26 = vld [vmem:[#allocation2 + $0x18] sm:$0xff]  ;;  %v726_v37 = vmul.f32 %v2199_v13, %v2502_v21  ;;  %vm963_vm4 = vcmask 261120  }
  0x3d   : > { %694 = vst.msk [vmem:[#allocation3 + $0xdf] sm:$0xff] %vm689_vm1, %v2291_v12  ;;  %v725_v17 = vmul.f32 %v2199_v13, %v2491_v16  ;;  %v2510_v25 = vld [vmem:[%s2416_s29 + $0x2] ss:$0 sm:$0xff]  ;;  %v2534_v34 = vld [vmem:[%s2416_s29 + $0x4] ss:$0 sm:$0xff]  ;;  %v727_v38 = vmul.f32 %v2199_v13, %v2505_v22  ;;  %v728_v41 = vmul.f32 %v2199_v13, %v2512_v26  ;;  %vm1174_vm9 = vcmask 130048  }
  0x3e   : > { %695 = vst.msk [vmem:[#allocation3 + $0xe7] sm:$0x3] %vm691_vm2, %v2291_v12  ;;  %v2516_v28 = vld [vmem:[#allocation2 + $0x20] sm:$0xff]  ;;  %v2520_v29 = vld [vmem:[#allocation2 + $0x28] sm:$0xff] }
  0x3f   : > { %698 = vst.msk [vmem:[#allocation3 + $0x1f] sm:$0x1] %vm697_vm3, %v2291_v12  ;;  %v2524_v30 = vld [vmem:[#allocation2 + $0x30] sm:$0xff]  ;;  %v2541_v39 = vld [vmem:[%s2416_s29 + $0x8] ss:$0 sm:$0xff]  ;;  %v729_v42 = vmul.f32 %v2199_v13, %v2516_v28  ;;  %v730_v43 = vmul.f32 %v2199_v13, %v2520_v29 }
  0x40   : > { %699 = vst.msk [vmem:[#allocation3 + $0x37] sm:$0x1] %vm697_vm3, %v2291_v12  ;;  %v2526_v31 = vld [vmem:[#allocation2 + $0x38] sm:$0xff]  ;;  %v2544_v40 = vld [vmem:[%s2416_s29 + $0x9] ss:$0 sm:$0xff]  ;;  %v731_v44 = vmul.f32 %v2199_v13, %v2524_v30 }
  0x41   : > { %700 = vst.msk [vmem:[#allocation3 + $0x4f] sm:$0x1] %vm697_vm3, %v2291_v12  ;;  %v732_v45 = vmul.f32 %v2199_v13, %v2526_v31 }
  0x42   : > { %701 = vst.msk [vmem:[#allocation3 + $0x67] sm:$0x1] %vm697_vm3, %v2291_v12  ;;  %v733_v15 = vld [vmem:[#allocation3 + $0x7] sm:$0xff] }
  0x43   : > { %702 = vst.msk [vmem:[#allocation3 + $0x7f] sm:$0x1] %vm697_vm3, %v2291_v12  ;;  %v743_v18 = vmul.f32 %v2485_v14, %v733_v15  ;;  %v759_v20 = vld [vmem:[#allocation3 + $0x8] sm:$0xff] }
  0x44   : > { %703 = vst.msk [vmem:[#allocation3 + $0x97] sm:$0x1] %vm697_vm3, %v2291_v12  ;;  %v769_v24 = vmul.f32 %v2498_v19, %v759_v20  ;;  %v785_v27 = vld [vmem:[#allocation3 + $0x9] sm:$0xff]  ;;  %v871_v35 = vld [vmem:[#allocation3 + $0xdf] sm:$0xff] }
  0x45   : > { %704 = vst.msk [vmem:[#allocation3 + $0xaf] sm:$0x1] %vm697_vm3, %v2291_v12  ;;  %v751_v23 = vadd.f32 %v743_v18, %v725_v17  ;;  %v795_v33 = vmul.f32 %v2510_v25, %v785_v27  ;;  %v898_v36 = vld [vmem:[#allocation3 + $0xe0] sm:$0xff]  ;;  %v2560_v50 = vmul.f32 %v2541_v39, %v871_v35 }
  0x46   : > { %705 = vst.msk [vmem:[#allocation3 + $0xc7] sm:$0x1] %vm697_vm3, %v2291_v12  ;;  %v2563_v51 = vmul.f32 %v2544_v40, %v898_v36 }
  0x47   : > { %706 = vst.msk [vmem:[#allocation3 + $0x28] sm:$0x1] %vm697_vm3, %v2291_v12  ;;  %v777_v32 = vadd.f32 %v769_v24, %v751_v23 }
  0x48   : > { %707 = vst.msk [vmem:[#allocation3 + $0x40] sm:$0x1] %vm697_vm3, %v2291_v12 }
  0x49   : > { %708 = vst.msk [vmem:[#allocation3 + $0x58] sm:$0x1] %vm697_vm3, %v2291_v12  ;;  %v2557_v49 = vadd.f32 %v795_v33, %v777_v32 }
  0x4a   : > { %709 = vst.msk [vmem:[#allocation3 + $0x70] sm:$0x1] %vm697_vm3, %v2291_v12 }
  0x4b   : > { %710 = vst.msk [vmem:[#allocation3 + $0x88] sm:$0x1] %vm697_vm3, %v2291_v12 }
  0x4c   : > { %711 = vst.msk [vmem:[#allocation3 + $0xa0] sm:$0x1] %vm697_vm3, %v2291_v12 }
  0x4d   : > { %712 = vst.msk [vmem:[#allocation3 + $0xb8] sm:$0x1] %vm697_vm3, %v2291_v12 }
  0x4e   : > { %713 = vst.msk [vmem:[#allocation3 + $0xd0] sm:$0x1] %vm697_vm3, %v2291_v12 }
  0x4f   : > { %714 = vst.msk [vmem:[#allocation3 + $0x20] sm:$0xff] %vm689_vm1, %v2491_v16 }
  0x50   : > { %715 = vst.msk [vmem:[#allocation3 + $0x38] sm:$0xff] %vm689_vm1, %v2502_v21 }
  0x51   : > { %3067 = vst [vmem:[#allocation11_spill] sm:$0xff] %v2520_v29 }
  0x52   : > { %716 = vst.msk [vmem:[#allocation3 + $0x50] sm:$0xff] %vm689_vm1, %v2505_v22 }
  0x53   : > { %3068 = vst [vmem:[#allocation12_spill] sm:$0xff] %v2524_v30 }
  0x54   : > { %3069 = vst [vmem:[#allocation13_spill] sm:$0xff] %v2526_v31 }
  0x55   : > { %717 = vst.msk [vmem:[#allocation3 + $0x68] sm:$0xff] %vm689_vm1, %v2512_v26 }
  0x56   : > { %718 = vst.msk [vmem:[#allocation3 + $0x80] sm:$0xff] %vm689_vm1, %v2516_v28  ;;  %v734_v46 = vld [vmem:[#allocation3 + $0x1f] sm:$0xff] }
  0x57   : > { %719 = vst.msk [vmem:[#allocation3 + $0x98] sm:$0xff] %vm689_vm1, %v2520_v29  ;;  %v760_v47 = vld [vmem:[#allocation3 + $0x20] sm:$0xff]  ;;  %v2565_v52 = vld [vmem:[#allocation3 + $0x37] sm:$0xff]  ;;  %v744_v53 = vmul.f32 %v2485_v14, %v734_v46  ;;  %v2576_v58 = vmul.f32 %v2534_v34, %v734_v46 }
  0x58   : > { %720 = vst.msk [vmem:[#allocation3 + $0xb0] sm:$0xff] %vm689_vm1, %v2524_v30  ;;  %v2555_v48 = vld [vmem:[#allocation3 + $0x21] sm:$0xff]  ;;  %v2568_v54 = vld [vmem:[#allocation3 + $0x38] sm:$0xff]  ;;  %v770_v55 = vmul.f32 %v2498_v19, %v760_v47  ;;  %v745_v60 = vmul.f32 %v2485_v14, %v2565_v52  ;;  %v822_v1 = vmul.f32 %v2534_v34, %v2565_v52 }
  0x59   : > { %721 = vst.msk [vmem:[#allocation3 + $0xc8] sm:$0xff] %vm689_vm1, %v2526_v31  ;;  %v2571_v56 = vld [vmem:[#allocation3 + $0x39] sm:$0xff]  ;;  %v796_v57 = vmul.f32 %v2510_v25, %v2555_v48  ;;  %v2578_v59 = vld [vmem:[#allocation3 + $0x4f] sm:$0xff]  ;;  %v771_v62 = vmul.f32 %v2498_v19, %v2568_v54  ;;  %v752_v4 = vadd.f32 %v744_v53, %v726_v37 }
  0x5a   : > { %v2582_v61 = vld [vmem:[#allocation3 + $0x50] sm:$0xff]  ;;  %v797_v0 = vmul.f32 %v2510_v25, %v2571_v56  ;;  %v746_v3 = vmul.f32 %v2485_v14, %v2578_v59  ;;  %v753_v11 = vadd.f32 %v745_v60, %v727_v38 }
  0x5b   : > { %v2586_v63 = vld [vmem:[#allocation3 + $0x51] sm:$0xff]  ;;  %v772_v6 = vmul.f32 %v2498_v19, %v2582_v61  ;;  %v778_v32 = vadd.f32 %v770_v55, %v752_v4 }
  0x5c   : > { %v2592_v2 = vld [vmem:[#allocation3 + $0x67] sm:$0xff]  ;;  %v798_v8 = vmul.f32 %v2510_v25, %v2586_v63  ;;  %v754_v23 = vadd.f32 %v746_v3, %v728_v41  ;;  %v779_v41 = vadd.f32 %v771_v62, %v753_v11 }
  0x5d   : > { %v2596_v5 = vld [vmem:[#allocation3 + $0x68] sm:$0xff]  ;;  %v2604_v9 = vld [vmem:[#allocation3 + $0x7f] sm:$0xff]  ;;  %v747_v10 = vmul.f32 %v2485_v14, %v2592_v2 }
  0x5e   : > { %v2600_v7 = vld [vmem:[#allocation3 + $0x69] sm:$0xff]  ;;  %v2608_v12 = vld [vmem:[#allocation3 + $0x80] sm:$0xff]  ;;  %v773_v13 = vmul.f32 %v2498_v19, %v2596_v5  ;;  %v2616_v18 = vld [vmem:[#allocation3 + $0x97] sm:$0xff]  ;;  %v748_v20 = vmul.f32 %v2485_v14, %v2604_v9  ;;  %v780_v3 = vadd.f32 %v772_v6, %v754_v23  ;;  %v823_v23 = vmul.f32 %v2534_v34, %v2578_v59 }
  0x5f   : > { %v2612_v15 = vld [vmem:[#allocation3 + $0x81] sm:$0xff]  ;;  %v799_v17 = vmul.f32 %v2510_v25, %v2600_v7  ;;  %v2620_v24 = vld [vmem:[#allocation3 + $0x98] sm:$0xff]  ;;  %v774_v27 = vmul.f32 %v2498_v19, %v2608_v12  ;;  %v2626_v35 = vld [vmem:[#allocation3 + $0xaf] sm:$0xff]  ;;  %v749_v36 = vmul.f32 %v2485_v14, %v2616_v18  ;;  %v755_v37 = vadd.f32 %v747_v10, %v729_v42 }
  0x60   : > { %v2624_v33 = vld [vmem:[#allocation3 + $0x99] sm:$0xff]  ;;  %v2630_v38 = vld [vmem:[#allocation3 + $0xb0] sm:$0xff]  ;;  %v775_v46 = vmul.f32 %v2498_v19, %v2620_v24  ;;  %v750_v53 = vmul.f32 %v2485_v14, %v2626_v35  ;;  %v756_v55 = vadd.f32 %v748_v20, %v730_v43  ;;  %v800_v42 = vmul.f32 %v2510_v25, %v2612_v15  ;;  %v818_v6 = vld [vmem:[#allocation3 + $0xc7] sm:$0xff] }
  0x61   : > { %v2634_v47 = vld [vmem:[#allocation3 + $0xb1] sm:$0xff]  ;;  %v776_v60 = vmul.f32 %v2498_v19, %v2630_v38  ;;  %v757_v4 = vadd.f32 %v749_v36, %v731_v44  ;;  %v781_v31 = vadd.f32 %v773_v13, %v755_v37  ;;  %v801_v10 = vmul.f32 %v2510_v25, %v2624_v33  ;;  %v2204_v37 = vld [vmem:[%s2416_s29 + $0x6] ss:$0 sm:$0xff] }
  0x62   : > { %v758_v62 = vadd.f32 %v750_v53, %v732_v45  ;;  %v782_v11 = vadd.f32 %v774_v27, %v756_v55  ;;  %v802_v30 = vmul.f32 %v2510_v25, %v2634_v47  ;;  %v804_v14 = vadd.f32 %v796_v57, %v778_v32  ;;  %v844_v55 = vld [vmem:[#allocation3 + $0xc9] sm:$0xff] }
  0x63   : > { %v783_v43 = vadd.f32 %v775_v46, %v757_v4  ;;  %v805_v20 = vadd.f32 %v797_v0, %v779_v41  ;;  %v806_v29 = vadd.f32 %v798_v8, %v780_v3  ;;  %v807_v19 = vadd.f32 %v799_v17, %v781_v31 }
  0x64   : > { %v784_v44 = vadd.f32 %v776_v60, %v758_v62  ;;  %v808_v13 = vadd.f32 %v800_v42, %v782_v11  ;;  %v824_v36 = vmul.f32 %v2534_v34, %v2592_v2  ;;  %v825_v27 = vmul.f32 %v2534_v34, %v2604_v9 }
  0x65   : > { %v809_v45 = vadd.f32 %v801_v10, %v783_v43  ;;  %v826_v25 = vmul.f32 %v2534_v34, %v2616_v18  ;;  %v827_v31 = vmul.f32 %v2534_v34, %v2626_v35  ;;  %v828_v0 = vmul.f32 %v2534_v34, %v818_v6 }
  0x66   : > { %v810_v57 = vadd.f32 %v802_v30, %v784_v44  ;;  %v829_v8 = vadd.f32 %v2576_v58, %v2557_v49  ;;  %v830_v17 = vadd.f32 %v822_v1, %v804_v14  ;;  %v831_v32 = vadd.f32 %v823_v23, %v805_v20 }
  0x67   : > { %v832_v46 = vadd.f32 %v824_v36, %v806_v29  ;;  %v833_v41 = vadd.f32 %v825_v27, %v807_v19  ;;  %v834_v53 = vadd.f32 %v826_v25, %v808_v13  ;;  %v835_v60 = vadd.f32 %v827_v31, %v809_v45 }
  0x68   : > { %v836_v3 = vadd.f32 %v828_v0, %v810_v57  ;;  %v847_v4 = vmul.f32 %v2204_v37, %v2555_v48  ;;  %v848_v42 = vmul.f32 %v2204_v37, %v2571_v56  ;;  %v849_v10 = vmul.f32 %v2204_v37, %v2586_v63 }
  0x69   : > { %v850_v30 = vmul.f32 %v2204_v37, %v2600_v7  ;;  %v851_v34 = vmul.f32 %v2204_v37, %v2612_v15  ;;  %v852_v49 = vmul.f32 %v2204_v37, %v2624_v33  ;;  %v853_v58 = vmul.f32 %v2204_v37, %v2634_v47 }
  0x6a   : > { %v854_v29 = vmul.f32 %v2204_v37, %v844_v55  ;;  %v855_v1 = vadd.f32 %v847_v4, %v829_v8  ;;  %v856_v62 = vadd.f32 %v848_v42, %v830_v17  ;;  %v857_v11 = vadd.f32 %v849_v10, %v831_v32  ;;  %v924_v17 = vld [vmem:[#allocation3 + $0xe1] sm:$0xff] }
  0x6b   : > { %v858_v14 = vadd.f32 %v850_v30, %v832_v46  ;;  %v859_v43 = vadd.f32 %v851_v34, %v833_v41  ;;  %v860_v20 = vadd.f32 %v852_v49, %v834_v53  ;;  %v861_v48 = vadd.f32 %v853_v58, %v835_v60 }
  0x6c   : > { %v862_v19 = vadd.f32 %v854_v29, %v836_v3  ;;  %v875_v44 = vmul.f32 %v2541_v39, %v2565_v52  ;;  %v876_v13 = vmul.f32 %v2541_v39, %v2578_v59  ;;  %v877_v23 = vmul.f32 %v2541_v39, %v2592_v2  ;;  %v897_v59 = vld [vmem:[#allocation3 + $0xc8] sm:$0xff] }
  0x6d   : > { %v878_v36 = vmul.f32 %v2541_v39, %v2604_v9  ;;  %v879_v37 = vmul.f32 %v2541_v39, %v2616_v18  ;;  %v880_v45 = vmul.f32 %v2541_v39, %v2626_v35  ;;  %v881_v27 = vmul.f32 %v2541_v39, %v818_v6  ;;  %v2207_v35 = vld [vmem:[%s2416_s29 + $0xa] ss:$0 sm:$0xff] }
  0x6e   : > { %v883_v25 = vadd.f32 %v875_v44, %v855_v1  ;;  %v884_v52 = vadd.f32 %v876_v13, %v856_v62  ;;  %v890_v31 = vadd.f32 %v2560_v50, %v862_v19  ;;  %v885_v57 = vadd.f32 %v877_v23, %v857_v11 }
  0x6f   : > { %v886_v0 = vadd.f32 %v878_v36, %v858_v14  ;;  %v887_v2 = vadd.f32 %v879_v37, %v859_v43  ;;  %v888_v8 = vadd.f32 %v880_v45, %v860_v20  ;;  %v889_v9 = vadd.f32 %v881_v27, %v861_v48  ;;  %v3071_v45 = vld [vmem:[#allocation11_spill] sm:$0xff] }
  0x70   : > { %v901_v18 = vmul.f32 %v2544_v40, %v2568_v54  ;;  %v902_v32 = vmul.f32 %v2544_v40, %v2582_v61  ;;  %v903_v39 = vmul.f32 %v2544_v40, %v2596_v5  ;;  %v904_v50 = vmul.f32 %v2544_v40, %v2608_v12 }
  0x71   : > { %v905_v6 = vmul.f32 %v2544_v40, %v2620_v24  ;;  %v906_v46 = vmul.f32 %v2544_v40, %v2630_v38  ;;  %v907_v41 = vmul.f32 %v2544_v40, %v897_v59  ;;  %v934_v61 = vmul.f32 %v2207_v35, %v924_v17  ;;  %v2208_v40 = vld [vmem:[%s3070_s7] ss:$0 sm:$0xff]  ;;  %s2293_s7 = smov 112  }
  0x72   : > { %v909_v54 = vadd.f32 %v901_v18, %v883_v25  ;;  %v910_v53 = vadd.f32 %v902_v32, %v884_v52  ;;  %v911_v60 = vadd.f32 %v903_v39, %v885_v57  ;;  %v912_v3 = vadd.f32 %v904_v50, %v886_v0  ;;  %v3073_v57 = vld [vmem:[#allocation13_spill] sm:$0xff] }
  0x73   : > { %v913_v4 = vadd.f32 %v905_v6, %v887_v2  ;;  %v914_v5 = vadd.f32 %v906_v46, %v888_v8  ;;  %v915_v42 = vadd.f32 %v907_v41, %v889_v9  ;;  %v927_v10 = vmul.f32 %v2207_v35, %v2571_v56 }
  0x74   : > { %v928_v12 = vmul.f32 %v2207_v35, %v2586_v63  ;;  %v929_v30 = vmul.f32 %v2207_v35, %v2600_v7  ;;  %v930_v24 = vmul.f32 %v2207_v35, %v2612_v15  ;;  %v916_v38 = vadd.f32 %v2563_v51, %v890_v31 }
  0x75   : > { %v931_v34 = vmul.f32 %v2207_v35, %v2624_v33  ;;  %v932_v49 = vmul.f32 %v2207_v35, %v2634_v47  ;;  %v933_v58 = vmul.f32 %v2207_v35, %v844_v55  ;;  %v935_v29 = vadd.f32 %v927_v10, %v909_v54 }
  0x76   : > { %v936_v56 = vadd.f32 %v928_v12, %v910_v53  ;;  %v937_v1 = vadd.f32 %v929_v30, %v911_v60  ;;  %v938_v63 = vadd.f32 %v930_v24, %v912_v3  ;;  %v942_v48 = vadd.f32 %v934_v61, %v916_v38 }
  0x77   : > { %v939_v62 = vadd.f32 %v931_v34, %v913_v4  ;;  %v940_v7 = vadd.f32 %v932_v49, %v914_v5  ;;  %v941_v11 = vadd.f32 %v933_v58, %v915_v42  ;;  %v947_v15 = vadd.f32 %v2208_v40, %v935_v29 }
  0x78   : > { %v948_v14 = vadd.f32 %v2208_v40, %v936_v56  ;;  %v949_v43 = vadd.f32 %v2208_v40, %v937_v1  ;;  %v950_v20 = vadd.f32 %v2208_v40, %v938_v63  ;;  %v2292_v35 = vmov 2048.0  }
  0x79   : > { %v951_v19 = vadd.f32 %v2208_v40, %v939_v62  ;;  %v952_v44 = vadd.f32 %v2208_v40, %v940_v7  ;;  %v2708_v51 = vadd.f32 %v947_v15, %v2491_v16  ;;  %v953_v13 = vadd.f32 %v2208_v40, %v941_v11 }
  0x7a   : > { %v2711_v33 = vadd.f32 %v948_v14, %v2502_v21  ;;  %v2714_v47 = vadd.f32 %v949_v43, %v2505_v22  ;;  %v2717_v55 = vadd.f32 %v950_v20, %v2512_v26  ;;  %v954_v22 = vadd.f32 %v2208_v40, %v942_v48 }
  0x7b   : > { %v2720_v23 = vadd.f32 %v951_v19, %v2516_v28  ;;  %v964_v36 = vsel %vm963_vm4, %v2708_v51, 0.0  ;;  %v2729_v27 = vadd.f32 %v952_v44, %v3071_v45  ;;  %v3072_v28 = vld [vmem:[#allocation12_spill] sm:$0xff]  ;;  %2215 = vrcp.f32 %v2292_v35 }
  0x7c   : > { %v965_v16 = vsel %vm963_vm4, %v2711_v33, 0.0  ;;  %v967_v21 = vsel %vm963_vm4, %v2714_v47, 0.0  ;;  %v969_v26 = vsel %vm963_vm4, %v2717_v55, 0.0  ;;  %v2734_v52 = vadd.f32 %v953_v13, %v3072_v28 }
  0x7d   : > { %v966_v37 = vadd.f32 %v965_v16, %v964_v36  ;;  %v971_v31 = vsel %vm963_vm4, %v2720_v23, 0.0  ;;  %v2739_v0 = vadd.f32 %v954_v22, %v3073_v57  ;;  %v973_v2 = vsel %vm963_vm4, %v2729_v27, 0.0 }
  0x7e   : > { %v975_v17 = vsel %vm963_vm4, %v2734_v52, 0.0 }
  0x7f   : > { %v968_v25 = vadd.f32 %v967_v21, %v966_v37  ;;  %v977_v18 = vsel %vm963_vm4, %v2739_v0, 0.0 }
  0x81   : > { %v970_v59 = vadd.f32 %v969_v26, %v968_v25  ;;  %v2216_v50 = vpop.eup %2215 }
  0x82   : > { %v989_v6 = vmul.f32 2048.0, %v2216_v50  ;;  %vm993_vm5 = vweird.f32 %v2216_v50 }
  0x83   : > { %v972_v8 = vadd.f32 %v971_v31, %v970_v59 }
  0x84   : > { %v990_v46 = vsub.f32 1.0, %v989_v6 }
  0x85   : > { %v974_v9 = vadd.f32 %v973_v2, %v972_v8 }
  0x86   : > { %v991_v60 = vmul.f32 %v2216_v50, %v990_v46 }
  0x87   : > { %v976_v32 = vadd.f32 %v975_v17, %v974_v9 }
  0x88   : > { %v992_v4 = vadd.f32 %v2216_v50, %v991_v60  ;;  %v2209_v60 = vld [vmem:[%s3074_s24] ss:$0 sm:$0xff] }
  0x89   : > { %v978_v39 = vadd.f32 %v977_v18, %v976_v32 }
  0x8a   : > { %v994_v10 = vsel %vm993_vm5, %v2216_v50, %v992_v4 }
  0x8b   : > { %979 = vadd.xlane.f32.xlu0 %v978_v39 }
  0xfe   : > { %v980_v41 = vpop.xlane.xlu0 %979 }
  0xff   : > { %v981_v54 = vrot.slane %v980_v41, 4 }
 0x101   : > { %v982_v53 = vadd.f32 %v981_v54, %v980_v41  ;;  %v2106_v54 = vld [vmem:[%s2430_s23 + $0x8] sm:$0xff] }
 0x102   : > { %1135 = vmatpush.bf16.msra.mxu0 %v2106_v54 }
 0x103   : > { %v983_v61 = vrot.slane %v982_v53, 2 }
 0x105   : > { %v984_v3 = vadd.f32 %v983_v61, %v982_v53  ;;  %v2105_v53 = vld [vmem:[%s2430_s23] sm:$0xff] }
 0x106   : > { %1136 = vmatpush.bf16.msra.mxu0 %v2105_v53 }
 0x107   : > { %v985_v5 = vrot.slane %v984_v3, 1 }
 0x109   : > { %v986_v42 = vadd.f32 %v985_v5, %v984_v3  ;;  %v2210_v5 = vld [vmem:[%s3075_s14] ss:$0 sm:$0xff] }
 0x10b   : > { %2147 = vpush %v986_v42 }
 0x10c   : > { %2149 = vpush %v994_v10 }
 0x13c   : > { %s2148_s11 = spop %2147 }
 0x13d   : > { %s2747_s29 = spop %2149 }
 0x13e   : > { %s996_s16 = smul.f32 %s2747_s29, %s2148_s11  ;;  %s2294_s11 = smov 96  }
 0x140   : > { %v997_v12 = vstv %s996_s16 }
 0x141   : > { %v2751_v30 = vsub.f32 %v2708_v51, %v997_v12  ;;  %v2754_v24 = vsub.f32 %v2711_v33, %v997_v12  ;;  %v2757_v40 = vsub.f32 %v2714_v47, %v997_v12  ;;  %v2760_v38 = vsub.f32 %v2717_v55, %v997_v12 }
 0x142   : > { %v2763_v34 = vsub.f32 %v2720_v23, %v997_v12  ;;  %v2772_v56 = vsub.f32 %v2729_v27, %v997_v12  ;;  %v2779_v11 = vsub.f32 %v2734_v52, %v997_v12  ;;  %v2785_v20 = vsub.f32 %v2739_v0, %v997_v12 }
 0x143   : > { %v1006_v49 = vmul.f32 %v2751_v30, %v2751_v30  ;;  %v1007_v58 = vmul.f32 %v2754_v24, %v2754_v24  ;;  %v1008_v29 = vmul.f32 %v2757_v40, %v2757_v40  ;;  %v1009_v1 = vmul.f32 %v2760_v38, %v2760_v38 }
 0x144   : > { %v1010_v15 = vmul.f32 %v2763_v34, %v2763_v34  ;;  %v1011_v48 = vmul.f32 %v2772_v56, %v2772_v56  ;;  %v1012_v13 = vmul.f32 %v2779_v11, %v2779_v11  ;;  %v1013_v21 = vmul.f32 %v2785_v20, %v2785_v20 }
 0x145   : > { %v1014_v63 = vsel %vm963_vm4, %v1006_v49, 0.0  ;;  %v1015_v62 = vsel %vm963_vm4, %v1007_v58, 0.0  ;;  %v1017_v14 = vsel %vm963_vm4, %v1008_v29, 0.0  ;;  %v1019_v19 = vsel %vm963_vm4, %v1009_v1, 0.0 }
 0x146   : > { %v1016_v7 = vadd.f32 %v1015_v62, %v1014_v63  ;;  %v1021_v36 = vsel %vm963_vm4, %v1010_v15, 0.0  ;;  %v1023_v37 = vsel %vm963_vm4, %v1011_v48, 0.0  ;;  %v1025_v45 = vsel %vm963_vm4, %v1012_v13, 0.0 }
 0x147   : > { %v1027_v25 = vsel %vm963_vm4, %v1013_v21, 0.0 }
 0x148   : > { %v1018_v43 = vadd.f32 %v1017_v14, %v1016_v7 }
 0x14a   : > { %v1020_v44 = vadd.f32 %v1019_v19, %v1018_v43 }
 0x14c   : > { %v1022_v16 = vadd.f32 %v1021_v36, %v1020_v44 }
 0x14e   : > { %v1024_v22 = vadd.f32 %v1023_v37, %v1022_v16 }
 0x150   : > { %v1026_v26 = vadd.f32 %v1025_v45, %v1024_v22 }
 0x152   : > { %v1028_v28 = vadd.f32 %v1027_v25, %v1026_v26  ;;  %v2211_v26 = vld [vmem:[%s3076_s5] ss:$0 sm:$0xff] }
 0x154   : > { %1029 = vadd.xlane.f32.xlu0 %v1028_v28 }
 0x1c7   : > { %v1030_v31 = vpop.xlane.xlu0 %1029 }
 0x1c8   : > { %v1031_v59 = vrot.slane %v1030_v31, 4 }
 0x1ca   : > { %v1032_v57 = vadd.f32 %v1031_v59, %v1030_v31 }
 0x1cc   : > { %v1033_v2 = vrot.slane %v1032_v57, 2 }
 0x1ce   : > { %v1034_v8 = vadd.f32 %v1033_v2, %v1032_v57 }
 0x1d0   : > { %v1035_v17 = vrot.slane %v1034_v8, 1 }
 0x1d2   : > { %v1036_v9 = vadd.f32 %v1035_v17, %v1034_v8 }
 0x1d4   : > { %2151 = vpush %v1036_v9 }
 0x205   : > { %s2152_s19 = spop %2151 }
 0x206   : > { %s1046_s25 = smul.f32 %s2152_s19, %s2747_s29  ;;  %s3077_s29 = sld [smem:[#allocation10_spill]] }
 0x208   : > { %s1047_s26 = sadd.f32 1e-05, %s1046_s25  ;;  %s3078_s25 = scalar_lea.vmem %s3033_s8, %s2399_s15 }
 0x209   : > { %s3079_s15 = sld [smem:[#allocation4_spill]] }
 0x20a   : > { %v1048_v18 = vstv %s1047_s26 }
 0x20b   : > { %2217 = vrsqrt.f32 %v1048_v18  ;;  %vm1055_vm7 = vweird.f32 %v1048_v18 }
 0x20f   : > { %p2096_p8 = scmp.ne.s32.totalorder %s3079_s15, 1 }
 0x211   : > { %v2218_v32 = vpop.eup %2217 }
 0x212   : > { %v1050_v39 = vmul.f32 %v2218_v32, %v1048_v18  ;;  %vm1056_vm6 = vweird.f32 %v2218_v32 }
 0x213   : > { %vm1057_vm8 = vmor %vm1055_vm7, %vm1056_vm6 }
 0x214   : > { %v1051_v35 = vmul.f32 %v2218_v32, %v1050_v39 }
 0x216   : > { %v1052_v50 = vmul.f32 0.5, %v1051_v35 }
 0x218   : > { %v1053_v6 = vsub.f32 1.5, %v1052_v50 }
 0x21a   : > { %v1054_v46 = vmul.f32 %v2218_v32, %v1053_v6 }
 0x21c   : > { %v1058_v41 = vsel %vm1057_vm8, %v2218_v32, %v1054_v46 }
 0x21d   : > { %2153 = vpush %v1058_v41 }
 0x24e   : > { %s2154_s13 = spop %2153 }
 0x24f   : > { %v1060_v61 = vstv %s2154_s13 }
 0x250   : > { %v1061_v3 = vmul.f32 %v1060_v61, %v2751_v30  ;;  %v1062_v4 = vmul.f32 %v1060_v61, %v2754_v24  ;;  %v1063_v29 = vmul.f32 %v1060_v61, %v2757_v40  ;;  %v1064_v1 = vmul.f32 %v1060_v61, %v2760_v38 }
 0x251   : > { %v1065_v15 = vmul.f32 %v1060_v61, %v2763_v34  ;;  %v1066_v14 = vmul.f32 %v1060_v61, %v2772_v56  ;;  %v1067_v40 = vmul.f32 %v1060_v61, %v2779_v11  ;;  %v1068_v38 = vmul.f32 %v1060_v61, %v2785_v20 }
 0x252   : > { %v1073_v42 = vmul.f32 %v2209_v60, %v1061_v3  ;;  %v1074_v10 = vmul.f32 %v2209_v60, %v1062_v4  ;;  %v1075_v63 = vmul.f32 %v2209_v60, %v1063_v29  ;;  %v1076_v30 = vmul.f32 %v2209_v60, %v1064_v1 }
 0x253   : > { %v1077_v43 = vmul.f32 %v2209_v60, %v1065_v15  ;;  %v1078_v48 = vmul.f32 %v2209_v60, %v1066_v14  ;;  %v1079_v36 = vmul.f32 %v2209_v60, %v1067_v40  ;;  %v1080_v16 = vmul.f32 %v2209_v60, %v1068_v38 }
 0x254   : > { %v1085_v12 = vadd.f32 %v2210_v5, %v1073_v42  ;;  %v1086_v49 = vadd.f32 %v2210_v5, %v1074_v10  ;;  %v1087_v62 = vadd.f32 %v2210_v5, %v1075_v63  ;;  %v1088_v24 = vadd.f32 %v2210_v5, %v1076_v30 }
 0x255   : > { %v1089_v19 = vadd.f32 %v2210_v5, %v1077_v43  ;;  %v1090_v44 = vadd.f32 %v2210_v5, %v1078_v48  ;;  %v1091_v21 = vadd.f32 %v2210_v5, %v1079_v36  ;;  %v1092_v37 = vadd.f32 %v2210_v5, %v1080_v16 }
 0x256   : > { %v1097_v58 = vpack.c.bf16 %v1086_v49, %v1085_v12  ;;  %v1098_v7 = vpack.c.bf16 %v1088_v24, %v1087_v62 }
 0x257   : > { %v1099_v13 = vpack.c.bf16 %v1090_v44, %v1089_v19  ;;  %v1100_v22 = vpack.c.bf16 %v1092_v37, %v1091_v21 }
 0x258   : > { %2008 = vmatmul.msk.bf16.vlgmr.msra.gmra.mxu0 %vm963_vm4, %v1097_v58 }
 0x268   : > { %2009 = vmatmul.msk.bf16.gmra.mxu0 %vm963_vm4, %v1098_v7 }
 0x278   : > { %2010 = vmatmul.msk.bf16.gmra.mxu0 %vm963_vm4, %v1099_v13 }
 0x288   : > { %2011 = vmatmul.msk.bf16.gmra.mxu0 %vm963_vm4, %v1100_v22 }
 0x2d5   : > { %v1138_v34 = vpop.f32.mrf.mxu0 }
 0x2d6   : > { %v1139_v57 = vadd.f32 %v2211_v26, %v1138_v34 }
 0x2dd   : > { %v1140_v56 = vpop.f32.mrf.mxu0 }
 0x2de   : > { %v1141_v20 = vadd.f32 %v2211_v26, %v1140_v56 }
 0x2e0   : > { %v1158_v2 = vpack.c.bf16 %v1141_v20, %v1139_v57 }
 0x2e5   : > { %v1143_v45 = vpop.f32.mrf.mxu0 }
 0x2e6   : > { %v1144_v28 = vadd.f32 %v2211_v26, %v1143_v45 }
 0x2ed   : > { %v1145_v25 = vpop.f32.mrf.mxu0 }
 0x2ee   : > { %v1146_v11 = vadd.f32 %v2211_v26, %v1145_v25 }
 0x2f0   : > { %v2828_v31 = vpack.c.bf16 %v1146_v11, %v1144_v28 }
 0x2f2   : > { %1168 = vrot.lane.b32.xlu2 %v2828_v31, %s2293_s7 }
 0x2f5   : > { %v1148_v59 = vpop.f32.mrf.mxu0 }
 0x2f6   : > { %v1149_v50 = vadd.f32 %v2211_v26, %v1148_v59 }
 0x2fa   : > { %1166 = vrot.lane.b32.xlu2 %v1158_v2, %s2293_s7 }
 0x2fd   : > { %v1150_v8 = vpop.f32.mrf.mxu0 }
 0x2fe   : > { %v1151_v35 = vadd.f32 %v2211_v26, %v1150_v8 }
 0x300   : > { %v2832_v6 = vpack.c.bf16 %v1151_v35, %v1149_v50 }
 0x305   : > { %v1153_v17 = vpop.f32.mrf.mxu0 }
 0x306   : > { %v1154_v18 = vadd.f32 %v2211_v26, %v1153_v17 }
 0x30d   : > { %v1155_v9 = vpop.f32.mrf.mxu0 }
 0x30e   : > { %v1156_v32 = vadd.f32 %v2211_v26, %v1155_v9 }
 0x310   : > { %v1161_v39 = vpack.c.bf16 %v1156_v32, %v1154_v18 }
 0x312   : > { %1172 = vrot.lane.b32.xlu1 %v1161_v39, %s2293_s7  ;;  %1326 = vrot.lane.b32.xlu2 %v1161_v39, %s2294_s11 }
 0x31a   : > { %1170 = vrot.lane.b32.xlu1 %v2832_v6, %s2293_s7 }
 0x34c   : > { %v1169_v46 = vpop.permute.xlu2 %1168 }
 0x34d   : > { %v1191_v4 = vsel %vm1174_vm9, %v1169_v46, 0 }
 0x354   : > { %v1167_v41 = vpop.permute.xlu2 %1166 }
 0x355   : > { %v1188_v5 = vsel %vm1174_vm9, %v1167_v41, 0 }
 0x36c   : > { %v1327_v54 = vpop.permute.xlu2 %1326 }
 0x36d   : > { %2142 = vmatpush.bf16.msra.mxu2 %v1327_v54 }
 0x384   : > { %v1173_v53 = vpop.permute.xlu1 %1172 }
 0x385   : > { %v1197_v60 = vsel %vm1174_vm9, %v1173_v53, 0 }
 0x386   : > { %1203 = vmatpush.bf16.xpose.msra.mxu1 %v1197_v60 }
 0x38c   : > { %v1171_v61 = vpop.permute.xlu1 %1170 }
 0x38d   : > { %v1194_v3 = vsel %vm1174_vm9, %v1171_v61, 0 }
 0x38e   : > { %1204 = vmatpush.bf16.xpose.msra.mxu1 %v1194_v3 }
 0x396   : > { %1205 = vmatpush.bf16.xpose.msra.mxu1 %v1191_v4 }
 0x39e   : > { %1206 = vmatpush.bf16.xpose.msra.mxu1 %v1188_v5 }
 0x3a5   : > { %2012 = vmatmul.msk.bf16.vlgmr.msra.gmra.mxu1 %vm1174_vm9, %v1158_v2 }
 0x3a6   : > { %1348 = vmatpush.bf16.msrb.mxu1 %v1327_v54 }
 0x3b5   : > { %2013 = vmatmul.msk.bf16.gmra.mxu1 %vm1174_vm9, %v2828_v31 }
 0x3c5   : > { %2014 = vmatmul.msk.bf16.gmra.mxu1 %vm1174_vm9, %v2832_v6 }
 0x3d5   : > { %2015 = vmatmul.msk.bf16.gmra.mxu1 %vm1174_vm9, %v1161_v39 }
 0x422   : > { %v1208_v42 = vpop.f32.mrf.mxu1 }
 0x423   : > { %v1228_v10 = vsel %vm689_vm1, %v1208_v42, -inf }
 0x424   : > { %1229 = vmax.xlane.f32.xlu0 %v1228_v10 }
 0x42a   : > { %v1210_v12 = vpop.f32.mrf.mxu1 }
 0x42b   : > { %v1231_v49 = vsel %vm689_vm1, %v1210_v12, -inf }
 0x42c   : > { %1232 = vmax.xlane.f32.xlu1 %v1231_v49 }
 0x432   : > { %v1213_v58 = vpop.f32.mrf.mxu1 }
 0x433   : > { %v1234_v29 = vsel %vm689_vm1, %v1213_v58, -inf }
 0x434   : > { %1235 = vmax.xlane.f32.xlu2 %v1234_v29 }
 0x43a   : > { %v1215_v1 = vpop.f32.mrf.mxu1 }
 0x43b   : > { %v1237_v63 = vsel %vm689_vm1, %v1215_v1, -inf }
 0x43c   : > { %1238 = vmax.xlane.f32.xlu0 %v1237_v63 }
 0x442   : > { %v1218_v30 = vpop.f32.mrf.mxu1 }
 0x443   : > { %v1240_v62 = vsel %vm689_vm1, %v1218_v30, -inf }
 0x444   : > { %1241 = vmax.xlane.f32.xlu0 %v1240_v62 }
 0x44a   : > { %v1220_v24 = vpop.f32.mrf.mxu1 }
 0x44b   : > { %v1243_v7 = vsel %vm689_vm1, %v1220_v24, -inf }
 0x44c   : > { %1320 = vrot.lane.b32.xlu2 %v1158_v2, %s2294_s11  ;;  %1244 = vmax.xlane.f32.xlu0 %v1243_v7  ;;  %v1390_v7 = vmax.f32 %v2711_v33, 0.0 }
 0x452   : > { %v1223_v15 = vpop.f32.mrf.mxu1 }
 0x453   : > { %v1246_v14 = vsel %vm689_vm1, %v1223_v15, -inf }
 0x454   : > { %1247 = vmax.xlane.f32.xlu0 %v1246_v14  ;;  %v1391_v14 = vmax.f32 %v2714_v47, 0.0 }
 0x45a   : > { %v1225_v43 = vpop.f32.mrf.mxu1 }
 0x45b   : > { %v1249_v48 = vsel %vm689_vm1, %v1225_v43, -inf }
 0x45c   : > { %1250 = vmax.xlane.f32.xlu0 %v1249_v48 }
 0x497   : > { %v1230_v19 = vpop.xlane.xlu0 %1229 }
 0x498   : > { %v1252_v44 = vsub.f32 %v1208_v42, %v1230_v19 }
 0x49a   : > { %v1260_v13 = vmul.f32 1.442695, %v1252_v44 }
 0x49c   : > { %2219 = vpow2.f32 %v1260_v13  ;;  %v1393_v13 = vmax.f32 %v2720_v23, 0.0 }
 0x49f   : > { %v1233_v40 = vpop.xlane.xlu1 %1232 }
 0x4a0   : > { %v1253_v38 = vsub.f32 %v1210_v12, %v1233_v40  ;;  %v1394_v40 = vmax.f32 %v2729_v27, 0.0 }
 0x4a2   : > { %v2846_v36 = vpop.eup %2219  ;;  %v1262_v16 = vmul.f32 1.442695, %v1253_v38  ;;  %v2108_v38 = vld [vmem:[%s3077_s29 + $0x8] sm:$0xff] }
 0x4a3   : > { %v1276_v21 = vsel %vm689_vm1, %v2846_v36, 0.0  ;;  %1500 = vmatpush.bf16.msrb.mxu0 %v2108_v38 }
 0x4a4   : > { %2221 = vpow2.f32 %v1262_v16  ;;  %1277 = vadd.xlane.f32.xlu1 %v1276_v21  ;;  %v1403_v16 = vpack.c.bf16 %v1394_v40, %v1393_v13  ;;  %v2111_v13 = vld [vmem:[%s2445_s0] sm:$0xff] }
 0x4a7   : > { %v1236_v37 = vpop.xlane.xlu2 %1235 }
 0x4a8   : > { %v1254_v22 = vsub.f32 %v1213_v58, %v1236_v37  ;;  %v1395_v37 = vmax.f32 %v2734_v52, 0.0 }
 0x4aa   : > { %v2222_v34 = vpop.eup %2221  ;;  %v1264_v56 = vmul.f32 1.442695, %v1254_v22  ;;  %v1396_v22 = vmax.f32 %v2739_v0, 0.0 }
 0x4ab   : > { %v1279_v45 = vsel %vm689_vm1, %v2222_v34, 0.0 }
 0x4ac   : > { %2223 = vpow2.f32 %v1264_v56  ;;  %1280 = vadd.xlane.f32.xlu0 %v1279_v45  ;;  %v1404_v45 = vpack.c.bf16 %v1396_v22, %v1395_v37 }
 0x4af   : > { %v1239_v26 = vpop.xlane.xlu0 %1238  ;;  %v1321_v63 = vpop.permute.xlu2 %1320 }
 0x4b0   : > { %v1255_v9 = vsub.f32 %v1215_v1, %v1239_v26 }
 0x4b2   : > { %v2851_v25 = vpop.eup %2223  ;;  %v1266_v32 = vmul.f32 1.442695, %v1255_v9 }
 0x4b3   : > { %v1282_v28 = vsel %vm689_vm1, %v2851_v25, 0.0 }
 0x4b4   : > { %1283 = vadd.xlane.f32.xlu2 %v1282_v28 }
 0x4b7   : > { %v1242_v11 = vpop.xlane.xlu0 %1241 }
 0x4b8   : > { %v1256_v18 = vsub.f32 %v1218_v30, %v1242_v11 }
 0x4ba   : > { %v1268_v39 = vmul.f32 1.442695, %v1256_v18 }
 0x4bd   : > { %1324 = vrot.lane.b32.xlu1 %v2832_v6, %s2294_s11 }
 0x4bf   : > { %v1245_v20 = vpop.xlane.xlu0 %1244 }
 0x4c0   : > { %v1257_v59 = vsub.f32 %v1220_v24, %v1245_v20  ;;  %1322 = vrot.lane.b32.xlu0 %v2828_v31, %s2294_s11  ;;  %v1389_v24 = vmax.f32 %v2708_v51, 0.0 }
 0x4c2   : > { %v1270_v57 = vmul.f32 1.442695, %v1257_v59 }
 0x4c4   : > { %2225 = vpow2.f32 %v1270_v57 }
 0x4c5   : > { %2227 = vpow2.f32 %v1266_v32 }
 0x4c6   : > { %2229 = vpow2.f32 %v1268_v39 }
 0x4c7   : > { %v1248_v17 = vpop.xlane.xlu0 %1247 }
 0x4c8   : > { %v1258_v35 = vsub.f32 %v1223_v15, %v1248_v17  ;;  %v1401_v15 = vpack.c.bf16 %v1390_v7, %v1389_v24 }
 0x4ca   : > { %v2859_v2 = vpop.eup %2225  ;;  %v1272_v46 = vmul.f32 1.442695, %v1258_v35 }
 0x4cb   : > { %v1291_v8 = vsel %vm689_vm1, %v2859_v2, 0.0  ;;  %v2863_v31 = vpop.eup %2227 }
 0x4cc   : > { %1292 = vadd.xlane.f32.xlu2 %v1291_v8  ;;  %2231 = vpow2.f32 %v1272_v46  ;;  %v2865_v54 = vpop.eup %2229  ;;  %v1285_v53 = vsel %vm689_vm1, %v2863_v31, 0.0 }
 0x4cd   : > { %v1288_v60 = vsel %vm689_vm1, %v2865_v54, 0.0 }
 0x4cf   : > { %v1251_v50 = vpop.xlane.xlu0 %1250 }
 0x4d0   : > { %v1259_v6 = vsub.f32 %v1225_v43, %v1251_v50  ;;  %v1392_v43 = vmax.f32 %v2717_v55, 0.0  ;;  %v2110_v50 = vld [vmem:[%s3077_s29 + $0x18] sm:$0xff] }
 0x4d1   : > { %1447 = vmatpush.bf16.msra.mxu3 %v2110_v50 }
 0x4d2   : > { %v1274_v41 = vmul.f32 1.442695, %v1259_v6  ;;  %v2871_v61 = vpop.eup %2231  ;;  %v1402_v48 = vpack.c.bf16 %v1392_v43, %v1391_v14  ;;  %v2109_v6 = vld [vmem:[%s3077_s29 + $0x10] sm:$0xff] }
 0x4d3   : > { %v1294_v4 = vsel %vm689_vm1, %v2871_v61, 0.0 }
 0x4d4   : > { %2233 = vpow2.f32 %v1274_v41 }
 0x4d5   : > { %1448 = vmatpush.bf16.msra.mxu3 %v2109_v6 }
 0x4da   : > { %v2873_v3 = vpop.eup %2233 }
 0x4db   : > { %v1297_v5 = vsel %vm689_vm1, %v2873_v3, 0.0 }
 0x4e4   : > { %1409 = vrot.lane.b32.xlu2 %v1401_v15, %s2294_s11 }
 0x4e7   : > { %1286 = vadd.xlane.f32.xlu1 %v1285_v53 }
 0x4ea   : > { %1289 = vadd.xlane.f32.xlu0 %v1288_v60 }
 0x4ef   : > { %1295 = vadd.xlane.f32.xlu1 %v1294_v4 }
 0x4f2   : > { %1298 = vadd.xlane.f32.xlu0 %v1297_v5 }
 0x506   : > { %1413 = vrot.lane.b32.xlu0 %v1403_v16, %s2294_s11  ;;  %v2212_v16 = vld [vmem:[%s3078_s25] ss:$0 sm:$0xff] }
 0x508   : > { %1411 = vrot.lane.b32.xlu1 %v1402_v48, %s2294_s11 }
 0x50e   : > { %1415 = vrot.lane.b32.xlu0 %v1404_v45, %s2294_s11 }
 0x517   : > { %v1278_v42 = vpop.xlane.xlu1 %1277 }
 0x51f   : > { %v1281_v10 = vpop.xlane.xlu0 %1280 }
 0x520   : > { %2235 = vrcp.f32 %v1281_v10 }
 0x521   : > { %2237 = vrcp.f32 %v1278_v42 }
 0x526   : > { %v2236_v49 = vpop.eup %2235 }
 0x527   : > { %v2238_v29 = vpop.eup %2237  ;;  %v1309_v1 = vmul.f32 %v2236_v49, %v2222_v34  ;;  %v1284_v19 = vpop.xlane.xlu2 %1283 }
 0x528   : > { %v1308_v30 = vmul.f32 %v2238_v29, %v2846_v36  ;;  %2239 = vrcp.f32 %v1284_v19  ;;  %v2113_v19 = vld [vmem:[%s2445_s0 + $0x10] sm:$0xff] }
 0x52a   : > { %v1316_v62 = vpack.c.bf16 %v1309_v1, %v1308_v30  ;;  %v2114_v1 = vld [vmem:[%s2445_s0 + $0x18] sm:$0xff] }
 0x52b   : > { %1599 = vmatpush.bf16.msrb.mxu3 %v2114_v1  ;;  %v2118_v1 = vld [vmem:[%s2459_s27 + $0x18] sm:$0xff] }
 0x52e   : > { %v2240_v34 = vpop.eup %2239 }
 0x52f   : > { %v1325_v12 = vpop.permute.xlu1 %1324  ;;  %v1310_v28 = vmul.f32 %v2240_v34, %v2851_v25  ;;  %1600 = vmatpush.bf16.msrb.mxu3 %v2113_v19 }
 0x530   : > { %1349 = vmatpush.bf16.msrb.mxu1 %v1325_v12  ;;  %2143 = vmatpush.bf16.msra.mxu2 %v1325_v12 }
 0x532   : > { %v1323_v58 = vpop.permute.xlu0 %1322 }
 0x534   : > { %1350 = vmatpush.bf16.msrb.mxu1 %v1323_v58  ;;  %2144 = vmatpush.bf16.msra.mxu2 %v1323_v58 }
 0x538   : > { %1351 = vmatpush.bf16.msrb.mxu1 %v1321_v63  ;;  %2145 = vmatpush.bf16.msra.mxu2 %v1321_v63 }
 0x53b   : > { %2016 = vmatmul.msk.bf16.vlgmr.msrb.gmra.mxu1 %vm689_vm1, %v1316_v62 }
 0x53f   : > { %v1293_v44 = vpop.xlane.xlu2 %1292 }
 0x547   : > { %v1410_v46 = vpop.permute.xlu2 %1409 }
 0x548   : > { %2028 = vmatmul.msk.bf16.vlgmr.msra.gmra.mxu3 %vm963_vm4, %v1410_v46  ;;  %v2120_v46 = vld [vmem:[%s2459_s27 + $0x28] sm:$0xff] }
 0x55a   : > { %v1287_v36 = vpop.xlane.xlu1 %1286 }
 0x55b   : > { %2241 = vrcp.f32 %v1287_v36 }
 0x55c   : > { %2243 = vrcp.f32 %v1293_v44  ;;  %v2112_v44 = vld [vmem:[%s2445_s0 + $0x8] sm:$0xff] }
 0x55d   : > { %v1290_v21 = vpop.xlane.xlu0 %1289  ;;  %1601 = vmatpush.bf16.msrb.mxu3 %v2112_v44 }
 0x55e   : > { %2245 = vrcp.f32 %v1290_v21 }
 0x561   : > { %v2242_v56 = vpop.eup %2241  ;;  %1602 = vmatpush.bf16.msrb.mxu3 %v2111_v13 }
 0x562   : > { %v2244_v26 = vpop.eup %2243  ;;  %v1311_v11 = vmul.f32 %v2242_v56, %v2863_v31  ;;  %v1296_v18 = vpop.xlane.xlu1 %1295  ;;  %v2107_v31 = vld [vmem:[%s3077_s29] sm:$0xff] }
 0x563   : > { %v1313_v8 = vmul.f32 %v2244_v26, %v2859_v2  ;;  %1501 = vmatpush.bf16.msrb.mxu0 %v2107_v31 }
 0x564   : > { %v2246_v20 = vpop.eup %2245  ;;  %v1317_v59 = vpack.c.bf16 %v1311_v11, %v1310_v28 }
 0x565   : > { %v1312_v57 = vmul.f32 %v2246_v20, %v2865_v54  ;;  %v1299_v17 = vpop.xlane.xlu0 %1298 }
 0x566   : > { %2017 = vmatmul.msk.bf16.gmra.mxu1 %vm689_vm1, %v1317_v59  ;;  %2247 = vrcp.f32 %v1299_v17 }
 0x567   : > { %v1318_v9 = vpack.c.bf16 %v1313_v8, %v1312_v57  ;;  %2249 = vrcp.f32 %v1296_v18 }
 0x569   : > { %2018 = vmatmul.msk.bf16.vlgmr.msra.gmra.mxu2 %vm689_vm1, %v1318_v9 }
 0x56c   : > { %v2248_v25 = vpop.eup %2247 }
 0x56d   : > { %v2250_v32 = vpop.eup %2249  ;;  %v1315_v39 = vmul.f32 %v2248_v25, %v2873_v3 }
 0x56e   : > { %v1314_v35 = vmul.f32 %v2250_v32, %v2871_v61 }
 0x570   : > { %v1319_v2 = vpack.c.bf16 %v1315_v39, %v1314_v35  ;;  %v2122_v35 = vld [vmem:[%s2459_s27 + $0x38] sm:$0xff] }
 0x571   : > { %1700 = vmatpush.bf16.msrb.mxu2 %v2122_v35 }
 0x578   : > { %v1414_v61 = vpop.permute.xlu0 %1413 }
 0x579   : > { %2019 = vmatmul.msk.bf16.gmra.mxu2 %vm689_vm1, %v1319_v2  ;;  %v2121_v2 = vld [vmem:[%s2459_s27 + $0x30] sm:$0xff] }
 0x57a   : > { %v1412_v4 = vpop.permute.xlu1 %1411  ;;  %1701 = vmatpush.bf16.msrb.mxu2 %v2121_v2 }
 0x57b   : > { %2029 = vmatmul.msk.bf16.gmra.mxu3 %vm963_vm4, %v1412_v4 }
 0x57e   : > { %1702 = vmatpush.bf16.msrb.mxu2 %v2120_v46 }
 0x580   : > { %v1416_v42 = vpop.permute.xlu0 %1415 }
 0x58b   : > { %2030 = vmatmul.msk.bf16.gmra.mxu3 %vm963_vm4, %v1414_v61 }
 0x59b   : > { %2031 = vmatmul.msk.bf16.gmra.mxu3 %vm963_vm4, %v1416_v42 }
 0x5b8   : > { %v1353_v41 = vpop.f32.mrf.mxu1 }
 0x5b9   : > { %v1373_v53 = vmax.f32 %v1353_v41, 0.0 }
 0x5c0   : > { %v1355_v54 = vpop.f32.mrf.mxu1 }
 0x5c1   : > { %v1374_v60 = vmax.f32 %v1355_v54, 0.0 }
 0x5c3   : > { %v1385_v3 = vpack.c.bf16 %v1374_v60, %v1373_v53 }
 0x5c5   : > { %2040 = vmatmul.msk.bf16.vlgmr.msrb.gmra.mxu0 %vm963_vm4, %v1385_v3 }
 0x5cb   : > { %v1450_v40 = vpop.f32.mrf.mxu3 }
 0x5d3   : > { %v1452_v21 = vpop.f32.mrf.mxu3 }
 0x5e3   : > { %v1358_v5 = vpop.f32.mrf.mxu1 }
 0x5e4   : > { %v1375_v12 = vmax.f32 %v1358_v5, 0.0 }
 0x5eb   : > { %v1360_v10 = vpop.f32.mrf.mxu1 }
 0x5ec   : > { %v1376_v49 = vmax.f32 %v1360_v10, 0.0  ;;  %v1363_v58 = vpop.f32.mrf.mxu2 }
 0x5ed   : > { %v1377_v62 = vmax.f32 %v1363_v58, 0.0 }
 0x5ee   : > { %v1386_v29 = vpack.c.bf16 %v1376_v49, %v1375_v12 }
 0x5f0   : > { %2041 = vmatmul.msk.bf16.gmra.mxu0 %vm963_vm4, %v1386_v29 }
 0x5f4   : > { %v1365_v63 = vpop.f32.mrf.mxu2 }
 0x5f5   : > { %v1378_v30 = vmax.f32 %v1365_v63, 0.0  ;;  %v2117_v63 = vld [vmem:[%s2459_s27 + $0x10] sm:$0xff] }
 0x5f7   : > { %v1387_v7 = vpack.c.bf16 %v1378_v30, %v1377_v62  ;;  %v2116_v30 = vld [vmem:[%s2459_s27 + $0x8] sm:$0xff]  ;;  %v2115_v62 = vld [vmem:[%s2459_s27] sm:$0xff] }
 0x5fc   : > { %v1368_v24 = vpop.f32.mrf.mxu2 }
 0x5fd   : > { %v1379_v43 = vmax.f32 %v1368_v24, 0.0 }
 0x5fe   : > { %v1455_v11 = vpop.f32.mrf.mxu3 }
 0x600   : > { %2042 = vmatmul.msk.bf16.gmra.mxu0 %vm963_vm4, %v1387_v7 }
 0x604   : > { %v1370_v15 = vpop.f32.mrf.mxu2 }
 0x605   : > { %v1380_v14 = vmax.f32 %v1370_v15, 0.0 }
 0x606   : > { %v1457_v59 = vpop.f32.mrf.mxu3 }
 0x607   : > { %v1388_v48 = vpack.c.bf16 %v1380_v14, %v1379_v43 }
 0x610   : > { %2043 = vmatmul.msk.bf16.gmra.mxu0 %vm963_vm4, %v1388_v48 }
 0x642   : > { %v1503_v38 = vpop.f32.mrf.mxu0 }
 0x643   : > { %v1504_v36 = vadd.f32 %v1503_v38, %v1450_v40 }
 0x645   : > { %v1527_v22 = vadd.f32 %v2212_v16, %v1504_v36 }
 0x647   : > { %v2924_v45 = vadd.f32 %v1527_v22, %v2708_v51  ;;  %v1460_v51 = vpop.f32.mrf.mxu3 }
 0x64a   : > { %v1505_v37 = vpop.f32.mrf.mxu0 }
 0x64b   : > { %v1506_v34 = vadd.f32 %v1505_v37, %v1452_v21 }
 0x64d   : > { %v1528_v56 = vadd.f32 %v2212_v16, %v1506_v34 }
 0x64f   : > { %v2927_v26 = vadd.f32 %v1528_v56, %v2711_v33  ;;  %v1462_v50 = vpop.f32.mrf.mxu3 }
 0x651   : > { %v1551_v28 = vpack.c.bf16 %v2927_v26, %v2924_v45 }
 0x653   : > { %2060 = vmatmul.msk.bf16.vlgmr.msrb.gmra.mxu3 %vm689_vm1, %v1551_v28 }
 0x657   : > { %v1465_v3 = vpop.f32.mrf.mxu3 }
 0x65f   : > { %v1467_v42 = vpop.f32.mrf.mxu3 }
 0x66d   : > { %v1508_v20 = vpop.f32.mrf.mxu0 }
 0x66e   : > { %v1509_v57 = vadd.f32 %v1508_v20, %v1455_v11 }
 0x670   : > { %v1529_v17 = vadd.f32 %v2212_v16, %v1509_v57 }
 0x672   : > { %v2933_v33 = vadd.f32 %v1529_v17, %v2714_v47 }
 0x675   : > { %v1510_v8 = vpop.f32.mrf.mxu0 }
 0x676   : > { %v1511_v9 = vadd.f32 %v1510_v8, %v1457_v59 }
 0x678   : > { %v1530_v18 = vadd.f32 %v2212_v16, %v1511_v9 }
 0x67a   : > { %v2936_v25 = vadd.f32 %v1530_v18, %v2717_v55  ;;  %v2119_v55 = vld [vmem:[%s2459_s27 + $0x20] sm:$0xff] }
 0x67b   : > { %1703 = vmatpush.bf16.msrb.mxu2 %v2119_v55  ;;  %v2214_v18 = vld [vmem:[%s645_s30] ss:$0 sm:$0xff] }
 0x67c   : > { %v1552_v32 = vpack.c.bf16 %v2936_v25, %v2933_v33 }
 0x67d   : > { %v1513_v39 = vpop.f32.mrf.mxu0 }
 0x67e   : > { %2061 = vmatmul.msk.bf16.gmra.mxu3 %vm689_vm1, %v1552_v32  ;;  %v1514_v6 = vadd.f32 %v1513_v39, %v1460_v51 }
 0x67f   : > { %1704 = vmatpush.bf16.msrb.mxu2 %v2118_v1 }
 0x680   : > { %v1531_v47 = vadd.f32 %v2212_v16, %v1514_v6 }
 0x682   : > { %v2946_v53 = vadd.f32 %v1531_v47, %v2720_v23 }
 0x683   : > { %1705 = vmatpush.bf16.msrb.mxu2 %v2117_v63 }
 0x685   : > { %v1515_v31 = vpop.f32.mrf.mxu0 }
 0x686   : > { %v1516_v41 = vadd.f32 %v1515_v31, %v1462_v50 }
 0x687   : > { %1706 = vmatpush.bf16.msrb.mxu2 %v2116_v30 }
 0x688   : > { %v1532_v54 = vadd.f32 %v2212_v16, %v1516_v41 }
 0x68a   : > { %v2949_v60 = vadd.f32 %v1532_v54, %v2729_v27 }
 0x68b   : > { %1707 = vmatpush.bf16.msrb.mxu2 %v2115_v62 }
 0x68c   : > { %v1553_v4 = vpack.c.bf16 %v2949_v60, %v2946_v53 }
 0x68d   : > { %v1518_v61 = vpop.f32.mrf.mxu0 }
 0x68e   : > { %2062 = vmatmul.msk.bf16.gmra.mxu3 %vm689_vm1, %v1553_v4  ;;  %v1519_v5 = vadd.f32 %v1518_v61, %v1465_v3 }
 0x690   : > { %v1533_v23 = vadd.f32 %v2212_v16, %v1519_v5 }
 0x692   : > { %v2955_v49 = vadd.f32 %v1533_v23, %v2734_v52  ;;  %v2213_v52 = vld [vmem:[%s637_s18] ss:$0 sm:$0xff] }
 0x695   : > { %v1520_v10 = vpop.f32.mrf.mxu0 }
 0x696   : > { %v1521_v12 = vadd.f32 %v1520_v10, %v1467_v42 }
 0x698   : > { %v1534_v27 = vadd.f32 %v2212_v16, %v1521_v12 }
 0x69a   : > { %v2958_v58 = vadd.f32 %v1534_v27, %v2739_v0 }
 0x69c   : > { %v1554_v29 = vpack.c.bf16 %v2958_v58, %v2955_v49 }
 0x69e   : > { %2063 = vmatmul.msk.bf16.gmra.mxu3 %vm689_vm1, %v1554_v29 }
 0x6d6   : > { %v1604_v24 = vpop.f32.mrf.mxu3 }
 0x6d7   : > { %v1605_v0 = vadd.f32 %v2213_v52, %v1604_v24 }
 0x6d9   : > { %v1624_v14 = vmax.f32 %v1605_v0, 0.0 }
 0x6de   : > { %v1606_v7 = vpop.f32.mrf.mxu3 }
 0x6df   : > { %v1607_v15 = vadd.f32 %v2213_v52, %v1606_v7 }
 0x6e1   : > { %v1625_v43 = vmax.f32 %v1607_v15, 0.0 }
 0x6e3   : > { %v1648_v48 = vpack.c.bf16 %v1625_v43, %v1624_v14 }
 0x6e5   : > { %1708 = vmatmul.bf16.vlgmr.msrb.gmra.mxu2 %v1648_v48 }
 0x701   : > { %v1609_v19 = vpop.f32.mrf.mxu3 }
 0x702   : > { %v1610_v44 = vadd.f32 %v2213_v52, %v1609_v19 }
 0x704   : > { %v1626_v38 = vmax.f32 %v1610_v44, 0.0 }
 0x709   : > { %v1611_v13 = vpop.f32.mrf.mxu3 }
 0x70a   : > { %v1612_v40 = vadd.f32 %v2213_v52, %v1611_v13 }
 0x70c   : > { %v1627_v36 = vmax.f32 %v1612_v40, 0.0 }
 0x70e   : > { %v1649_v16 = vpack.c.bf16 %v1627_v36, %v1626_v38 }
 0x710   : > { %1713 = vmatmul.bf16.gmra.mxu2 %v1649_v16 }
 0x711   : > { %v1614_v21 = vpop.f32.mrf.mxu3 }
 0x712   : > { %v1615_v37 = vadd.f32 %v2213_v52, %v1614_v21 }
 0x714   : > { %v1628_v56 = vmax.f32 %v1615_v37, 0.0 }
 0x719   : > { %v1616_v22 = vpop.f32.mrf.mxu3 }
 0x71a   : > { %v1617_v34 = vadd.f32 %v2213_v52, %v1616_v22 }
 0x71c   : > { %v1629_v28 = vmax.f32 %v1617_v34, 0.0 }
 0x71e   : > { %v1650_v11 = vpack.c.bf16 %v1629_v28, %v1628_v56 }
 0x720   : > { %1718 = vmatmul.bf16.gmra.mxu2 %v1650_v11 }
 0x721   : > { %v1619_v20 = vpop.f32.mrf.mxu3 }
 0x722   : > { %v1620_v59 = vadd.f32 %v2213_v52, %v1619_v20 }
 0x724   : > { %v1630_v17 = vmax.f32 %v1620_v59, 0.0 }
 0x729   : > { %v1621_v57 = vpop.f32.mrf.mxu3 }
 0x72a   : > { %v1622_v8 = vadd.f32 %v2213_v52, %v1621_v57 }
 0x72c   : > { %v1631_v9 = vmax.f32 %v1622_v8, 0.0 }
 0x72e   : > { %v1651_v51 = vpack.c.bf16 %v1631_v9, %v1630_v17 }
 0x730   : > { %1723 = vmatmul.bf16.gmra.mxu2 %v1651_v51 }
 0x768   : > { %v1709_v32 = vpop.f32.mrf.mxu2 }
 0x769   : > { %v1729_v39 = vadd.f32 %v1709_v32, %v2924_v45 }
 0x76b   : > { %v1741_v35 = vadd.f32 %v2214_v18, %v1729_v39 }
 0x76d   : > { %1749 = vst.msk [vmem:[#allocation2] sm:$0xff] %vm689_vm1, %v1741_v35 }
 0x770   : > { %v1711_v2 = vpop.f32.mrf.mxu2 }
 0x771   : > { %v1730_v50 = vadd.f32 %v1711_v2, %v2927_v26 }
 0x773   : > { %v1742_v6 = vadd.f32 %v2214_v18, %v1730_v50 }
 0x775   : > { %1750 = vst.msk [vmem:[#allocation2 + $0x8] sm:$0xff] %vm689_vm1, %v1742_v6 }
 0x793   : > { %v1714_v46 = vpop.f32.mrf.mxu2 }
 0x794   : > { %v1731_v31 = vadd.f32 %v1714_v46, %v2933_v33 }
 0x796   : > { %v1743_v47 = vadd.f32 %v2214_v18, %v1731_v31 }
 0x798   : > { %1751 = vst.msk [vmem:[#allocation2 + $0x10] sm:$0xff] %vm689_vm1, %v1743_v47 }
 0x79b   : > { %v1716_v41 = vpop.f32.mrf.mxu2 }
 0x79c   : > { %v1732_v54 = vadd.f32 %v1716_v41, %v2936_v25 }
 0x79e   : > { %v1744_v55 = vadd.f32 %v2214_v18, %v1732_v54 }
 0x7a0   : > { %1752 = vst.msk [vmem:[#allocation2 + $0x18] sm:$0xff] %vm689_vm1, %v1744_v55 }
 0x7a3   : > { %v1719_v45 = vpop.f32.mrf.mxu2 }
 0x7a4   : > { %v1733_v3 = vadd.f32 %v1719_v45, %v2946_v53 }
 0x7a6   : > { %v1745_v4 = vadd.f32 %v2214_v18, %v1733_v3 }
 0x7a8   : > { %1753 = vst.msk [vmem:[#allocation2 + $0x20] sm:$0xff] %vm689_vm1, %v1745_v4 }
 0x7ab   : > { %v1721_v26 = vpop.f32.mrf.mxu2 }
 0x7ac   : > { %v1734_v61 = vadd.f32 %v1721_v26, %v2949_v60 }
 0x7ae   : > { %v1746_v5 = vadd.f32 %v2214_v18, %v1734_v61 }
 0x7b0   : > { %1754 = vst.msk [vmem:[#allocation2 + $0x28] sm:$0xff] %vm689_vm1, %v1746_v5 }
 0x7b3   : > { %v1724_v33 = vpop.f32.mrf.mxu2 }
 0x7b4   : > { %v1735_v42 = vadd.f32 %v1724_v33, %v2955_v49 }
 0x7b6   : > { %v1747_v10 = vadd.f32 %v2214_v18, %v1735_v42 }
 0x7b8   : > { %1755 = vst.msk [vmem:[#allocation2 + $0x30] sm:$0xff] %vm689_vm1, %v1747_v10 }
 0x7bb   : > { %v1726_v25 = vpop.f32.mrf.mxu2 }
 0x7bc   : > { %v1736_v23 = vadd.f32 %v1726_v25, %v2958_v58  ;;  %1760 = sbr.rel (%p2096_p8) target bundleno = 1996 (0x7cc), region = 80 }
 0x7be   : > { %v1748_v12 = vadd.f32 %v2214_v18, %v1736_v23 }
 0x7c0   : > { %1756 = vst.msk [vmem:[#allocation2 + $0x38] sm:$0xff] %vm689_vm1, %v1748_v12 }
 0x7c1   : > { %v1761_v53 = vld [vmem:[#allocation2] sm:$0xff]  ;;  %vm1777_vm10 = vcmask 519168   ;;  %v1762_v60 = vld [vmem:[#allocation2 + $0x8] sm:$0xff]  ;;  %v1763_v27 = vld [vmem:[#allocation2 + $0x10] sm:$0xff] }
 0x7c2   : > { %v1769_v49 = vpack.c.bf16 %v1761_v53, %v1761_v53  ;;  %v1770_v29 = vpack.c.bf16 %v1762_v60, %v1762_v60  ;;  %v1771_v1 = vpack.c.bf16 %v1763_v27, %v1763_v27  ;;  %v1764_v58 = vld [vmem:[#allocation2 + $0x18] sm:$0xff]  ;;  %v1765_v63 = vld [vmem:[#allocation2 + $0x20] sm:$0xff]  ;;  %v1766_v30 = vld [vmem:[#allocation2 + $0x28] sm:$0xff] }
 0x7c3   : > { %v1772_v62 = vpack.c.bf16 %v1764_v58, %v1764_v58  ;;  %v1767_v24 = vld [vmem:[#allocation2 + $0x30] sm:$0xff]  ;;  %v1773_v52 = vpack.c.bf16 %v1765_v63, %v1765_v63  ;;  %v1774_v7 = vpack.c.bf16 %v1766_v30, %v1766_v30 }
 0x7c4   : > { %1778 = vst.msk [vmem:[%s2464_s17] sm:$0xf] %vm1777_vm10, %v1769_v49  ;;  %v1775_v15 = vpack.c.bf16 %v1767_v24, %v1767_v24 }
 0x7c5   : > { %1779 = vst.msk [vmem:[%s2464_s17 + $0x4] sm:$0xf] %vm1777_vm10, %v1770_v29 }
 0x7c6   : > { %1780 = vst.msk [vmem:[%s2464_s17 + $0x8] sm:$0xf] %vm1777_vm10, %v1771_v1 }
 0x7c7   : > { %v1768_v0 = vld [vmem:[#allocation2 + $0x38] sm:$0xff]  ;;  %1781 = vst.msk [vmem:[%s2464_s17 + $0xc] sm:$0xf] %vm1777_vm10, %v1772_v62 }
 0x7c8   : > { %v1776_v14 = vpack.c.bf16 %v1768_v0, %v1768_v0  ;;  %1782 = vst.msk [vmem:[%s2464_s17 + $0x10] sm:$0xf] %vm1777_vm10, %v1773_v52 }
 0x7c9   : > { %1783 = vst.msk [vmem:[%s2464_s17 + $0x14] sm:$0xf] %vm1777_vm10, %v1774_v7 }
 0x7ca   : > { %1784 = vst.msk [vmem:[%s2464_s17 + $0x18] sm:$0xf] %vm1777_vm10, %v1775_v15 }
 0x7cb   : > { %1785 = vst.msk [vmem:[%s2464_s17 + $0x1c] sm:$0xf] %vm1777_vm10, %v1776_v14 }
 0x7cc PF: > { %s3080_s30 = sld [smem:[#allocation7_spill]] }
 0x7cd   : > { %s3081_s25 = sld [smem:[#allocation5_spill]] }
 0x7ce   : > { %s3082_s26 = sld [smem:[#allocation6_spill]] }
 0x7cf   : > { %s3083_s27 = sld [smem:[#allocation8_spill]] }
 0x7d0   : > { %s3084_s28 = sld [smem:[#allocation9_spill]] }
 0x7d2   : > { %s23_s29 = sadd.s32 1, %s3080_s30  }
 0x7d3   : > { %p20_p9 = scmp.ge.s32.totalorder %s23_s29, 6  }
 0x7d5   :  { %22 = sbr.rel (!%p20_p9) target bundleno = 7 (0x7), region = 151 }

// kernel: stage_block_forward.4
= control target key start
LH: loop header
LB: loop body
LE: loop exit
PB: predicated region body
PF: predicated region fallthrough
CT: control target
= control target key end

     0   :  { %s1310_s13 = smov 0   ;;  %s1673_s0 = inlined_call_operand.vmem [shape: bf16[2,8,8,128], index: 0, kind: input, shape index: {}]   ;;  %s1674_s1 = inlined_call_operand.vmem [shape: f32[2,1,128], index: 1, kind: input, shape index: {}]   ;;  %s1675_s2 = inlined_call_operand.vmem [shape: bf16[128,64], index: 2, kind: input, shape index: {}]   ;;  %s1676_s3 = inlined_call_operand.vmem [shape: f32[1,64], index: 3, kind: input, shape index: {}]   ;;  %s1677_s4 = inlined_call_operand.vmem [shape: f32[1,3,3,64], index: 4, kind: input, shape index: {}]   ;;  %s1678_s5 = inlined_call_operand.vmem [shape: f32[1,1,64], index: 5, kind: input, shape index: {}]   ;;  %s1679_s6 = inlined_call_operand.vmem [shape: bf16[64,128], index: 6, kind: input, shape index: {}]   ;;  %s1680_s7 = inlined_call_operand.vmem [shape: f32[1,128], index: 7, kind: input, shape index: {}]   ;;  %s1681_s8 = inlined_call_operand.vmem [shape: bf16[128,64], index: 8, kind: input, shape index: {}]   ;;  %s1682_s9 = inlined_call_operand.vmem [shape: f32[1,64], index: 9, kind: input, shape index: {}]   ;;  %s1683_s10 = inlined_call_operand.vmem [shape: bf16[2,8,8,64], index: 10, kind: output, shape index: {}]  }
   0x1 LB: > { %s1065_s14 = sadd.s32 4294967295, %s1252_s13   ;;  %p1069_p0 = scmp.ge.s32.totalorder %s1252_s13, 1  ;;  %s1252_s13 = sphi %s1310_s13, %s20_s13  }
   0x2   : > { %p320_p1 = scmp.lt.s32.totalorder %s1252_s13, 3 }
   0x4   : > { %p321_p2 = pnand %p1069_p0, %p320_p1 }
   0x5   : > { %p361_p3 = scmp.lt.s32.totalorder (!%p321_p2), %s1065_s14, 1 }
   0x6   : > { %324 = sbr.rel (%p321_p2) target bundleno = 540 (0x21c), region = 60 }
   0xb   : > { %v1175_v0 = vld [vmem:[%s1675_s2 + $0x38] sm:$0xff]  ;;  %v1174_v1 = vld [vmem:[%s1675_s2 + $0x30] sm:$0xff]  ;;  %s1685_s14 = smov (!%p361_p3, %s1065_s14), 1  ;;  %v1173_v2 = vld [vmem:[%s1675_s2 + $0x28] sm:$0xff]  ;;  %vm504_vm0 = vcmask 523264   ;;  %v1254_v33 = vmov 0.0  }
   0xc   : > { %475 = vmatpush.bf16.msra.mxu0 %v1175_v0  ;;  %1207 = vmatpush.bf16.msra.mxu3 %v1175_v0  ;;  %s368_s21 = scalar_lea.vmem %s1674_s1, %s1685_s14  ;;  %v1172_v3 = vld [vmem:[%s1675_s2 + $0x20] sm:$0xff]  ;;  %s1166_s26 = sshll.u32 %s1685_s14, 5  ;;  %v1171_v4 = vld [vmem:[%s1675_s2 + $0x18] sm:$0xff]  ;;  %v1170_v5 = vld [vmem:[%s1675_s2 + $0x10] sm:$0xff]  ;;  %505 = vst.msk [vmem:[#allocation2 + $0x7] sm:$0xff] %vm504_vm0, %v1254_v33  ;;  %vm506_vm1 = vcmask 517120  }
   0xd   : > { %s1345_s11 = scalar_lea.vmem %s1673_s0, %s1166_s26  ;;  %v1232_v10 = vld [vmem:[%s368_s21] ss:$0 sm:$0xff]  ;;  %v1169_v13 = vld [vmem:[%s1675_s2 + $0x8] sm:$0xff]  ;;  %509 = vst.msk [vmem:[#allocation2 + $0xdf] sm:$0xff] %vm504_vm0, %v1254_v33  ;;  %vm512_vm2 = vcmask 516096   ;;  %v1179_v34 = vld [vmem:[%s1679_s6 + $0x18] sm:$0xff]  ;;  %s1645_s21 = scalar_lea.vmem %s1683_s10, %s1166_s26 }
   0xe   : > { %v1189_v6 = vld [vmem:[%s1345_s11] sm:$0xff]   ;;  %v1204_v7 = vld [vmem:[%s1345_s11 + $0x8] sm:$0xff]   ;;  %v1205_v21 = vld [vmem:[%s1345_s11 + $0x10] sm:$0xff]   ;;  %507 = vst.msk [vmem:[#allocation2 + $0xf] sm:$0x3] %vm506_vm1, %v1254_v33  ;;  %834 = vmatpush.bf16.msra.mxu1 %v1179_v34  ;;  %vm992_vm3 = vcmask 519168  }
   0xf   : > { %v1190_v8 = vunpack.c.l.bf16 %v1189_v6  ;;  %v1191_v9 = vunpack.c.h.bf16 %v1189_v6  ;;  %v1194_v11 = vunpack.c.l.bf16 %v1204_v7  ;;  %v1195_v12 = vunpack.c.h.bf16 %v1204_v7  ;;  %v1168_v18 = vld [vmem:[%s1675_s2] sm:$0xff]  ;;  %v1206_v27 = vld [vmem:[%s1345_s11 + $0x18] sm:$0xff]   ;;  %510 = vst.msk [vmem:[#allocation2 + $0xe7] sm:$0x3] %vm506_vm1, %v1254_v33  ;;  %v1178_v35 = vld [vmem:[%s1679_s6 + $0x10] sm:$0xff] }
  0x10   : > { %476 = vmatpush.bf16.msra.mxu0 %v1174_v1  ;;  %1208 = vmatpush.bf16.msra.mxu3 %v1174_v1  ;;  %v1198_v22 = vunpack.c.l.bf16 %v1205_v21  ;;  %v1199_v23 = vunpack.c.h.bf16 %v1205_v21  ;;  %v1202_v28 = vunpack.c.l.bf16 %v1206_v27  ;;  %v1203_v29 = vunpack.c.h.bf16 %v1206_v27  ;;  %513 = vst.msk [vmem:[#allocation2 + $0x1f] sm:$0x1] %vm512_vm2, %v1254_v33  ;;  %v1387_v36 = vld [vmem:[%s1676_s3] ss:$0 sm:$0xff]  ;;  %v1177_v38 = vld [vmem:[%s1679_s6 + $0x8] sm:$0xff] }
  0x11   : > { %v395_v14 = vmul.f32 %v1232_v10, %v1190_v8  ;;  %v396_v15 = vmul.f32 %v1232_v10, %v1191_v9  ;;  %v397_v16 = vmul.f32 %v1232_v10, %v1194_v11  ;;  %v398_v17 = vmul.f32 %v1232_v10, %v1195_v12  ;;  %521 = vst.msk [vmem:[#allocation2 + $0x28] sm:$0x1] %vm512_vm2, %v1254_v33  ;;  %v1392_v37 = vld [vmem:[%s1677_s4] ss:$0 sm:$0xff]  ;;  %v1400_v40 = vld [vmem:[%s1677_s4 + $0x5] ss:$0 sm:$0xff] }
  0x12   : > { %v399_v24 = vmul.f32 %v1232_v10, %v1198_v22  ;;  %v400_v25 = vmul.f32 %v1232_v10, %v1199_v23  ;;  %v401_v30 = vmul.f32 %v1232_v10, %v1202_v28  ;;  %v402_v31 = vmul.f32 %v1232_v10, %v1203_v29  ;;  %514 = vst.msk [vmem:[#allocation2 + $0x37] sm:$0x1] %vm512_vm2, %v1254_v33  ;;  %v1409_v44 = vld [vmem:[%s1677_s4 + $0x1] ss:$0 sm:$0xff]  ;;  %v1422_v50 = vld [vmem:[%s1677_s4 + $0x2] ss:$0 sm:$0xff] }
  0x13   : > { %v419_v19 = vpack.c.bf16 %v396_v15, %v395_v14  ;;  %v420_v20 = vpack.c.bf16 %v398_v17, %v397_v16  ;;  %515 = vst.msk [vmem:[#allocation2 + $0x4f] sm:$0x1] %vm512_vm2, %v1254_v33  ;;  %835 = vmatpush.bf16.msra.mxu1 %v1178_v35  ;;  %v548_v39 = vld [vmem:[#allocation2 + $0x7] sm:$0xff]  ;;  %v1427_v53 = vld [vmem:[%s1677_s4 + $0x4] ss:$0 sm:$0xff] }
  0x14   : > { %477 = vmatpush.bf16.msra.mxu0 %v1173_v2  ;;  %1209 = vmatpush.bf16.msra.mxu3 %v1173_v2  ;;  %v421_v26 = vpack.c.bf16 %v400_v25, %v399_v24  ;;  %v422_v32 = vpack.c.bf16 %v402_v31, %v401_v30  ;;  %516 = vst.msk [vmem:[#allocation2 + $0x67] sm:$0x1] %vm512_vm2, %v1254_v33  ;;  %v1176_v45 = vld [vmem:[%s1679_s6] sm:$0xff]  ;;  %v1453_v8 = vld [vmem:[%s1677_s4 + $0x8] ss:$0 sm:$0xff] }
  0x15   : > { %517 = vst.msk [vmem:[#allocation2 + $0x7f] sm:$0x1] %vm512_vm2, %v1254_v33  ;;  %v558_v43 = vmul.f32 %v1392_v37, %v548_v39  ;;  %v574_v46 = vld [vmem:[#allocation2 + $0x8] sm:$0xff]  ;;  %v1447_v1 = vld [vmem:[%s1677_s4 + $0x6] ss:$0 sm:$0xff] }
  0x16   : > { %518 = vst.msk [vmem:[#allocation2 + $0x97] sm:$0x1] %vm512_vm2, %v1254_v33  ;;  %v584_v49 = vmul.f32 %v1409_v44, %v574_v46  ;;  %v600_v51 = vld [vmem:[#allocation2 + $0x9] sm:$0xff] }
  0x17   : > { %519 = vst.msk [vmem:[#allocation2 + $0xaf] sm:$0x1] %vm512_vm2, %v1254_v33  ;;  %836 = vmatpush.bf16.msra.mxu1 %v1177_v38  ;;  %v610_v57 = vmul.f32 %v1422_v50, %v600_v51  ;;  %v1463_v14 = vld [vmem:[%s1677_s4 + $0x9] ss:$0 sm:$0xff] }
  0x18   : > { %478 = vmatpush.bf16.msra.mxu0 %v1172_v3  ;;  %1210 = vmatpush.bf16.msra.mxu3 %v1172_v3  ;;  %520 = vst.msk [vmem:[#allocation2 + $0xc7] sm:$0x1] %vm512_vm2, %v1254_v33 }
  0x19   : > { %522 = vst.msk [vmem:[#allocation2 + $0x40] sm:$0x1] %vm512_vm2, %v1254_v33 }
  0x1a   : > { %523 = vst.msk [vmem:[#allocation2 + $0x58] sm:$0x1] %vm512_vm2, %v1254_v33 }
  0x1b   : > { %524 = vst.msk [vmem:[#allocation2 + $0x70] sm:$0x1] %vm512_vm2, %v1254_v33  ;;  %837 = vmatpush.bf16.msra.mxu1 %v1176_v45 }
  0x1c   : > { %479 = vmatpush.bf16.msra.mxu0 %v1171_v4  ;;  %1211 = vmatpush.bf16.msra.mxu3 %v1171_v4  ;;  %525 = vst.msk [vmem:[#allocation2 + $0x88] sm:$0x1] %vm512_vm2, %v1254_v33 }
  0x1d   : > { %526 = vst.msk [vmem:[#allocation2 + $0xa0] sm:$0x1] %vm512_vm2, %v1254_v33 }
  0x1e   : > { %527 = vst.msk [vmem:[#allocation2 + $0xb8] sm:$0x1] %vm512_vm2, %v1254_v33 }
  0x1f   : > { %528 = vst.msk [vmem:[#allocation2 + $0xd0] sm:$0x1] %vm512_vm2, %v1254_v33 }
  0x20   : > { %480 = vmatpush.bf16.msra.mxu0 %v1170_v5  ;;  %1212 = vmatpush.bf16.msra.mxu3 %v1170_v5 }
  0x24   : > { %481 = vmatpush.bf16.msra.mxu0 %v1169_v13  ;;  %1213 = vmatpush.bf16.msra.mxu3 %v1169_v13 }
  0x28   : > { %482 = vmatpush.bf16.msra.mxu0 %v1168_v18  ;;  %1214 = vmatpush.bf16.msra.mxu3 %v1168_v18 }
  0x2b   : > { %483 = vmatmul.bf16.vlgmr.msra.gmra.mxu0 %v419_v19  ;;  %488 = vmatmul.bf16.vlgmr.msra.gmra.mxu3 %v420_v20 }
  0x3b   : > { %493 = vmatmul.bf16.gmra.mxu3 %v421_v26  ;;  %v1478_v26 = vld [vmem:[%s1677_s4 + $0xa] ss:$0 sm:$0xff] }
  0x4b   : > { %498 = vmatmul.bf16.gmra.mxu3 %v422_v32 }
  0xa8   : > { %v484_v41 = vpop.f32.mrf.mxu0 }
  0xa9   : > { %v1403_v42 = vadd.f32 %v1387_v36, %v484_v41 }
  0xab   : > { %529 = vst.msk [vmem:[#allocation2 + $0x20] sm:$0xff] %vm504_vm0, %v1403_v42  ;;  %v540_v47 = vmul.f32 %v1400_v40, %v1403_v42 }
  0xad   : > { %v566_v48 = vadd.f32 %v558_v43, %v540_v47 }
  0xae   : > { %v489_v52 = vpop.f32.mrf.mxu3 }
  0xaf   : > { %v1430_v54 = vadd.f32 %v1387_v36, %v489_v52  ;;  %v592_v56 = vadd.f32 %v584_v49, %v566_v48 }
  0xb0   : > { %v486_v55 = vpop.f32.mrf.mxu0 }
  0xb1   : > { %531 = vst.msk [vmem:[#allocation2 + $0x50] sm:$0xff] %vm504_vm0, %v1430_v54  ;;  %v1436_v58 = vadd.f32 %v1387_v36, %v486_v55  ;;  %v618_v0 = vadd.f32 %v610_v57, %v592_v56  ;;  %v542_v15 = vmul.f32 %v1400_v40, %v1430_v54  ;;  %v1494_v56 = vld [vmem:[%s1678_s5] ss:$0 sm:$0xff] }
  0xb2   : > { %v626_v59 = vld [vmem:[#allocation2 + $0x1f] sm:$0xff] }
  0xb3   : > { %v575_v60 = vld [vmem:[#allocation2 + $0x20] sm:$0xff]  ;;  %v636_v61 = vmul.f32 %v1427_v53, %v626_v59  ;;  %530 = vst.msk [vmem:[#allocation2 + $0x38] sm:$0xff] %vm504_vm0, %v1436_v58  ;;  %v541_v62 = vmul.f32 %v1400_v40, %v1436_v58  ;;  %v559_v63 = vmul.f32 %v1392_v37, %v626_v59 }
  0xb4   : > { %v585_v3 = vmul.f32 %v1409_v44, %v575_v60  ;;  %v652_v4 = vld [vmem:[#allocation2 + $0x21] sm:$0xff] }
  0xb5   : > { %v567_v2 = vadd.f32 %v559_v63, %v541_v62  ;;  %v644_v6 = vadd.f32 %v636_v61, %v618_v0  ;;  %v662_v11 = vmul.f32 %v1447_v1, %v652_v4  ;;  %v611_v12 = vmul.f32 %v1422_v50, %v652_v4 }
  0xb6   : > { %v491_v5 = vpop.f32.mrf.mxu3 }
  0xb7   : > { %v593_v7 = vadd.f32 %v585_v3, %v567_v2  ;;  %v1456_v9 = vadd.f32 %v1387_v36, %v491_v5  ;;  %v670_v21 = vadd.f32 %v662_v11, %v644_v6 }
  0xb8   : > { %v680_v10 = vld [vmem:[#allocation2 + $0x4f] sm:$0xff] }
  0xb9   : > { %v707_v13 = vld [vmem:[#allocation2 + $0x50] sm:$0xff]  ;;  %532 = vst.msk [vmem:[#allocation2 + $0x68] sm:$0xff] %vm504_vm0, %v1456_v9  ;;  %v543_v18 = vmul.f32 %v1400_v40, %v1456_v9  ;;  %v561_v19 = vmul.f32 %v1392_v37, %v680_v10  ;;  %v619_v22 = vadd.f32 %v611_v12, %v593_v7  ;;  %v691_v25 = vmul.f32 %v1453_v8, %v680_v10 }
  0xba   : > { %v627_v16 = vld [vmem:[#allocation2 + $0x37] sm:$0xff]  ;;  %v587_v28 = vmul.f32 %v1409_v44, %v707_v13  ;;  %v717_v55 = vmul.f32 %v1463_v14, %v707_v13  ;;  %v638_v0 = vmul.f32 %v1427_v53, %v680_v10 }
  0xbb   : > { %v653_v17 = vld [vmem:[#allocation2 + $0x39] sm:$0xff]  ;;  %v637_v23 = vmul.f32 %v1427_v53, %v627_v16  ;;  %v690_v24 = vmul.f32 %v1453_v8, %v627_v16  ;;  %v569_v27 = vadd.f32 %v561_v19, %v543_v18  ;;  %v560_v29 = vmul.f32 %v1392_v37, %v627_v16  ;;  %v733_v32 = vld [vmem:[#allocation2 + $0x51] sm:$0xff] }
  0xbc   : > { %v706_v20 = vld [vmem:[#allocation2 + $0x38] sm:$0xff]  ;;  %v663_v31 = vmul.f32 %v1447_v1, %v653_v17  ;;  %v613_v47 = vmul.f32 %v1422_v50, %v733_v32  ;;  %v742_v49 = vmul.f32 %v1478_v26, %v653_v17  ;;  %v612_v57 = vmul.f32 %v1422_v50, %v653_v17 }
  0xbd   : > { %v645_v30 = vadd.f32 %v637_v23, %v619_v22  ;;  %v698_v33 = vadd.f32 %v690_v24, %v670_v21  ;;  %v716_v34 = vmul.f32 %v1463_v14, %v706_v20  ;;  %v568_v38 = vadd.f32 %v560_v29, %v542_v15 }
  0xbe   : > { %v494_v35 = vpop.f32.mrf.mxu3  ;;  %v586_v39 = vmul.f32 %v1409_v44, %v706_v20  ;;  %v595_v46 = vadd.f32 %v587_v28, %v569_v27  ;;  %v743_v59 = vmul.f32 %v1478_v26, %v733_v32  ;;  %v664_v4 = vmul.f32 %v1447_v1, %v733_v32 }
  0xbf   : > { %v671_v41 = vadd.f32 %v663_v31, %v645_v30  ;;  %v1486_v43 = vadd.f32 %v1387_v36, %v494_v35  ;;  %v724_v45 = vadd.f32 %v716_v34, %v698_v33 }
  0xc0   : > { %v629_v48 = vld [vmem:[#allocation2 + $0x67] sm:$0xff]  ;;  %v594_v51 = vadd.f32 %v586_v39, %v568_v38  ;;  %v621_v2 = vadd.f32 %v613_v47, %v595_v46 }
  0xc1   : > { %v699_v52 = vadd.f32 %v691_v25, %v671_v41  ;;  %533 = vst.msk [vmem:[#allocation2 + $0x80] sm:$0xff] %vm504_vm0, %v1486_v43  ;;  %v750_v60 = vadd.f32 %v742_v49, %v724_v45  ;;  %v639_v62 = vmul.f32 %v1427_v53, %v629_v48  ;;  %v544_v3 = vmul.f32 %v1400_v40, %v1486_v43  ;;  %v655_v6 = vld [vmem:[#allocation2 + $0x69] sm:$0xff] }
  0xc2   : > { %v620_v63 = vadd.f32 %v612_v57, %v594_v51  ;;  %v562_v7 = vmul.f32 %v1392_v37, %v629_v48  ;;  %v578_v17 = vld [vmem:[#allocation2 + $0x68] sm:$0xff]  ;;  %v665_v19 = vmul.f32 %v1447_v1, %v655_v6  ;;  %v692_v21 = vmul.f32 %v1453_v8, %v629_v48 }
  0xc3   : > { %v725_v61 = vadd.f32 %v717_v55, %v699_v52  ;;  %v762_v11 = vadd.f32 %v1494_v56, %v750_v60  ;;  %v647_v16 = vadd.f32 %v639_v62, %v621_v2  ;;  %v588_v28 = vmul.f32 %v1409_v44, %v578_v17 }
  0xc4   : > { %v646_v12 = vadd.f32 %v638_v0, %v620_v63  ;;  %v570_v23 = vadd.f32 %v562_v7, %v544_v3  ;;  %v718_v30 = vmul.f32 %v1463_v14, %v578_v17  ;;  %v614_v46 = vmul.f32 %v1422_v50, %v655_v6 }
  0xc5   : > { %v751_v5 = vadd.f32 %v743_v59, %v725_v61  ;;  %v1521_v27 = vadd.f32 %v762_v11, %v1403_v42  ;;  %v673_v31 = vadd.f32 %v665_v19, %v647_v16  ;;  %v744_v55 = vmul.f32 %v1478_v26, %v655_v6 }
  0xc6   : > { %v496_v13 = vpop.f32.mrf.mxu3  ;;  %v672_v18 = vadd.f32 %v664_v4, %v646_v12  ;;  %v596_v42 = vadd.f32 %v588_v28, %v570_v23 }
  0xc7   : > { %v763_v15 = vadd.f32 %v1494_v56, %v751_v5  ;;  %v1509_v10 = vadd.f32 %v1387_v36, %v496_v13 }
  0xc8   : > { %v630_v20 = vld [vmem:[#allocation2 + $0x7f] sm:$0xff]  ;;  %v700_v33 = vadd.f32 %v692_v21, %v672_v18  ;;  %v622_v61 = vadd.f32 %v614_v46, %v596_v42 }
  0xc9   : > { %v1514_v22 = vadd.f32 %v763_v15, %v1436_v58  ;;  %534 = vst.msk [vmem:[#allocation2 + $0x98] sm:$0xff] %vm504_vm0, %v1509_v10  ;;  %v545_v24 = vmul.f32 %v1400_v40, %v1509_v10  ;;  %v579_v25 = vld [vmem:[#allocation2 + $0x80] sm:$0xff]  ;;  %v563_v29 = vmul.f32 %v1392_v37, %v630_v20  ;;  %v693_v32 = vmul.f32 %v1453_v8, %v630_v20 }
  0xca   : > { %v589_v35 = vmul.f32 %v1409_v44, %v579_v25  ;;  %v719_v38 = vmul.f32 %v1463_v14, %v579_v25  ;;  %v656_v39 = vld [vmem:[#allocation2 + $0x81] sm:$0xff]  ;;  %v726_v45 = vadd.f32 %v718_v30, %v700_v33  ;;  %v640_v49 = vmul.f32 %v1427_v53, %v630_v20 }
  0xcb   : > { %v786_v58 = vpack.c.bf16 %v1514_v22, %v1521_v27  ;;  %v571_v34 = vadd.f32 %v563_v29, %v545_v24  ;;  %v701_v41 = vadd.f32 %v693_v32, %v673_v31  ;;  %v745_v48 = vmul.f32 %v1478_v26, %v656_v39 }
  0xcc   : > { %v615_v59 = vmul.f32 %v1422_v50, %v656_v39  ;;  %v752_v62 = vadd.f32 %v744_v55, %v726_v45  ;;  %v648_v2 = vadd.f32 %v640_v49, %v622_v61  ;;  %v666_v3 = vmul.f32 %v1447_v1, %v656_v39  ;;  %v1187_v45 = vld [vmem:[%s1681_s8 + $0x38] sm:$0xff]  ;;  %v1186_v55 = vld [vmem:[%s1681_s8 + $0x30] sm:$0xff] }
  0xcd   : > { %1128 = vmatmul.msk.bf16.vlgmr.msra.gmra.mxu1 %vm504_vm0, %v786_v58  ;;  %v727_v52 = vadd.f32 %v719_v38, %v701_v41  ;;  %v597_v57 = vadd.f32 %v589_v35, %v571_v34  ;;  %v686_v49 = vld [vmem:[#allocation2 + $0xdf] sm:$0xff]  ;;  %935 = vmatpush.bf16.msrb.mxu0 %v1187_v45 }
  0xce   : > { %v499_v47 = vpop.f32.mrf.mxu3  ;;  %v764_v13 = vadd.f32 %v1494_v56, %v752_v62  ;;  %v674_v18 = vadd.f32 %v666_v3, %v648_v2  ;;  %1215 = vmatpush.bf16.msra.mxu2 %v1187_v45  ;;  %v697_v3 = vmul.f32 %v1453_v8, %v686_v49 }
  0xcf   : > { %v1536_v51 = vadd.f32 %v1387_v36, %v499_v47  ;;  %v753_v0 = vadd.f32 %v745_v48, %v727_v52  ;;  %v623_v4 = vadd.f32 %v615_v59, %v597_v57 }
  0xd0   : > { %v631_v60 = vld [vmem:[#allocation2 + $0x97] sm:$0xff] }
  0xd1   : > { %535 = vst.msk [vmem:[#allocation2 + $0xb0] sm:$0xff] %vm504_vm0, %v1536_v51  ;;  %v641_v63 = vmul.f32 %v1427_v53, %v631_v60  ;;  %v546_v5 = vmul.f32 %v1400_v40, %v1536_v51  ;;  %v564_v6 = vmul.f32 %v1392_v37, %v631_v60  ;;  %v765_v7 = vadd.f32 %v1494_v56, %v753_v0  ;;  %v657_v11 = vld [vmem:[#allocation2 + $0x99] sm:$0xff] }
  0xd2   : > { %v580_v12 = vld [vmem:[#allocation2 + $0x98] sm:$0xff]  ;;  %v694_v15 = vmul.f32 %v1453_v8, %v631_v60  ;;  %v667_v21 = vmul.f32 %v1447_v1, %v657_v11  ;;  %v616_v46 = vmul.f32 %v1422_v50, %v657_v11  ;;  %v746_v52 = vmul.f32 %v1478_v26, %v657_v11  ;;  %936 = vmatpush.bf16.msrb.mxu0 %v1186_v55  ;;  %v1185_v11 = vld [vmem:[%s1681_s8 + $0x28] sm:$0xff] }
  0xd3   : > { %v649_v16 = vadd.f32 %v641_v63, %v623_v4  ;;  %v1554_v20 = vadd.f32 %v765_v7, %v1456_v9  ;;  %v572_v23 = vadd.f32 %v564_v6, %v546_v5  ;;  %v590_v24 = vmul.f32 %v1409_v44, %v580_v12  ;;  %v713_v6 = vld [vmem:[#allocation2 + $0xe0] sm:$0xff]  ;;  %1216 = vmatpush.bf16.msra.mxu2 %v1186_v55 }
  0xd4   : > { %v702_v9 = vadd.f32 %v694_v15, %v674_v18  ;;  %v723_v15 = vmul.f32 %v1463_v14, %v713_v6  ;;  %v739_v18 = vld [vmem:[#allocation2 + $0xe1] sm:$0xff] }
  0xd5   : > { %v675_v31 = vadd.f32 %v667_v21, %v649_v16  ;;  %v598_v42 = vadd.f32 %v590_v24, %v572_v23  ;;  %v1184_v21 = vld [vmem:[%s1681_s8 + $0x20] sm:$0xff] }
  0xd6   : > { %v501_v17 = vpop.f32.mrf.mxu3  ;;  %937 = vmatpush.bf16.msrb.mxu0 %v1185_v11 }
  0xd7   : > { %v1551_v19 = vadd.f32 %v1387_v36, %v501_v17  ;;  %v1564_v36 = vadd.f32 %v764_v13, %v1430_v54  ;;  %v624_v57 = vadd.f32 %v616_v46, %v598_v42  ;;  %1217 = vmatpush.bf16.msra.mxu2 %v1185_v11 }
  0xd8   : > { %v632_v25 = vld [vmem:[#allocation2 + $0xaf] sm:$0xff] }
  0xd9   : > { %v581_v28 = vld [vmem:[#allocation2 + $0xb0] sm:$0xff]  ;;  %536 = vst.msk [vmem:[#allocation2 + $0xc8] sm:$0xff] %vm504_vm0, %v1551_v19  ;;  %v547_v29 = vmul.f32 %v1400_v40, %v1551_v19  ;;  %v565_v30 = vmul.f32 %v1392_v37, %v632_v25  ;;  %v695_v32 = vmul.f32 %v1453_v8, %v632_v25  ;;  %v787_v38 = vpack.c.bf16 %v1554_v20, %v1564_v36 }
  0xda   : > { %v591_v58 = vmul.f32 %v1409_v44, %v581_v28  ;;  %v721_v33 = vmul.f32 %v1463_v14, %v581_v28  ;;  %v658_v34 = vld [vmem:[#allocation2 + $0xb1] sm:$0xff]  ;;  %v720_v40 = vmul.f32 %v1463_v14, %v580_v12  ;;  %v642_v47 = vmul.f32 %v1427_v53, %v632_v25  ;;  %938 = vmatpush.bf16.msrb.mxu0 %v1184_v21 }
  0xdb   : > { %v573_v35 = vadd.f32 %v565_v30, %v547_v29  ;;  %v703_v37 = vadd.f32 %v695_v32, %v675_v31  ;;  %v747_v54 = vmul.f32 %v1478_v26, %v658_v34  ;;  %v617_v41 = vmul.f32 %v1422_v50, %v658_v34  ;;  %1218 = vmatpush.bf16.msra.mxu2 %v1184_v21 }
  0xdc   : > { %v728_v44 = vadd.f32 %v720_v40, %v702_v9  ;;  %v650_v0 = vadd.f32 %v642_v47, %v624_v57  ;;  %v668_v2 = vmul.f32 %v1447_v1, %v658_v34 }
  0xdd   : > { %v599_v39 = vadd.f32 %v591_v58, %v573_v35  ;;  %1129 = vmatmul.msk.bf16.gmra.mxu1 %vm504_vm0, %v787_v38  ;;  %v729_v48 = vadd.f32 %v721_v33, %v703_v37  ;;  %v1244_v38 = vld [vmem:[%s1680_s7] ss:$0 sm:$0xff] }
  0xde   : > { %v754_v50 = vadd.f32 %v746_v52, %v728_v44  ;;  %v676_v16 = vadd.f32 %v668_v2, %v650_v0 }
  0xdf   : > { %v755_v61 = vadd.f32 %v747_v54, %v729_v48  ;;  %v625_v62 = vadd.f32 %v617_v41, %v599_v39 }
  0xe0   : > { %v633_v59 = vld [vmem:[#allocation2 + $0xc7] sm:$0xff] }
  0xe1   : > { %v659_v60 = vld [vmem:[#allocation2 + $0xc9] sm:$0xff]  ;;  %v643_v63 = vmul.f32 %v1427_v53, %v633_v59  ;;  %v767_v7 = vadd.f32 %v1494_v56, %v755_v61  ;;  %v766_v53 = vadd.f32 %v1494_v56, %v754_v50  ;;  %v696_v13 = vmul.f32 %v1453_v8, %v633_v59 }
  0xe2   : > { %v669_v5 = vmul.f32 %v1447_v1, %v659_v60  ;;  %v712_v23 = vld [vmem:[#allocation2 + $0xc8] sm:$0xff]  ;;  %v749_v8 = vmul.f32 %v1478_v26, %v739_v18  ;;  %v748_v31 = vmul.f32 %v1478_v26, %v659_v60  ;;  %v1183_v26 = vld [vmem:[%s1681_s8 + $0x18] sm:$0xff] }
  0xe3   : > { %v651_v4 = vadd.f32 %v643_v63, %v625_v62  ;;  %v1596_v1 = vadd.f32 %v767_v7, %v1509_v10  ;;  %v1602_v24 = vadd.f32 %v766_v53, %v1486_v43  ;;  %v704_v25 = vadd.f32 %v696_v13, %v676_v16  ;;  %939 = vmatpush.bf16.msrb.mxu0 %v1183_v26  ;;  %v1245_v7 = vld [vmem:[%s1682_s9] ss:$0 sm:$0xff] }
  0xe4   : > { %v722_v10 = vmul.f32 %v1463_v14, %v712_v23  ;;  %1219 = vmatpush.bf16.msra.mxu2 %v1183_v26 }
  0xe5   : > { %v677_v12 = vadd.f32 %v669_v5, %v651_v4  ;;  %v788_v29 = vpack.c.bf16 %v1596_v1, %v1602_v24 }
  0xe6   : > { %v730_v30 = vadd.f32 %v722_v10, %v704_v25 }
  0xe7   : > { %v705_v17 = vadd.f32 %v697_v3, %v677_v12 }
  0xe8   : > { %v756_v58 = vadd.f32 %v748_v31, %v730_v30 }
  0xe9   : > { %v731_v28 = vadd.f32 %v723_v15, %v705_v17 }
  0xea   : > { %v768_v32 = vadd.f32 %v1494_v56, %v756_v58 }
  0xeb   : > { %v757_v9 = vadd.f32 %v749_v8, %v731_v28 }
  0xec   : > { %v1616_v34 = vadd.f32 %v768_v32, %v1536_v51  ;;  %v1181_v51 = vld [vmem:[%s1681_s8 + $0x8] sm:$0xff] }
  0xed   : > { %1130 = vmatmul.msk.bf16.gmra.mxu1 %vm504_vm0, %v788_v29  ;;  %v769_v43 = vadd.f32 %v1494_v56, %v757_v9  ;;  %v1182_v56 = vld [vmem:[%s1681_s8 + $0x10] sm:$0xff] }
  0xee   : > { %940 = vmatpush.bf16.msrb.mxu0 %v1182_v56  ;;  %1220 = vmatpush.bf16.msra.mxu2 %v1182_v56 }
  0xef   : > { %v1613_v33 = vadd.f32 %v769_v43, %v1551_v19  ;;  %v1180_v19 = vld [vmem:[%s1681_s8] sm:$0xff] }
  0xf1   : > { %v789_v14 = vpack.c.bf16 %v1613_v33, %v1616_v34 }
  0xf2   : > { %941 = vmatpush.bf16.msrb.mxu0 %v1181_v51  ;;  %1221 = vmatpush.bf16.msra.mxu2 %v1181_v51 }
  0xf6   : > { %942 = vmatpush.bf16.msrb.mxu0 %v1180_v19  ;;  %1222 = vmatpush.bf16.msra.mxu2 %v1180_v19 }
  0xfd   : > { %1131 = vmatmul.msk.bf16.gmra.mxu1 %vm504_vm0, %v789_v14 }
 0x14a   : > { %v839_v35 = vpop.f32.mrf.mxu1 }
 0x14b   : > { %v840_v40 = vadd.f32 %v1244_v38, %v839_v35 }
 0x14d   : > { %v859_v54 = vmax.f32 %v840_v40, 0.0 }
 0x152   : > { %v841_v42 = vpop.f32.mrf.mxu1 }
 0x153   : > { %v842_v37 = vadd.f32 %v1244_v38, %v841_v42 }
 0x155   : > { %v860_v39 = vmax.f32 %v842_v37, 0.0 }
 0x157   : > { %v883_v41 = vpack.c.bf16 %v860_v39, %v859_v54 }
 0x159   : > { %943 = vmatmul.bf16.vlgmr.msrb.gmra.mxu0 %v883_v41 }
 0x15a   : > { %v844_v44 = vpop.f32.mrf.mxu1 }
 0x15b   : > { %v845_v45 = vadd.f32 %v1244_v38, %v844_v44 }
 0x15d   : > { %v861_v48 = vmax.f32 %v845_v45, 0.0 }
 0x162   : > { %v846_v46 = vpop.f32.mrf.mxu1 }
 0x163   : > { %v847_v47 = vadd.f32 %v1244_v38, %v846_v46 }
 0x165   : > { %v862_v49 = vmax.f32 %v847_v47, 0.0 }
 0x167   : > { %v884_v52 = vpack.c.bf16 %v862_v49, %v861_v48 }
 0x169   : > { %948 = vmatmul.bf16.vlgmr.msra.gmra.mxu2 %v884_v52 }
 0x16a   : > { %v849_v55 = vpop.f32.mrf.mxu1 }
 0x16b   : > { %v850_v57 = vadd.f32 %v1244_v38, %v849_v55 }
 0x16d   : > { %v863_v61 = vmax.f32 %v850_v57, 0.0 }
 0x172   : > { %v851_v59 = vpop.f32.mrf.mxu1 }
 0x173   : > { %v852_v60 = vadd.f32 %v1244_v38, %v851_v59 }
 0x175   : > { %v864_v62 = vmax.f32 %v852_v60, 0.0 }
 0x177   : > { %v885_v63 = vpack.c.bf16 %v864_v62, %v863_v61 }
 0x179   : > { %953 = vmatmul.bf16.gmra.mxu2 %v885_v63 }
 0x17a   : > { %v854_v50 = vpop.f32.mrf.mxu1 }
 0x17b   : > { %v855_v0 = vadd.f32 %v1244_v38, %v854_v50 }
 0x17d   : > { %v865_v4 = vmax.f32 %v855_v0, 0.0 }
 0x182   : > { %v856_v2 = vpop.f32.mrf.mxu1 }
 0x183   : > { %v857_v3 = vadd.f32 %v1244_v38, %v856_v2 }
 0x185   : > { %v866_v5 = vmax.f32 %v857_v3, 0.0 }
 0x187   : > { %v886_v6 = vpack.c.bf16 %v866_v5, %v865_v4 }
 0x189   : > { %958 = vmatmul.bf16.gmra.mxu2 %v886_v6 }
 0x1d6   : > { %v944_v11 = vpop.f32.mrf.mxu0 }
 0x1d7   : > { %v964_v12 = vadd.f32 %v944_v11, %v1521_v27 }
 0x1d9   : > { %v976_v53 = vadd.f32 %v1245_v7, %v964_v12 }
 0x1db   : > { %v984_v13 = vpack.c.bf16 %v976_v53, %v976_v53 }
 0x1dd   : > { %993 = vst.msk [vmem:[%s1645_s21] sm:$0xf] %vm992_vm3, %v984_v13 }
 0x1de   : > { %v946_v15 = vpop.f32.mrf.mxu0 }
 0x1df   : > { %v965_v16 = vadd.f32 %v946_v15, %v1514_v22 }
 0x1e1   : > { %v977_v17 = vadd.f32 %v1245_v7, %v965_v16 }
 0x1e3   : > { %v985_v27 = vpack.c.bf16 %v977_v17, %v977_v17 }
 0x1e5   : > { %994 = vst.msk [vmem:[%s1645_s21 + $0x4] sm:$0xf] %vm992_vm3, %v985_v27 }
 0x1ec   : > { %v949_v18 = vpop.f32.mrf.mxu2 }
 0x1ed   : > { %v966_v21 = vadd.f32 %v949_v18, %v1564_v36 }
 0x1ef   : > { %v978_v23 = vadd.f32 %v1245_v7, %v966_v21 }
 0x1f1   : > { %v986_v25 = vpack.c.bf16 %v978_v23, %v978_v23 }
 0x1f3   : > { %995 = vst.msk [vmem:[%s1645_s21 + $0x8] sm:$0xf] %vm992_vm3, %v986_v25 }
 0x1f4   : > { %v951_v8 = vpop.f32.mrf.mxu2 }
 0x1f5   : > { %v967_v28 = vadd.f32 %v951_v8, %v1554_v20 }
 0x1f7   : > { %v979_v29 = vadd.f32 %v1245_v7, %v967_v28 }
 0x1f9   : > { %v987_v10 = vpack.c.bf16 %v979_v29, %v979_v29 }
 0x1fb   : > { %996 = vst.msk [vmem:[%s1645_s21 + $0xc] sm:$0xf] %vm992_vm3, %v987_v10 }
 0x1fc   : > { %v954_v22 = vpop.f32.mrf.mxu2 }
 0x1fd   : > { %v968_v30 = vadd.f32 %v954_v22, %v1602_v24 }
 0x1ff   : > { %v980_v9 = vadd.f32 %v1245_v7, %v968_v30 }
 0x201   : > { %v988_v31 = vpack.c.bf16 %v980_v9, %v980_v9 }
 0x203   : > { %997 = vst.msk [vmem:[%s1645_s21 + $0x10] sm:$0xf] %vm992_vm3, %v988_v31 }
 0x204   : > { %v956_v36 = vpop.f32.mrf.mxu2 }
 0x205   : > { %v969_v58 = vadd.f32 %v956_v36, %v1596_v1 }
 0x207   : > { %v981_v43 = vadd.f32 %v1245_v7, %v969_v58 }
 0x209   : > { %v989_v32 = vpack.c.bf16 %v981_v43, %v981_v43 }
 0x20b   : > { %998 = vst.msk [vmem:[%s1645_s21 + $0x14] sm:$0xf] %vm992_vm3, %v989_v32 }
 0x20c   : > { %v959_v20 = vpop.f32.mrf.mxu2 }
 0x20d   : > { %v970_v14 = vadd.f32 %v959_v20, %v1616_v34 }
 0x20f   : > { %v982_v26 = vadd.f32 %v1245_v7, %v970_v14 }
 0x211   : > { %v990_v56 = vpack.c.bf16 %v982_v26, %v982_v26 }
 0x213   : > { %999 = vst.msk [vmem:[%s1645_s21 + $0x18] sm:$0xf] %vm992_vm3, %v990_v56 }
 0x214   : > { %v961_v24 = vpop.f32.mrf.mxu2 }
 0x215   : > { %v971_v51 = vadd.f32 %v961_v24, %v1613_v33 }
 0x217   : > { %v983_v19 = vadd.f32 %v1245_v7, %v971_v51 }
 0x219   : > { %v991_v35 = vpack.c.bf16 %v983_v19, %v983_v19 }
 0x21b   : > { %1000 = vst.msk [vmem:[%s1645_s21 + $0x1c] sm:$0xf] %vm992_vm3, %v991_v35 }
 0x21c PF: > { %s20_s13 = sadd.s32 1, %s1252_s13  }
 0x21d   : > { %p17_p4 = scmp.ge.s32.totalorder %s20_s13, 4  }
 0x21f   :  { %19 = sbr.rel (!%p17_p4) target bundleno = 1 (0x1), region = 98 }

// kernel: stage_block_forward.3
= control target key start
LH: loop header
LB: loop body
LE: loop exit
PB: predicated region body
PF: predicated region fallthrough
CT: control target
= control target key end

     0   :  { %s3205_s21 = smov 0   ;;  %s4804_s0 = inlined_call_operand.vmem [shape: bf16[2,16,16,32], index: 0, kind: input, shape index: {}]   ;;  %s4805_s1 = inlined_call_operand.vmem [shape: f32[1,3,3,32], index: 1, kind: input, shape index: {}]   ;;  %s4806_s2 = inlined_call_operand.vmem [shape: f32[1,1,32], index: 2, kind: input, shape index: {}]   ;;  %s4807_s3 = inlined_call_operand.vmem [shape: bf16[32,64], index: 3, kind: input, shape index: {}]   ;;  %s4808_s4 = inlined_call_operand.vmem [shape: f32[1,64], index: 4, kind: input, shape index: {}]   ;;  %s4809_s5 = inlined_call_operand.vmem [shape: bf16[64,32], index: 5, kind: input, shape index: {}]   ;;  %s4810_s6 = inlined_call_operand.vmem [shape: f32[1,32], index: 6, kind: input, shape index: {}]   ;;  %s4811_s7 = inlined_call_operand.vmem [shape: bf16[32,128], index: 7, kind: input, shape index: {}]   ;;  %s4812_s8 = inlined_call_operand.vmem [shape: f32[1,128], index: 8, kind: input, shape index: {}]   ;;  %s4813_s9 = inlined_call_operand.vmem [shape: f32[1,3,3,128], index: 9, kind: input, shape index: {}]   ;;  %s4814_s10 = inlined_call_operand.vmem [shape: f32[1,1,128], index: 10, kind: input, shape index: {}]   ;;  %s4815_s11 = inlined_call_operand.vmem [shape: bf16[2,8,16,128], index: 11, kind: output, shape index: {0}]   ;;  %s4816_s12 = inlined_call_operand.vmem [shape: f32[2,1,128], index: 12, kind: output, shape index: {1}]  }
   0x1 LB: > { %s2829_s22 = sadd.s32 4294967295, %s3137_s21   ;;  %p2833_p0 = scmp.ge.s32.totalorder %s3137_s21, 1  ;;  %s3137_s21 = sphi %s3205_s21, %s23_s21  }
   0x2   : > { %p365_p1 = scmp.lt.s32.totalorder %s3137_s21, 3 }
   0x4   : > { %p366_p2 = pnand %p2833_p0, %p365_p1 }
   0x6   : > { %369 = sbr.rel (%p366_p2) target bundleno = 805 (0x325), region = 64 }
   0xb   : > { %v2935_v0 = vld [vmem:[%s4807_s3 + $0x8] sm:$0xff]  ;;  %p410_p3 = scmp.lt.s32.totalorder %s2829_s22, 1  ;;  %vm488_vm0 = vcmask 261120   ;;  %vm491_vm1 = vcmask 254976   ;;  %v3139_v1 = vmov 0.0   ;;  %vm498_vm2 = vcmask 253952  }
   0xc   : > { %489 = vst.msk [vmem:[#allocation2 + $0x7] sm:$0xff] %vm488_vm0, %v3139_v1  ;;  %1542 = vmatpush.bf16.msra.mxu0 %v2935_v0  ;;  %v2934_v2 = vld [vmem:[%s4807_s3] sm:$0xff]  ;;  %3068 = vmatpush.bf16.msra.mxu3 %v2935_v0  ;;  %v3304_v32 = vld [vmem:[%s4805_s1 + $0x8] ss:$0 sm:$0xff]  ;;  %v3313_v35 = vld [vmem:[%s4805_s1 + $0x9] ss:$0 sm:$0xff] }
   0xd   : > { %s4874_s22 = smov (!%p410_p3, %s2829_s22), 1  ;;  %490 = vst.msk [vmem:[#allocation2 + $0xf] sm:$0xff] %vm488_vm0, %v3139_v1  ;;  %v3230_v3 = vld [vmem:[%s4805_s1 + $0x5] ss:$0 sm:$0xff]  ;;  %v3245_v4 = vld [vmem:[%s4805_s1] ss:$0 sm:$0xff] }
   0xe   : > { %492 = vst.msk [vmem:[#allocation2 + $0x17] sm:$0x3] %vm491_vm1, %v3139_v1  ;;  %s2932_s29 = sshll.u32 %s4874_s22, 7  ;;  %v3254_v7 = vld [vmem:[%s4805_s1 + $0x1] ss:$0 sm:$0xff]  ;;  %vm1705_vm3 = vcmask 523264   ;;  %s422_s30 = scalar_lea.vmem %s4816_s12, %s4874_s22 }
   0xf   : > { %499 = vst.msk [vmem:[#allocation2 + $0x27] sm:$0x1] %vm498_vm2, %v3139_v1  ;;  %s3238_s14 = scalar_lea.vmem %s4804_s0, %s2932_s29  ;;  %v3267_v11 = vld [vmem:[%s4805_s1 + $0x2] ss:$0 sm:$0xff]  ;;  %v3291_v27 = vld [vmem:[%s4805_s1 + $0x4] ss:$0 sm:$0xff] }
  0x10   : > { %500 = vst.msk [vmem:[#allocation2 + $0x47] sm:$0x1] %vm498_vm2, %v3139_v1  ;;  %1543 = vmatpush.bf16.msra.mxu0 %v2934_v2  ;;  %v2943_v5 = vld [vmem:[%s3238_s14] sm:$0xff]   ;;  %v3046_v6 = vld [vmem:[%s3238_s14 + $0x8] sm:$0xff]   ;;  %3069 = vmatpush.bf16.msra.mxu3 %v2934_v2  ;;  %s2933_s16 = sshll.u32 %s4874_s22, 6 }
  0x11   : > { %515 = vst.msk [vmem:[#allocation2 + $0x38] sm:$0x1] %vm498_vm2, %v3139_v1  ;;  %v3256_v8 = vunpack.c.l.bf16 %v2943_v5  ;;  %v3258_v9 = vunpack.c.h.bf16 %v2943_v5  ;;  %v3260_v10 = vunpack.c.l.bf16 %v3046_v6  ;;  %v3269_v12 = vunpack.c.h.bf16 %v3046_v6  ;;  %v3299_v30 = vld [vmem:[%s4805_s1 + $0x6] ss:$0 sm:$0xff]  ;;  %v3352_v51 = vld [vmem:[%s4805_s1 + $0xa] ss:$0 sm:$0xff]  ;;  %s4484_s18 = scalar_lea.vmem %s4815_s11, %s2933_s16 }
  0x12   : > { %516 = vst.msk [vmem:[#allocation2 + $0x58] sm:$0x1] %vm498_vm2, %v3139_v1  ;;  %v3383_v2 = vld [vmem:[%s4806_s2] ss:$0 sm:$0xff] }
  0x13   : > { %v598_v13 = vld [vmem:[#allocation2 + $0x7] sm:$0xff]  ;;  %494 = vst.msk [vmem:[#allocation2 + $0x227] sm:$0xff] %vm488_vm0, %v3139_v1  ;;  %v566_v14 = vmul.f32 %v3230_v3, %v3256_v8  ;;  %v567_v15 = vmul.f32 %v3230_v3, %v3258_v9 }
  0x14   : > { %531 = vst.msk [vmem:[#allocation2 + $0x28] sm:$0xff] %vm488_vm0, %v3256_v8  ;;  %v599_v16 = vld [vmem:[#allocation2 + $0xf] sm:$0xff]  ;;  %v632_v17 = vmul.f32 %v3245_v4, %v598_v13 }
  0x15   : > { %v696_v18 = vld [vmem:[#allocation2 + $0x8] sm:$0xff]  ;;  %532 = vst.msk [vmem:[#allocation2 + $0x30] sm:$0xff] %vm488_vm0, %v3258_v9  ;;  %v633_v20 = vmul.f32 %v3245_v4, %v599_v16  ;;  %v697_v21 = vld [vmem:[#allocation2 + $0x10] sm:$0xff] }
  0x16   : > { %v794_v19 = vld [vmem:[#allocation2 + $0x9] sm:$0xff]  ;;  %v730_v22 = vmul.f32 %v3254_v7, %v696_v18  ;;  %v795_v23 = vld [vmem:[#allocation2 + $0x11] sm:$0xff]  ;;  %533 = vst.msk [vmem:[#allocation2 + $0x48] sm:$0xff] %vm488_vm0, %v3260_v10  ;;  %v664_v24 = vadd.f32 %v632_v17, %v566_v14  ;;  %v731_v25 = vmul.f32 %v3254_v7, %v697_v21 }
  0x17   : > { %v828_v26 = vmul.f32 %v3267_v11, %v794_v19  ;;  %534 = vst.msk [vmem:[#allocation2 + $0x50] sm:$0xff] %vm488_vm0, %v3269_v12  ;;  %v665_v28 = vadd.f32 %v633_v20, %v567_v15  ;;  %v829_v29 = vmul.f32 %v3267_v11, %v795_v23 }
  0x18   : > { %v762_v31 = vadd.f32 %v730_v22, %v664_v24  ;;  %495 = vst.msk [vmem:[#allocation2 + $0x22f] sm:$0xff] %vm488_vm0, %v3139_v1 }
  0x19   : > { %v763_v33 = vadd.f32 %v731_v25, %v665_v28  ;;  %496 = vst.msk [vmem:[#allocation2 + $0x237] sm:$0x3] %vm491_vm1, %v3139_v1 }
  0x1a   : > { %v860_v34 = vadd.f32 %v828_v26, %v762_v31  ;;  %501 = vst.msk [vmem:[#allocation2 + $0x67] sm:$0x1] %vm498_vm2, %v3139_v1 }
  0x1b   : > { %v861_v36 = vadd.f32 %v829_v29, %v763_v33  ;;  %v3317_v37 = vld [vmem:[#allocation2 + $0x27] sm:$0xff]  ;;  %502 = vst.msk [vmem:[#allocation2 + $0x87] sm:$0x1] %vm498_vm2, %v3139_v1 }
  0x1c   : > { %v3321_v38 = vld [vmem:[#allocation2 + $0x2f] sm:$0xff]  ;;  %v926_v39 = vmul.f32 %v3291_v27, %v3317_v37  ;;  %503 = vst.msk [vmem:[#allocation2 + $0xa7] sm:$0x1] %vm498_vm2, %v3139_v1  ;;  %v634_v19 = vmul.f32 %v3245_v4, %v3317_v37 }
  0x1d   : > { %v3325_v40 = vld [vmem:[#allocation2 + $0x29] sm:$0xff]  ;;  %v3327_v41 = vld [vmem:[#allocation2 + $0x31] sm:$0xff]  ;;  %v927_v42 = vmul.f32 %v3291_v27, %v3321_v38  ;;  %504 = vst.msk [vmem:[#allocation2 + $0xc7] sm:$0x1] %vm498_vm2, %v3139_v1  ;;  %v635_v20 = vmul.f32 %v3245_v4, %v3321_v38 }
  0x1e   : > { %v1024_v43 = vmul.f32 %v3299_v30, %v3325_v40  ;;  %v1025_v44 = vmul.f32 %v3299_v30, %v3327_v41  ;;  %v3337_v45 = vld [vmem:[#allocation2 + $0x47] sm:$0xff]  ;;  %v958_v47 = vadd.f32 %v926_v39, %v860_v34  ;;  %v3343_v48 = vld [vmem:[#allocation2 + $0x4f] sm:$0xff]  ;;  %505 = vst.msk [vmem:[#allocation2 + $0xe7] sm:$0x1] %vm498_vm2, %v3139_v1  ;;  %v830_v28 = vmul.f32 %v3267_v11, %v3325_v40 }
  0x1f   : > { %v3339_v46 = vld [vmem:[#allocation2 + $0x48] sm:$0xff]  ;;  %v1124_v49 = vmul.f32 %v3304_v32, %v3337_v45  ;;  %v3347_v50 = vld [vmem:[#allocation2 + $0x50] sm:$0xff]  ;;  %v959_v52 = vadd.f32 %v927_v42, %v861_v36  ;;  %v1125_v53 = vmul.f32 %v3304_v32, %v3343_v48  ;;  %506 = vst.msk [vmem:[#allocation2 + $0x107] sm:$0x1] %vm498_vm2, %v3139_v1  ;;  %v831_v29 = vmul.f32 %v3267_v11, %v3327_v41 }
  0x20   : > { %v3358_v54 = vld [vmem:[#allocation2 + $0x49] sm:$0xff]  ;;  %v3360_v55 = vld [vmem:[#allocation2 + $0x51] sm:$0xff]  ;;  %v1056_v56 = vadd.f32 %v1024_v43, %v958_v47  ;;  %v1222_v57 = vmul.f32 %v3313_v35, %v3339_v46  ;;  %507 = vst.msk [vmem:[#allocation2 + $0x127] sm:$0x1] %vm498_vm2, %v3139_v1  ;;  %v1223_v59 = vmul.f32 %v3313_v35, %v3347_v50  ;;  %v928_v34 = vmul.f32 %v3291_v27, %v3337_v45 }
  0x21   : > { %v1057_v58 = vadd.f32 %v1025_v44, %v959_v52  ;;  %508 = vst.msk [vmem:[#allocation2 + $0x147] sm:$0x1] %vm498_vm2, %v3139_v1  ;;  %v1320_v61 = vmul.f32 %v3352_v51, %v3358_v54  ;;  %v1321_v63 = vmul.f32 %v3352_v51, %v3360_v55  ;;  %v698_v21 = vld [vmem:[#allocation2 + $0x28] sm:$0xff]  ;;  %v699_v22 = vld [vmem:[#allocation2 + $0x30] sm:$0xff]  ;;  %v929_v36 = vmul.f32 %v3291_v27, %v3343_v48 }
  0x22   : > { %v1156_v60 = vadd.f32 %v1124_v49, %v1056_v56  ;;  %509 = vst.msk [vmem:[#allocation2 + $0x167] sm:$0x1] %vm498_vm2, %v3139_v1  ;;  %v732_v25 = vmul.f32 %v3254_v7, %v698_v21  ;;  %v733_v26 = vmul.f32 %v3254_v7, %v699_v22  ;;  %v3047_v41 = vld [vmem:[%s3238_s14 + $0x10] sm:$0xff]   ;;  %v636_v49 = vmul.f32 %v3245_v4, %v3337_v45 }
  0x23   : > { %v1157_v62 = vadd.f32 %v1125_v53, %v1057_v58  ;;  %510 = vst.msk [vmem:[#allocation2 + $0x187] sm:$0x1] %vm498_vm2, %v3139_v1  ;;  %v3468_v42 = vunpack.c.l.bf16 %v3047_v41  ;;  %v3470_v43 = vunpack.c.h.bf16 %v3047_v41  ;;  %v637_v52 = vmul.f32 %v3245_v4, %v3343_v48 }
  0x24   : > { %v1254_v0 = vadd.f32 %v1222_v57, %v1156_v60  ;;  %511 = vst.msk [vmem:[#allocation2 + $0x1a7] sm:$0x1] %vm498_vm2, %v3139_v1  ;;  %v734_v53 = vmul.f32 %v3254_v7, %v3339_v46  ;;  %v735_v56 = vmul.f32 %v3254_v7, %v3347_v50  ;;  %v832_v45 = vmul.f32 %v3267_v11, %v3358_v54 }
  0x25   : > { %v1255_v5 = vadd.f32 %v1223_v59, %v1157_v62  ;;  %512 = vst.msk [vmem:[#allocation2 + $0x1c7] sm:$0x1] %vm498_vm2, %v3139_v1  ;;  %v570_v44 = vmul.f32 %v3230_v3, %v3468_v42  ;;  %v571_v47 = vmul.f32 %v3230_v3, %v3470_v43  ;;  %v833_v48 = vmul.f32 %v3267_v11, %v3360_v55 }
  0x26   : > { %v1352_v6 = vadd.f32 %v1320_v61, %v1254_v0  ;;  %513 = vst.msk [vmem:[#allocation2 + $0x1e7] sm:$0x1] %vm498_vm2, %v3139_v1  ;;  %v3048_v61 = vld [vmem:[%s3238_s14 + $0x18] sm:$0xff]  }
  0x27   : > { %v1353_v13 = vadd.f32 %v1321_v63, %v1255_v5  ;;  %514 = vst.msk [vmem:[#allocation2 + $0x207] sm:$0x1] %vm498_vm2, %v3139_v1  ;;  %v668_v57 = vadd.f32 %v636_v49, %v570_v44  ;;  %v669_v58 = vadd.f32 %v637_v52, %v571_v47  ;;  %v3506_v62 = vunpack.c.l.bf16 %v3048_v61  ;;  %v3049_v63 = vld [vmem:[%s3238_s14 + $0x20] sm:$0xff]  }
  0x28   : > { %v1388_v14 = vadd.f32 %v3383_v2, %v1352_v6  ;;  %517 = vst.msk [vmem:[#allocation2 + $0x78] sm:$0x1] %vm498_vm2, %v3139_v1  ;;  %v3510_v0 = vunpack.c.h.bf16 %v3048_v61  ;;  %v3514_v5 = vunpack.c.l.bf16 %v3049_v63  ;;  %v3518_v6 = vunpack.c.h.bf16 %v3049_v63 }
  0x29   : > { %v1389_v15 = vadd.f32 %v3383_v2, %v1353_v13  ;;  %518 = vst.msk [vmem:[#allocation2 + $0x98] sm:$0x1] %vm498_vm2, %v3139_v1  ;;  %v766_v59 = vadd.f32 %v734_v53, %v668_v57  ;;  %v767_v46 = vadd.f32 %v735_v56, %v669_v58  ;;  %v1026_v13 = vmul.f32 %v3299_v30, %v3358_v54 }
  0x2a   : > { %v3400_v16 = vadd.f32 %v3256_v8, %v1388_v14  ;;  %519 = vst.msk [vmem:[#allocation2 + $0xb8] sm:$0x1] %vm498_vm2, %v3139_v1  ;;  %v568_v8 = vmul.f32 %v3230_v3, %v3260_v10  ;;  %v572_v54 = vmul.f32 %v3230_v3, %v3506_v62 }
  0x2b   : > { %v3405_v17 = vadd.f32 %v3258_v9, %v1389_v15  ;;  %520 = vst.msk [vmem:[#allocation2 + $0xd8] sm:$0x1] %vm498_vm2, %v3139_v1  ;;  %v569_v9 = vmul.f32 %v3230_v3, %v3269_v12  ;;  %v864_v50 = vadd.f32 %v832_v45, %v766_v59  ;;  %v865_v60 = vadd.f32 %v833_v48, %v767_v46 }
  0x2c   : > { %521 = vst.msk [vmem:[#allocation2 + $0xf8] sm:$0x1] %vm498_vm2, %v3139_v1  ;;  %v666_v23 = vadd.f32 %v634_v19, %v568_v8 }
  0x2d   : > { %v1456_v18 = vpack.c.bf16 %v3405_v17, %v3400_v16  ;;  %522 = vst.msk [vmem:[#allocation2 + $0x118] sm:$0x1] %vm498_vm2, %v3139_v1  ;;  %v667_v24 = vadd.f32 %v635_v20, %v569_v9  ;;  %v573_v9 = vmul.f32 %v3230_v3, %v3510_v0 }
  0x2e   : > { %523 = vst.msk [vmem:[#allocation2 + $0x138] sm:$0x1] %vm498_vm2, %v3139_v1  ;;  %v764_v31 = vadd.f32 %v732_v25, %v666_v23 }
  0x2f   : > { %2852 = vmatmul.msk.bf16.vlgmr.msra.gmra.mxu0 %vm488_vm0, %v1456_v18  ;;  %524 = vst.msk [vmem:[#allocation2 + $0x158] sm:$0x1] %vm498_vm2, %v3139_v1  ;;  %v765_v33 = vadd.f32 %v733_v26, %v667_v24 }
  0x30   : > { %525 = vst.msk [vmem:[#allocation2 + $0x178] sm:$0x1] %vm498_vm2, %v3139_v1  ;;  %v862_v37 = vadd.f32 %v830_v28, %v764_v31 }
  0x31   : > { %526 = vst.msk [vmem:[#allocation2 + $0x198] sm:$0x1] %vm498_vm2, %v3139_v1  ;;  %v863_v38 = vadd.f32 %v831_v29, %v765_v33 }
  0x32   : > { %527 = vst.msk [vmem:[#allocation2 + $0x1b8] sm:$0x1] %vm498_vm2, %v3139_v1  ;;  %v960_v39 = vadd.f32 %v928_v34, %v862_v37 }
  0x33   : > { %528 = vst.msk [vmem:[#allocation2 + $0x1d8] sm:$0x1] %vm498_vm2, %v3139_v1  ;;  %v961_v40 = vadd.f32 %v929_v36, %v863_v38 }
  0x34   : > { %529 = vst.msk [vmem:[#allocation2 + $0x1f8] sm:$0x1] %vm498_vm2, %v3139_v1  ;;  %v1058_v14 = vadd.f32 %v1026_v13, %v960_v39 }
  0x35   : > { %530 = vst.msk [vmem:[#allocation2 + $0x218] sm:$0x1] %vm498_vm2, %v3139_v1 }
  0x36   : > { %2116 = vst [vmem:[#allocation3 + $0x7] sm:$0xff] %v3139_v1 }
  0x37   : > { %2117 = vst [vmem:[#allocation3 + $0xf] sm:$0xff] %v3139_v1 }
  0x38   : > { %2118 = vst [vmem:[#allocation3 + $0x17] sm:$0x3] %v3139_v1 }
  0x39   : > { %2124 = vst [vmem:[#allocation3 + $0x27] sm:$0x1] %v3139_v1 }
  0x3a   : > { %2125 = vst [vmem:[#allocation3 + $0x47] sm:$0x1] %v3139_v1 }
  0x3b   : > { %2126 = vst [vmem:[#allocation3 + $0x67] sm:$0x1] %v3139_v1 }
  0x3c   : > { %2127 = vst [vmem:[#allocation3 + $0x87] sm:$0x1] %v3139_v1 }
  0x3d   : > { %2128 = vst [vmem:[#allocation3 + $0xa7] sm:$0x1] %v3139_v1 }
  0x3e   : > { %2129 = vst [vmem:[#allocation3 + $0xc7] sm:$0x1] %v3139_v1 }
  0x3f   : > { %2130 = vst [vmem:[#allocation3 + $0xe7] sm:$0x1] %v3139_v1 }
  0x40   : > { %2131 = vst [vmem:[#allocation3 + $0x107] sm:$0x1] %v3139_v1 }
  0x41   : > { %2132 = vst [vmem:[#allocation3 + $0x127] sm:$0x1] %v3139_v1 }
  0x42   : > { %2133 = vst [vmem:[#allocation3 + $0x147] sm:$0x1] %v3139_v1 }
  0x43   : > { %2134 = vst [vmem:[#allocation3 + $0x167] sm:$0x1] %v3139_v1 }
  0x44   : > { %2135 = vst [vmem:[#allocation3 + $0x187] sm:$0x1] %v3139_v1 }
  0x45   : > { %2136 = vst [vmem:[#allocation3 + $0x1a7] sm:$0x1] %v3139_v1 }
  0x46   : > { %2137 = vst [vmem:[#allocation3 + $0x1c7] sm:$0x1] %v3139_v1 }
  0x47   : > { %2138 = vst [vmem:[#allocation3 + $0x1e7] sm:$0x1] %v3139_v1 }
  0x48   : > { %2139 = vst [vmem:[#allocation3 + $0x207] sm:$0x1] %v3139_v1 }
  0x49   : > { %2140 = vst [vmem:[#allocation3 + $0x38] sm:$0x1] %v3139_v1 }
  0x4a   : > { %2141 = vst [vmem:[#allocation3 + $0x58] sm:$0x1] %v3139_v1 }
  0x4b   : > { %2142 = vst [vmem:[#allocation3 + $0x78] sm:$0x1] %v3139_v1 }
  0x4c   : > { %2143 = vst [vmem:[#allocation3 + $0x98] sm:$0x1] %v3139_v1 }
  0x4d   : > { %2144 = vst [vmem:[#allocation3 + $0xb8] sm:$0x1] %v3139_v1 }
  0x4e   : > { %2145 = vst [vmem:[#allocation3 + $0xd8] sm:$0x1] %v3139_v1 }
  0x4f   : > { %2146 = vst [vmem:[#allocation3 + $0xf8] sm:$0x1] %v3139_v1 }
  0x50   : > { %2147 = vst [vmem:[#allocation3 + $0x118] sm:$0x1] %v3139_v1 }
  0x51   : > { %2148 = vst [vmem:[#allocation3 + $0x138] sm:$0x1] %v3139_v1 }
  0x52   : > { %2149 = vst [vmem:[#allocation3 + $0x158] sm:$0x1] %v3139_v1 }
  0x53   : > { %2150 = vst [vmem:[#allocation3 + $0x178] sm:$0x1] %v3139_v1 }
  0x54   : > { %2151 = vst [vmem:[#allocation3 + $0x198] sm:$0x1] %v3139_v1 }
  0x55   : > { %2152 = vst [vmem:[#allocation3 + $0x1b8] sm:$0x1] %v3139_v1 }
  0x56   : > { %2153 = vst [vmem:[#allocation3 + $0x1d8] sm:$0x1] %v3139_v1 }
  0x57   : > { %2154 = vst [vmem:[#allocation3 + $0x1f8] sm:$0x1] %v3139_v1 }
  0x58   : > { %2155 = vst [vmem:[#allocation3 + $0x218] sm:$0x1] %v3139_v1  ;;  %v1027_v1 = vmul.f32 %v3299_v30, %v3360_v55 }
  0x59   : > { %535 = vst.msk [vmem:[#allocation2 + $0x68] sm:$0xff] %vm488_vm0, %v3468_v42 }
  0x5a   : > { %536 = vst.msk [vmem:[#allocation2 + $0x70] sm:$0xff] %vm488_vm0, %v3470_v43  ;;  %v1059_v15 = vadd.f32 %v1027_v1, %v961_v40 }
  0x5b   : > { %537 = vst.msk [vmem:[#allocation2 + $0x88] sm:$0xff] %vm488_vm0, %v3506_v62 }
  0x5c   : > { %538 = vst.msk [vmem:[#allocation2 + $0x90] sm:$0xff] %vm488_vm0, %v3510_v0 }
  0x5d   : > { %539 = vst.msk [vmem:[#allocation2 + $0xa8] sm:$0xff] %vm488_vm0, %v3514_v5 }
  0x5e   : > { %540 = vst.msk [vmem:[#allocation2 + $0xb0] sm:$0xff] %vm488_vm0, %v3518_v6 }
  0x60   : > { %v1091_v18 = vld [vmem:[#allocation2 + $0x67] sm:$0xff] }
  0x61   : > { %v1190_v8 = vld [vmem:[#allocation2 + $0x68] sm:$0xff]  ;;  %v1126_v19 = vmul.f32 %v3304_v32, %v1091_v18  ;;  %v1191_v20 = vld [vmem:[#allocation2 + $0x70] sm:$0xff]  ;;  %v930_v23 = vmul.f32 %v3291_v27, %v1091_v18  ;;  %v638_v24 = vmul.f32 %v3245_v4, %v1091_v18 }
  0x62   : > { %v1092_v55 = vld [vmem:[#allocation2 + $0x6f] sm:$0xff]  ;;  %v1224_v21 = vmul.f32 %v3313_v35, %v1190_v8  ;;  %v1225_v26 = vmul.f32 %v3313_v35, %v1191_v20  ;;  %v3544_v33 = vld [vmem:[#allocation2 + $0x87] sm:$0xff] }
  0x63   : > { %v1288_v22 = vld [vmem:[#allocation2 + $0x69] sm:$0xff]  ;;  %v1127_v25 = vmul.f32 %v3304_v32, %v1092_v55  ;;  %v1289_v28 = vld [vmem:[#allocation2 + $0x71] sm:$0xff]  ;;  %v931_v31 = vmul.f32 %v3291_v27, %v1092_v55  ;;  %v1158_v36 = vadd.f32 %v1126_v19, %v1058_v14  ;;  %v962_v38 = vadd.f32 %v930_v23, %v864_v50 }
  0x64   : > { %v1322_v29 = vmul.f32 %v3352_v51, %v1288_v22  ;;  %v3546_v34 = vld [vmem:[#allocation2 + $0x88] sm:$0xff]  ;;  %v1323_v37 = vmul.f32 %v3352_v51, %v1289_v28  ;;  %v1028_v39 = vmul.f32 %v3299_v30, %v1288_v22  ;;  %v3550_v41 = vld [vmem:[#allocation2 + $0x90] sm:$0xff]  ;;  %v1029_v52 = vmul.f32 %v3299_v30, %v1289_v28 }
  0x65   : > { %v1094_v40 = vld [vmem:[#allocation2 + $0x8f] sm:$0xff]  ;;  %v1159_v47 = vadd.f32 %v1127_v25, %v1059_v15  ;;  %v963_v49 = vadd.f32 %v931_v31, %v865_v60  ;;  %v1128_v53 = vmul.f32 %v3304_v32, %v3544_v33  ;;  %v1256_v57 = vadd.f32 %v1224_v21, %v1158_v36 }
  0x66   : > { %v3552_v44 = vld [vmem:[#allocation2 + $0x89] sm:$0xff]  ;;  %v3557_v56 = vld [vmem:[#allocation2 + $0x91] sm:$0xff]  ;;  %v1060_v58 = vadd.f32 %v1028_v39, %v962_v38  ;;  %v1129_v45 = vmul.f32 %v3304_v32, %v1094_v40  ;;  %v1226_v48 = vmul.f32 %v3313_v35, %v3546_v34  ;;  %v1227_v50 = vmul.f32 %v3313_v35, %v3550_v41 }
  0x67   : > { %v1257_v59 = vadd.f32 %v1225_v26, %v1159_v47  ;;  %v1061_v46 = vadd.f32 %v1029_v52, %v963_v49  ;;  %v1324_v60 = vmul.f32 %v3352_v51, %v3552_v44  ;;  %v1354_v61 = vadd.f32 %v1322_v29, %v1256_v57  ;;  %v1095_v52 = vld [vmem:[#allocation2 + $0xa7] sm:$0xff] }
  0x68   : > { %v1160_v63 = vadd.f32 %v1128_v53, %v1060_v58  ;;  %v1325_v13 = vmul.f32 %v3352_v51, %v3557_v56  ;;  %v639_v1 = vmul.f32 %v3245_v4, %v1092_v55  ;;  %v670_v18 = vadd.f32 %v638_v24, %v572_v54  ;;  %v1096_v58 = vld [vmem:[#allocation2 + $0xaf] sm:$0xff] }
  0x69   : > { %v1355_v14 = vadd.f32 %v1323_v37, %v1257_v59  ;;  %v1161_v15 = vadd.f32 %v1129_v45, %v1061_v46  ;;  %v736_v19 = vmul.f32 %v3254_v7, %v1190_v8  ;;  %v1390_v21 = vadd.f32 %v3383_v2, %v1354_v61 }
  0x6a   : > { %v1258_v23 = vadd.f32 %v1226_v48, %v1160_v63  ;;  %v671_v25 = vadd.f32 %v639_v1, %v573_v9  ;;  %v737_v26 = vmul.f32 %v3254_v7, %v1191_v20  ;;  %v834_v38 = vmul.f32 %v3267_v11, %v1288_v22 }
  0x6b   : > { %v1391_v29 = vadd.f32 %v3383_v2, %v1355_v14  ;;  %v1259_v31 = vadd.f32 %v1227_v50, %v1161_v15  ;;  %v768_v36 = vadd.f32 %v736_v19, %v670_v18  ;;  %v3575_v55 = vadd.f32 %v3260_v10, %v1390_v21  ;;  %v3050_v10 = vld [vmem:[%s3238_s14 + $0x28] sm:$0xff]   ;;  %v1195_v19 = vld [vmem:[#allocation2 + $0xb0] sm:$0xff] }
  0x6c   : > { %v769_v37 = vadd.f32 %v737_v26, %v671_v25  ;;  %v835_v54 = vmul.f32 %v3267_v11, %v1289_v28  ;;  %v932_v9 = vmul.f32 %v3291_v27, %v3544_v33  ;;  %v1356_v20 = vadd.f32 %v1324_v60, %v1258_v23  ;;  %v1194_v18 = vld [vmem:[#allocation2 + $0xa8] sm:$0xff] }
  0x6d   : > { %v3579_v8 = vadd.f32 %v3269_v12, %v1391_v29  ;;  %v866_v24 = vadd.f32 %v834_v38, %v768_v36  ;;  %v933_v47 = vmul.f32 %v3291_v27, %v1094_v40  ;;  %v1357_v49 = vadd.f32 %v1325_v13, %v1259_v31 }
  0x6e   : > { %v867_v39 = vadd.f32 %v835_v54, %v769_v37  ;;  %v1030_v12 = vmul.f32 %v3299_v30, %v3552_v44  ;;  %v1031_v57 = vmul.f32 %v3299_v30, %v3557_v56  ;;  %v1392_v45 = vadd.f32 %v3383_v2, %v1356_v20  ;;  %v3051_v37 = vld [vmem:[%s3238_s14 + $0x30] sm:$0xff]  }
  0x6f   : > { %v1457_v22 = vpack.c.bf16 %v3579_v8, %v3575_v55  ;;  %v964_v28 = vadd.f32 %v932_v9, %v866_v24  ;;  %v3593_v48 = vunpack.c.l.bf16 %v3050_v10  ;;  %v1393_v59 = vadd.f32 %v3383_v2, %v1357_v49  ;;  %v1292_v9 = vld [vmem:[#allocation2 + $0xa9] sm:$0xff]  ;;  %v1293_v20 = vld [vmem:[#allocation2 + $0xb1] sm:$0xff] }
  0x70   : > { %v965_v53 = vadd.f32 %v933_v47, %v867_v39  ;;  %v1130_v46 = vmul.f32 %v3304_v32, %v1095_v52  ;;  %v3597_v50 = vunpack.c.h.bf16 %v3050_v10  ;;  %v574_v60 = vmul.f32 %v3230_v3, %v3514_v5 }
  0x71   : > { %2853 = vmatmul.msk.bf16.gmra.mxu0 %vm488_vm0, %v1457_v22  ;;  %v1131_v61 = vmul.f32 %v3304_v32, %v1096_v58  ;;  %541 = vst.msk [vmem:[#allocation2 + $0xc8] sm:$0xff] %vm488_vm0, %v3593_v48  ;;  %v575_v63 = vmul.f32 %v3230_v3, %v3518_v6  ;;  %v640_v13 = vmul.f32 %v3245_v4, %v3544_v33 }
  0x72   : > { %v641_v1 = vmul.f32 %v3245_v4, %v1094_v40  ;;  %v1062_v14 = vadd.f32 %v1030_v12, %v964_v28  ;;  %v1063_v15 = vadd.f32 %v1031_v57, %v965_v53  ;;  %542 = vst.msk [vmem:[#allocation2 + $0xd0] sm:$0xff] %vm488_vm0, %v3597_v50  ;;  %v738_v21 = vmul.f32 %v3254_v7, %v3546_v34 }
  0x73   : > { %v739_v23 = vmul.f32 %v3254_v7, %v3550_v41  ;;  %v672_v25 = vadd.f32 %v640_v13, %v574_v60  ;;  %v836_v33 = vmul.f32 %v3267_v11, %v3552_v44  ;;  %v3618_v40 = vadd.f32 %v3468_v42, %v1392_v45 }
  0x74   : > { %v673_v26 = vadd.f32 %v641_v1, %v575_v63  ;;  %v3621_v29 = vadd.f32 %v3470_v43, %v1393_v59  ;;  %v837_v31 = vmul.f32 %v3267_v11, %v3557_v56  ;;  %v1228_v36 = vmul.f32 %v3313_v35, %v1194_v18 }
  0x75   : > { %v1229_v34 = vmul.f32 %v3313_v35, %v1195_v19  ;;  %v770_v38 = vadd.f32 %v738_v21, %v672_v25  ;;  %v1162_v54 = vadd.f32 %v1130_v46, %v1062_v14  ;;  %v1163_v24 = vadd.f32 %v1131_v61, %v1063_v15 }
  0x76   : > { %v771_v41 = vadd.f32 %v739_v23, %v673_v26  ;;  %v3628_v44 = vunpack.c.l.bf16 %v3051_v37  ;;  %v3630_v42 = vunpack.c.h.bf16 %v3051_v37  ;;  %v934_v39 = vmul.f32 %v3291_v27, %v1095_v52 }
  0x77   : > { %v868_v43 = vadd.f32 %v836_v33, %v770_v38  ;;  %v935_v56 = vmul.f32 %v3291_v27, %v1096_v58  ;;  %v1326_v22 = vmul.f32 %v3352_v51, %v1292_v9  ;;  %v1458_v49 = vpack.c.bf16 %v3621_v29, %v3618_v40 }
  0x78   : > { %v869_v47 = vadd.f32 %v837_v31, %v771_v41  ;;  %543 = vst.msk [vmem:[#allocation2 + $0xe8] sm:$0xff] %vm488_vm0, %v3628_v44  ;;  %v1260_v10 = vadd.f32 %v1228_v36, %v1162_v54  ;;  %v1261_v28 = vadd.f32 %v1229_v34, %v1163_v24  ;;  %v1327_v53 = vmul.f32 %v3352_v51, %v1293_v20  ;;  %v1097_v60 = vld [vmem:[#allocation2 + $0xc7] sm:$0xff] }
  0x79   : > { %544 = vst.msk [vmem:[#allocation2 + $0xf0] sm:$0xff] %vm488_vm0, %v3630_v42  ;;  %v966_v12 = vadd.f32 %v934_v39, %v868_v43  ;;  %v1032_v57 = vmul.f32 %v3299_v30, %v1292_v9  ;;  %v1033_v45 = vmul.f32 %v3299_v30, %v1293_v20  ;;  %v576_v59 = vmul.f32 %v3230_v3, %v3593_v48  ;;  %v1098_v61 = vld [vmem:[#allocation2 + $0xcf] sm:$0xff] }
  0x7a   : > { %v967_v46 = vadd.f32 %v935_v56, %v869_v47  ;;  %v577_v63 = vmul.f32 %v3230_v3, %v3597_v50  ;;  %v642_v13 = vmul.f32 %v3245_v4, %v1095_v52  ;;  %v643_v1 = vmul.f32 %v3245_v4, %v1096_v58  ;;  %v1196_v31 = vld [vmem:[#allocation2 + $0xc8] sm:$0xff]  ;;  %v1197_v36 = vld [vmem:[#allocation2 + $0xd0] sm:$0xff] }
  0x7b   : > { %v1358_v14 = vadd.f32 %v1326_v22, %v1260_v10  ;;  %v1359_v15 = vadd.f32 %v1327_v53, %v1261_v28  ;;  %v1064_v21 = vadd.f32 %v1032_v57, %v966_v12  ;;  %v1132_v23 = vmul.f32 %v3304_v32, %v1097_v60  ;;  %v1294_v39 = vld [vmem:[#allocation2 + $0xc9] sm:$0xff]  ;;  %v1295_v47 = vld [vmem:[#allocation2 + $0xd1] sm:$0xff] }
  0x7c   : > { %v1133_v25 = vmul.f32 %v3304_v32, %v1098_v61  ;;  %v740_v26 = vmul.f32 %v3254_v7, %v1194_v18  ;;  %v1065_v33 = vadd.f32 %v1033_v45, %v967_v46  ;;  %v674_v34 = vadd.f32 %v642_v13, %v576_v59  ;;  %v3052_v10 = vld [vmem:[%s3238_s14 + $0x38] sm:$0xff]  }
  0x7d   : > { %v675_v38 = vadd.f32 %v643_v1, %v577_v63  ;;  %v741_v52 = vmul.f32 %v3254_v7, %v1195_v19  ;;  %v1394_v58 = vadd.f32 %v3383_v2, %v1358_v14  ;;  %v1395_v41 = vadd.f32 %v3383_v2, %v1359_v15 }
  0x7e   : > { %v1164_v37 = vadd.f32 %v1132_v23, %v1064_v21  ;;  %v1230_v54 = vmul.f32 %v3313_v35, %v1196_v31  ;;  %v1231_v24 = vmul.f32 %v3313_v35, %v1197_v36  ;;  %v838_v43 = vmul.f32 %v3267_v11, %v1292_v9 }
  0x7f   : > { %v1165_v18 = vadd.f32 %v1133_v25, %v1065_v33  ;;  %v772_v56 = vadd.f32 %v740_v26, %v674_v34  ;;  %v773_v22 = vadd.f32 %v741_v52, %v675_v38  ;;  %v3663_v19 = vadd.f32 %v3506_v62, %v1394_v58  ;;  %v1099_v25 = vld [vmem:[#allocation2 + $0xe7] sm:$0xff] }
  0x80   : > { %v3666_v28 = vadd.f32 %v3510_v0, %v1395_v41  ;;  %v3668_v53 = vunpack.c.l.bf16 %v3052_v10  ;;  %v3670_v12 = vunpack.c.h.bf16 %v3052_v10  ;;  %v1328_v9 = vmul.f32 %v3352_v51, %v1294_v39  ;;  %v1100_v26 = vld [vmem:[#allocation2 + $0xef] sm:$0xff] }
  0x81   : > { %2854 = vmatmul.msk.bf16.gmra.mxu0 %vm488_vm0, %v1458_v49  ;;  %v839_v49 = vmul.f32 %v3267_v11, %v1293_v20  ;;  %v1329_v57 = vmul.f32 %v3352_v51, %v1295_v47  ;;  %v936_v45 = vmul.f32 %v3291_v27, %v1097_v60  ;;  %v937_v59 = vmul.f32 %v3291_v27, %v1098_v61 }
  0x82   : > { %v1262_v20 = vadd.f32 %v1230_v54, %v1164_v37  ;;  %v1263_v46 = vadd.f32 %v1231_v24, %v1165_v18  ;;  %v870_v63 = vadd.f32 %v838_v43, %v772_v56  ;;  %545 = vst.msk [vmem:[#allocation2 + $0x108] sm:$0xff] %vm488_vm0, %v3668_v53  ;;  %v1459_v0 = vpack.c.bf16 %v3666_v28, %v3663_v19  ;;  %v1198_v18 = vld [vmem:[#allocation2 + $0xe8] sm:$0xff]  ;;  %v1199_v56 = vld [vmem:[#allocation2 + $0xf0] sm:$0xff] }
  0x83   : > { %v871_v62 = vadd.f32 %v839_v49, %v773_v22  ;;  %546 = vst.msk [vmem:[#allocation2 + $0x110] sm:$0xff] %vm488_vm0, %v3670_v12  ;;  %v1034_v13 = vmul.f32 %v3299_v30, %v1294_v39  ;;  %v1035_v1 = vmul.f32 %v3299_v30, %v1295_v47  ;;  %v578_v33 = vmul.f32 %v3230_v3, %v3628_v44 }
  0x84   : > { %v1360_v14 = vadd.f32 %v1328_v9, %v1262_v20  ;;  %v1361_v15 = vadd.f32 %v1329_v57, %v1263_v46  ;;  %v968_v21 = vadd.f32 %v936_v45, %v870_v63  ;;  %v579_v34 = vmul.f32 %v3230_v3, %v3630_v42  ;;  %v1296_v46 = vld [vmem:[#allocation2 + $0xe9] sm:$0xff]  ;;  %v1297_v63 = vld [vmem:[#allocation2 + $0xf1] sm:$0xff] }
  0x85   : > { %v969_v23 = vadd.f32 %v937_v59, %v871_v62  ;;  %v644_v38 = vmul.f32 %v3245_v4, %v1097_v60  ;;  %v645_v52 = vmul.f32 %v3245_v4, %v1098_v61  ;;  %v1134_v58 = vmul.f32 %v3304_v32, %v1099_v25 }
  0x86   : > { %v1135_v41 = vmul.f32 %v3304_v32, %v1100_v26  ;;  %v1396_v37 = vadd.f32 %v3383_v2, %v1360_v14  ;;  %v1397_v54 = vadd.f32 %v3383_v2, %v1361_v15  ;;  %v1066_v24 = vadd.f32 %v1034_v13, %v968_v21  ;;  %v3053_v13 = vld [vmem:[%s3238_s14 + $0x40] sm:$0xff]  }
  0x87   : > { %v1067_v43 = vadd.f32 %v1035_v1, %v969_v23  ;;  %v676_v22 = vadd.f32 %v644_v38, %v578_v33  ;;  %v677_v49 = vadd.f32 %v645_v52, %v579_v34  ;;  %v742_v60 = vmul.f32 %v3254_v7, %v1196_v31 }
  0x88   : > { %v743_v61 = vmul.f32 %v3254_v7, %v1197_v36  ;;  %v1232_v10 = vmul.f32 %v3313_v35, %v1198_v18  ;;  %v1233_v9 = vmul.f32 %v3313_v35, %v1199_v56  ;;  %v3700_v57 = vadd.f32 %v3514_v5, %v1396_v37 }
  0x89   : > { %v3703_v45 = vadd.f32 %v3518_v6, %v1397_v54  ;;  %v1166_v59 = vadd.f32 %v1134_v58, %v1066_v24  ;;  %v1167_v20 = vadd.f32 %v1135_v41, %v1067_v43  ;;  %v774_v62 = vadd.f32 %v742_v60, %v676_v22  ;;  %v1101_v60 = vld [vmem:[#allocation2 + $0x107] sm:$0xff] }
  0x8a   : > { %4834 = vst [vmem:[#allocation4_spill] sm:$0xff] %v3700_v57  ;;  %v840_v31 = vmul.f32 %v3267_v11, %v1294_v39  ;;  %v841_v36 = vmul.f32 %v3267_v11, %v1295_v47  ;;  %v3708_v1 = vunpack.c.l.bf16 %v3053_v13  ;;  %v3710_v14 = vunpack.c.h.bf16 %v3053_v13  ;;  %v1200_v13 = vld [vmem:[#allocation2 + $0x108] sm:$0xff] }
  0x8b   : > { %4835 = vst [vmem:[#allocation5_spill] sm:$0xff] %v3703_v45  ;;  %v1330_v5 = vmul.f32 %v3352_v51, %v1296_v46  ;;  %v1460_v6 = vpack.c.bf16 %v3703_v45, %v3700_v57  ;;  %v1264_v15 = vadd.f32 %v1232_v10, %v1166_v59  ;;  %v1265_v21 = vadd.f32 %v1233_v9, %v1167_v20 }
  0x8c   : > { %v1331_v23 = vmul.f32 %v3352_v51, %v1297_v63  ;;  %547 = vst.msk [vmem:[#allocation2 + $0x128] sm:$0xff] %vm488_vm0, %v3708_v1  ;;  %v872_v39 = vadd.f32 %v840_v31, %v774_v62  ;;  %v938_v47 = vmul.f32 %v3291_v27, %v1099_v25  ;;  %v939_v34 = vmul.f32 %v3291_v27, %v1100_v26 }
  0x8d   : > { %548 = vst.msk [vmem:[#allocation2 + $0x130] sm:$0xff] %vm488_vm0, %v3710_v14  ;;  %v580_v38 = vmul.f32 %v3230_v3, %v3668_v53  ;;  %v581_v52 = vmul.f32 %v3230_v3, %v3670_v12  ;;  %v646_v58 = vmul.f32 %v3245_v4, %v1099_v25  ;;  %v647_v41 = vmul.f32 %v3245_v4, %v1100_v26 }
  0x8e   : > { %v1362_v37 = vadd.f32 %v1330_v5, %v1264_v15  ;;  %v1363_v54 = vadd.f32 %v1331_v23, %v1265_v21  ;;  %v970_v24 = vadd.f32 %v938_v47, %v872_v39  ;;  %v1036_v22 = vmul.f32 %v3299_v30, %v1296_v46  ;;  %v1201_v5 = vld [vmem:[#allocation2 + $0x110] sm:$0xff] }
  0x8f   : > { %v678_v10 = vadd.f32 %v646_v58, %v580_v38  ;;  %v679_v9 = vadd.f32 %v647_v41, %v581_v52  ;;  %v744_v59 = vmul.f32 %v3254_v7, %v1198_v18  ;;  %v745_v25 = vmul.f32 %v3254_v7, %v1199_v56  ;;  %v3054_v58 = vld [vmem:[%s3238_s14 + $0x48] sm:$0xff]   ;;  %v1299_v41 = vld [vmem:[#allocation2 + $0x111] sm:$0xff] }
  0x90   : > { %v1398_v26 = vadd.f32 %v3383_v2, %v1362_v37  ;;  %v1399_v20 = vadd.f32 %v3383_v2, %v1363_v54  ;;  %v1068_v62 = vadd.f32 %v1036_v22, %v970_v24  ;;  %v1136_v31 = vmul.f32 %v3304_v32, %v1101_v60 }
  0x91   : > { %2855 = vmatmul.msk.bf16.gmra.mxu0 %vm488_vm0, %v1459_v0  ;;  %v775_v0 = vadd.f32 %v743_v61, %v677_v49  ;;  %v1037_v49 = vmul.f32 %v3299_v30, %v1297_v63  ;;  %v1102_v61 = vld [vmem:[#allocation2 + $0x10f] sm:$0xff]  ;;  %v777_v15 = vadd.f32 %v745_v25, %v679_v9  ;;  %v842_v21 = vmul.f32 %v3267_v11, %v1296_v46 }
  0x92   : > { %v843_v18 = vmul.f32 %v3267_v11, %v1297_v63  ;;  %v3740_v56 = vadd.f32 %v3593_v48, %v1398_v26  ;;  %v3743_v23 = vadd.f32 %v3597_v50, %v1399_v20  ;;  %v1234_v39 = vmul.f32 %v3313_v35, %v1200_v13  ;;  %v1298_v46 = vld [vmem:[#allocation2 + $0x109] sm:$0xff] }
  0x93   : > { %v873_v33 = vadd.f32 %v841_v36, %v775_v0  ;;  %v1137_v36 = vmul.f32 %v3304_v32, %v1102_v61  ;;  %v1168_v47 = vadd.f32 %v1136_v31, %v1068_v62  ;;  %v940_v38 = vmul.f32 %v3291_v27, %v1101_v60  ;;  %v1103_v25 = vld [vmem:[#allocation2 + $0x127] sm:$0xff] }
  0x94   : > { %4836 = vst [vmem:[#allocation6_spill] sm:$0xff] %v3740_v56  ;;  %v941_v52 = vmul.f32 %v3291_v27, %v1102_v61  ;;  %v875_v63 = vadd.f32 %v843_v18, %v777_v15  ;;  %v3750_v48 = vunpack.c.l.bf16 %v3054_v58  ;;  %v3752_v37 = vunpack.c.h.bf16 %v3054_v58  ;;  %v1104_v26 = vld [vmem:[#allocation2 + $0x12f] sm:$0xff] }
  0x95   : > { %v971_v43 = vadd.f32 %v939_v34, %v873_v33  ;;  %4837 = vst [vmem:[#allocation7_spill] sm:$0xff] %v3743_v23  ;;  %v1235_v33 = vmul.f32 %v3313_v35, %v1201_v5  ;;  %v1461_v50 = vpack.c.bf16 %v3743_v23, %v3740_v56  ;;  %v1266_v54 = vadd.f32 %v1234_v39, %v1168_v47  ;;  %v2939_v39 = vld [vmem:[%s4809_s5 + $0x18] sm:$0xff] }
  0x96   : > { %549 = vst.msk [vmem:[#allocation2 + $0x148] sm:$0xff] %vm488_vm0, %v3750_v48  ;;  %v1333_v22 = vmul.f32 %v3352_v51, %v1299_v41  ;;  %v1038_v9 = vmul.f32 %v3299_v30, %v1298_v46  ;;  %v582_v20 = vmul.f32 %v3230_v3, %v3708_v1  ;;  %v583_v62 = vmul.f32 %v3230_v3, %v3710_v14  ;;  %v3776_v3 = vld [vmem:[#allocation2 + $0x130] sm:$0xff] }
  0x97   : > { %v1069_v0 = vadd.f32 %v1037_v49, %v971_v43  ;;  %v1332_v43 = vmul.f32 %v3352_v51, %v1298_v46  ;;  %550 = vst.msk [vmem:[#allocation2 + $0x150] sm:$0xff] %vm488_vm0, %v3752_v37  ;;  %v649_v31 = vmul.f32 %v3245_v4, %v1102_v61  ;;  %v1139_v18 = vmul.f32 %v3304_v32, %v1104_v26 }
  0x98   : > { %1758 = vmatpush.bf16.msra.mxu1 %v2939_v39  ;;  %v747_v47 = vmul.f32 %v3254_v7, %v1201_v5  ;;  %3070 = vmatpush.bf16.msrb.mxu3 %v2939_v39  ;;  %v3792_v5 = vld [vmem:[%s4805_s1 + $0x2] ss:$0 sm:$0xff] }
  0x99   : > { %v1169_v34 = vadd.f32 %v1137_v36, %v1069_v0  ;;  %v648_v0 = vmul.f32 %v3245_v4, %v1101_v60  ;;  %v1364_v36 = vadd.f32 %v1332_v43, %v1266_v54  ;;  %v746_v60 = vmul.f32 %v3254_v7, %v1200_v13  ;;  %v3787_v13 = vld [vmem:[#allocation2 + $0x131] sm:$0xff] }
  0x9a   : > { %v681_v61 = vadd.f32 %v649_v31, %v583_v62  ;;  %v845_v43 = vmul.f32 %v3792_v5, %v1299_v41 }
  0x9b   : > { %v1267_v24 = vadd.f32 %v1235_v33, %v1169_v34  ;;  %v1202_v33 = vld [vmem:[#allocation2 + $0x128] sm:$0xff]  ;;  %v680_v4 = vadd.f32 %v648_v0, %v582_v20  ;;  %v1400_v34 = vadd.f32 %v3383_v2, %v1364_v36  ;;  %v3827_v36 = vld [vmem:[%s4805_s1] ss:$0 sm:$0xff] }
  0x9c   : > { %v1236_v58 = vmul.f32 %v3313_v35, %v1202_v33  ;;  %v779_v7 = vadd.f32 %v747_v47, %v681_v61  ;;  %v651_v39 = vmul.f32 %v3827_v36, %v1104_v26 }
  0x9d   : > { %v778_v54 = vadd.f32 %v746_v60, %v680_v4 }
  0x9e   : > { %v877_v0 = vadd.f32 %v845_v43, %v779_v7  ;;  %v1204_v43 = vld [vmem:[#allocation2 + $0x148] sm:$0xff] }
  0xa1   : > { %2856 = vmatmul.msk.bf16.gmra.mxu0 %vm488_vm0, %v1460_v6  ;;  %v776_v6 = vadd.f32 %v744_v59, %v678_v10  ;;  %v973_v10 = vadd.f32 %v941_v52, %v875_v63  ;;  %v1039_v59 = vmul.f32 %v3299_v30, %v1299_v41  ;;  %v1138_v30 = vmul.f32 %v3304_v32, %v1103_v25  ;;  %v3785_v63 = vld [vmem:[#allocation2 + $0x129] sm:$0xff] }
  0xa3   : > { %v874_v11 = vadd.f32 %v842_v21, %v776_v6  ;;  %v1365_v6 = vadd.f32 %v1333_v22, %v1267_v24  ;;  %v1071_v21 = vadd.f32 %v1039_v59, %v973_v10  ;;  %v844_v24 = vmul.f32 %v3792_v5, %v1298_v46 }
  0xa4   : > { %v3797_v22 = vadd.f32 %v3628_v44, %v1400_v34  ;;  %v1335_v10 = vmul.f32 %v3352_v51, %v3787_v13  ;;  %v942_v44 = vmul.f32 %v3291_v27, %v1103_v25  ;;  %v1105_v34 = vld [vmem:[#allocation2 + $0x147] sm:$0xff] }
  0xa5   : > { %v972_v49 = vadd.f32 %v940_v38, %v874_v11  ;;  %v1401_v38 = vadd.f32 %v3383_v2, %v1365_v6  ;;  %v1171_v52 = vadd.f32 %v1139_v18, %v1071_v21  ;;  %v1237_v11 = vmul.f32 %v3313_v35, %v3776_v3 }
  0xa6   : > { %4838 = vst [vmem:[#allocation8_spill] sm:$0xff] %v3797_v22  ;;  %v876_v41 = vadd.f32 %v844_v24, %v778_v54 }
  0xa7   : > { %v1070_v15 = vadd.f32 %v1038_v9, %v972_v49  ;;  %v3800_v35 = vadd.f32 %v3630_v42, %v1401_v38  ;;  %v1334_v49 = vmul.f32 %v3352_v51, %v3785_v63  ;;  %v3055_v9 = vld [vmem:[%s3238_s14 + $0x50] sm:$0xff]   ;;  %v1269_v20 = vadd.f32 %v1237_v11, %v1171_v52  ;;  %v3820_v51 = vld [vmem:[%s4805_s1 + $0x5] ss:$0 sm:$0xff]  ;;  %v3855_v52 = vld [vmem:[%s4805_s1 + $0x1] ss:$0 sm:$0xff] }
  0xa8   : > { %v3807_v62 = vunpack.c.l.bf16 %v3055_v9  ;;  %v3809_v46 = vunpack.c.h.bf16 %v3055_v9  ;;  %v943_v42 = vmul.f32 %v3291_v27, %v1104_v26  ;;  %v584_v31 = vmul.f32 %v3820_v51, %v3750_v48  ;;  %v1106_v38 = vld [vmem:[#allocation2 + $0x14f] sm:$0xff] }
  0xa9   : > { %v1170_v32 = vadd.f32 %v1138_v30, %v1070_v15  ;;  %4839 = vst [vmem:[#allocation9_spill] sm:$0xff] %v3800_v35  ;;  %v650_v27 = vmul.f32 %v3827_v36, %v1103_v25  ;;  %v1462_v6 = vpack.c.bf16 %v3800_v35, %v3797_v22  ;;  %v1367_v21 = vadd.f32 %v1335_v10, %v1269_v20  ;;  %v3835_v30 = vld [vmem:[%s4808_s4] ss:$0 sm:$0xff]  ;;  %v3843_v25 = vld [vmem:[%s4805_s1 + $0x6] ss:$0 sm:$0xff]  ;;  %v2937_v10 = vld [vmem:[%s4809_s5 + $0x8] sm:$0xff] }
  0xaa   : > { %551 = vst.msk [vmem:[#allocation2 + $0x168] sm:$0xff] %vm488_vm0, %v3807_v62  ;;  %v585_v18 = vmul.f32 %v3820_v51, %v3752_v37  ;;  %v974_v60 = vadd.f32 %v942_v44, %v876_v41  ;;  %v975_v4 = vadd.f32 %v943_v42, %v877_v0  ;;  %v1040_v61 = vmul.f32 %v3843_v25, %v3785_v63  ;;  %v1205_v0 = vld [vmem:[#allocation2 + $0x150] sm:$0xff] }
  0xab   : > { %v1268_v59 = vadd.f32 %v1236_v58, %v1170_v32  ;;  %552 = vst.msk [vmem:[#allocation2 + $0x170] sm:$0xff] %vm488_vm0, %v3809_v46  ;;  %v1041_v47 = vmul.f32 %v3843_v25, %v3787_v13  ;;  %v2938_v32 = vld [vmem:[%s4809_s5 + $0x10] sm:$0xff]  ;;  %v682_v26 = vadd.f32 %v650_v27, %v584_v31  ;;  %v748_v58 = vmul.f32 %v3855_v52, %v1202_v33 }
  0xac   : > { %v1403_v54 = vadd.f32 %v3383_v2, %v1367_v21  ;;  %1759 = vmatpush.bf16.msra.mxu1 %v2938_v32  ;;  %v683_v9 = vadd.f32 %v651_v39, %v585_v18  ;;  %v749_v33 = vmul.f32 %v3855_v52, %v3776_v3  ;;  %3071 = vmatpush.bf16.msrb.mxu3 %v2938_v32  ;;  %v1302_v44 = vld [vmem:[#allocation2 + $0x149] sm:$0xff]  ;;  %v1303_v42 = vld [vmem:[#allocation2 + $0x151] sm:$0xff] }
  0xad   : > { %v1366_v15 = vadd.f32 %v1334_v49, %v1268_v59  ;;  %v1072_v59 = vadd.f32 %v1040_v61, %v974_v60  ;;  %v1073_v20 = vadd.f32 %v1041_v47, %v975_v4  ;;  %v780_v27 = vadd.f32 %v748_v58, %v682_v26  ;;  %v3886_v21 = vld [vmem:[%s4805_s1 + $0x9] ss:$0 sm:$0xff]  ;;  %v3898_v47 = vld [vmem:[%s4805_s1 + $0xa] ss:$0 sm:$0xff] }
  0xae   : > { %v846_v3 = vmul.f32 %v3792_v5, %v3785_v63  ;;  %v1238_v18 = vmul.f32 %v3886_v21, %v1204_v43  ;;  %v1239_v60 = vmul.f32 %v3886_v21, %v1205_v0  ;;  %v781_v63 = vadd.f32 %v749_v33, %v683_v9 }
  0xaf   : > { %v1402_v11 = vadd.f32 %v3383_v2, %v1366_v15  ;;  %v3871_v2 = vld [vmem:[%s4805_s1 + $0x8] ss:$0 sm:$0xff]  ;;  %v3881_v15 = vadd.f32 %v3670_v12, %v1403_v54  ;;  %v847_v12 = vmul.f32 %v3792_v5, %v3787_v13  ;;  %v1336_v32 = vmul.f32 %v3898_v47, %v1302_v44  ;;  %v3905_v54 = vld [vmem:[%s4805_s1 + $0x4] ss:$0 sm:$0xff] }
  0xb0   : > { %v1141_v41 = vmul.f32 %v3871_v2, %v1106_v38  ;;  %1760 = vmatpush.bf16.msra.mxu1 %v2937_v10  ;;  %3072 = vmatpush.bf16.msrb.mxu3 %v2937_v10  ;;  %v1337_v26 = vmul.f32 %v3898_v47, %v1303_v42  ;;  %v944_v13 = vmul.f32 %v3905_v54, %v1105_v34 }
  0xb1   : > { %2857 = vmatmul.msk.bf16.gmra.mxu0 %vm488_vm0, %v1461_v50  ;;  %v1545_v50 = vpop.f32.mrf.mxu0  ;;  %4841 = vst [vmem:[#allocation11_spill] sm:$0xff] %v3881_v15  ;;  %v586_v9 = vmul.f32 %v3820_v51, %v3807_v62  ;;  %v587_v33 = vmul.f32 %v3820_v51, %v3809_v46 }
  0xb2   : > { %v1546_v7 = vadd.f32 %v3835_v30, %v1545_v50  ;;  %v1140_v50 = vmul.f32 %v3871_v2, %v1105_v34  ;;  %v1173_v61 = vadd.f32 %v1141_v41, %v1073_v20  ;;  %v652_v20 = vmul.f32 %v3827_v36, %v1105_v34 }
  0xb4   : > { %v1625_v39 = vmax.f32 %v1546_v7, 0.0  ;;  %v1172_v4 = vadd.f32 %v1140_v50, %v1072_v59  ;;  %v945_v7 = vmul.f32 %v3905_v54, %v1106_v38  ;;  %v879_v59 = vadd.f32 %v847_v12, %v781_v63  ;;  %v1107_v12 = vld [vmem:[#allocation2 + $0x167] sm:$0xff] }
  0xb5   : > { %v653_v50 = vmul.f32 %v3827_v36, %v1106_v38  ;;  %v1043_v63 = vmul.f32 %v3843_v25, %v1303_v42 }
  0xb6   : > { %v1270_v41 = vadd.f32 %v1238_v18, %v1172_v4  ;;  %v977_v18 = vadd.f32 %v945_v7, %v879_v59  ;;  %v1108_v4 = vld [vmem:[#allocation2 + $0x16f] sm:$0xff] }
  0xb7   : > { %v1206_v7 = vld [vmem:[#allocation2 + $0x168] sm:$0xff]  ;;  %v1207_v59 = vld [vmem:[#allocation2 + $0x170] sm:$0xff] }
  0xb9   : > { %v1547_v24 = vpop.f32.mrf.mxu0 }
  0xba   : > { %v1548_v49 = vadd.f32 %v3835_v30, %v1547_v24  ;;  %v3056_v24 = vld [vmem:[%s3238_s14 + $0x58] sm:$0xff]  }
  0xbb   : > { %v3912_v10 = vunpack.c.h.bf16 %v3056_v24 }
  0xbc   : > { %v1626_v31 = vmax.f32 %v1548_v49, 0.0  ;;  %v3910_v49 = vunpack.c.l.bf16 %v3056_v24  ;;  %v751_v24 = vmul.f32 %v3855_v52, %v1205_v0  ;;  %v849_v0 = vmul.f32 %v3792_v5, %v1303_v42 }
  0xbd   : > { %554 = vst.msk [vmem:[#allocation2 + $0x190] sm:$0xff] %vm488_vm0, %v3912_v10 }
  0xbe   : > { %v1665_v58 = vpack.c.bf16 %v1626_v31, %v1625_v39  ;;  %v1271_v31 = vadd.f32 %v1239_v60, %v1173_v61  ;;  %553 = vst.msk [vmem:[#allocation2 + $0x188] sm:$0xff] %vm488_vm0, %v3910_v49  ;;  %v685_v39 = vadd.f32 %v653_v50, %v587_v33  ;;  %v1042_v60 = vmul.f32 %v3843_v25, %v1302_v44 }
  0xbf   : > { %v946_v50 = vmul.f32 %v3905_v54, %v1107_v12 }
  0xc0   : > { %v783_v33 = vadd.f32 %v751_v24, %v685_v39 }
  0xc1   : > { %2858 = vmatmul.msk.bf16.gmra.mxu0 %vm488_vm0, %v1462_v6  ;;  %v3878_v6 = vadd.f32 %v3668_v53, %v1402_v11  ;;  %v2936_v53 = vld [vmem:[%s4809_s5] sm:$0xff]  ;;  %v878_v11 = vadd.f32 %v846_v3, %v780_v27  ;;  %v750_v27 = vmul.f32 %v3855_v52, %v1204_v43  ;;  %v684_v3 = vadd.f32 %v652_v20, %v586_v9 }
  0xc2   : > { %1761 = vmatpush.bf16.msra.mxu1 %v2936_v53  ;;  %3073 = vmatpush.bf16.msrb.mxu3 %v2936_v53  ;;  %v1368_v43 = vadd.f32 %v1336_v32, %v1270_v41  ;;  %v1369_v53 = vadd.f32 %v1337_v26, %v1271_v31  ;;  %v848_v9 = vmul.f32 %v3792_v5, %v1302_v44  ;;  %v3939_v32 = vld [vmem:[%s4806_s2] ss:$0 sm:$0xff] }
  0xc3   : > { %4840 = vst [vmem:[#allocation10_spill] sm:$0xff] %v3878_v6  ;;  %v1463_v34 = vpack.c.bf16 %v3881_v15, %v3878_v6  ;;  %v976_v38 = vadd.f32 %v944_v13, %v878_v11  ;;  %v782_v61 = vadd.f32 %v750_v27, %v684_v3  ;;  %v1142_v11 = vmul.f32 %v3871_v2, %v1107_v12  ;;  %v1304_v27 = vld [vmem:[#allocation2 + $0x169] sm:$0xff]  ;;  %v1305_v3 = vld [vmem:[#allocation2 + $0x171] sm:$0xff] }
  0xc4   : > { %v1143_v13 = vmul.f32 %v3871_v2, %v1108_v4  ;;  %v1404_v26 = vadd.f32 %v3939_v32, %v1368_v43  ;;  %v1405_v44 = vadd.f32 %v3939_v32, %v1369_v53  ;;  %v881_v41 = vadd.f32 %v849_v0, %v783_v33 }
  0xc5   : > { %2884 = vmatmul.msk.bf16.vlgmr.msra.gmra.mxu1 %vm1705_vm3, %v1665_v58  ;;  %v1074_v20 = vadd.f32 %v1042_v60, %v976_v38  ;;  %v1075_v58 = vadd.f32 %v1043_v63, %v977_v18  ;;  %v880_v42 = vadd.f32 %v848_v9, %v782_v61  ;;  %v947_v31 = vmul.f32 %v3905_v54, %v1108_v4  ;;  %v3957_v0 = vld [vmem:[#allocation2 + $0x187] sm:$0xff] }
  0xc6   : > { %v1241_v38 = vmul.f32 %v3886_v21, %v1207_v59  ;;  %v3948_v18 = vadd.f32 %v3708_v1, %v1404_v26  ;;  %v3951_v60 = vadd.f32 %v3710_v14, %v1405_v44  ;;  %v1044_v43 = vmul.f32 %v3843_v25, %v1304_v27 }
  0xc7   : > { %v1174_v39 = vadd.f32 %v1142_v11, %v1074_v20  ;;  %v1175_v24 = vadd.f32 %v1143_v13, %v1075_v58  ;;  %v978_v63 = vadd.f32 %v946_v50, %v880_v42  ;;  %v1338_v53 = vmul.f32 %v3898_v47, %v1304_v27  ;;  %v3057_v20 = vld [vmem:[%s3238_s14 + $0x60] sm:$0xff]   ;;  %v3960_v58 = vld [vmem:[#allocation2 + $0x18f] sm:$0xff] }
  0xc8   : > { %4842 = vst [vmem:[#allocation12_spill] sm:$0xff] %v3948_v18  ;;  %v1339_v61 = vmul.f32 %v3898_v47, %v1305_v3  ;;  %v979_v9 = vadd.f32 %v947_v31, %v881_v41  ;;  %v1045_v33 = vmul.f32 %v3843_v25, %v1305_v3  ;;  %v3962_v1 = vunpack.c.l.bf16 %v3057_v20 }
  0xc9   : > { %4843 = vst [vmem:[#allocation13_spill] sm:$0xff] %v3951_v60  ;;  %v3964_v11 = vunpack.c.h.bf16 %v3057_v20  ;;  %v588_v14 = vmul.f32 %v3820_v51, %v3910_v49  ;;  %v589_v13 = vmul.f32 %v3820_v51, %v3912_v10  ;;  %v1273_v44 = vadd.f32 %v1241_v38, %v1175_v24  ;;  %v3980_v24 = vld [vmem:[#allocation2 + $0x188] sm:$0xff]  ;;  %v3986_v38 = vld [vmem:[#allocation2 + $0x190] sm:$0xff] }
  0xca   : > { %v654_v42 = vmul.f32 %v3827_v36, %v1107_v12  ;;  %v655_v50 = vmul.f32 %v3827_v36, %v1108_v4  ;;  %v1076_v41 = vadd.f32 %v1044_v43, %v978_v63  ;;  %v1144_v31 = vmul.f32 %v3871_v2, %v3957_v0  ;;  %555 = vst.msk [vmem:[#allocation2 + $0x1a8] sm:$0xff] %vm488_vm0, %v3962_v1 }
  0xcb   : > { %v752_v20 = vmul.f32 %v3855_v52, %v1206_v7  ;;  %v753_v15 = vmul.f32 %v3855_v52, %v1207_v59  ;;  %v1077_v6 = vadd.f32 %v1045_v33, %v979_v9  ;;  %556 = vst.msk [vmem:[#allocation2 + $0x1b0] sm:$0xff] %vm488_vm0, %v3964_v11  ;;  %v851_v59 = vmul.f32 %v3792_v5, %v1305_v3  ;;  %v3998_v3 = vld [vmem:[#allocation2 + $0x191] sm:$0xff] }
  0xcc   : > { %v686_v12 = vadd.f32 %v654_v42, %v588_v14  ;;  %v687_v4 = vadd.f32 %v655_v50, %v589_v13  ;;  %v1371_v43 = vadd.f32 %v1339_v61, %v1273_v44  ;;  %v1176_v35 = vadd.f32 %v1144_v31, %v1076_v41  ;;  %v1306_v50 = vld [vmem:[#allocation2 + $0x189] sm:$0xff] }
  0xcd   : > { %v1242_v22 = vmul.f32 %v3886_v21, %v3980_v24  ;;  %v948_v14 = vmul.f32 %v3905_v54, %v3957_v0  ;;  %v949_v13 = vmul.f32 %v3905_v54, %v3960_v58 }
  0xce   : > { %v784_v9 = vadd.f32 %v752_v20, %v686_v12  ;;  %v785_v33 = vadd.f32 %v753_v15, %v687_v4  ;;  %v1046_v15 = vmul.f32 %v3843_v25, %v1306_v50  ;;  %v1407_v41 = vadd.f32 %v3939_v32, %v1371_v43 }
  0xcf   : > { %v1340_v12 = vmul.f32 %v3898_v47, %v1306_v50  ;;  %v1341_v4 = vmul.f32 %v3898_v47, %v3998_v3 }
  0xd0   : > { %v883_v61 = vadd.f32 %v851_v59, %v785_v33 }
  0xd1   : > { %2859 = vmatmul.msk.bf16.gmra.mxu0 %vm488_vm0, %v1463_v34  ;;  %v1240_v34 = vmul.f32 %v3886_v21, %v1206_v7  ;;  %v850_v7 = vmul.f32 %v3792_v5, %v1304_v27  ;;  %v1243_v27 = vmul.f32 %v3886_v21, %v3986_v38  ;;  %v4006_v20 = vld [vmem:[#allocation2 + $0x1a7] sm:$0xff] }
  0xd2   : > { %v981_v31 = vadd.f32 %v949_v13, %v883_v61  ;;  %v1210_v33 = vld [vmem:[#allocation2 + $0x1a8] sm:$0xff] }
  0xd3   : > { %v1272_v26 = vadd.f32 %v1240_v34, %v1174_v39  ;;  %v1145_v39 = vmul.f32 %v3871_v2, %v3960_v58  ;;  %v1464_v34 = vpack.c.bf16 %v3951_v60, %v3948_v18  ;;  %v3058_v13 = vld [vmem:[%s3238_s14 + $0x68] sm:$0xff]   ;;  %v1244_v61 = vmul.f32 %v3886_v21, %v1210_v33 }
  0xd4   : > { %v4025_v60 = vunpack.c.l.bf16 %v3058_v13  ;;  %v950_v18 = vmul.f32 %v3905_v54, %v4006_v20 }
  0xd5   : > { %v1370_v63 = vadd.f32 %v1338_v53, %v1272_v26  ;;  %v1177_v42 = vadd.f32 %v1145_v39, %v1077_v6  ;;  %v882_v53 = vadd.f32 %v850_v7, %v784_v9  ;;  %v1047_v26 = vmul.f32 %v3843_v25, %v3998_v3 }
  0xd6   : > { %v1274_v39 = vadd.f32 %v1242_v22, %v1176_v35  ;;  %v1146_v7 = vmul.f32 %v3871_v2, %v4006_v20  ;;  %v4021_v35 = vadd.f32 %v3752_v37, %v1407_v41  ;;  %557 = vst.msk [vmem:[#allocation2 + $0x1c8] sm:$0xff] %vm488_vm0, %v4025_v60  ;;  %v591_v37 = vmul.f32 %v3820_v51, %v3964_v11 }
  0xd7   : > { %v1406_v44 = vadd.f32 %v3939_v32, %v1370_v63  ;;  %v980_v6 = vadd.f32 %v948_v14, %v882_v53  ;;  %v1275_v59 = vadd.f32 %v1243_v27, %v1177_v42  ;;  %v1079_v9 = vadd.f32 %v1047_v26, %v981_v31  ;;  %v1211_v14 = vld [vmem:[#allocation2 + $0x1b0] sm:$0xff] }
  0xd8   : > { %4845 = vst [vmem:[#allocation15_spill] sm:$0xff] %v4021_v35  ;;  %v4027_v42 = vunpack.c.h.bf16 %v3058_v13  ;;  %v1372_v27 = vadd.f32 %v1340_v12, %v1274_v39  ;;  %v4030_v31 = vld [vmem:[#allocation2 + $0x1a9] sm:$0xff]  ;;  %v657_v41 = vmul.f32 %v3827_v36, %v3960_v58  ;;  %v4044_v12 = vld [vmem:[#allocation2 + $0x1b1] sm:$0xff] }
  0xd9   : > { %v1078_v63 = vadd.f32 %v1046_v15, %v980_v6  ;;  %v4018_v22 = vadd.f32 %v3750_v48, %v1406_v44  ;;  %v1373_v15 = vadd.f32 %v1341_v4, %v1275_v59  ;;  %v1245_v6 = vmul.f32 %v3886_v21, %v1211_v14  ;;  %v3059_v4 = vld [vmem:[%s3238_s14 + $0x70] sm:$0xff]  }
  0xda   : > { %v590_v48 = vmul.f32 %v3820_v51, %v3962_v1  ;;  %v656_v44 = vmul.f32 %v3827_v36, %v3957_v0  ;;  %558 = vst.msk [vmem:[#allocation2 + $0x1d0] sm:$0xff] %vm488_vm0, %v4027_v42  ;;  %v1342_v59 = vmul.f32 %v3898_v47, %v4030_v31  ;;  %v754_v0 = vmul.f32 %v3855_v52, %v3980_v24 }
  0xdb   : > { %4844 = vst [vmem:[#allocation14_spill] sm:$0xff] %v4018_v22  ;;  %v1178_v53 = vadd.f32 %v1146_v7, %v1078_v63  ;;  %v1465_v39 = vpack.c.bf16 %v4021_v35, %v4018_v22  ;;  %v1409_v58 = vadd.f32 %v3939_v32, %v1373_v15  ;;  %v4057_v13 = vunpack.c.h.bf16 %v3059_v4 }
  0xdc   : > { %v688_v63 = vadd.f32 %v656_v44, %v590_v48  ;;  %v1343_v22 = vmul.f32 %v3898_v47, %v4044_v12  ;;  %v592_v24 = vmul.f32 %v3820_v51, %v4025_v60 }
  0xdd   : > { %v1276_v7 = vadd.f32 %v1244_v61, %v1178_v53  ;;  %v689_v53 = vadd.f32 %v657_v41, %v591_v37  ;;  %v755_v61 = vmul.f32 %v3855_v52, %v3986_v38  ;;  %560 = vst.msk [vmem:[#allocation2 + $0x1f0] sm:$0xff] %vm488_vm0, %v4057_v13  ;;  %v658_v38 = vmul.f32 %v3827_v36, %v4006_v20  ;;  %v4089_v23 = vld [vmem:[#allocation2 + $0x1c7] sm:$0xff] }
  0xde   : > { %v786_v44 = vadd.f32 %v754_v0, %v688_v63  ;;  %v4081_v41 = vadd.f32 %v3809_v46, %v1409_v58  ;;  %v757_v46 = vmul.f32 %v3855_v52, %v1211_v14 }
  0xdf   : > { %v1374_v15 = vadd.f32 %v1342_v59, %v1276_v7  ;;  %v787_v7 = vadd.f32 %v755_v61, %v689_v53  ;;  %v690_v59 = vadd.f32 %v658_v38, %v592_v24 }
  0xe0   : > { %4847 = vst [vmem:[#allocation17_spill] sm:$0xff] %v4081_v41 }
  0xe1   : > { %2860 = vmatmul.msk.bf16.gmra.mxu0 %vm488_vm0, %v1464_v34  ;;  %v4011_v34 = vld [vmem:[#allocation2 + $0x1af] sm:$0xff]  ;;  %v1410_v0 = vadd.f32 %v3939_v32, %v1374_v15 }
  0xe2   : > { %v1147_v43 = vmul.f32 %v3871_v2, %v4011_v34  ;;  %v659_v37 = vmul.f32 %v3827_v36, %v4011_v34  ;;  %v4102_v61 = vld [vmem:[#allocation2 + $0x1c9] sm:$0xff]  ;;  %v951_v14 = vmul.f32 %v3905_v54, %v4011_v34  ;;  %v1048_v34 = vmul.f32 %v3843_v25, %v4030_v31 }
  0xe4   : > { %v1179_v26 = vadd.f32 %v1147_v43, %v1079_v9  ;;  %v1408_v9 = vadd.f32 %v3939_v32, %v1372_v27  ;;  %v4055_v43 = vunpack.c.l.bf16 %v3059_v4  ;;  %v593_v27 = vmul.f32 %v3820_v51, %v4027_v42  ;;  %v4143_v56 = vld [vmem:[#allocation2 + $0x1f1] sm:$0xff] }
  0xe6   : > { %v1277_v35 = vadd.f32 %v1245_v6, %v1179_v26  ;;  %559 = vst.msk [vmem:[#allocation2 + $0x1e8] sm:$0xff] %vm488_vm0, %v4055_v43  ;;  %v852_v26 = vmul.f32 %v3792_v5, %v1306_v50  ;;  %v4073_v6 = vadd.f32 %v3807_v62, %v1408_v9  ;;  %v853_v50 = vmul.f32 %v3792_v5, %v3998_v3 }
  0xe7   : > { %v691_v63 = vadd.f32 %v659_v37, %v593_v27  ;;  %v756_v62 = vmul.f32 %v3855_v52, %v1210_v33  ;;  %v854_v3 = vmul.f32 %v3792_v5, %v4030_v31  ;;  %v855_v33 = vmul.f32 %v3792_v5, %v4044_v12 }
  0xe8   : > { %4846 = vst [vmem:[#allocation16_spill] sm:$0xff] %v4073_v6  ;;  %v1375_v4 = vadd.f32 %v1343_v22, %v1277_v35  ;;  %v884_v9 = vadd.f32 %v852_v26, %v786_v44  ;;  %v885_v53 = vadd.f32 %v853_v50, %v787_v7  ;;  %v952_v44 = vmul.f32 %v3905_v54, %v4089_v23 }
  0xe9   : > { %v788_v35 = vadd.f32 %v756_v62, %v690_v59  ;;  %v789_v24 = vadd.f32 %v757_v46, %v691_v63  ;;  %v1050_v46 = vmul.f32 %v3843_v25, %v4102_v61 }
  0xea   : > { %v1411_v20 = vadd.f32 %v3939_v32, %v1375_v4  ;;  %v4116_v4 = vadd.f32 %v3910_v49, %v1410_v0  ;;  %v982_v7 = vadd.f32 %v950_v18, %v884_v9  ;;  %v1049_v49 = vmul.f32 %v3843_v25, %v4044_v12  ;;  %v4132_v0 = vld [vmem:[#allocation2 + $0x1f0] sm:$0xff] }
  0xeb   : > { %v886_v15 = vadd.f32 %v854_v3, %v788_v35  ;;  %v887_v63 = vadd.f32 %v855_v33, %v789_v24  ;;  %v1148_v12 = vmul.f32 %v3871_v2, %v4089_v23 }
  0xec   : > { %4848 = vst [vmem:[#allocation18_spill] sm:$0xff] %v4116_v4 }
  0xed   : > { %v4112_v38 = vld [vmem:[#allocation2 + $0x1e7] sm:$0xff]  ;;  %v4120_v50 = vld [vmem:[#allocation2 + $0x1ef] sm:$0xff]  ;;  %v984_v62 = vadd.f32 %v952_v44, %v886_v15  ;;  %v3060_v15 = vld [vmem:[%s3238_s14 + $0x78] sm:$0xff]  }
  0xee   : > { %v1550_v48 = vpop.f32.mrf.mxu0  ;;  %v4124_v35 = vld [vmem:[#allocation2 + $0x1e8] sm:$0xff]  ;;  %v1150_v31 = vmul.f32 %v3871_v2, %v4112_v38 }
  0xef   : > { %v1551_v22 = vadd.f32 %v3835_v30, %v1550_v48  ;;  %v4106_v48 = vld [vmem:[#allocation2 + $0x1d1] sm:$0xff]  ;;  %v4134_v9 = vld [vmem:[#allocation2 + $0x1e9] sm:$0xff]  ;;  %v1082_v24 = vadd.f32 %v1050_v46, %v984_v62  ;;  %v1248_v58 = vmul.f32 %v3886_v21, %v4124_v35 }
  0xf0   : > { %v1051_v18 = vmul.f32 %v3843_v25, %v4106_v48  ;;  %v1212_v62 = vld [vmem:[#allocation2 + $0x1c8] sm:$0xff] }
  0xf1   : > { %2861 = vmatmul.msk.bf16.gmra.mxu0 %vm488_vm0, %v1465_v39  ;;  %v4091_v39 = vld [vmem:[#allocation2 + $0x1cf] sm:$0xff]  ;;  %v1627_v59 = vmax.f32 %v1551_v22, 0.0  ;;  %v983_v22 = vadd.f32 %v951_v14, %v885_v53  ;;  %v1182_v57 = vadd.f32 %v1150_v31, %v1082_v24  ;;  %v1249_v53 = vmul.f32 %v3886_v21, %v4132_v0 }
  0xf2   : > { %v953_v26 = vmul.f32 %v3905_v54, %v4091_v39  ;;  %v1346_v14 = vmul.f32 %v3898_v47, %v4134_v9  ;;  %v594_v31 = vmul.f32 %v3820_v51, %v4055_v43 }
  0xf4   : > { %v985_v33 = vadd.f32 %v953_v26, %v887_v63  ;;  %v4151_v26 = vadd.f32 %v3912_v10, %v1411_v20  ;;  %v595_v10 = vmul.f32 %v3820_v51, %v4057_v13  ;;  %v660_v20 = vmul.f32 %v3827_v36, %v4089_v23 }
  0xf6   : > { %v1552_v27 = vpop.f32.mrf.mxu0  ;;  %v1083_v45 = vadd.f32 %v1051_v18, %v985_v33  ;;  %4849 = vst [vmem:[#allocation19_spill] sm:$0xff] %v4151_v26  ;;  %v1347_v18 = vmul.f32 %v3898_v47, %v4143_v56  ;;  %v1081_v33 = vadd.f32 %v1049_v49, %v983_v22  ;;  %v758_v49 = vmul.f32 %v3855_v52, %v1212_v62 }
  0xf7   : > { %v1553_v37 = vadd.f32 %v3835_v30, %v1552_v27  ;;  %v1151_v27 = vmul.f32 %v3871_v2, %v4120_v50  ;;  %v4850_v22 = vpack.c.bf16 %v4081_v41, %v4073_v6  ;;  %v692_v23 = vadd.f32 %v660_v20, %v594_v31 }
  0xf9   : > { %v1628_v3 = vmax.f32 %v1553_v37, 0.0  ;;  %v1080_v37 = vadd.f32 %v1048_v34, %v982_v7  ;;  %v1149_v7 = vmul.f32 %v3871_v2, %v4091_v39  ;;  %v4155_v34 = vunpack.c.l.bf16 %v3060_v15 }
  0xfa   : > { %v1183_v46 = vadd.f32 %v1151_v27, %v1083_v45  ;;  %v661_v45 = vmul.f32 %v3827_v36, %v4091_v39 }
  0xfb   : > { %v1666_v44 = vpack.c.bf16 %v1628_v3, %v1627_v59  ;;  %v4157_v59 = vunpack.c.h.bf16 %v3060_v15  ;;  %v1280_v3 = vadd.f32 %v1248_v58, %v1182_v57  ;;  %561 = vst.msk [vmem:[#allocation2 + $0x208] sm:$0xff] %vm488_vm0, %v4155_v34  ;;  %v1180_v57 = vadd.f32 %v1148_v12, %v1080_v37  ;;  %v1213_v58 = vld [vmem:[#allocation2 + $0x1d0] sm:$0xff] }
  0xfc   : > { %v1281_v24 = vadd.f32 %v1249_v53, %v1183_v46  ;;  %v1246_v15 = vmul.f32 %v3886_v21, %v1212_v62  ;;  %v759_v39 = vmul.f32 %v3855_v52, %v1213_v58  ;;  %v856_v53 = vmul.f32 %v3792_v5, %v4102_v61 }
  0xfd   : > { %2885 = vmatmul.msk.bf16.gmra.mxu1 %vm1705_vm3, %v1666_v44  ;;  %v1378_v27 = vadd.f32 %v1346_v14, %v1280_v3  ;;  %562 = vst.msk [vmem:[#allocation2 + $0x210] sm:$0xff] %vm488_vm0, %v4157_v59  ;;  %v693_v44 = vadd.f32 %v661_v45, %v595_v10  ;;  %v857_v14 = vmul.f32 %v3792_v5, %v4106_v48 }
  0xfe   : > { %v1555_v63 = vpop.f32.mrf.mxu0  ;;  %v1379_v37 = vadd.f32 %v1347_v18, %v1281_v24  ;;  %v790_v46 = vadd.f32 %v758_v49, %v692_v23  ;;  %v955_v62 = vmul.f32 %v3905_v54, %v4120_v50  ;;  %v1467_v18 = vpack.c.bf16 %v4151_v26, %v4116_v4 }
  0xff   : > { %v1414_v12 = vadd.f32 %v3939_v32, %v1378_v27  ;;  %v791_v3 = vadd.f32 %v759_v39, %v693_v44  ;;  %v1556_v31 = vadd.f32 %v3835_v30, %v1555_v63  ;;  %v1052_v27 = vmul.f32 %v3843_v25, %v4134_v9 }
 0x100   : > { %v1415_v10 = vadd.f32 %v3939_v32, %v1379_v37  ;;  %v888_v45 = vadd.f32 %v856_v53, %v790_v46  ;;  %v1053_v49 = vmul.f32 %v3843_v25, %v4143_v56  ;;  %v1181_v44 = vadd.f32 %v1149_v7, %v1081_v33 }
 0x101   : > { %2862 = vmatmul.msk.bf16.gmra.mxu0 %vm488_vm0, %v4850_v22  ;;  %v954_v22 = vmul.f32 %v3905_v54, %v4112_v38  ;;  %v4194_v20 = vadd.f32 %v4025_v60, %v1414_v12  ;;  %v889_v24 = vadd.f32 %v857_v14, %v791_v3  ;;  %v1247_v63 = vmul.f32 %v3886_v21, %v1213_v58 }
 0x102   : > { %v1278_v39 = vadd.f32 %v1246_v15, %v1180_v57  ;;  %v4202_v26 = vadd.f32 %v4027_v42, %v1415_v10  ;;  %v1117_v37 = vld [vmem:[#allocation2 + $0x207] sm:$0xff]  ;;  %v1629_v41 = vmax.f32 %v1556_v31, 0.0  ;;  %v1345_v31 = vmul.f32 %v3898_v47, %v4106_v48 }
 0x103   : > { %v1216_v4 = vld [vmem:[#allocation2 + $0x208] sm:$0xff]  ;;  %v986_v12 = vadd.f32 %v954_v22, %v888_v45  ;;  %v987_v53 = vadd.f32 %v955_v62, %v889_v24  ;;  %v1152_v46 = vmul.f32 %v3871_v2, %v1117_v37  ;;  %v1344_v62 = vmul.f32 %v3898_v47, %v4102_v61 }
 0x104   : > { %4851 = vst [vmem:[#allocation20_spill] sm:$0xff] %v4202_v26  ;;  %v1118_v14 = vld [vmem:[#allocation2 + $0x20f] sm:$0xff]  ;;  %v1469_v7 = vpack.c.bf16 %v4202_v26, %v4194_v20  ;;  %v1250_v57 = vmul.f32 %v3886_v21, %v1216_v4  ;;  %v662_v61 = vmul.f32 %v3827_v36, %v4112_v38  ;;  %v663_v48 = vmul.f32 %v3827_v36, %v4120_v50 }
 0x105   : > { %v1217_v3 = vld [vmem:[#allocation2 + $0x210] sm:$0xff]  ;;  %v1153_v33 = vmul.f32 %v3871_v2, %v1118_v14  ;;  %v1084_v10 = vadd.f32 %v1052_v27, %v986_v12  ;;  %v1085_v6 = vadd.f32 %v1053_v49, %v987_v53  ;;  %v596_v27 = vmul.f32 %v3820_v51, %v4155_v34 }
 0x106   : > { %v1557_v23 = vpop.f32.mrf.mxu0  ;;  %v1314_v42 = vld [vmem:[#allocation2 + $0x209] sm:$0xff]  ;;  %v1315_v58 = vld [vmem:[#allocation2 + $0x211] sm:$0xff]  ;;  %v1251_v22 = vmul.f32 %v3886_v21, %v1217_v3  ;;  %2865 = vmatmul.msk.bf16.vlgmr.msra.gmra.mxu3 %vm488_vm0, %v1469_v7  ;;  %v1279_v49 = vadd.f32 %v1247_v63, %v1181_v44  ;;  %v858_v38 = vmul.f32 %v3792_v5, %v4134_v9 }
 0x107   : > { %v1558_v60 = vadd.f32 %v3835_v30, %v1557_v23  ;;  %v1348_v45 = vmul.f32 %v3898_v47, %v1314_v42  ;;  %v1349_v24 = vmul.f32 %v3898_v47, %v1315_v58  ;;  %v1184_v23 = vadd.f32 %v1152_v46, %v1084_v10 }
 0x108   : > { %v1185_v26 = vadd.f32 %v1153_v33, %v1085_v6  ;;  %v760_v6 = vmul.f32 %v3855_v52, %v4124_v35  ;;  %v694_v63 = vadd.f32 %v662_v61, %v596_v27  ;;  %v1377_v36 = vadd.f32 %v1345_v31, %v1279_v49  ;;  %v1119_v31 = vld [vmem:[#allocation2 + $0x227] sm:$0xff] }
 0x109   : > { %v1630_v15 = vmax.f32 %v1558_v60, 0.0  ;;  %v597_v60 = vmul.f32 %v3820_v51, %v4157_v59  ;;  %v1282_v12 = vadd.f32 %v1250_v57, %v1184_v23  ;;  %v1376_v51 = vadd.f32 %v1344_v62, %v1278_v39 }
 0x10a   : > { %v1283_v53 = vadd.f32 %v1251_v22, %v1185_v26  ;;  %v792_v50 = vadd.f32 %v760_v6, %v694_v63  ;;  %v859_v26 = vmul.f32 %v3792_v5, %v4143_v56  ;;  %v1054_v56 = vmul.f32 %v3843_v25, %v1314_v42 }
 0x10b   : > { %v1667_v4 = vpack.c.bf16 %v1630_v15, %v1629_v41  ;;  %v761_v41 = vmul.f32 %v3855_v52, %v4132_v0  ;;  %v695_v46 = vadd.f32 %v663_v48, %v597_v60  ;;  %v1380_v3 = vadd.f32 %v1348_v45, %v1282_v12  ;;  %v1120_v45 = vld [vmem:[#allocation2 + $0x22f] sm:$0xff] }
 0x10c   : > { %v1381_v7 = vadd.f32 %v1349_v24, %v1283_v53  ;;  %v956_v0 = vmul.f32 %v3905_v54, %v1117_v37  ;;  %v890_v39 = vadd.f32 %v858_v38, %v792_v50  ;;  %v957_v15 = vmul.f32 %v3905_v54, %v1118_v14  ;;  %v1316_v12 = vld [vmem:[#allocation2 + $0x229] sm:$0xff]  ;;  %v1317_v53 = vld [vmem:[#allocation2 + $0x231] sm:$0xff] }
 0x10d   : > { %2886 = vmatmul.msk.bf16.gmra.mxu1 %vm1705_vm3, %v1667_v4  ;;  %v793_v33 = vadd.f32 %v761_v41, %v695_v46  ;;  %v1416_v35 = vadd.f32 %v3939_v32, %v1380_v3  ;;  %v1055_v5 = vmul.f32 %v3843_v25, %v1315_v58  ;;  %v1413_v22 = vadd.f32 %v3939_v32, %v1377_v36  ;;  %v1218_v58 = vld [vmem:[#allocation2 + $0x228] sm:$0xff]  ;;  %v1219_v4 = vld [vmem:[#allocation2 + $0x230] sm:$0xff] }
 0x10e   : > { %v1560_v44 = vpop.f32.mrf.mxu0  ;;  %v1417_v52 = vadd.f32 %v3939_v32, %v1381_v7  ;;  %v988_v62 = vadd.f32 %v956_v0, %v890_v39  ;;  %v1155_v14 = vmul.f32 %v3871_v2, %v1120_v45  ;;  %v1252_v27 = vmul.f32 %v3886_v21, %v1218_v58 }
 0x10f   : > { %v891_v57 = vadd.f32 %v859_v26, %v793_v33  ;;  %v4241_v9 = vadd.f32 %v4055_v43, %v1416_v35  ;;  %v1561_v54 = vadd.f32 %v3835_v30, %v1560_v44  ;;  %v1154_v43 = vmul.f32 %v3871_v2, %v1119_v31 }
 0x110   : > { %v4244_v10 = vadd.f32 %v4057_v13, %v1417_v52  ;;  %v1086_v24 = vadd.f32 %v1054_v56, %v988_v62  ;;  %v1253_v49 = vmul.f32 %v3886_v21, %v1219_v4  ;;  %v4262_v61 = vadd.f32 %v3964_v11, %v1413_v22 }
 0x111   : > { %2863 = vmatmul.msk.bf16.gmra.mxu0 %vm488_vm0, %v1467_v18  ;;  %v1412_v18 = vadd.f32 %v3939_v32, %v1376_v51  ;;  %v989_v37 = vadd.f32 %v957_v15, %v891_v57  ;;  %v1631_v6 = vmax.f32 %v1561_v54, 0.0  ;;  %v1350_v44 = vmul.f32 %v3898_v47, %v1316_v12 }
 0x112   : > { %v1470_v42 = vpack.c.bf16 %v4244_v10, %v4241_v9  ;;  %v1186_v2 = vadd.f32 %v1154_v43, %v1086_v24  ;;  %v1351_v63 = vmul.f32 %v3898_v47, %v1317_v53 }
 0x113   : > { %v1087_v25 = vadd.f32 %v1055_v5, %v989_v37  ;;  %v4259_v60 = vadd.f32 %v3962_v1, %v1412_v18 }
 0x114   : > { %v1284_v46 = vadd.f32 %v1252_v27, %v1186_v2 }
 0x115   : > { %v1187_v48 = vadd.f32 %v1155_v14, %v1087_v25  ;;  %v1468_v11 = vpack.c.bf16 %v4262_v61, %v4259_v60  ;;  %v4298_v25 = vld [vmem:[%s4810_s6] ss:$0 sm:$0xff] }
 0x116   : > { %v1562_v13 = vpop.f32.mrf.mxu0  ;;  %2866 = vmatmul.msk.bf16.gmra.mxu3 %vm488_vm0, %v1470_v42  ;;  %v1382_v1 = vadd.f32 %v1350_v44, %v1284_v46  ;;  %v2941_v42 = vld [vmem:[%s4811_s7 + $0x8] sm:$0xff] }
 0x117   : > { %v1563_v23 = vadd.f32 %v3835_v30, %v1562_v13  ;;  %v1285_v21 = vadd.f32 %v1253_v49, %v1187_v48  ;;  %2001 = vmatpush.bf16.msra.mxu2 %v2941_v42  ;;  %3074 = vmatpush.bf16.msra.mxu3 %v2941_v42  ;;  %v3118_v42 = vld [vmem:[%s4808_s4] ss:$0 sm:$0xff] }
 0x118   : > { %v1418_v38 = vadd.f32 %v3939_v32, %v1382_v1 }
 0x119   : > { %v1632_v41 = vmax.f32 %v1563_v23, 0.0  ;;  %v1383_v3 = vadd.f32 %v1351_v63, %v1285_v21  ;;  %v2940_v23 = vld [vmem:[%s4811_s7] sm:$0xff] }
 0x11a   : > { %v4274_v47 = vadd.f32 %v4155_v34, %v1418_v38 }
 0x11b   : > { %v1668_v51 = vpack.c.bf16 %v1632_v41, %v1631_v6  ;;  %v1419_v36 = vadd.f32 %v3939_v32, %v1383_v3  ;;  %2002 = vmatpush.bf16.msra.mxu2 %v2940_v23  ;;  %3075 = vmatpush.bf16.msra.mxu3 %v2940_v23 }
 0x11d   : > { %2887 = vmatmul.msk.bf16.gmra.mxu1 %vm1705_vm3, %v1668_v51  ;;  %v4277_v50 = vadd.f32 %v4157_v59, %v1419_v36 }
 0x11e   : > { %v1565_v7 = vpop.f32.mrf.mxu0 }
 0x11f   : > { %v1566_v33 = vadd.f32 %v3835_v30, %v1565_v7  ;;  %v1471_v35 = vpack.c.bf16 %v4277_v50, %v4274_v47 }
 0x121   : > { %2864 = vmatmul.msk.bf16.gmra.mxu0 %vm488_vm0, %v1468_v11  ;;  %v1633_v0 = vmax.f32 %v1566_v33, 0.0 }
 0x126   : > { %v1567_v26 = vpop.f32.mrf.mxu0  ;;  %2867 = vmatmul.msk.bf16.gmra.mxu3 %vm488_vm0, %v1471_v35 }
 0x127   : > { %v1568_v52 = vadd.f32 %v3835_v30, %v1567_v26 }
 0x129   : > { %v1634_v39 = vmax.f32 %v1568_v52, 0.0 }
 0x12b   : > { %v1669_v32 = vpack.c.bf16 %v1634_v39, %v1633_v0 }
 0x12d   : > { %2888 = vmatmul.msk.bf16.gmra.mxu1 %vm1705_vm3, %v1669_v32 }
 0x12e   : > { %v1570_v34 = vpop.f32.mrf.mxu0 }
 0x12f   : > { %v1571_v57 = vadd.f32 %v3835_v30, %v1570_v34 }
 0x131   : > { %v1635_v56 = vmax.f32 %v1571_v57, 0.0 }
 0x136   : > { %v1572_v59 = vpop.f32.mrf.mxu0 }
 0x137   : > { %v1573_v15 = vadd.f32 %v3835_v30, %v1572_v59 }
 0x139   : > { %v1636_v5 = vmax.f32 %v1573_v15, 0.0 }
 0x13b   : > { %v1670_v18 = vpack.c.bf16 %v1636_v5, %v1635_v56 }
 0x13d   : > { %2889 = vmatmul.msk.bf16.gmra.mxu1 %vm1705_vm3, %v1670_v18 }
 0x13e   : > { %v1575_v22 = vpop.f32.mrf.mxu0 }
 0x13f   : > { %v1576_v62 = vadd.f32 %v3835_v30, %v1575_v22 }
 0x141   : > { %v1637_v45 = vmax.f32 %v1576_v62, 0.0 }
 0x142   : > { %v1763_v43 = vpop.f32.mrf.mxu1 }
 0x143   : > { %v1843_v24 = vadd.f32 %v1763_v43, %v3400_v16 }
 0x145   : > { %v1879_v49 = vadd.f32 %v4298_v25, %v1843_v24 }
 0x146   : > { %v1577_v37 = vpop.f32.mrf.mxu0 }
 0x147   : > { %v1578_v31 = vadd.f32 %v3835_v30, %v1577_v37 }
 0x149   : > { %v1638_v54 = vmax.f32 %v1578_v31, 0.0 }
 0x14a   : > { %v1765_v58 = vpop.f32.mrf.mxu1 }
 0x14b   : > { %v1671_v14 = vpack.c.bf16 %v1638_v54, %v1637_v45  ;;  %v1844_v4 = vadd.f32 %v1765_v58, %v3405_v17 }
 0x14d   : > { %2890 = vmatmul.msk.bf16.gmra.mxu1 %vm1705_vm3, %v1671_v14  ;;  %v1880_v16 = vadd.f32 %v4298_v25, %v1844_v4 }
 0x14e   : > { %v1580_v13 = vpop.f32.mrf.mxu0 }
 0x14f   : > { %v1581_v27 = vadd.f32 %v3835_v30, %v1580_v13  ;;  %v1915_v12 = vpack.c.bf16 %v1880_v16, %v1879_v49 }
 0x151   : > { %v1639_v53 = vmax.f32 %v1581_v27, 0.0  ;;  %2908 = vmatmul.msk.bf16.vlgmr.msra.gmra.mxu2 %vm488_vm0, %v1915_v12 }
 0x156   : > { %v1582_v2 = vpop.f32.mrf.mxu0 }
 0x157   : > { %v1583_v48 = vadd.f32 %v3835_v30, %v1582_v2 }
 0x159   : > { %v1640_v6 = vmax.f32 %v1583_v48, 0.0 }
 0x15b   : > { %v1672_v17 = vpack.c.bf16 %v1640_v6, %v1639_v53 }
 0x15d   : > { %2891 = vmatmul.msk.bf16.gmra.mxu1 %vm1705_vm3, %v1672_v17 }
 0x15e   : > { %v1585_v41 = vpop.f32.mrf.mxu0 }
 0x15f   : > { %v1586_v44 = vadd.f32 %v3835_v30, %v1585_v41 }
 0x161   : > { %v1641_v21 = vmax.f32 %v1586_v44, 0.0 }
 0x166   : > { %v1587_v63 = vpop.f32.mrf.mxu0 }
 0x167   : > { %v1588_v46 = vadd.f32 %v3835_v30, %v1587_v63 }
 0x169   : > { %v1642_v51 = vmax.f32 %v1588_v46, 0.0 }
 0x16b   : > { %v1673_v1 = vpack.c.bf16 %v1642_v51, %v1641_v21 }
 0x16d   : > { %2892 = vmatmul.msk.bf16.gmra.mxu1 %vm1705_vm3, %v1673_v1 }
 0x16e   : > { %v1590_v3 = vpop.f32.mrf.mxu0 }
 0x16f   : > { %v1591_v11 = vadd.f32 %v3835_v30, %v1590_v3 }
 0x171   : > { %v1643_v36 = vmax.f32 %v1591_v11, 0.0 }
 0x176   : > { %v1592_v7 = vpop.f32.mrf.mxu0 }
 0x177   : > { %v1593_v38 = vadd.f32 %v3835_v30, %v1592_v7 }
 0x179   : > { %v1644_v33 = vmax.f32 %v1593_v38, 0.0  ;;  %v4853_v38 = vld [vmem:[#allocation5_spill] sm:$0xff] }
 0x17a   : > { %v1768_v26 = vpop.f32.mrf.mxu1 }
 0x17b   : > { %v1674_v35 = vpack.c.bf16 %v1644_v33, %v1643_v36  ;;  %v1845_v0 = vadd.f32 %v1768_v26, %v3575_v55 }
 0x17d   : > { %2893 = vmatmul.msk.bf16.gmra.mxu1 %vm1705_vm3, %v1674_v35  ;;  %v1881_v34 = vadd.f32 %v4298_v25, %v1845_v0 }
 0x17e   : > { %v1595_v52 = vpop.f32.mrf.mxu0 }
 0x17f   : > { %v1596_v57 = vadd.f32 %v3835_v30, %v1595_v52 }
 0x181   : > { %v1645_v18 = vmax.f32 %v1596_v57, 0.0  ;;  %v4854_v57 = vld [vmem:[#allocation6_spill] sm:$0xff] }
 0x182   : > { %v1770_v39 = vpop.f32.mrf.mxu1 }
 0x183   : > { %v1846_v32 = vadd.f32 %v1770_v39, %v3579_v8 }
 0x185   : > { %v1882_v59 = vadd.f32 %v4298_v25, %v1846_v32 }
 0x186   : > { %v1597_v15 = vpop.f32.mrf.mxu0 }
 0x187   : > { %v1598_v56 = vadd.f32 %v3835_v30, %v1597_v15  ;;  %v1916_v5 = vpack.c.bf16 %v1882_v59, %v1881_v34 }
 0x189   : > { %v1646_v22 = vmax.f32 %v1598_v56, 0.0  ;;  %2909 = vmatmul.msk.bf16.gmra.mxu2 %vm488_vm0, %v1916_v5  ;;  %v1610_v49 = vpop.f32.mrf.mxu3 }
 0x18a   : > { %v1773_v62 = vpop.f32.mrf.mxu1  ;;  %v1611_v11 = vadd.f32 %v3118_v42, %v1610_v49 }
 0x18b   : > { %v1675_v37 = vpack.c.bf16 %v1646_v22, %v1645_v18  ;;  %v1847_v8 = vadd.f32 %v1773_v62, %v3618_v40  ;;  %v4855_v18 = vld [vmem:[#allocation7_spill] sm:$0xff] }
 0x18c   : > { %v1651_v35 = vmax.f32 %v1611_v11, 0.0 }
 0x18d   : > { %2894 = vmatmul.msk.bf16.gmra.mxu1 %vm1705_vm3, %v1675_v37  ;;  %v1883_v54 = vadd.f32 %v4298_v25, %v1847_v8 }
 0x18e   : > { %v1600_v55 = vpop.f32.mrf.mxu0 }
 0x18f   : > { %v1601_v43 = vadd.f32 %v3835_v30, %v1600_v55 }
 0x191   : > { %v1647_v4 = vmax.f32 %v1601_v43, 0.0  ;;  %v1612_v44 = vpop.f32.mrf.mxu3 }
 0x192   : > { %v1775_v31 = vpop.f32.mrf.mxu1  ;;  %v1613_v7 = vadd.f32 %v3118_v42, %v1612_v44 }
 0x193   : > { %v1848_v45 = vadd.f32 %v1775_v31, %v3621_v29 }
 0x194   : > { %v1652_v52 = vmax.f32 %v1613_v7, 0.0 }
 0x195   : > { %v1884_v14 = vadd.f32 %v4298_v25, %v1848_v45 }
 0x196   : > { %v1602_v13 = vpop.f32.mrf.mxu0  ;;  %v1678_v32 = vpack.c.bf16 %v1652_v52, %v1651_v35 }
 0x197   : > { %v1603_v24 = vadd.f32 %v3118_v42, %v1602_v13  ;;  %v1917_v58 = vpack.c.bf16 %v1884_v14, %v1883_v54  ;;  %v4856_v13 = vld [vmem:[#allocation8_spill] sm:$0xff] }
 0x199   : > { %v1648_v23 = vmax.f32 %v1603_v24, 0.0  ;;  %2910 = vmatmul.msk.bf16.gmra.mxu2 %vm488_vm0, %v1917_v58  ;;  %v1615_v3 = vpop.f32.mrf.mxu3 }
 0x19a   : > { %v1778_v40 = vpop.f32.mrf.mxu1  ;;  %v1616_v56 = vadd.f32 %v3118_v42, %v1615_v3 }
 0x19b   : > { %v1676_v27 = vpack.c.bf16 %v1648_v23, %v1647_v4  ;;  %v1849_v30 = vadd.f32 %v1778_v40, %v3663_v19  ;;  %v4852_v19 = vld [vmem:[#allocation4_spill] sm:$0xff]  ;;  %v4857_v40 = vld [vmem:[#allocation9_spill] sm:$0xff] }
 0x19c   : > { %v1653_v8 = vmax.f32 %v1616_v56, 0.0 }
 0x19d   : > { %2895 = vmatmul.msk.bf16.gmra.mxu1 %vm1705_vm3, %v1676_v27  ;;  %v1885_v48 = vadd.f32 %v4298_v25, %v1849_v30 }
 0x19e   : > { %v1605_v29 = vpop.f32.mrf.mxu0 }
 0x19f   : > { %v1606_v12 = vadd.f32 %v3118_v42, %v1605_v29 }
 0x1a1   : > { %v1649_v63 = vmax.f32 %v1606_v12, 0.0  ;;  %v1617_v34 = vpop.f32.mrf.mxu3 }
 0x1a2   : > { %v1780_v16 = vpop.f32.mrf.mxu1  ;;  %v1618_v5 = vadd.f32 %v3118_v42, %v1617_v34  ;;  %v4862_v34 = vld [vmem:[#allocation14_spill] sm:$0xff] }
 0x1a3   : > { %v1850_v2 = vadd.f32 %v1780_v16, %v3666_v28 }
 0x1a4   : > { %v1654_v31 = vmax.f32 %v1618_v5, 0.0 }
 0x1a5   : > { %v1886_v53 = vadd.f32 %v4298_v25, %v1850_v2 }
 0x1a6   : > { %v1607_v6 = vpop.f32.mrf.mxu0  ;;  %v1679_v43 = vpack.c.bf16 %v1654_v31, %v1653_v8  ;;  %v3119_v8 = vld [vmem:[#allocation3 + $0x7] sm:$0xff] }
 0x1a7   : > { %v1608_v17 = vadd.f32 %v3118_v42, %v1607_v6  ;;  %v1918_v41 = vpack.c.bf16 %v1886_v53, %v1885_v48  ;;  %v4360_v53 = vld [vmem:[%s4812_s8] ss:$0 sm:$0xff] }
 0x1a9   : > { %v1650_v46 = vmax.f32 %v1608_v17, 0.0  ;;  %2911 = vmatmul.msk.bf16.gmra.mxu2 %vm488_vm0, %v1918_v41  ;;  %v1620_v55 = vpop.f32.mrf.mxu3  ;;  %v4858_v41 = vld [vmem:[#allocation10_spill] sm:$0xff] }
 0x1aa   : > { %v1783_v21 = vpop.f32.mrf.mxu1  ;;  %v1621_v4 = vadd.f32 %v3118_v42, %v1620_v55 }
 0x1ab   : > { %v1677_v51 = vpack.c.bf16 %v1650_v46, %v1649_v63  ;;  %v1851_v1 = vadd.f32 %v1783_v21, %v4852_v19  ;;  %v4859_v46 = vld [vmem:[#allocation11_spill] sm:$0xff] }
 0x1ac   : > { %v1655_v30 = vmax.f32 %v1621_v4, 0.0  ;;  %v4402_v4 = vld [vmem:[%s4813_s9 + $0x2] ss:$0 sm:$0xff] }
 0x1ad   : > { %2896 = vmatmul.msk.bf16.vlgmr.msrb.gmra.mxu3 %vm1705_vm3, %v1677_v51  ;;  %v1887_v33 = vadd.f32 %v4298_v25, %v1851_v1 }
 0x1b1   : > { %v1622_v14 = vpop.f32.mrf.mxu3 }
 0x1b2   : > { %v1785_v28 = vpop.f32.mrf.mxu1  ;;  %v1623_v23 = vadd.f32 %v3118_v42, %v1622_v14 }
 0x1b3   : > { %v1852_v36 = vadd.f32 %v1785_v28, %v4853_v38  ;;  %v4860_v38 = vld [vmem:[#allocation12_spill] sm:$0xff] }
 0x1b4   : > { %v1656_v16 = vmax.f32 %v1623_v23, 0.0  ;;  %v2307_v23 = vld [vmem:[#allocation3 + $0x9] sm:$0xff] }
 0x1b5   : > { %v1888_v26 = vadd.f32 %v4298_v25, %v1852_v36 }
 0x1b6   : > { %v1680_v12 = vpack.c.bf16 %v1656_v16, %v1655_v30  ;;  %v4864_v30 = vld [vmem:[#allocation16_spill] sm:$0xff] }
 0x1b7   : > { %v1919_v0 = vpack.c.bf16 %v1888_v26, %v1887_v33  ;;  %v4861_v26 = vld [vmem:[#allocation13_spill] sm:$0xff] }
 0x1b9   : > { %2912 = vmatmul.msk.bf16.gmra.mxu2 %vm488_vm0, %v1919_v0 }
 0x1ba   : > { %v1788_v39 = vpop.f32.mrf.mxu1 }
 0x1bb   : > { %v1853_v59 = vadd.f32 %v1788_v39, %v4854_v57 }
 0x1bd   : > { %2897 = vmatmul.msk.bf16.gmra.mxu3 %vm1705_vm3, %v1678_v32  ;;  %v1889_v62 = vadd.f32 %v4298_v25, %v1853_v59 }
 0x1c2   : > { %v1790_v15 = vpop.f32.mrf.mxu1 }
 0x1c3   : > { %v1854_v22 = vadd.f32 %v1790_v15, %v4855_v18  ;;  %v4863_v15 = vld [vmem:[#allocation15_spill] sm:$0xff] }
 0x1c5   : > { %v1890_v37 = vadd.f32 %v4298_v25, %v1854_v22  ;;  %v4382_v22 = vld [vmem:[%s4813_s9 + $0x5] ss:$0 sm:$0xff] }
 0x1c7   : > { %v1920_v45 = vpack.c.bf16 %v1890_v37, %v1889_v62  ;;  %v4387_v62 = vld [vmem:[%s4813_s9] ss:$0 sm:$0xff] }
 0x1c8   : > { %v2225_v31 = vmul.f32 %v3119_v8, %v4387_v62 }
 0x1c9   : > { %2913 = vmatmul.msk.bf16.gmra.mxu2 %vm488_vm0, %v1920_v45  ;;  %v4395_v45 = vld [vmem:[%s4813_s9 + $0x1] ss:$0 sm:$0xff] }
 0x1ca   : > { %v1793_v54 = vpop.f32.mrf.mxu1 }
 0x1cb   : > { %v1855_v24 = vadd.f32 %v1793_v54, %v4856_v13 }
 0x1cd   : > { %2898 = vmatmul.msk.bf16.gmra.mxu3 %vm1705_vm3, %v1679_v43  ;;  %v1891_v29 = vadd.f32 %v4298_v25, %v1855_v24  ;;  %v2257_v43 = vld [vmem:[#allocation3 + $0x8] sm:$0xff] }
 0x1d2   : > { %v1795_v58 = vpop.f32.mrf.mxu1 }
 0x1d3   : > { %v1856_v27 = vadd.f32 %v1795_v58, %v4857_v40  ;;  %v2275_v58 = vmul.f32 %v4395_v45, %v2257_v43 }
 0x1d4   : > { %v2004_v6 = vpop.f32.mrf.mxu2 }
 0x1d5   : > { %v1892_v49 = vadd.f32 %v4298_v25, %v1856_v27  ;;  %v2005_v42 = vadd.f32 %v4360_v53, %v2004_v6 }
 0x1d7   : > { %v1921_v2 = vpack.c.bf16 %v1892_v49, %v1891_v29  ;;  %v2084_v17 = vmax.f32 %v2005_v42, 0.0  ;;  %v2258_v29 = vld [vmem:[#allocation3 + $0x10] sm:$0xff]  ;;  %v4410_v49 = vld [vmem:[%s4813_s9 + $0x4] ss:$0 sm:$0xff] }
 0x1d9   : > { %2914 = vmatmul.msk.bf16.gmra.mxu2 %vm488_vm0, %v1921_v2  ;;  %2156 = vst [vmem:[#allocation3 + $0x28] sm:$0xff] %v2084_v17  ;;  %v2191_v55 = vmul.f32 %v4382_v22, %v2084_v17  ;;  %v2276_v17 = vmul.f32 %v4395_v45, %v2258_v29 }
 0x1da   : > { %v1798_v48 = vpop.f32.mrf.mxu1 }
 0x1db   : > { %v1857_v44 = vadd.f32 %v1798_v48, %v4858_v41  ;;  %v2241_v24 = vadd.f32 %v2225_v31, %v2191_v55  ;;  %v2325_v48 = vmul.f32 %v4402_v4, %v2307_v23  ;;  %v2308_v41 = vld [vmem:[#allocation3 + $0x11] sm:$0xff] }
 0x1dc   : > { %v2006_v51 = vpop.f32.mrf.mxu2 }
 0x1dd   : > { %2899 = vmatmul.msk.bf16.gmra.mxu3 %vm1705_vm3, %v1680_v12  ;;  %v1893_v19 = vadd.f32 %v4298_v25, %v1857_v44  ;;  %v2007_v28 = vadd.f32 %v4360_v53, %v2006_v51  ;;  %v2291_v2 = vadd.f32 %v2275_v58, %v2241_v24  ;;  %v4419_v44 = vld [vmem:[%s4813_s9 + $0x6] ss:$0 sm:$0xff] }
 0x1df   : > { %v2085_v11 = vmax.f32 %v2007_v28, 0.0  ;;  %v4427_v28 = vld [vmem:[%s4813_s9 + $0x8] ss:$0 sm:$0xff] }
 0x1e0   : > { %v2357_v12 = vld [vmem:[#allocation3 + $0x27] sm:$0xff] }
 0x1e1   : > { %2157 = vst [vmem:[#allocation3 + $0x30] sm:$0xff] %v2085_v11  ;;  %v2192_v40 = vmul.f32 %v4382_v22, %v2085_v11 }
 0x1e2   : > { %v1800_v63 = vpop.f32.mrf.mxu1 }
 0x1e3   : > { %v1858_v21 = vadd.f32 %v1800_v63, %v4859_v46  ;;  %v2242_v42 = vadd.f32 %v2225_v31, %v2192_v40  ;;  %v4865_v63 = vld [vmem:[#allocation17_spill] sm:$0xff]  ;;  %v4866_v40 = vld [vmem:[#allocation18_spill] sm:$0xff] }
 0x1e4   : > { %v4447_v31 = vld [vmem:[%s4813_s9 + $0xa] ss:$0 sm:$0xff] }
 0x1e5   : > { %v1894_v1 = vadd.f32 %v4298_v25, %v1858_v21 }
 0x1e7   : > { %v1922_v3 = vpack.c.bf16 %v1894_v1, %v1893_v19  ;;  %v2375_v19 = vmul.f32 %v4410_v49, %v2357_v12  ;;  %v4459_v12 = vld [vmem:[%s4814_s10] ss:$0 sm:$0xff] }
 0x1e8   : > { %v2407_v21 = vld [vmem:[#allocation3 + $0x29] sm:$0xff] }
 0x1e9   : > { %2915 = vmatmul.msk.bf16.gmra.mxu2 %vm488_vm0, %v1922_v3 }
 0x1ea   : > { %v1803_v7 = vpop.f32.mrf.mxu1 }
 0x1eb   : > { %v1859_v36 = vadd.f32 %v1803_v7, %v4860_v38  ;;  %v2341_v7 = vadd.f32 %v2325_v48, %v2291_v2  ;;  %v2326_v38 = vmul.f32 %v4402_v4, %v2308_v41 }
 0x1ed   : > { %v1895_v52 = vadd.f32 %v4298_v25, %v1859_v36  ;;  %v2358_v36 = vld [vmem:[#allocation3 + $0x2f] sm:$0xff] }
 0x1f2   : > { %v1805_v33 = vpop.f32.mrf.mxu1 }
 0x1f3   : > { %v1860_v35 = vadd.f32 %v1805_v33, %v4861_v26  ;;  %v2292_v33 = vadd.f32 %v2276_v17, %v2242_v42  ;;  %v2425_v26 = vmul.f32 %v4419_v44, %v2407_v21  ;;  %v4867_v21 = vld [vmem:[#allocation19_spill] sm:$0xff] }
 0x1f5   : > { %v1896_v0 = vadd.f32 %v4298_v25, %v1860_v35 }
 0x1f7   : > { %v1923_v39 = vpack.c.bf16 %v1896_v0, %v1895_v52 }
 0x1f9   : > { %2916 = vmatmul.msk.bf16.gmra.mxu2 %vm488_vm0, %v1923_v39  ;;  %v2391_v39 = vadd.f32 %v2375_v19, %v2341_v7 }
 0x1fa   : > { %v1808_v32 = vpop.f32.mrf.mxu1 }
 0x1fb   : > { %v1861_v57 = vadd.f32 %v1808_v32, %v4862_v34  ;;  %v2376_v32 = vmul.f32 %v4410_v49, %v2358_v36 }
 0x1fd   : > { %v1897_v5 = vadd.f32 %v4298_v25, %v1861_v57 }
 0x202   : > { %v1810_v59 = vpop.f32.mrf.mxu1 }
 0x203   : > { %v1862_v56 = vadd.f32 %v1810_v59, %v4863_v15  ;;  %v2342_v59 = vadd.f32 %v2326_v38, %v2292_v33  ;;  %v2441_v15 = vadd.f32 %v2425_v26, %v2391_v39 }
 0x205   : > { %v1898_v18 = vadd.f32 %v4298_v25, %v1862_v56  ;;  %v4442_v56 = vld [vmem:[%s4813_s9 + $0x9] ss:$0 sm:$0xff]  ;;  %v2392_v55 = vadd.f32 %v2376_v32, %v2342_v59 }
 0x207   : > { %v1924_v37 = vpack.c.bf16 %v1898_v18, %v1897_v5  ;;  %v2408_v5 = vld [vmem:[#allocation3 + $0x31] sm:$0xff]  ;;  %v2677_v18 = vlaneseq }
 0x208   : > { %v2426_v43 = vmul.f32 %v4419_v44, %v2408_v5 }
 0x209   : > { %2917 = vmatmul.msk.bf16.gmra.mxu2 %vm488_vm0, %v1924_v37  ;;  %v2678_v23 = vshrl.u32 %v2677_v18, 7 }
 0x20a   : > { %v1813_v54 = vpop.f32.mrf.mxu1 }
 0x20b   : > { %v1863_v16 = vadd.f32 %v1813_v54, %v4864_v30  ;;  %v2442_v30 = vadd.f32 %v2426_v43, %v2392_v55  ;;  %v2679_v42 = vadd.s32 8, %v2678_v23  ;;  %v2684_v36 = vand.u32 1, %v2678_v23 }
 0x20c   : > { %v2009_v14 = vpop.f32.mrf.mxu2 }
 0x20d   : > { %v2010_v13 = vadd.f32 %v4360_v53, %v2009_v14  ;;  %v1899_v1 = vadd.f32 %v4298_v25, %v1863_v16  ;;  %v2691_v33 = vand.u32 1, %v2679_v42  ;;  %vm4472_vm4 = vcmp.eq.s32.totalorder %v2684_v36, 0 }
 0x20f   : > { %v4405_v27 = vmax.f32 %v2010_v13, 0.0  ;;  %vm4476_vm5 = vcmp.eq.s32.totalorder %v2691_v33, 0 }
 0x211   : > { %2158 = vst [vmem:[#allocation3 + $0x48] sm:$0xff] %v4405_v27  ;;  %v2527_v14 = vmul.f32 %v4442_v56, %v4405_v27 }
 0x212   : > { %v1815_v6 = vpop.f32.mrf.mxu1 }
 0x213   : > { %v1864_v46 = vadd.f32 %v1815_v6, %v4865_v63 }
 0x214   : > { %v2011_v51 = vpop.f32.mrf.mxu2 }
 0x215   : > { %v1900_v3 = vadd.f32 %v4298_v25, %v1864_v46  ;;  %v2012_v11 = vadd.f32 %v4360_v53, %v2011_v51 }
 0x217   : > { %v4433_v35 = vmax.f32 %v2012_v11, 0.0  ;;  %v1925_v52 = vpack.c.bf16 %v1900_v3, %v1899_v1 }
 0x218   : > { %v2458_v0 = vld [vmem:[#allocation3 + $0x47] sm:$0xff] }
 0x219   : > { %v2477_v34 = vmul.f32 %v4427_v28, %v2458_v0  ;;  %2159 = vst [vmem:[#allocation3 + $0x50] sm:$0xff] %v4433_v35  ;;  %2918 = vmatmul.msk.bf16.gmra.mxu2 %vm488_vm0, %v1925_v52  ;;  %v2528_v63 = vmul.f32 %v4442_v56, %v4433_v35 }
 0x21a   : > { %v1818_v57 = vpop.f32.mrf.mxu1 }
 0x21b   : > { %v2493_v8 = vadd.f32 %v2477_v34, %v2441_v15  ;;  %v1865_v29 = vadd.f32 %v1818_v57, %v4866_v40 }
 0x21c   : > { %v2014_v37 = vpop.f32.mrf.mxu2 }
 0x21d   : > { %v2015_v54 = vadd.f32 %v4360_v53, %v2014_v37  ;;  %v2543_v16 = vadd.f32 %v2527_v14, %v2493_v8  ;;  %v1901_v19 = vadd.f32 %v4298_v25, %v1865_v29  ;;  %v2227_v37 = vmul.f32 %v4387_v62, %v2458_v0 }
 0x21e   : > { %v2277_v0 = vmul.f32 %v4395_v45, %v4405_v27 }
 0x21f   : > { %v2088_v13 = vmax.f32 %v2015_v54, 0.0 }
 0x220   : > { %v2459_v24 = vld [vmem:[#allocation3 + $0x4f] sm:$0xff] }
 0x221   : > { %v2559_v58 = vld [vmem:[#allocation3 + $0x49] sm:$0xff]  ;;  %v2478_v2 = vmul.f32 %v4427_v28, %v2459_v24  ;;  %2160 = vst [vmem:[#allocation3 + $0x68] sm:$0xff] %v2088_v13  ;;  %v2560_v6 = vld [vmem:[#allocation3 + $0x51] sm:$0xff]  ;;  %v2193_v5 = vmul.f32 %v4382_v22, %v2088_v13 }
 0x222   : > { %v2577_v48 = vmul.f32 %v4447_v31, %v2559_v58  ;;  %v1820_v17 = vpop.f32.mrf.mxu1  ;;  %v2578_v11 = vmul.f32 %v4447_v31, %v2560_v6 }
 0x223   : > { %v2494_v41 = vadd.f32 %v2478_v2, %v2442_v30  ;;  %v1866_v51 = vadd.f32 %v1820_v17, %v4867_v21  ;;  %v2243_v23 = vadd.f32 %v2227_v37, %v2193_v5  ;;  %v2327_v17 = vmul.f32 %v4402_v4, %v2559_v58 }
 0x224   : > { %v2593_v46 = vadd.f32 %v2577_v48, %v2543_v16  ;;  %v2016_v1 = vpop.f32.mrf.mxu2  ;;  %v2228_v16 = vmul.f32 %v4387_v62, %v2459_v24  ;;  %v2278_v21 = vmul.f32 %v4395_v45, %v4433_v35  ;;  %v2328_v58 = vmul.f32 %v4402_v4, %v2560_v6 }
 0x225   : > { %v2544_v3 = vadd.f32 %v2528_v63, %v2494_v41  ;;  %v1902_v38 = vadd.f32 %v4298_v25, %v1866_v51  ;;  %v2017_v26 = vadd.f32 %v4360_v53, %v2016_v1  ;;  %v2293_v2 = vadd.f32 %v2277_v0, %v2243_v23 }
 0x226   : > { %v2613_v7 = vadd.f32 %v4459_v12, %v2593_v46 }
 0x227   : > { %v2594_v52 = vadd.f32 %v2578_v11, %v2544_v3  ;;  %v1926_v39 = vpack.c.bf16 %v1902_v38, %v1901_v19  ;;  %v2089_v32 = vmax.f32 %v2017_v26, 0.0  ;;  %v2343_v27 = vadd.f32 %v2327_v17, %v2293_v2 }
 0x228   : > { %v2629_v57 = vmax.f32 %v2613_v7, 0.0  ;;  %v2359_v48 = vld [vmem:[#allocation3 + $0x67] sm:$0xff] }
 0x229   : > { %v2614_v34 = vadd.f32 %v4459_v12, %v2594_v52  ;;  %2919 = vmatmul.msk.bf16.gmra.mxu2 %vm488_vm0, %v1926_v39  ;;  %2161 = vst [vmem:[#allocation3 + $0x70] sm:$0xff] %v2089_v32  ;;  %v2194_v40 = vmul.f32 %v4382_v22, %v2089_v32  ;;  %v2377_v46 = vmul.f32 %v4410_v49, %v2359_v48 }
 0x22a   : > { %v2710_v54 = vsel %vm4472_vm4, %v2629_v57, 0.0 }
 0x22b   : > { %v2630_v18 = vmax.f32 %v2614_v34, 0.0  ;;  %v2244_v42 = vadd.f32 %v2228_v16, %v2194_v40  ;;  %v2393_v36 = vadd.f32 %v2377_v46, %v2343_v27 }
 0x22c   : > { %v2019_v55 = vpop.f32.mrf.mxu2 }
 0x22d   : > { %v3009_v8 = vpack.c.bf16 %v2630_v18, %v2629_v57  ;;  %v2711_v43 = vsel %vm4476_vm5, %v2630_v18, 0.0  ;;  %v2020_v14 = vadd.f32 %v4360_v53, %v2019_v55  ;;  %v2294_v1 = vadd.f32 %v2278_v21, %v2244_v42 }
 0x22e   : > { %v4492_v13 = vadd.f32 %v2711_v43, %v2710_v54 }
 0x22f   : > { %3010 = vst [vmem:[%s4484_s18] sm:$0xff] %v3009_v8   ;;  %v4496_v29 = vmax.f32 %v2020_v14, 0.0  ;;  %v2344_v52 = vadd.f32 %v2328_v58, %v2294_v1 }
 0x230   : > { %v1823_v30 = vpop.f32.mrf.mxu3  ;;  %v2409_v41 = vld [vmem:[#allocation3 + $0x69] sm:$0xff]  ;;  %v2410_v34 = vld [vmem:[#allocation3 + $0x71] sm:$0xff] }
 0x231   : > { %2162 = vst [vmem:[#allocation3 + $0x88] sm:$0xff] %v4496_v29  ;;  %v2360_v19 = vld [vmem:[#allocation3 + $0x6f] sm:$0xff]  ;;  %v2427_v24 = vmul.f32 %v4419_v44, %v2409_v41  ;;  %v1867_v3 = vadd.f32 %v1823_v30, %v4259_v60  ;;  %v2428_v55 = vmul.f32 %v4419_v44, %v2410_v34  ;;  %v2529_v8 = vmul.f32 %v4442_v56, %v4496_v29 }
 0x232   : > { %v2378_v33 = vmul.f32 %v4410_v49, %v2360_v19 }
 0x233   : > { %v2443_v39 = vadd.f32 %v2427_v24, %v2393_v36  ;;  %v1903_v32 = vadd.f32 %v4298_v25, %v1867_v3 }
 0x234   : > { %v2021_v63 = vpop.f32.mrf.mxu2  ;;  %v2394_v6 = vadd.f32 %v2378_v33, %v2344_v52  ;;  %v4872_v33 = vld [vmem:[#allocation20_spill] sm:$0xff] }
 0x235   : > { %v2022_v51 = vadd.f32 %v4360_v53, %v2021_v63 }
 0x236   : > { %v2444_v23 = vadd.f32 %v2428_v55, %v2394_v6 }
 0x237   : > { %v4509_v11 = vmax.f32 %v2022_v51, 0.0 }
 0x238   : > { %v2460_v7 = vld [vmem:[#allocation3 + $0x87] sm:$0xff]  ;;  %v1825_v38 = vpop.f32.mrf.mxu3 }
 0x239   : > { %v2479_v35 = vmul.f32 %v4427_v28, %v2460_v7  ;;  %2163 = vst [vmem:[#allocation3 + $0x90] sm:$0xff] %v4509_v11  ;;  %v1868_v26 = vadd.f32 %v1825_v38, %v4262_v61  ;;  %v2530_v48 = vmul.f32 %v4442_v56, %v4509_v11  ;;  %v2229_v52 = vmul.f32 %v4387_v62, %v2460_v7 }
 0x23a   : > { %v2279_v7 = vmul.f32 %v4395_v45, %v4496_v29 }
 0x23b   : > { %v1904_v60 = vadd.f32 %v4298_v25, %v1868_v26  ;;  %v2495_v5 = vadd.f32 %v2479_v35, %v2443_v39 }
 0x23c   : > { %v2024_v57 = vpop.f32.mrf.mxu2 }
 0x23d   : > { %v1927_v18 = vpack.c.bf16 %v1904_v60, %v1903_v32  ;;  %v2025_v37 = vadd.f32 %v4360_v53, %v2024_v57  ;;  %v2545_v40 = vadd.f32 %v2529_v8, %v2495_v5 }
 0x23f   : > { %v2092_v54 = vmax.f32 %v2025_v37, 0.0  ;;  %2920 = vmatmul.msk.bf16.gmra.mxu2 %vm488_vm0, %v1927_v18 }
 0x240   : > { %v2461_v61 = vld [vmem:[#allocation3 + $0x8f] sm:$0xff]  ;;  %v1828_v14 = vpop.f32.mrf.mxu3 }
 0x241   : > { %v2561_v43 = vld [vmem:[#allocation3 + $0x89] sm:$0xff]  ;;  %v2480_v0 = vmul.f32 %v4427_v28, %v2461_v61  ;;  %2164 = vst [vmem:[#allocation3 + $0xa8] sm:$0xff] %v2092_v54  ;;  %v2562_v16 = vld [vmem:[#allocation3 + $0x91] sm:$0xff]  ;;  %v1869_v1 = vadd.f32 %v1828_v14, %v4194_v20  ;;  %v2195_v36 = vmul.f32 %v4382_v22, %v2092_v54  ;;  %v2230_v8 = vmul.f32 %v4387_v62, %v2461_v61 }
 0x242   : > { %v2579_v30 = vmul.f32 %v4447_v31, %v2561_v43  ;;  %v2580_v63 = vmul.f32 %v4447_v31, %v2562_v16 }
 0x243   : > { %v2496_v2 = vadd.f32 %v2480_v0, %v2444_v23  ;;  %v1905_v39 = vadd.f32 %v4298_v25, %v1869_v1 }
 0x244   : > { %v2595_v42 = vadd.f32 %v2579_v30, %v2545_v40  ;;  %v2026_v17 = vpop.f32.mrf.mxu2  ;;  %v2329_v40 = vmul.f32 %v4402_v4, %v2561_v43  ;;  %v2330_v43 = vmul.f32 %v4402_v4, %v2562_v16 }
 0x245   : > { %v2546_v41 = vadd.f32 %v2530_v48, %v2496_v2  ;;  %v2027_v21 = vadd.f32 %v4360_v53, %v2026_v17  ;;  %v2280_v48 = vmul.f32 %v4395_v45, %v4509_v11 }
 0x246   : > { %v2615_v46 = vadd.f32 %v4459_v12, %v2595_v42 }
 0x247   : > { %v2596_v51 = vadd.f32 %v2580_v63, %v2546_v41  ;;  %v2093_v19 = vmax.f32 %v2027_v21, 0.0 }
 0x248   : > { %v2631_v27 = vmax.f32 %v2615_v46, 0.0  ;;  %v1830_v24 = vpop.f32.mrf.mxu3  ;;  %v2361_v14 = vld [vmem:[#allocation3 + $0xa7] sm:$0xff] }
 0x249   : > { %v2616_v3 = vadd.f32 %v4459_v12, %v2596_v51  ;;  %2165 = vst [vmem:[#allocation3 + $0xb0] sm:$0xff] %v2093_v19  ;;  %v1870_v35 = vadd.f32 %v1830_v24, %v4872_v33  ;;  %v2196_v18 = vmul.f32 %v4382_v22, %v2093_v19  ;;  %v2379_v2 = vmul.f32 %v4410_v49, %v2361_v14 }
 0x24a   : > { %v2712_v58 = vsel %vm4472_vm4, %v2631_v27, 0.0 }
 0x24b   : > { %v2727_v38 = vadd.f32 %v4492_v13, %v2712_v58  ;;  %v2632_v26 = vmax.f32 %v2616_v3, 0.0  ;;  %v1906_v20 = vadd.f32 %v4298_v25, %v1870_v35  ;;  %v2245_v13 = vadd.f32 %v2229_v52, %v2195_v36 }
 0x24c   : > { %v2029_v32 = vpop.f32.mrf.mxu2  ;;  %v2246_v23 = vadd.f32 %v2230_v8, %v2196_v18 }
 0x24d   : > { %v3014_v60 = vpack.c.bf16 %v2632_v26, %v2631_v27  ;;  %v2713_v34 = vsel %vm4476_vm5, %v2632_v26, 0.0  ;;  %v2030_v57 = vadd.f32 %v4360_v53, %v2029_v32  ;;  %v1928_v5 = vpack.c.bf16 %v1906_v20, %v1905_v39 }
 0x24e   : > { %v4543_v6 = vadd.f32 %v2727_v38, %v2713_v34  ;;  %v2295_v54 = vadd.f32 %v2279_v7, %v2245_v13  ;;  %v2296_v41 = vadd.f32 %v2280_v48, %v2246_v23 }
 0x24f   : > { %3061 = vst [vmem:[%s4484_s18 + $0x8] sm:$0xff] %v3014_v60   ;;  %v4547_v37 = vmax.f32 %v2030_v57, 0.0  ;;  %2921 = vmatmul.msk.bf16.vlgmr.msra.gmra.mxu3 %vm488_vm0, %v1928_v5 }
 0x250   : > { %v1833_v55 = vpop.f32.mrf.mxu3  ;;  %v2411_v0 = vld [vmem:[#allocation3 + $0xa9] sm:$0xff]  ;;  %v2345_v42 = vadd.f32 %v2329_v40, %v2295_v54  ;;  %v2346_v24 = vadd.f32 %v2330_v43, %v2296_v41  ;;  %v2412_v38 = vld [vmem:[#allocation3 + $0xb1] sm:$0xff] }
 0x251   : > { %2166 = vst [vmem:[#allocation3 + $0xc8] sm:$0xff] %v4547_v37  ;;  %v2362_v17 = vld [vmem:[#allocation3 + $0xaf] sm:$0xff]  ;;  %v2429_v61 = vmul.f32 %v4419_v44, %v2411_v0  ;;  %v1871_v63 = vadd.f32 %v1833_v55, %v4241_v9  ;;  %v2430_v52 = vmul.f32 %v4419_v44, %v2412_v38  ;;  %v2531_v39 = vmul.f32 %v4442_v56, %v4547_v37 }
 0x252   : > { %v2395_v27 = vadd.f32 %v2379_v2, %v2345_v42  ;;  %v2380_v19 = vmul.f32 %v4410_v49, %v2362_v17 }
 0x253   : > { %v1907_v58 = vadd.f32 %v4298_v25, %v1871_v63 }
 0x254   : > { %v2031_v30 = vpop.f32.mrf.mxu2  ;;  %v2445_v3 = vadd.f32 %v2429_v61, %v2395_v27  ;;  %v2396_v16 = vadd.f32 %v2380_v19, %v2346_v24 }
 0x255   : > { %v2032_v29 = vadd.f32 %v4360_v53, %v2031_v30 }
 0x256   : > { %v2446_v34 = vadd.f32 %v2430_v52, %v2396_v16 }
 0x257   : > { %v4561_v46 = vmax.f32 %v2032_v29, 0.0 }
 0x258   : > { %v2462_v21 = vld [vmem:[#allocation3 + $0xc7] sm:$0xff]  ;;  %v1835_v51 = vpop.f32.mrf.mxu3 }
 0x259   : > { %v2481_v11 = vmul.f32 %v4427_v28, %v2462_v21  ;;  %2167 = vst [vmem:[#allocation3 + $0xd0] sm:$0xff] %v4561_v46  ;;  %v1872_v1 = vadd.f32 %v1835_v51, %v4244_v10  ;;  %v2532_v55 = vmul.f32 %v4442_v56, %v4561_v46  ;;  %v2231_v24 = vmul.f32 %v4387_v62, %v2462_v21 }
 0x25b   : > { %v1908_v9 = vadd.f32 %v4298_v25, %v1872_v1  ;;  %v2497_v33 = vadd.f32 %v2481_v11, %v2445_v3 }
 0x25c   : > { %v2034_v36 = vpop.f32.mrf.mxu2 }
 0x25d   : > { %v2035_v35 = vadd.f32 %v4360_v53, %v2034_v36  ;;  %v1929_v26 = vpack.c.bf16 %v1908_v9, %v1907_v58  ;;  %v2547_v57 = vadd.f32 %v2531_v39, %v2497_v33 }
 0x25f   : > { %v2096_v20 = vmax.f32 %v2035_v35, 0.0  ;;  %2922 = vmatmul.msk.bf16.gmra.mxu3 %vm488_vm0, %v1929_v26 }
 0x260   : > { %v2463_v10 = vld [vmem:[#allocation3 + $0xcf] sm:$0xff]  ;;  %v1838_v60 = vpop.f32.mrf.mxu3 }
 0x261   : > { %v2563_v32 = vld [vmem:[#allocation3 + $0xc9] sm:$0xff]  ;;  %v2482_v13 = vmul.f32 %v4427_v28, %v2463_v10  ;;  %2168 = vst [vmem:[#allocation3 + $0xe8] sm:$0xff] %v2096_v20  ;;  %v2564_v18 = vld [vmem:[#allocation3 + $0xd1] sm:$0xff]  ;;  %v1873_v29 = vadd.f32 %v1838_v60, %v4274_v47  ;;  %v2197_v51 = vmul.f32 %v4382_v22, %v2096_v20  ;;  %v2232_v36 = vmul.f32 %v4387_v62, %v2463_v10 }
 0x262   : > { %v2581_v5 = vmul.f32 %v4447_v31, %v2563_v32  ;;  %v2582_v23 = vmul.f32 %v4447_v31, %v2564_v18  ;;  %v2331_v52 = vmul.f32 %v4402_v4, %v2563_v32  ;;  %v2282_v20 = vmul.f32 %v4395_v45, %v4561_v46 }
 0x263   : > { %v2498_v7 = vadd.f32 %v2482_v13, %v2446_v34  ;;  %v1909_v27 = vadd.f32 %v4298_v25, %v1873_v29 }
 0x264   : > { %v2597_v8 = vadd.f32 %v2581_v5, %v2547_v57  ;;  %v2036_v54 = vpop.f32.mrf.mxu2 }
 0x265   : > { %v2548_v14 = vadd.f32 %v2532_v55, %v2498_v7  ;;  %v2037_v0 = vadd.f32 %v4360_v53, %v2036_v54  ;;  %v2332_v55 = vmul.f32 %v4402_v4, %v2564_v18 }
 0x266   : > { %v2617_v40 = vadd.f32 %v4459_v12, %v2597_v8 }
 0x267   : > { %v2598_v30 = vadd.f32 %v2582_v23, %v2548_v14  ;;  %v2097_v48 = vmax.f32 %v2037_v0, 0.0 }
 0x268   : > { %v2633_v2 = vmax.f32 %v2617_v40, 0.0  ;;  %v1840_v42 = vpop.f32.mrf.mxu3  ;;  %v2363_v21 = vld [vmem:[#allocation3 + $0xe7] sm:$0xff] }
 0x269   : > { %v2618_v17 = vadd.f32 %v4459_v12, %v2598_v30  ;;  %2169 = vst [vmem:[#allocation3 + $0xf0] sm:$0xff] %v2097_v48  ;;  %v1874_v63 = vadd.f32 %v1840_v42, %v4277_v50  ;;  %v2247_v50 = vadd.f32 %v2231_v24, %v2197_v51  ;;  %v2198_v9 = vmul.f32 %v4382_v22, %v2097_v48 }
 0x26a   : > { %v2714_v41 = vsel %vm4472_vm4, %v2633_v2, 0.0  ;;  %v2381_v39 = vmul.f32 %v4410_v49, %v2363_v21 }
 0x26b   : > { %v2729_v61 = vadd.f32 %v4543_v6, %v2714_v41  ;;  %v2634_v43 = vmax.f32 %v2618_v17, 0.0  ;;  %v1910_v19 = vadd.f32 %v4298_v25, %v1874_v63  ;;  %v2281_v25 = vmul.f32 %v4395_v45, %v4547_v37 }
 0x26c   : > { %v2039_v47 = vpop.f32.mrf.mxu2  ;;  %v2248_v33 = vadd.f32 %v2232_v36, %v2198_v9 }
 0x26d   : > { %v3019_v11 = vpack.c.bf16 %v2634_v43, %v2633_v2  ;;  %v2715_v1 = vsel %vm4476_vm5, %v2634_v43, 0.0  ;;  %v2040_v3 = vadd.f32 %v4360_v53, %v2039_v47  ;;  %v1930_v6 = vpack.c.bf16 %v1910_v19, %v1909_v27 }
 0x26e   : > { %v2730_v58 = vadd.f32 %v2729_v61, %v2715_v1  ;;  %v2297_v16 = vadd.f32 %v2281_v25, %v2247_v50  ;;  %v2298_v57 = vadd.f32 %v2282_v20, %v2248_v33 }
 0x26f   : > { %3062 = vst [vmem:[%s4484_s18 + $0x10] sm:$0xff] %v3019_v11   ;;  %v4597_v38 = vmax.f32 %v2040_v3, 0.0  ;;  %2923 = vmatmul.msk.bf16.gmra.mxu3 %vm488_vm0, %v1930_v6 }
 0x270   : > { %v2413_v35 = vld [vmem:[#allocation3 + $0xe9] sm:$0xff]  ;;  %v2347_v37 = vadd.f32 %v2331_v52, %v2297_v16  ;;  %v2348_v54 = vadd.f32 %v2332_v55, %v2298_v57  ;;  %v2414_v46 = vld [vmem:[#allocation3 + $0xf1] sm:$0xff] }
 0x271   : > { %2170 = vst [vmem:[#allocation3 + $0x108] sm:$0xff] %v4597_v38  ;;  %v2364_v34 = vld [vmem:[#allocation3 + $0xef] sm:$0xff]  ;;  %v2431_v10 = vmul.f32 %v4419_v44, %v2413_v35  ;;  %v2432_v2 = vmul.f32 %v4419_v44, %v2414_v46  ;;  %v2533_v48 = vmul.f32 %v4442_v56, %v4597_v38 }
 0x272   : > { %v2397_v7 = vadd.f32 %v2381_v39, %v2347_v37  ;;  %v2382_v8 = vmul.f32 %v4410_v49, %v2364_v34 }
 0x274   : > { %v2041_v26 = vpop.f32.mrf.mxu2  ;;  %v2447_v14 = vadd.f32 %v2431_v10, %v2397_v7  ;;  %v2398_v40 = vadd.f32 %v2382_v8, %v2348_v54 }
 0x275   : > { %v2042_v60 = vadd.f32 %v4360_v53, %v2041_v26 }
 0x276   : > { %v2448_v17 = vadd.f32 %v2432_v2, %v2398_v40 }
 0x277   : > { %v2099_v13 = vmax.f32 %v2042_v60, 0.0 }
 0x278   : > { %v2464_v5 = vld [vmem:[#allocation3 + $0x107] sm:$0xff] }
 0x279   : > { %v2483_v32 = vmul.f32 %v4427_v28, %v2464_v5  ;;  %2171 = vst [vmem:[#allocation3 + $0x110] sm:$0xff] %v2099_v13  ;;  %v2534_v27 = vmul.f32 %v4442_v56, %v2099_v13  ;;  %v2233_v39 = vmul.f32 %v4387_v62, %v2464_v5  ;;  %v2284_v46 = vmul.f32 %v4395_v45, %v2099_v13 }
 0x27b   : > { %v2499_v0 = vadd.f32 %v2483_v32, %v2447_v14 }
 0x27c   : > { %v2044_v23 = vpop.f32.mrf.mxu2 }
 0x27d   : > { %v2045_v30 = vadd.f32 %v4360_v53, %v2044_v23  ;;  %v2549_v41 = vadd.f32 %v2533_v48, %v2499_v0 }
 0x27f   : > { %v2100_v29 = vmax.f32 %v2045_v30, 0.0 }
 0x280   : > { %v2465_v18 = vld [vmem:[#allocation3 + $0x10f] sm:$0xff] }
 0x281   : > { %v2565_v42 = vld [vmem:[#allocation3 + $0x109] sm:$0xff]  ;;  %v2484_v61 = vmul.f32 %v4427_v28, %v2465_v18  ;;  %2172 = vst [vmem:[#allocation3 + $0x128] sm:$0xff] %v2100_v29  ;;  %v2566_v43 = vld [vmem:[#allocation3 + $0x111] sm:$0xff]  ;;  %v2199_v33 = vmul.f32 %v4382_v22, %v2100_v29  ;;  %v2234_v10 = vmul.f32 %v4387_v62, %v2465_v18 }
 0x282   : > { %v2583_v63 = vmul.f32 %v4447_v31, %v2565_v42  ;;  %v2584_v1 = vmul.f32 %v4447_v31, %v2566_v43  ;;  %v2333_v54 = vmul.f32 %v4402_v4, %v2565_v42  ;;  %v2334_v18 = vmul.f32 %v4402_v4, %v2566_v43 }
 0x283   : > { %v2500_v51 = vadd.f32 %v2484_v61, %v2448_v17  ;;  %v2249_v34 = vadd.f32 %v2233_v39, %v2199_v33 }
 0x284   : > { %v2599_v19 = vadd.f32 %v2583_v63, %v2549_v41  ;;  %v2046_v47 = vpop.f32.mrf.mxu2 }
 0x285   : > { %v2550_v11 = vadd.f32 %v2534_v27, %v2500_v51  ;;  %v2047_v3 = vadd.f32 %v4360_v53, %v2046_v47 }
 0x286   : > { %v2619_v24 = vadd.f32 %v4459_v12, %v2599_v19 }
 0x287   : > { %v2600_v6 = vadd.f32 %v2584_v1, %v2550_v11  ;;  %v2101_v9 = vmax.f32 %v2047_v3, 0.0 }
 0x288   : > { %v2635_v50 = vmax.f32 %v2619_v24, 0.0  ;;  %v2365_v7 = vld [vmem:[#allocation3 + $0x127] sm:$0xff] }
 0x289   : > { %v2620_v25 = vadd.f32 %v4459_v12, %v2600_v6  ;;  %2173 = vst [vmem:[#allocation3 + $0x130] sm:$0xff] %v2101_v9  ;;  %v2200_v37 = vmul.f32 %v4382_v22, %v2101_v9  ;;  %v2383_v14 = vmul.f32 %v4410_v49, %v2365_v7 }
 0x28a   : > { %v2716_v36 = vsel %vm4472_vm4, %v2635_v50, 0.0 }
 0x28b   : > { %v2731_v21 = vadd.f32 %v2730_v58, %v2716_v36  ;;  %v2636_v16 = vmax.f32 %v2620_v25, 0.0  ;;  %v2283_v58 = vmul.f32 %v4395_v45, %v4597_v38  ;;  %v2250_v8 = vadd.f32 %v2234_v10, %v2200_v37 }
 0x28c   : > { %v2049_v35 = vpop.f32.mrf.mxu2 }
 0x28d   : > { %v3024_v26 = vpack.c.bf16 %v2636_v16, %v2635_v50  ;;  %v2717_v52 = vsel %vm4476_vm5, %v2636_v16, 0.0  ;;  %v2050_v20 = vadd.f32 %v4360_v53, %v2049_v35  ;;  %v2299_v55 = vadd.f32 %v2283_v58, %v2249_v34 }
 0x28e   : > { %v2732_v60 = vadd.f32 %v2731_v21, %v2717_v52  ;;  %v2300_v38 = vadd.f32 %v2284_v46, %v2250_v8 }
 0x28f   : > { %3063 = vst [vmem:[%s4484_s18 + $0x18] sm:$0xff] %v3024_v26   ;;  %v4633_v57 = vmax.f32 %v2050_v20, 0.0  ;;  %v2349_v0 = vadd.f32 %v2333_v54, %v2299_v55 }
 0x290   : > { %v2415_v5 = vld [vmem:[#allocation3 + $0x129] sm:$0xff]  ;;  %v2350_v41 = vadd.f32 %v2334_v18, %v2300_v38  ;;  %v2416_v13 = vld [vmem:[#allocation3 + $0x131] sm:$0xff] }
 0x291   : > { %2174 = vst [vmem:[#allocation3 + $0x148] sm:$0xff] %v4633_v57  ;;  %v2366_v40 = vld [vmem:[#allocation3 + $0x12f] sm:$0xff]  ;;  %v2433_v30 = vmul.f32 %v4419_v44, %v2415_v5  ;;  %v2399_v29 = vadd.f32 %v2383_v14, %v2349_v0  ;;  %v2434_v47 = vmul.f32 %v4419_v44, %v2416_v13  ;;  %v2535_v11 = vmul.f32 %v4442_v56, %v4633_v57 }
 0x292   : > { %v2384_v17 = vmul.f32 %v4410_v49, %v2366_v40 }
 0x293   : > { %v2449_v61 = vadd.f32 %v2433_v30, %v2399_v29 }
 0x294   : > { %v2051_v32 = vpop.f32.mrf.mxu2  ;;  %v2400_v51 = vadd.f32 %v2384_v17, %v2350_v41 }
 0x295   : > { %v2052_v23 = vadd.f32 %v4360_v53, %v2051_v32 }
 0x296   : > { %v2450_v3 = vadd.f32 %v2434_v47, %v2400_v51 }
 0x297   : > { %v2103_v2 = vmax.f32 %v2052_v23, 0.0 }
 0x298   : > { %v2466_v48 = vld [vmem:[#allocation3 + $0x147] sm:$0xff] }
 0x299   : > { %v2485_v42 = vmul.f32 %v4427_v28, %v2466_v48  ;;  %2175 = vst [vmem:[#allocation3 + $0x150] sm:$0xff] %v2103_v2  ;;  %v2536_v21 = vmul.f32 %v4442_v56, %v2103_v2  ;;  %v2235_v14 = vmul.f32 %v4387_v62, %v2466_v48  ;;  %v2286_v13 = vmul.f32 %v4395_v45, %v2103_v2 }
 0x29b   : > { %v2501_v27 = vadd.f32 %v2485_v42, %v2449_v61 }
 0x29c   : > { %v2054_v63 = vpop.f32.mrf.mxu2 }
 0x29d   : > { %v2055_v19 = vadd.f32 %v4360_v53, %v2054_v63  ;;  %v2551_v6 = vadd.f32 %v2535_v11, %v2501_v27 }
 0x29f   : > { %v2104_v1 = vmax.f32 %v2055_v19, 0.0 }
 0x2a0   : > { %v2467_v43 = vld [vmem:[#allocation3 + $0x14f] sm:$0xff] }
 0x2a1   : > { %v2567_v24 = vld [vmem:[#allocation3 + $0x149] sm:$0xff]  ;;  %v2486_v50 = vmul.f32 %v4427_v28, %v2467_v43  ;;  %2176 = vst [vmem:[#allocation3 + $0x168] sm:$0xff] %v2104_v1  ;;  %v2568_v25 = vld [vmem:[#allocation3 + $0x151] sm:$0xff]  ;;  %v2201_v8 = vmul.f32 %v4382_v22, %v2104_v1  ;;  %v2236_v30 = vmul.f32 %v4387_v62, %v2467_v43 }
 0x2a2   : > { %v2585_v9 = vmul.f32 %v4447_v31, %v2567_v24  ;;  %v2586_v26 = vmul.f32 %v4447_v31, %v2568_v25  ;;  %v2335_v41 = vmul.f32 %v4402_v4, %v2567_v24  ;;  %v2336_v43 = vmul.f32 %v4402_v4, %v2568_v25 }
 0x2a3   : > { %v2502_v36 = vadd.f32 %v2486_v50, %v2450_v3  ;;  %v2251_v40 = vadd.f32 %v2235_v14, %v2201_v8 }
 0x2a4   : > { %v2601_v16 = vadd.f32 %v2585_v9, %v2551_v6  ;;  %v2056_v33 = vpop.f32.mrf.mxu2 }
 0x2a5   : > { %v2552_v35 = vadd.f32 %v2536_v21, %v2502_v36  ;;  %v2057_v39 = vadd.f32 %v4360_v53, %v2056_v33 }
 0x2a6   : > { %v2621_v52 = vadd.f32 %v4459_v12, %v2601_v16 }
 0x2a7   : > { %v2602_v20 = vadd.f32 %v2586_v26, %v2552_v35  ;;  %v2105_v37 = vmax.f32 %v2057_v39, 0.0 }
 0x2a8   : > { %v2637_v34 = vmax.f32 %v2621_v52, 0.0  ;;  %v2367_v29 = vld [vmem:[#allocation3 + $0x167] sm:$0xff] }
 0x2a9   : > { %v2622_v58 = vadd.f32 %v4459_v12, %v2602_v20  ;;  %2177 = vst [vmem:[#allocation3 + $0x170] sm:$0xff] %v2105_v37  ;;  %v2202_v0 = vmul.f32 %v4382_v22, %v2105_v37  ;;  %v2385_v61 = vmul.f32 %v4410_v49, %v2367_v29 }
 0x2aa   : > { %v2718_v10 = vsel %vm4472_vm4, %v2637_v34, 0.0 }
 0x2ab   : > { %v2733_v7 = vadd.f32 %v2732_v60, %v2718_v10  ;;  %v2638_v55 = vmax.f32 %v2622_v58, 0.0  ;;  %v2285_v60 = vmul.f32 %v4395_v45, %v4633_v57  ;;  %v2252_v17 = vadd.f32 %v2236_v30, %v2202_v0 }
 0x2ac   : > { %v2059_v5 = vpop.f32.mrf.mxu2 }
 0x2ad   : > { %v3029_v32 = vpack.c.bf16 %v2638_v55, %v2637_v34  ;;  %v2719_v54 = vsel %vm4476_vm5, %v2638_v55, 0.0  ;;  %v2060_v46 = vadd.f32 %v4360_v53, %v2059_v5  ;;  %v2301_v18 = vadd.f32 %v2285_v60, %v2251_v40 }
 0x2ae   : > { %v2734_v23 = vadd.f32 %v2733_v7, %v2719_v54  ;;  %v2302_v57 = vadd.f32 %v2286_v13, %v2252_v17 }
 0x2af   : > { %3064 = vst [vmem:[%s4484_s18 + $0x20] sm:$0xff] %v3029_v32   ;;  %v4667_v38 = vmax.f32 %v2060_v46, 0.0  ;;  %v2351_v27 = vadd.f32 %v2335_v41, %v2301_v18 }
 0x2b0   : > { %v2417_v48 = vld [vmem:[#allocation3 + $0x169] sm:$0xff]  ;;  %v2352_v2 = vadd.f32 %v2336_v43, %v2302_v57  ;;  %v2418_v50 = vld [vmem:[#allocation3 + $0x171] sm:$0xff] }
 0x2b1   : > { %2178 = vst [vmem:[#allocation3 + $0x188] sm:$0xff] %v4667_v38  ;;  %v2368_v51 = vld [vmem:[#allocation3 + $0x16f] sm:$0xff]  ;;  %v2435_v19 = vmul.f32 %v4419_v44, %v2417_v48  ;;  %v2401_v1 = vadd.f32 %v2385_v61, %v2351_v27  ;;  %v2436_v21 = vmul.f32 %v4419_v44, %v2418_v50  ;;  %v2537_v16 = vmul.f32 %v4442_v56, %v4667_v38 }
 0x2b2   : > { %v2386_v3 = vmul.f32 %v4410_v49, %v2368_v51  ;;  %v2287_v57 = vmul.f32 %v4395_v45, %v4667_v38 }
 0x2b3   : > { %v2451_v6 = vadd.f32 %v2435_v19, %v2401_v1 }
 0x2b4   : > { %v2061_v42 = vpop.f32.mrf.mxu2  ;;  %v2402_v9 = vadd.f32 %v2386_v3, %v2352_v2 }
 0x2b5   : > { %v2062_v63 = vadd.f32 %v4360_v53, %v2061_v42 }
 0x2b6   : > { %v2452_v26 = vadd.f32 %v2436_v21, %v2402_v9 }
 0x2b7   : > { %v4678_v47 = vmax.f32 %v2062_v63, 0.0  ;;  %v4708_v63 = vld [vmem:[%s4812_s8] ss:$0 sm:$0xff] }
 0x2b8   : > { %v2468_v11 = vld [vmem:[#allocation3 + $0x187] sm:$0xff] }
 0x2b9   : > { %v2487_v24 = vmul.f32 %v4427_v28, %v2468_v11  ;;  %2179 = vst [vmem:[#allocation3 + $0x190] sm:$0xff] %v4678_v47  ;;  %v2538_v58 = vmul.f32 %v4442_v56, %v4678_v47  ;;  %v2237_v13 = vmul.f32 %v4387_v62, %v2468_v11 }
 0x2bb   : > { %v2503_v36 = vadd.f32 %v2487_v24, %v2451_v6 }
 0x2bd   : > { %v2553_v25 = vadd.f32 %v2537_v16, %v2503_v36 }
 0x2c0   : > { %v2469_v33 = vld [vmem:[#allocation3 + $0x18f] sm:$0xff] }
 0x2c1   : > { %v2569_v35 = vld [vmem:[#allocation3 + $0x189] sm:$0xff]  ;;  %v2488_v52 = vmul.f32 %v4427_v28, %v2469_v33  ;;  %v2570_v20 = vld [vmem:[#allocation3 + $0x191] sm:$0xff]  ;;  %v2238_v19 = vmul.f32 %v4387_v62, %v2469_v33 }
 0x2c2   : > { %v2587_v39 = vmul.f32 %v4447_v31, %v2569_v35  ;;  %v2064_v34 = vpop.f32.mrf.mxu2  ;;  %v2588_v8 = vmul.f32 %v4447_v31, %v2570_v20  ;;  %v2337_v2 = vmul.f32 %v4402_v4, %v2569_v35 }
 0x2c3   : > { %v2504_v37 = vadd.f32 %v2488_v52, %v2452_v26  ;;  %v2065_v7 = vadd.f32 %v4360_v53, %v2064_v34  ;;  %v2338_v26 = vmul.f32 %v4402_v4, %v2570_v20 }
 0x2c4   : > { %v2603_v10 = vadd.f32 %v2587_v39, %v2553_v25 }
 0x2c5   : > { %v2554_v55 = vadd.f32 %v2538_v58, %v2504_v37  ;;  %v2108_v32 = vmax.f32 %v2065_v7, 0.0 }
 0x2c6   : > { %v2623_v5 = vadd.f32 %v4459_v12, %v2603_v10 }
 0x2c7   : > { %v2604_v54 = vadd.f32 %v2588_v8, %v2554_v55  ;;  %2180 = vst [vmem:[#allocation3 + $0x1a8] sm:$0xff] %v2108_v32  ;;  %v2203_v41 = vmul.f32 %v4382_v22, %v2108_v32 }
 0x2c8   : > { %v2639_v14 = vmax.f32 %v2623_v5, 0.0 }
 0x2c9   : > { %v2624_v46 = vadd.f32 %v4459_v12, %v2604_v54 }
 0x2ca   : > { %v2720_v40 = vsel %vm4472_vm4, %v2639_v14, 0.0  ;;  %v2066_v0 = vpop.f32.mrf.mxu2 }
 0x2cb   : > { %v2640_v60 = vmax.f32 %v2624_v46, 0.0  ;;  %v2067_v30 = vadd.f32 %v4360_v53, %v2066_v0  ;;  %v2735_v29 = vadd.f32 %v2734_v23, %v2720_v40  ;;  %v2253_v23 = vadd.f32 %v2237_v13, %v2203_v41 }
 0x2cd   : > { %v3034_v18 = vpack.c.bf16 %v2640_v60, %v2639_v14  ;;  %v2721_v17 = vsel %vm4476_vm5, %v2640_v60, 0.0  ;;  %v2109_v48 = vmax.f32 %v2067_v30, 0.0  ;;  %v2303_v1 = vadd.f32 %v2287_v57, %v2253_v23 }
 0x2ce   : > { %v4700_v42 = vadd.f32 %v2735_v29, %v2721_v17  ;;  %v2369_v11 = vld [vmem:[#allocation3 + $0x1a7] sm:$0xff] }
 0x2cf   : > { %3065 = vst [vmem:[%s4484_s18 + $0x28] sm:$0xff] %v3034_v18   ;;  %v2204_v51 = vmul.f32 %v4382_v22, %v2109_v48  ;;  %v2387_v6 = vmul.f32 %v4410_v49, %v2369_v11  ;;  %v2288_v22 = vmul.f32 %v4395_v45, %v4678_v47  ;;  %v2353_v38 = vadd.f32 %v2337_v2, %v2303_v1  ;;  %v3123_v11 = vld [vmem:[%s4813_s9 + $0x1] ss:$0 sm:$0xff] }
 0x2d0   : > { %2181 = vst [vmem:[#allocation3 + $0x1b0] sm:$0xff] %v2109_v48 }
 0x2d1   : > { %v2254_v43 = vadd.f32 %v2238_v19, %v2204_v51  ;;  %v2403_v33 = vadd.f32 %v2387_v6, %v2353_v38  ;;  %v3125_v38 = vld [vmem:[%s4813_s9 + $0x4] ss:$0 sm:$0xff] }
 0x2d2   : > { %v2069_v61 = vpop.f32.mrf.mxu3 }
 0x2d3   : > { %v2070_v53 = vadd.f32 %v4708_v63, %v2069_v61  ;;  %v2304_v36 = vadd.f32 %v2288_v22, %v2254_v43 }
 0x2d5   : > { %v4712_v27 = vmax.f32 %v2070_v53, 0.0  ;;  %v2354_v45 = vadd.f32 %v2338_v26, %v2304_v36  ;;  %v3122_v53 = vld [vmem:[%s4813_s9] ss:$0 sm:$0xff] }
 0x2d7   : > { %2182 = vst [vmem:[#allocation3 + $0x1c8] sm:$0xff] %v4712_v27  ;;  %v2419_v3 = vld [vmem:[#allocation3 + $0x1a9] sm:$0xff]  ;;  %v2420_v52 = vld [vmem:[#allocation3 + $0x1b1] sm:$0xff]  ;;  %v2539_v7 = vmul.f32 %v4442_v56, %v4712_v27  ;;  %v2289_v1 = vmul.f32 %v3123_v11, %v4712_v27 }
 0x2d8   : > { %v2370_v9 = vld [vmem:[#allocation3 + $0x1af] sm:$0xff]  ;;  %v2437_v62 = vmul.f32 %v4419_v44, %v2419_v3  ;;  %v2438_v10 = vmul.f32 %v4419_v44, %v2420_v52 }
 0x2d9   : > { %v2388_v35 = vmul.f32 %v4410_v49, %v2370_v9 }
 0x2da   : > { %v2071_v24 = vpop.f32.mrf.mxu3  ;;  %v2453_v47 = vadd.f32 %v2437_v62, %v2403_v33 }
 0x2db   : > { %v2072_v50 = vadd.f32 %v4708_v63, %v2071_v24  ;;  %v2404_v34 = vadd.f32 %v2388_v35, %v2354_v45  ;;  %v3126_v35 = vld [vmem:[%s4813_s9 + $0x6] ss:$0 sm:$0xff] }
 0x2dd   : > { %v4724_v21 = vmax.f32 %v2072_v50, 0.0  ;;  %v2454_v55 = vadd.f32 %v2438_v10, %v2404_v34  ;;  %v3124_v50 = vld [vmem:[%s4813_s9 + $0x2] ss:$0 sm:$0xff] }
 0x2de   : > { %v2470_v16 = vld [vmem:[#allocation3 + $0x1c7] sm:$0xff] }
 0x2df   : > { %v2489_v25 = vmul.f32 %v4427_v28, %v2470_v16  ;;  %2183 = vst [vmem:[#allocation3 + $0x1d0] sm:$0xff] %v4724_v21  ;;  %v2540_v46 = vmul.f32 %v4442_v56, %v4724_v21  ;;  %v2290_v62 = vmul.f32 %v3123_v11, %v4724_v21 }
 0x2e1   : > { %v2505_v37 = vadd.f32 %v2489_v25, %v2453_v47 }
 0x2e2   : > { %v2074_v39 = vpop.f32.mrf.mxu3 }
 0x2e3   : > { %v2075_v58 = vadd.f32 %v4708_v63, %v2074_v39  ;;  %v2555_v8 = vadd.f32 %v2539_v7, %v2505_v37  ;;  %v3127_v37 = vld [vmem:[%s4813_s9 + $0x8] ss:$0 sm:$0xff] }
 0x2e5   : > { %v2112_v4 = vmax.f32 %v2075_v58, 0.0 }
 0x2e6   : > { %v2471_v20 = vld [vmem:[#allocation3 + $0x1cf] sm:$0xff] }
 0x2e7   : > { %v2571_v49 = vld [vmem:[#allocation3 + $0x1c9] sm:$0xff]  ;;  %v2490_v5 = vmul.f32 %v4427_v28, %v2471_v20  ;;  %2184 = vst [vmem:[#allocation3 + $0x1e8] sm:$0xff] %v2112_v4  ;;  %v2572_v54 = vld [vmem:[#allocation3 + $0x1d1] sm:$0xff]  ;;  %v2240_v43 = vmul.f32 %v3122_v53, %v2471_v20 }
 0x2e8   : > { %v2589_v32 = vmul.f32 %v4447_v31, %v2571_v49  ;;  %v2590_v60 = vmul.f32 %v4447_v31, %v2572_v54  ;;  %v3121_v31 = vld [vmem:[%s4813_s9 + $0x5] ss:$0 sm:$0xff]  ;;  %v2339_v9 = vmul.f32 %v3124_v50, %v2571_v49  ;;  %v2340_v39 = vmul.f32 %v3124_v50, %v2572_v54  ;;  %v3128_v49 = vld [vmem:[%s4813_s9 + $0x9] ss:$0 sm:$0xff] }
 0x2e9   : > { %v2506_v14 = vadd.f32 %v2490_v5, %v2454_v55  ;;  %v2205_v41 = vmul.f32 %v3121_v31, %v2112_v4 }
 0x2ea   : > { %v2605_v40 = vadd.f32 %v2589_v32, %v2555_v8  ;;  %v2076_v44 = vpop.f32.mrf.mxu3 }
 0x2eb   : > { %v2556_v0 = vadd.f32 %v2540_v46, %v2506_v14  ;;  %v2077_v30 = vadd.f32 %v4708_v63, %v2076_v44  ;;  %v3129_v46 = vld [vmem:[%s4813_s9 + $0xa] ss:$0 sm:$0xff] }
 0x2ec   : > { %v4741_v18 = vadd.f32 %v4459_v12, %v2605_v40 }
 0x2ed   : > { %v2606_v29 = vadd.f32 %v2590_v60, %v2556_v0  ;;  %v2113_v28 = vmax.f32 %v2077_v30, 0.0 }
 0x2ee   : > { %v2641_v48 = vmax.f32 %v4741_v18, 0.0  ;;  %v2371_v3 = vld [vmem:[#allocation3 + $0x1e7] sm:$0xff] }
 0x2ef   : > { %v4744_v17 = vadd.f32 %v4459_v12, %v2606_v29  ;;  %2185 = vst [vmem:[#allocation3 + $0x1f0] sm:$0xff] %v2113_v28  ;;  %v2239_v12 = vmul.f32 %v3122_v53, %v2470_v16  ;;  %v2206_v57 = vmul.f32 %v3121_v31, %v2113_v28  ;;  %v2389_v36 = vmul.f32 %v3125_v38, %v2371_v3  ;;  %v3130_v31 = vld [vmem:[%s4814_s10] ss:$0 sm:$0xff] }
 0x2f0   : > { %v2722_v29 = vsel %vm4472_vm4, %v2641_v48, 0.0 }
 0x2f1   : > { %v2642_v56 = vmax.f32 %v4744_v17, 0.0  ;;  %v2255_v51 = vadd.f32 %v2239_v12, %v2205_v41  ;;  %v2256_v2 = vadd.f32 %v2240_v43, %v2206_v57  ;;  %v2737_v12 = vadd.f32 %v4700_v42, %v2722_v29 }
 0x2f2   : > { %v2079_v61 = vpop.f32.mrf.mxu3 }
 0x2f3   : > { %v3039_v13 = vpack.c.bf16 %v2642_v56, %v2641_v48  ;;  %v2080_v23 = vadd.f32 %v4708_v63, %v2079_v61  ;;  %v2305_v24 = vadd.f32 %v2289_v1, %v2255_v51  ;;  %v2306_v26 = vadd.f32 %v2290_v62, %v2256_v2 }
 0x2f4   : > { %v2723_v61 = vsel %vm4476_vm5, %v2642_v56, 0.0 }
 0x2f5   : > { %3066 = vst [vmem:[%s4484_s18 + $0x30] sm:$0xff] %v3039_v13   ;;  %v2114_v19 = vmax.f32 %v2080_v23, 0.0  ;;  %v2355_v33 = vadd.f32 %v2339_v9, %v2305_v24  ;;  %v2738_v51 = vadd.f32 %v2737_v12, %v2723_v61 }
 0x2f6   : > { %v2421_v6 = vld [vmem:[#allocation3 + $0x1e9] sm:$0xff]  ;;  %v2422_v10 = vld [vmem:[#allocation3 + $0x1f1] sm:$0xff] }
 0x2f7   : > { %2186 = vst [vmem:[#allocation3 + $0x208] sm:$0xff] %v2114_v19  ;;  %v2372_v16 = vld [vmem:[#allocation3 + $0x1ef] sm:$0xff]  ;;  %v2439_v25 = vmul.f32 %v3126_v35, %v2421_v6  ;;  %v2405_v52 = vadd.f32 %v2389_v36, %v2355_v33  ;;  %v2440_v20 = vmul.f32 %v3126_v35, %v2422_v10  ;;  %v2541_v55 = vmul.f32 %v3128_v49, %v2114_v19 }
 0x2f8   : > { %v2390_v34 = vmul.f32 %v3125_v38, %v2372_v16 }
 0x2f9   : > { %v2455_v58 = vadd.f32 %v2439_v25, %v2405_v52 }
 0x2fa   : > { %v2081_v22 = vpop.f32.mrf.mxu3 }
 0x2fb   : > { %v2082_v27 = vadd.f32 %v4708_v63, %v2081_v22  ;;  %v2356_v63 = vadd.f32 %v2340_v39, %v2306_v26 }
 0x2fd   : > { %v2115_v45 = vmax.f32 %v2082_v27, 0.0  ;;  %v2406_v7 = vadd.f32 %v2390_v34, %v2356_v63 }
 0x2fe   : > { %v2472_v47 = vld [vmem:[#allocation3 + $0x207] sm:$0xff] }
 0x2ff   : > { %v2491_v21 = vmul.f32 %v3127_v37, %v2472_v47  ;;  %2187 = vst [vmem:[#allocation3 + $0x210] sm:$0xff] %v2115_v45  ;;  %v2456_v32 = vadd.f32 %v2440_v20, %v2406_v7  ;;  %v2542_v60 = vmul.f32 %v3128_v49, %v2115_v45 }
 0x301   : > { %v2507_v4 = vadd.f32 %v2491_v21, %v2455_v58 }
 0x303   : > { %v2557_v54 = vadd.f32 %v2541_v55, %v2507_v4 }
 0x306   : > { %v2473_v8 = vld [vmem:[#allocation3 + $0x20f] sm:$0xff] }
 0x307   : > { %v2573_v5 = vld [vmem:[#allocation3 + $0x209] sm:$0xff]  ;;  %v2492_v14 = vmul.f32 %v3127_v37, %v2473_v8  ;;  %v2574_v44 = vld [vmem:[#allocation3 + $0x211] sm:$0xff] }
 0x308   : > { %v2591_v40 = vmul.f32 %v3129_v46, %v2573_v5  ;;  %v2592_v28 = vmul.f32 %v3129_v46, %v2574_v44 }
 0x309   : > { %v2508_v0 = vadd.f32 %v2492_v14, %v2456_v32 }
 0x30a   : > { %v2607_v30 = vadd.f32 %v2591_v40, %v2557_v54 }
 0x30b   : > { %v2558_v18 = vadd.f32 %v2542_v60, %v2508_v0 }
 0x30c   : > { %v2627_v41 = vadd.f32 %v3130_v31, %v2607_v30 }
 0x30d   : > { %v2608_v13 = vadd.f32 %v2592_v28, %v2558_v18 }
 0x30e   : > { %v2643_v53 = vmax.f32 %v2627_v41, 0.0 }
 0x30f   : > { %v2628_v23 = vadd.f32 %v3130_v31, %v2608_v13 }
 0x310   : > { %v2724_v48 = vsel %vm4472_vm4, %v2643_v53, 0.0 }
 0x311   : > { %v2644_v57 = vmax.f32 %v2628_v23, 0.0  ;;  %v2739_v19 = vadd.f32 %v2738_v51, %v2724_v48 }
 0x313   : > { %v3044_v11 = vpack.c.bf16 %v2644_v57, %v2643_v53  ;;  %v2725_v1 = vsel %vm4476_vm5, %v2644_v57, 0.0 }
 0x314   : > { %v2740_v17 = vadd.f32 %v2739_v19, %v2725_v1 }
 0x315   : > { %3067 = vst [vmem:[%s4484_s18 + $0x38] sm:$0xff] %v3044_v11  }
 0x316   : > { %v2741_v43 = vrot.slane %v2740_v17, 4 }
 0x318   : > { %v2742_v56 = vadd.f32 %v2741_v43, %v2740_v17 }
 0x31a   : > { %v2743_v3 = vrot.slane %v2742_v56, 2 }
 0x31c   : > { %v2744_v24 = vadd.f32 %v2743_v3, %v2742_v56 }
 0x31e   : > { %v2745_v2 = vrot.slane %v2744_v24, 1 }
 0x320   : > { %v2746_v42 = vadd.f32 %v2745_v2, %v2744_v24 }
 0x322   : > { %v2747_v59 = vmul.f32 0.015625, %v2746_v42 }
 0x324   : > { %2748 = vst [vmem:[%s422_s30] sm:$0x1] %v2747_v59 }
 0x325 PF: > { %s23_s21 = sadd.s32 1, %s3137_s21  }
 0x326   : > { %p20_p4 = scmp.ge.s32.totalorder %s23_s21, 4  }
 0x328   :  { %22 = sbr.rel (!%p20_p4) target bundleno = 1 (0x1), region = 116 }

</bundles_post_ra>
